<compile_context>
chip_gen: v7x
topology: tpu7x:2x2x1
jax: 0.10.0
libtpu: 0.0.40
codegen_flags: <defaults>
</compile_context>

<pallas_src>
import jax
import jax.numpy as jnp
from jax.experimental import pallas as pl
from jax.experimental.pallas import tpu as pltpu

# ---------------------------------------------------------------------------------------
# Fixed geometry (28x28 input, 3x3 valid convs, 2x2/2 pool) in the flat "wide" layout.
# Row stride of every flat activation is the input width W0 = 28.
# ---------------------------------------------------------------------------------------
W0 = 28          # row stride of the wide layout
XPAD = 1024      # 8*128 padded flat input width  (784 valid pixels, zeros beyond)
L1 = 896         # 7*128 conv1 output slab width  (valid cols <= 725; reads x up to 953)
L2 = 768         # 6*128 conv2 output slab width  (valid cols <= 667; reads h1 up to 825)
LP = 640         # 5*128 pool-corner slab width   (corners at 56*ip+2*jp <= 638)
C1P = 16         # conv1 out-channels padded 10 -> 16 (sublane aligned)
C2P = 24         # conv2 out-channels padded 20 -> 24 (sublane aligned)
K2 = 9 * C1P     # 144: conv2 contraction length (9 taps x 16 padded in-channels)


# ---------------------------------------------------------------------------------------
# Fused, batch-blocked kernel: BLOCK_B images per grid step, everything VMEM-resident.
# ---------------------------------------------------------------------------------------
def shallow_fused_kernel(x_ref, w1_ref, b1_ref, w2_ref, b2_ref,
                         wl_ref, maskb_ref, sel_ref, fold_ref, bl_ref,
                         o_ref,
                         slab1_s, h1_s, slab2_s, h2_s, pooled_s):
    # x_ref    : (B, 1, 1024)   zero-padded flat images
    # w1_ref   : (16, 16)       conv1 weight, [out_ch_pad, tap_pad] (valid 10x9)
    # b1_ref   : (16, 1)
    # w2_ref   : (24, 144)      conv2 weight, col = 16*tap + in_ch (valid 20 x (9x10))
    # b2_ref   : (24, 1)
    # wl_ref   : (640, 200)     linear weight scattered to pool-corner rows, cols = c*10+n
    # maskb_ref: (B*24, 200)    per-row diagonal-channel selector (tiled over the batch)
    # sel_ref  : (B, B*24)      block-ones selector summing each image's 24 rows
    # fold_ref : (200, 10)      folds column groups (m % 10 == n)
    # bl_ref   : (1, 10)
    # o_ref    : (B, 10)
    bb = o_ref.shape[0]

    # Rows 9..15 of the conv1 tap-slab are never written below; keep them zero so the
    # (zero) weight columns always multiply finite data.  Re-done every grid step so the
    # kernel stays correct when the grid is split across TensorCores (megacore).
    slab1_s[9:C1P, :] = jnp.zeros((C1P - 9, L1), jnp.float32)

    def per_image(b, carry):
        # ---- conv1 (1 -> 10, 3x3 valid) + ReLU, on the MXU ---------------------------
        xrow = x_ref[b]                                            # (1, XPAD)
        for k in range(9):
            dy, dx = divmod(k, 3)
            off = dy * W0 + dx
            slab1_s[k:k + 1, :] = xrow[:, off:off + L1]
        h1_s[...] = jnp.maximum(
            jnp.dot(w1_ref[...], slab1_s[...],
                    preferred_element_type=jnp.float32) + b1_ref[...], 0.0)   # (16, L1)

        # ---- conv2 (10 -> 20, 3x3 valid) + ReLU: ONE K=144 MXU dot -------------------
        for k in range(9):
            dy, dx = divmod(k, 3)
            off = dy * W0 + dx
            slab2_s[C1P * k:C1P * (k + 1), :] = h1_s[:, off:off + L2]
        h2_s[...] = jnp.maximum(
            jnp.dot(w2_ref[...], slab2_s[...],
                    preferred_element_type=jnp.float32) + b2_ref[...], 0.0)   # (24, L2)

        # ---- 2x2 / stride-2 max-pool, kept at window-corner lanes -------------------
        pooled = jnp.maximum(
            jnp.maximum(h2_s[:, 0:LP], h2_s[:, 1:LP + 1]),
            jnp.maximum(h2_s[:, W0:W0 + LP], h2_s[:, W0 + 1:W0 + 1 + LP]))    # (24, LP)
        row0 = pl.multiple_of(b * C2P, 8)
        pooled_s[pl.ds(row0, C2P), :] = pooled
        return carry

    jax.lax.fori_loop(0, bb, per_image, 0)

    # ---- linear (2880 -> 10), vectorized over the whole batch block ------------------
    m1 = jnp.dot(pooled_s[...], wl_ref[...],
                 preferred_element_type=jnp.float32)               # (B*24, 200)
    m1 = m1 * maskb_ref[...]                                       # diag-channel select
    t = jnp.dot(sel_ref[...], m1,
                preferred_element_type=jnp.float32)                # (B, 200) per-image sum
    o_ref[...] = jnp.dot(t, fold_ref[...],
                         preferred_element_type=jnp.float32) + bl_ref[...]    # (B, 10)


# ---------------------------------------------------------------------------------------
# One-time parameter repacking (host side; not in the per-call hot path).
# ---------------------------------------------------------------------------------------
def pack_params(params, block_b=32):
    w1, b1, w2, b2, wl, bl = params
    f32 = jnp.float32

    # conv1: (16, 16): rows = out-channels (10 valid), cols = taps k = dy*3+dx (9 valid).
    w1p = jnp.zeros((C1P, C1P), f32).at[:10, :9].set(w1.reshape(10, 9).astype(f32))
    b1p = jnp.zeros((C1P, 1), f32).at[:10, 0].set(b1.astype(f32))

    # conv2: (24, 144): rows = out-channels (20 valid), cols = 16*tap + in-channel.
    w2k = jnp.transpose(w2, (2, 3, 0, 1)).reshape(9, 20, 10).astype(f32)   # [tap, out, in]
    w2p = jnp.zeros((C2P, 9, C1P), f32).at[:20, :, :10].set(jnp.transpose(w2k, (1, 0, 2)))
    w2p = w2p.reshape(C2P, K2)
    b2p = jnp.zeros((C2P, 1), f32).at[:20, 0].set(b2.astype(f32))

    # Scatter the linear weight to pool-corner rows of the wide layout:
    #   wlw[q, c*10 + n] = wl[n, c*144 + ip*12 + jp]   with q = 56*ip + 2*jp
    q_idx = (2 * W0 * jnp.arange(12)[:, None] + 2 * jnp.arange(12)[None, :]).reshape(144)
    vals = jnp.transpose(wl.reshape(10, 20, 144), (2, 1, 0)).reshape(144, 200).astype(f32)
    wlw = jnp.zeros((LP, 200), f32).at[q_idx, :].set(vals)

    # Head constants for a block of `block_b` images.
    mask24 = (jnp.arange(200)[None, :] // 10
              == jnp.arange(C2P)[:, None]).astype(f32)             # (24,200); rows 20..23 zero
    maskb = jnp.tile(mask24, (block_b, 1))                         # (B*24, 200)
    sel = (jnp.arange(block_b * C2P)[None, :] // C2P
           == jnp.arange(block_b)[:, None]).astype(f32)            # (B, B*24)
    fold = (jnp.arange(200)[:, None] % 10
            == jnp.arange(10)[None, :]).astype(f32)                # (200, 10)
    blr = bl.reshape(1, 10).astype(f32)
    return (w1p, b1p, w2p, b2p, wlw, maskb, sel, fold, blr)


# ---------------------------------------------------------------------------------------
# One-time input preprocessing (flatten + zero-pad lanes to 1024 + pad batch to B multiple)
# -- hoisted out of the per-call hot path per feedback.
# ---------------------------------------------------------------------------------------
def preprocess_input(x, block_b):
    n = x.shape[0]
    n_pad = ((n + block_b - 1) // block_b) * block_b
    xf = x.reshape(n, 1, 28 * 28).astype(jnp.float32)
    # The zero pad is load-bearing: garbage-but-finite tail lanes must stay finite.
    return jnp.pad(xf, ((0, n_pad - n), (0, 0), (0, XPAD - 28 * 28)))


# ---------------------------------------------------------------------------------------
# Forward wrapper: single pallas_call, grid over batch blocks.
# ---------------------------------------------------------------------------------------
@jax.jit
def shallow_forward_padded(x_pad, packed):
    """x_pad: (N_pad, 1, 1024) f32 (from preprocess_input). Returns logits (N_pad, 10)."""
    w1p, b1p, w2p, b2p, wlw, maskb, sel, fold, blr = packed
    bb = sel.shape[0]
    n_pad = x_pad.shape[0]
    assert n_pad % bb == 0, "batch must be padded to a multiple of the block size"

    out = pl.pallas_call(
        shallow_fused_kernel,
        out_shape=jax.ShapeDtypeStruct((n_pad, 10), jnp.float32),
        grid=(n_pad // bb,),
        in_specs=[
            pl.BlockSpec((bb, 1, XPAD), lambda i: (i, 0, 0)),    # images (per block)
            pl.BlockSpec((C1P, C1P), lambda i: (0, 0)),          # conv1 weight (resident)
            pl.BlockSpec((C1P, 1), lambda i: (0, 0)),
            pl.BlockSpec((C2P, K2), lambda i: (0, 0)),           # conv2 weight (resident)
            pl.BlockSpec((C2P, 1), lambda i: (0, 0)),
            pl.BlockSpec((LP, 200), lambda i: (0, 0)),           # scattered linear weight
            pl.BlockSpec((bb * C2P, 200), lambda i: (0, 0)),     # batched diag mask
            pl.BlockSpec((bb, bb * C2P), lambda i: (0, 0)),      # per-image row selector
            pl.BlockSpec((200, 10), lambda i: (0, 0)),           # fold matrix
            pl.BlockSpec((1, 10), lambda i: (0, 0)),             # linear bias
        ],
        out_specs=pl.BlockSpec((bb, 10), lambda i: (i, 0)),
        scratch_shapes=[
            pltpu.VMEM((C1P, L1), jnp.float32),        # conv1 tap slab
            pltpu.VMEM((C1P, L1), jnp.float32),        # h1
            pltpu.VMEM((K2, L2), jnp.float32),         # conv2 tap slab (9 x 16 rows)
            pltpu.VMEM((C2P, L2), jnp.float32),        # h2
            pltpu.VMEM((bb * C2P, LP), jnp.float32),   # stacked pooled slabs
        ],
        compiler_params=pltpu.CompilerParams(dimension_semantics=("parallel",)),
    )(x_pad, w1p, b1p, w2p, b2p, wlw, maskb, sel, fold, blr)
    return out


def shallow_model_forward(x, packed):
    """Convenience wrapper: raw NCHW (N,1,28,28) -> logits (N,10)."""
    bb = packed[6].shape[0]
    x_pad = preprocess_input(x, bb)
    return shallow_forward_padded(x_pad, packed)[: x.shape[0]]


# ---------------------------------------------------------------------------------------
# Plain-JAX reference (for correctness check)
# ---------------------------------------------------------------------------------------
def reference_forward(x, params):
    w1, b1, w2, b2, wl, bl = params

    def conv(h, w, b):
        y = jax.lax.conv_general_dilated(
            h, w, window_strides=(1, 1), padding="VALID",
            dimension_numbers=("NCHW", "OIHW", "NCHW"),
            precision=jax.lax.Precision.HIGHEST)
        return y + b.reshape(1, -1, 1, 1)

    h = jax.nn.relu(conv(x, w1, b1))
    h = jax.nn.relu(conv(h, w2, b2))
    h = jax.lax.reduce_window(h, -jnp.inf, jax.lax.max,
                              (1, 1, 2, 2), (1, 1, 2, 2), "VALID")
    h = h.reshape(h.shape[0], -1)
    return jnp.dot(h, wl.T, precision=jax.lax.Precision.HIGHEST) + bl


# ---------------------------------------------------------------------------------------
# Main
# ---------------------------------------------------------------------------------------
if __name__ == "__main__":
    key = jax.random.PRNGKey(0)
    k1, k2, k3, k4, k5, k6, kx = jax.random.split(key, 7)

    # Deterministic synthetic parameters (shapes from ShallowModel.__init__).
    w1 = jax.random.normal(k1, (10, 1, 3, 3), jnp.float32) * 0.30       # conv_1.weight
    b1 = jax.random.normal(k2, (10,), jnp.float32) * 0.10               # conv_1.bias
    w2 = jax.random.normal(k3, (20, 10, 3, 3), jnp.float32) * 0.10      # conv_2.weight
    b2 = jax.random.normal(k4, (20,), jnp.float32) * 0.10               # conv_2.bias
    wl = jax.random.normal(k5, (10, 20 * 12 * 12), jnp.float32) * 0.02  # linear.weight
    bl = jax.random.normal(k6, (10,), jnp.float32) * 0.10               # linear.bias
    params = (w1, b1, w2, b2, wl, bl)

    # Spatial size 28x28 is fixed by the linear layer (20*12*12 features); small batch.
    x = jax.random.normal(kx, (2, 1, 28, 28), jnp.float32)

    BLOCK_B = 32                                   # images per grid step (32-128 sweet spot)
    packed = pack_params(params, BLOCK_B)          # one-time weight repacking
    x_pad = preprocess_input(x, BLOCK_B)           # one-time input pad (hoisted off hot path)

    logits = shallow_forward_padded(x_pad, packed)[: x.shape[0]]
    logits = jax.block_until_ready(logits)

    ref = reference_forward(x, params)
    if not bool(jnp.allclose(logits, ref, rtol=1e-2, atol=1e-2)):
        raise AssertionError(
            f"Pallas output mismatch vs reference; max abs diff = "
            f"{float(jnp.max(jnp.abs(logits - ref)))}")

    print("KERNEL_OK")
</pallas_src>

<mosaic_0001>
module attributes {stable_mosaic.version = 11 : i64} {
  func.func @shallow_fused_kernel(%arg0: i32, %arg1: memref<32x1x1024xf32, #tpu.memory_space<vmem>>, %arg2: memref<16x16xf32, #tpu.memory_space<vmem>>, %arg3: memref<16x1xf32, #tpu.memory_space<vmem>>, %arg4: memref<24x144xf32, #tpu.memory_space<vmem>>, %arg5: memref<24x1xf32, #tpu.memory_space<vmem>>, %arg6: memref<640x200xf32, #tpu.memory_space<vmem>>, %arg7: memref<768x200xf32, #tpu.memory_space<vmem>>, %arg8: memref<32x768xf32, #tpu.memory_space<vmem>>, %arg9: memref<200x10xf32, #tpu.memory_space<vmem>>, %arg10: memref<1x10xf32, #tpu.memory_space<vmem>>, %arg11: memref<32x10xf32, #tpu.memory_space<vmem>>, %arg12: memref<16x896xf32, #tpu.memory_space<vmem>>, %arg13: memref<16x896xf32, #tpu.memory_space<vmem>>, %arg14: memref<144x768xf32, #tpu.memory_space<vmem>>, %arg15: memref<24x768xf32, #tpu.memory_space<vmem>>, %arg16: memref<768x640xf32, #tpu.memory_space<vmem>>) attributes {dimension_semantics = [#tpu.dimension_semantics<parallel>], iteration_bounds = array<i64: 1>, scalar_prefetch = 0 : i64, scratch_operands = 5 : i64, tpu.core_type = #tpu.core_type<tc>, window_params = [{transform_indices = @transform_0, window_bounds = array<i64: 32, 1, 1024>}, {pipeline_mode = #tpu.pipeline_mode<synchronous>, transform_indices = @transform_1, window_bounds = array<i64: 16, 16>}, {pipeline_mode = #tpu.pipeline_mode<synchronous>, transform_indices = @transform_2, window_bounds = array<i64: 16, 1>}, {pipeline_mode = #tpu.pipeline_mode<synchronous>, transform_indices = @transform_3, window_bounds = array<i64: 24, 144>}, {pipeline_mode = #tpu.pipeline_mode<synchronous>, transform_indices = @transform_4, window_bounds = array<i64: 24, 1>}, {pipeline_mode = #tpu.pipeline_mode<synchronous>, transform_indices = @transform_5, window_bounds = array<i64: 640, 200>}, {pipeline_mode = #tpu.pipeline_mode<synchronous>, transform_indices = @transform_6, window_bounds = array<i64: 768, 200>}, {pipeline_mode = #tpu.pipeline_mode<synchronous>, transform_indices = @transform_7, window_bounds = array<i64: 32, 768>}, {pipeline_mode = #tpu.pipeline_mode<synchronous>, transform_indices = @transform_8, window_bounds = array<i64: 200, 10>}, {pipeline_mode = #tpu.pipeline_mode<synchronous>, transform_indices = @transform_9, window_bounds = array<i64: 1, 10>}, {transform_indices = @transform_10, window_bounds = array<i64: 32, 10>}]} {
    %cst = arith.constant 0.000000e+00 : f32
    %0 = vector.broadcast %cst : f32 to vector<7x896xf32>
    %c9 = arith.constant 9 : index
    %c0 = arith.constant 0 : index
    %1 = vector.load %arg12[%c9, %c0] : memref<16x896xf32, #tpu.memory_space<vmem>>, vector<7x896xf32>
    tpu.vector_store %arg12[%c9, %c0], %0 {strides = array<i32>} : memref<16x896xf32, #tpu.memory_space<vmem>>, vector<7x896xf32>,
    %c0_i32 = arith.constant 0 : i32
    %c32_i32 = arith.constant 32 : i32
    %2 = arith.addi %c0_i32, %c32_i32 : i32
    %c1_i32 = arith.constant 1 : i32
    scf.for %arg17 = %c0_i32 to %2 step %c1_i32  : i32 {
      %16 = arith.index_cast %arg17 : i32 to index
      %c0_18 = arith.constant 0 : index
      %c0_19 = arith.constant 0 : index
      %17 = vector.load %arg1[%16, %c0_18, %c0_19] : memref<32x1x1024xf32, #tpu.memory_space<vmem>>, vector<1x1x1024xf32>
      %18 = vector.shape_cast %17 : vector<1x1x1024xf32> to vector<1x1024xf32>
      %19 = vector.extract_strided_slice %18 {offsets = [0, 0], sizes = [1, 896], strides = [1, 1]} : vector<1x1024xf32> to vector<1x896xf32>
      %c0_20 = arith.constant 0 : index
      %c0_21 = arith.constant 0 : index
      %20 = vector.load %arg12[%c0_20, %c0_21] : memref<16x896xf32, #tpu.memory_space<vmem>>, vector<1x896xf32>
      tpu.vector_store %arg12[%c0_20, %c0_21], %19 {strides = array<i32>} : memref<16x896xf32, #tpu.memory_space<vmem>>, vector<1x896xf32>,
      %21 = vector.extract_strided_slice %18 {offsets = [0, 1], sizes = [1, 896], strides = [1, 1]} : vector<1x1024xf32> to vector<1x896xf32>
      %c1 = arith.constant 1 : index
      %c0_22 = arith.constant 0 : index
      %22 = vector.load %arg12[%c1, %c0_22] : memref<16x896xf32, #tpu.memory_space<vmem>>, vector<1x896xf32>
      tpu.vector_store %arg12[%c1, %c0_22], %21 {strides = array<i32>} : memref<16x896xf32, #tpu.memory_space<vmem>>, vector<1x896xf32>,
      %23 = vector.extract_strided_slice %18 {offsets = [0, 2], sizes = [1, 896], strides = [1, 1]} : vector<1x1024xf32> to vector<1x896xf32>
      %c2 = arith.constant 2 : index
      %c0_23 = arith.constant 0 : index
      %24 = vector.load %arg12[%c2, %c0_23] : memref<16x896xf32, #tpu.memory_space<vmem>>, vector<1x896xf32>
      tpu.vector_store %arg12[%c2, %c0_23], %23 {strides = array<i32>} : memref<16x896xf32, #tpu.memory_space<vmem>>, vector<1x896xf32>,
      %25 = vector.extract_strided_slice %18 {offsets = [0, 28], sizes = [1, 896], strides = [1, 1]} : vector<1x1024xf32> to vector<1x896xf32>
      %c3 = arith.constant 3 : index
      %c0_24 = arith.constant 0 : index
      %26 = vector.load %arg12[%c3, %c0_24] : memref<16x896xf32, #tpu.memory_space<vmem>>, vector<1x896xf32>
      tpu.vector_store %arg12[%c3, %c0_24], %25 {strides = array<i32>} : memref<16x896xf32, #tpu.memory_space<vmem>>, vector<1x896xf32>,
      %27 = vector.extract_strided_slice %18 {offsets = [0, 29], sizes = [1, 896], strides = [1, 1]} : vector<1x1024xf32> to vector<1x896xf32>
      %c4 = arith.constant 4 : index
      %c0_25 = arith.constant 0 : index
      %28 = vector.load %arg12[%c4, %c0_25] : memref<16x896xf32, #tpu.memory_space<vmem>>, vector<1x896xf32>
      tpu.vector_store %arg12[%c4, %c0_25], %27 {strides = array<i32>} : memref<16x896xf32, #tpu.memory_space<vmem>>, vector<1x896xf32>,
      %29 = vector.extract_strided_slice %18 {offsets = [0, 30], sizes = [1, 896], strides = [1, 1]} : vector<1x1024xf32> to vector<1x896xf32>
      %c5 = arith.constant 5 : index
      %c0_26 = arith.constant 0 : index
      %30 = vector.load %arg12[%c5, %c0_26] : memref<16x896xf32, #tpu.memory_space<vmem>>, vector<1x896xf32>
      tpu.vector_store %arg12[%c5, %c0_26], %29 {strides = array<i32>} : memref<16x896xf32, #tpu.memory_space<vmem>>, vector<1x896xf32>,
      %31 = vector.extract_strided_slice %18 {offsets = [0, 56], sizes = [1, 896], strides = [1, 1]} : vector<1x1024xf32> to vector<1x896xf32>
      %c6 = arith.constant 6 : index
      %c0_27 = arith.constant 0 : index
      %32 = vector.load %arg12[%c6, %c0_27] : memref<16x896xf32, #tpu.memory_space<vmem>>, vector<1x896xf32>
      tpu.vector_store %arg12[%c6, %c0_27], %31 {strides = array<i32>} : memref<16x896xf32, #tpu.memory_space<vmem>>, vector<1x896xf32>,
      %33 = vector.extract_strided_slice %18 {offsets = [0, 57], sizes = [1, 896], strides = [1, 1]} : vector<1x1024xf32> to vector<1x896xf32>
      %c7 = arith.constant 7 : index
      %c0_28 = arith.constant 0 : index
      %34 = vector.load %arg12[%c7, %c0_28] : memref<16x896xf32, #tpu.memory_space<vmem>>, vector<1x896xf32>
      tpu.vector_store %arg12[%c7, %c0_28], %33 {strides = array<i32>} : memref<16x896xf32, #tpu.memory_space<vmem>>, vector<1x896xf32>,
      %35 = vector.extract_strided_slice %18 {offsets = [0, 58], sizes = [1, 896], strides = [1, 1]} : vector<1x1024xf32> to vector<1x896xf32>
      %c8 = arith.constant 8 : index
      %c0_29 = arith.constant 0 : index
      %36 = vector.load %arg12[%c8, %c0_29] : memref<16x896xf32, #tpu.memory_space<vmem>>, vector<1x896xf32>
      tpu.vector_store %arg12[%c8, %c0_29], %35 {strides = array<i32>} : memref<16x896xf32, #tpu.memory_space<vmem>>, vector<1x896xf32>,
      %c0_30 = arith.constant 0 : index
      %c0_31 = arith.constant 0 : index
      %37 = vector.load %arg2[%c0_30, %c0_31] : memref<16x16xf32, #tpu.memory_space<vmem>>, vector<16x16xf32>
      %c0_32 = arith.constant 0 : index
      %c0_33 = arith.constant 0 : index
      %38 = vector.load %arg12[%c0_32, %c0_33] : memref<16x896xf32, #tpu.memory_space<vmem>>, vector<16x896xf32>
      %cst_34 = arith.constant dense<0.000000e+00> : vector<16x896xf32>
      %39 = tpu.matmul %37, %38, %cst_34 {dimension_numbers = #tpu.dot_dimension_numbers<[1], [0], [0], [1], [0, 0, 1, 1], [], []>} : vector<16x16xf32>, vector<16x896xf32>, vector<16x896xf32> -> vector<16x896xf32>
      %c0_35 = arith.constant 0 : index
      %c0_36 = arith.constant 0 : index
      %40 = vector.load %arg3[%c0_35, %c0_36] : memref<16x1xf32, #tpu.memory_space<vmem>>, vector<16x1xf32>
      %41 = vector.broadcast %40 : vector<16x1xf32> to vector<16x896xf32>
      %42 = arith.addf %39, %41 : vector<16x896xf32>
      %cst_37 = arith.constant 0.000000e+00 : f32
      %43 = vector.broadcast %cst_37 : f32 to vector<16x896xf32>
      %44 = arith.maximumf %42, %43 : vector<16x896xf32>
      %c0_38 = arith.constant 0 : index
      %c0_39 = arith.constant 0 : index
      %45 = vector.load %arg13[%c0_38, %c0_39] : memref<16x896xf32, #tpu.memory_space<vmem>>, vector<16x896xf32>
      tpu.vector_store %arg13[%c0_38, %c0_39], %44 {strides = array<i32>} : memref<16x896xf32, #tpu.memory_space<vmem>>, vector<16x896xf32>,
      %c0_40 = arith.constant 0 : index
      %c0_41 = arith.constant 0 : index
      %46 = vector.load %arg13[%c0_40, %c0_41] : memref<16x896xf32, #tpu.memory_space<vmem>>, vector<16x768xf32>
      %c0_42 = arith.constant 0 : index
      %c0_43 = arith.constant 0 : index
      %47 = vector.load %arg14[%c0_42, %c0_43] : memref<144x768xf32, #tpu.memory_space<vmem>>, vector<16x768xf32>
      tpu.vector_store %arg14[%c0_42, %c0_43], %46 {strides = array<i32>} : memref<144x768xf32, #tpu.memory_space<vmem>>, vector<16x768xf32>,
      %c0_44 = arith.constant 0 : index
      %c1_45 = arith.constant 1 : index
      %48 = vector.load %arg13[%c0_44, %c1_45] : memref<16x896xf32, #tpu.memory_space<vmem>>, vector<16x768xf32>
      %c16 = arith.constant 16 : index
      %c0_46 = arith.constant 0 : index
      %49 = vector.load %arg14[%c16, %c0_46] : memref<144x768xf32, #tpu.memory_space<vmem>>, vector<16x768xf32>
      tpu.vector_store %arg14[%c16, %c0_46], %48 {strides = array<i32>} : memref<144x768xf32, #tpu.memory_space<vmem>>, vector<16x768xf32>,
      %c0_47 = arith.constant 0 : index
      %c2_48 = arith.constant 2 : index
      %50 = vector.load %arg13[%c0_47, %c2_48] : memref<16x896xf32, #tpu.memory_space<vmem>>, vector<16x768xf32>
      %c32 = arith.constant 32 : index
      %c0_49 = arith.constant 0 : index
      %51 = vector.load %arg14[%c32, %c0_49] : memref<144x768xf32, #tpu.memory_space<vmem>>, vector<16x768xf32>
      tpu.vector_store %arg14[%c32, %c0_49], %50 {strides = array<i32>} : memref<144x768xf32, #tpu.memory_space<vmem>>, vector<16x768xf32>,
      %c0_50 = arith.constant 0 : index
      %c28 = arith.constant 28 : index
      %52 = vector.load %arg13[%c0_50, %c28] : memref<16x896xf32, #tpu.memory_space<vmem>>, vector<16x768xf32>
      %c48 = arith.constant 48 : index
      %c0_51 = arith.constant 0 : index
      %53 = vector.load %arg14[%c48, %c0_51] : memref<144x768xf32, #tpu.memory_space<vmem>>, vector<16x768xf32>
      tpu.vector_store %arg14[%c48, %c0_51], %52 {strides = array<i32>} : memref<144x768xf32, #tpu.memory_space<vmem>>, vector<16x768xf32>,
      %c0_52 = arith.constant 0 : index
      %c29 = arith.constant 29 : index
      %54 = vector.load %arg13[%c0_52, %c29] : memref<16x896xf32, #tpu.memory_space<vmem>>, vector<16x768xf32>
      %c64 = arith.constant 64 : index
      %c0_53 = arith.constant 0 : index
      %55 = vector.load %arg14[%c64, %c0_53] : memref<144x768xf32, #tpu.memory_space<vmem>>, vector<16x768xf32>
      tpu.vector_store %arg14[%c64, %c0_53], %54 {strides = array<i32>} : memref<144x768xf32, #tpu.memory_space<vmem>>, vector<16x768xf32>,
      %c0_54 = arith.constant 0 : index
      %c30 = arith.constant 30 : index
      %56 = vector.load %arg13[%c0_54, %c30] : memref<16x896xf32, #tpu.memory_space<vmem>>, vector<16x768xf32>
      %c80 = arith.constant 80 : index
      %c0_55 = arith.constant 0 : index
      %57 = vector.load %arg14[%c80, %c0_55] : memref<144x768xf32, #tpu.memory_space<vmem>>, vector<16x768xf32>
      tpu.vector_store %arg14[%c80, %c0_55], %56 {strides = array<i32>} : memref<144x768xf32, #tpu.memory_space<vmem>>, vector<16x768xf32>,
      %c0_56 = arith.constant 0 : index
      %c56 = arith.constant 56 : index
      %58 = vector.load %arg13[%c0_56, %c56] : memref<16x896xf32, #tpu.memory_space<vmem>>, vector<16x768xf32>
      %c96 = arith.constant 96 : index
      %c0_57 = arith.constant 0 : index
      %59 = vector.load %arg14[%c96, %c0_57] : memref<144x768xf32, #tpu.memory_space<vmem>>, vector<16x768xf32>
      tpu.vector_store %arg14[%c96, %c0_57], %58 {strides = array<i32>} : memref<144x768xf32, #tpu.memory_space<vmem>>, vector<16x768xf32>,
      %c0_58 = arith.constant 0 : index
      %c57 = arith.constant 57 : index
      %60 = vector.load %arg13[%c0_58, %c57] : memref<16x896xf32, #tpu.memory_space<vmem>>, vector<16x768xf32>
      %c112 = arith.constant 112 : index
      %c0_59 = arith.constant 0 : index
      %61 = vector.load %arg14[%c112, %c0_59] : memref<144x768xf32, #tpu.memory_space<vmem>>, vector<16x768xf32>
      tpu.vector_store %arg14[%c112, %c0_59], %60 {strides = array<i32>} : memref<144x768xf32, #tpu.memory_space<vmem>>, vector<16x768xf32>,
      %c0_60 = arith.constant 0 : index
      %c58 = arith.constant 58 : index
      %62 = vector.load %arg13[%c0_60, %c58] : memref<16x896xf32, #tpu.memory_space<vmem>>, vector<16x768xf32>
      %c128 = arith.constant 128 : index
      %c0_61 = arith.constant 0 : index
      %63 = vector.load %arg14[%c128, %c0_61] : memref<144x768xf32, #tpu.memory_space<vmem>>, vector<16x768xf32>
      tpu.vector_store %arg14[%c128, %c0_61], %62 {strides = array<i32>} : memref<144x768xf32, #tpu.memory_space<vmem>>, vector<16x768xf32>,
      %c0_62 = arith.constant 0 : index
      %c0_63 = arith.constant 0 : index
      %64 = vector.load %arg4[%c0_62, %c0_63] : memref<24x144xf32, #tpu.memory_space<vmem>>, vector<24x144xf32>
      %c0_64 = arith.constant 0 : index
      %c0_65 = arith.constant 0 : index
      %65 = vector.load %arg14[%c0_64, %c0_65] : memref<144x768xf32, #tpu.memory_space<vmem>>, vector<144x768xf32>
      %cst_66 = arith.constant dense<0.000000e+00> : vector<24x768xf32>
      %66 = tpu.matmul %64, %65, %cst_66 {dimension_numbers = #tpu.dot_dimension_numbers<[1], [0], [0], [1], [0, 0, 1, 1], [], []>} : vector<24x144xf32>, vector<144x768xf32>, vector<24x768xf32> -> vector<24x768xf32>
      %c0_67 = arith.constant 0 : index
      %c0_68 = arith.constant 0 : index
      %67 = vector.load %arg5[%c0_67, %c0_68] : memref<24x1xf32, #tpu.memory_space<vmem>>, vector<24x1xf32>
      %68 = vector.broadcast %67 : vector<24x1xf32> to vector<24x768xf32>
      %69 = arith.addf %66, %68 : vector<24x768xf32>
      %cst_69 = arith.constant 0.000000e+00 : f32
      %70 = vector.broadcast %cst_69 : f32 to vector<24x768xf32>
      %71 = arith.maximumf %69, %70 : vector<24x768xf32>
      %c0_70 = arith.constant 0 : index
      %c0_71 = arith.constant 0 : index
      %72 = vector.load %arg15[%c0_70, %c0_71] : memref<24x768xf32, #tpu.memory_space<vmem>>, vector<24x768xf32>
      tpu.vector_store %arg15[%c0_70, %c0_71], %71 {strides = array<i32>} : memref<24x768xf32, #tpu.memory_space<vmem>>, vector<24x768xf32>,
      %c0_72 = arith.constant 0 : index
      %c0_73 = arith.constant 0 : index
      %73 = vector.load %arg15[%c0_72, %c0_73] : memref<24x768xf32, #tpu.memory_space<vmem>>, vector<24x640xf32>
      %c0_74 = arith.constant 0 : index
      %c1_75 = arith.constant 1 : index
      %74 = vector.load %arg15[%c0_74, %c1_75] : memref<24x768xf32, #tpu.memory_space<vmem>>, vector<24x640xf32>
      %75 = arith.maximumf %73, %74 : vector<24x640xf32>
      %c0_76 = arith.constant 0 : index
      %c28_77 = arith.constant 28 : index
      %76 = vector.load %arg15[%c0_76, %c28_77] : memref<24x768xf32, #tpu.memory_space<vmem>>, vector<24x640xf32>
      %c0_78 = arith.constant 0 : index
      %c29_79 = arith.constant 29 : index
      %77 = vector.load %arg15[%c0_78, %c29_79] : memref<24x768xf32, #tpu.memory_space<vmem>>, vector<24x640xf32>
      %78 = arith.maximumf %76, %77 : vector<24x640xf32>
      %79 = arith.maximumf %75, %78 : vector<24x640xf32>
      %c24_i32 = arith.constant 24 : i32
      %80 = arith.muli %arg17, %c24_i32 : i32
      %81 = tpu.assume_multiple %80, 8 : i32
      %82 = arith.index_cast %81 : i32 to index
      %c0_80 = arith.constant 0 : index
      %83 = vector.load %arg16[%82, %c0_80] : memref<768x640xf32, #tpu.memory_space<vmem>>, vector<24x640xf32>
      tpu.vector_store %arg16[%82, %c0_80], %79 {strides = array<i32>} : memref<768x640xf32, #tpu.memory_space<vmem>>, vector<24x640xf32>,
    }
    %c32_i32_0 = arith.constant 32 : i32
    %c0_1 = arith.constant 0 : index
    %c0_2 = arith.constant 0 : index
    %3 = vector.load %arg16[%c0_1, %c0_2] : memref<768x640xf32, #tpu.memory_space<vmem>>, vector<768x640xf32>
    %c0_3 = arith.constant 0 : index
    %c0_4 = arith.constant 0 : index
    %4 = vector.load %arg6[%c0_3, %c0_4] : memref<640x200xf32, #tpu.memory_space<vmem>>, vector<640x200xf32>
    %cst_5 = arith.constant dense<0.000000e+00> : vector<768x200xf32>
    %5 = tpu.matmul %3, %4, %cst_5 {dimension_numbers = #tpu.dot_dimension_numbers<[1], [0], [0], [1], [0, 0, 1, 1], [], []>} : vector<768x640xf32>, vector<640x200xf32>, vector<768x200xf32> -> vector<768x200xf32>
    %c0_6 = arith.constant 0 : index
    %c0_7 = arith.constant 0 : index
    %6 = vector.load %arg7[%c0_6, %c0_7] : memref<768x200xf32, #tpu.memory_space<vmem>>, vector<768x200xf32>
    %7 = arith.mulf %5, %6 : vector<768x200xf32>
    %c0_8 = arith.constant 0 : index
    %c0_9 = arith.constant 0 : index
    %8 = vector.load %arg8[%c0_8, %c0_9] : memref<32x768xf32, #tpu.memory_space<vmem>>, vector<32x768xf32>
    %cst_10 = arith.constant dense<0.000000e+00> : vector<32x200xf32>
    %9 = tpu.matmul %8, %7, %cst_10 {dimension_numbers = #tpu.dot_dimension_numbers<[1], [0], [0], [1], [0, 0, 1, 1], [], []>} : vector<32x768xf32>, vector<768x200xf32>, vector<32x200xf32> -> vector<32x200xf32>
    %c0_11 = arith.constant 0 : index
    %c0_12 = arith.constant 0 : index
    %10 = vector.load %arg9[%c0_11, %c0_12] : memref<200x10xf32, #tpu.memory_space<vmem>>, vector<200x10xf32>
    %cst_13 = arith.constant dense<0.000000e+00> : vector<32x10xf32>
    %11 = tpu.matmul %9, %10, %cst_13 {dimension_numbers = #tpu.dot_dimension_numbers<[1], [0], [0], [1], [0, 0, 1, 1], [], []>} : vector<32x200xf32>, vector<200x10xf32>, vector<32x10xf32> -> vector<32x10xf32>
    %c0_14 = arith.constant 0 : index
    %c0_15 = arith.constant 0 : index
    %12 = vector.load %arg10[%c0_14, %c0_15] : memref<1x10xf32, #tpu.memory_space<vmem>>, vector<1x10xf32>
    %13 = vector.broadcast %12 : vector<1x10xf32> to vector<32x10xf32>
    %14 = arith.addf %11, %13 : vector<32x10xf32>
    %c0_16 = arith.constant 0 : index
    %c0_17 = arith.constant 0 : index
    %15 = vector.load %arg11[%c0_16, %c0_17] : memref<32x10xf32, #tpu.memory_space<vmem>>, vector<32x10xf32>
    tpu.vector_store %arg11[%c0_16, %c0_17], %14 {strides = array<i32>} : memref<32x10xf32, #tpu.memory_space<vmem>>, vector<32x10xf32>,
    return
  }
  func.func @transform_0(%arg0: i32) -> (i32, i32, i32) {
    %c0_i32 = arith.constant 0 : i32
    %c0_i32_0 = arith.constant 0 : i32
    %c0_i32_1 = arith.constant 0 : i32
    return %arg0, %c0_i32, %c0_i32_0 : i32, i32, i32
  }
  func.func @transform_1(%arg0: i32) -> (i32, i32) {
    %c0_i32 = arith.constant 0 : i32
    %c0_i32_0 = arith.constant 0 : i32
    %c0_i32_1 = arith.constant 0 : i32
    return %c0_i32, %c0_i32_0 : i32, i32
  }
  func.func @transform_2(%arg0: i32) -> (i32, i32) {
    %c0_i32 = arith.constant 0 : i32
    %c0_i32_0 = arith.constant 0 : i32
    %c0_i32_1 = arith.constant 0 : i32
    return %c0_i32, %c0_i32_0 : i32, i32
  }
  func.func @transform_3(%arg0: i32) -> (i32, i32) {
    %c0_i32 = arith.constant 0 : i32
    %c0_i32_0 = arith.constant 0 : i32
    %c0_i32_1 = arith.constant 0 : i32
    return %c0_i32, %c0_i32_0 : i32, i32
  }
  func.func @transform_4(%arg0: i32) -> (i32, i32) {
    %c0_i32 = arith.constant 0 : i32
    %c0_i32_0 = arith.constant 0 : i32
    %c0_i32_1 = arith.constant 0 : i32
    return %c0_i32, %c0_i32_0 : i32, i32
  }
  func.func @transform_5(%arg0: i32) -> (i32, i32) {
    %c0_i32 = arith.constant 0 : i32
    %c0_i32_0 = arith.constant 0 : i32
    %c0_i32_1 = arith.constant 0 : i32
    return %c0_i32, %c0_i32_0 : i32, i32
  }
  func.func @transform_6(%arg0: i32) -> (i32, i32) {
    %c0_i32 = arith.constant 0 : i32
    %c0_i32_0 = arith.constant 0 : i32
    %c0_i32_1 = arith.constant 0 : i32
    return %c0_i32, %c0_i32_0 : i32, i32
  }
  func.func @transform_7(%arg0: i32) -> (i32, i32) {
    %c0_i32 = arith.constant 0 : i32
    %c0_i32_0 = arith.constant 0 : i32
    %c0_i32_1 = arith.constant 0 : i32
    return %c0_i32, %c0_i32_0 : i32, i32
  }
  func.func @transform_8(%arg0: i32) -> (i32, i32) {
    %c0_i32 = arith.constant 0 : i32
    %c0_i32_0 = arith.constant 0 : i32
    %c0_i32_1 = arith.constant 0 : i32
    return %c0_i32, %c0_i32_0 : i32, i32
  }
  func.func @transform_9(%arg0: i32) -> (i32, i32) {
    %c0_i32 = arith.constant 0 : i32
    %c0_i32_0 = arith.constant 0 : i32
    %c0_i32_1 = arith.constant 0 : i32
    return %c0_i32, %c0_i32_0 : i32, i32
  }
  func.func @transform_10(%arg0: i32) -> (i32, i32) {
    %c0_i32 = arith.constant 0 : i32
    %c0_i32_0 = arith.constant 0 : i32
    return %arg0, %c0_i32 : i32, i32
  }
}

</mosaic_0001>

<bundles_post_ra>
// kernel: shallow_forward_padded.1
= control target key start
LH: loop header
LB: loop body
LE: loop exit
PB: predicated region body
PF: predicated region fallthrough
CT: control target
= control target key end

     0   :  { %v9616_v0 = vmov 0.0   ;;  %s6708_s13 = smov 0   ;;  %s9605_s0 = inlined_call_operand.vmem [shape: f32[32,1,1024], index: 0, kind: input, shape index: {}]   ;;  %s9606_s1 = inlined_call_operand.vmem [shape: f32[16,16], index: 1, kind: input, shape index: {}]   ;;  %s9607_s2 = inlined_call_operand.vmem [shape: f32[16,1], index: 2, kind: input, shape index: {}]   ;;  %s9608_s3 = inlined_call_operand.vmem [shape: f32[24,144], index: 3, kind: input, shape index: {}]   ;;  %s9609_s4 = inlined_call_operand.vmem [shape: f32[24,1], index: 4, kind: input, shape index: {}]   ;;  %s9610_s5 = inlined_call_operand.vmem [shape: f32[640,200], index: 5, kind: input, shape index: {}]   ;;  %s9611_s6 = inlined_call_operand.vmem [shape: f32[768,200], index: 6, kind: input, shape index: {}]   ;;  %s9612_s7 = inlined_call_operand.vmem [shape: f32[32,768], index: 7, kind: input, shape index: {}]   ;;  %s9613_s8 = inlined_call_operand.vmem [shape: f32[200,10], index: 8, kind: input, shape index: {}]   ;;  %s9614_s9 = inlined_call_operand.vmem [shape: f32[1,10], index: 9, kind: input, shape index: {}]   ;;  %s9615_s10 = inlined_call_operand.vmem [shape: f32[32,10], index: 10, kind: output, shape index: {}]  }
   0x1   :  { %35 = vst [vmem:[#allocation2 + $0x38] sm:$0xfe] %v9616_v0  ;;  %36 = vst [vmem:[#allocation2 + $0x40] sm:$0xfe] %v9616_v0 }
   0x2   :  { %37 = vst [vmem:[#allocation2 + $0x48] sm:$0xfe] %v9616_v0  ;;  %38 = vst [vmem:[#allocation2 + $0x50] sm:$0xfe] %v9616_v0 }
   0x3   :  { %39 = vst [vmem:[#allocation2 + $0x58] sm:$0xfe] %v9616_v0  ;;  %40 = vst [vmem:[#allocation2 + $0x60] sm:$0xfe] %v9616_v0 }
   0x4   :  { %41 = vst [vmem:[#allocation2 + $0x68] sm:$0xfe] %v9616_v0 }
   0x5 LB: > { %v51_v1 = vlaneseq  ;;  %s5344_s14 = sshll.u32 %s6632_s13, 3  ;;  %s6635_s18 = smov 100   ;;  %v6643_v4 = vmov 0.0   ;;  %v146_v5 = vld [vmem:[%s9607_s2] sm:$0xff]  ;;  %v147_v6 = vld [vmem:[%s9607_s2 + $0x8] sm:$0xff]  ;;  %v6644_v7 = vmov 0   ;;  %s6632_s13 = sphi %s6708_s13, %s47_s13  }
   0x6   : > { %s49_s17 = scalar_lea.vmem %s9605_s0, %s5344_s14  ;;  %s6636_s19 = smov 127   ;;  %229 = vmatprep.mubr.f32.mxu1 %v6643_v4  ;;  %6344 = vset.pattern.permute.xlu0 %v6644_v7  ;;  %vm79_vm1 = vcmask 818176   ;;  %vm61_vm2 = vcmask 1039360   ;;  %vm88_vm3 = vcmask 809984   ;;  %vm70_vm4 = vcmask 1031168   ;;  %v130_v43 = vld [vmem:[%s9606_s1] sm:$0xff] }
   0x7   : > { %v50_v2 = vld [vmem:[%s49_s17] sm:$0xff]  ;;  %vm6717_vm0 = vcmp.lt.s32.totalorder %v51_v1, 896  ;;  %s6637_s20 = smov 99   ;;  %s6638_s21 = smov 126   ;;  %6345 = vset.pattern.permute.xlu1 %v6644_v7  ;;  %vm106_vm5 = vcmask 588800   ;;  %vm97_vm6 = vcmask 801792  }
   0x8   : > { %76 = vrot.lane.b32.xlu1 %v50_v2, %s6635_s18  ;;  %58 = vrot.lane.b32.xlu0 %v50_v2, %s6636_s19  ;;  %55 = vst.msk [vmem:[#allocation2] ss:$8 sm:$0xf] %vm6717_vm0, %v50_v2  ;;  %56 = vst.msk [vmem:[#allocation2] ss:$8 sm:$0x70] %vm6717_vm0, %v50_v2 }
   0x9   : > { %s6639_s22 = smov 72   ;;  %s6640_s23 = smov 98   ;;  %vm124_vm7 = vcmask 572416   ;;  %vm115_vm8 = vcmask 580608   ;;  %vm158_vm9 = vcmask 130048   ;;  %v131_v48 = vld [vmem:[%s9606_s1 + $0x8] sm:$0xff] }
   0xa   : > { %s6641_s24 = smov 70   ;;  %s6642_s25 = smov 71  }
   0xc   : > { %85 = vrot.lane.b32.xlu1 %v50_v2, %s6637_s20  ;;  %67 = vrot.lane.b32.xlu0 %v50_v2, %s6638_s21 }
  0x10   : > { %103 = vrot.lane.b32.xlu1 %v50_v2, %s6639_s22  ;;  %94 = vrot.lane.b32.xlu0 %v50_v2, %s6640_s23 }
  0x14   : > { %121 = vrot.lane.b32.xlu1 %v50_v2, %s6641_s24  ;;  %112 = vrot.lane.b32.xlu0 %v50_v2, %s6642_s25 }
  0x18   : > { %150 = vperm.xlu0 %6344, %v146_v5   ;;  %155 = vperm.xlu1 %6345, %v147_v6  }
  0x7a   : > { %v77_v8 = vpop.permute.xlu1 %76  ;;  %v59_v9 = vpop.permute.xlu0 %58 }
  0x7b   : > { %v78_v10 = vrot.slane %v77_v8, 1  ;;  %v60_v11 = vrot.slane %v59_v9, 1 }
  0x7d   : > { %v80_v12 = vsel %vm79_vm1, %v77_v8, %v78_v10  ;;  %v62_v13 = vsel %vm61_vm2, %v59_v9, %v60_v11 }
  0x7e   : > { %83 = vst.msk [vmem:[#allocation2 + $0x3] ss:$8 sm:$0xf] %vm6717_vm0, %v80_v12  ;;  %84 = vst.msk [vmem:[#allocation2 + $0x3] ss:$8 sm:$0x70] %vm6717_vm0, %v80_v12  ;;  %v86_v14 = vpop.permute.xlu1 %85  ;;  %v68_v15 = vpop.permute.xlu0 %67 }
  0x7f   : > { %65 = vst.msk [vmem:[#allocation2 + $0x1] ss:$8 sm:$0xf] %vm6717_vm0, %v62_v13  ;;  %66 = vst.msk [vmem:[#allocation2 + $0x1] ss:$8 sm:$0x70] %vm6717_vm0, %v62_v13 }
  0x80   : > { %v87_v16 = vrot.slane %v86_v14, 1  ;;  %v69_v17 = vrot.slane %v68_v15, 1 }
  0x82   : > { %v89_v18 = vsel %vm88_vm3, %v86_v14, %v87_v16  ;;  %v71_v19 = vsel %vm70_vm4, %v68_v15, %v69_v17  ;;  %v104_v20 = vpop.permute.xlu1 %103  ;;  %v95_v21 = vpop.permute.xlu0 %94 }
  0x83   : > { %92 = vst.msk [vmem:[#allocation2 + $0x4] ss:$8 sm:$0xf] %vm6717_vm0, %v89_v18  ;;  %93 = vst.msk [vmem:[#allocation2 + $0x4] ss:$8 sm:$0x70] %vm6717_vm0, %v89_v18 }
  0x84   : > { %74 = vst.msk [vmem:[#allocation2 + $0x2] ss:$8 sm:$0xf] %vm6717_vm0, %v71_v19  ;;  %75 = vst.msk [vmem:[#allocation2 + $0x2] ss:$8 sm:$0x70] %vm6717_vm0, %v71_v19 }
  0x85   : > { %v105_v22 = vrot.slane %v104_v20, 1  ;;  %v96_v23 = vrot.slane %v95_v21, 1 }
  0x86   : > { %v122_v26 = vpop.permute.xlu1 %121  ;;  %v113_v27 = vpop.permute.xlu0 %112 }
  0x87   : > { %v107_v24 = vsel %vm106_vm5, %v104_v20, %v105_v22  ;;  %v98_v25 = vsel %vm97_vm6, %v95_v21, %v96_v23  ;;  %v123_v28 = vrot.slane %v122_v26, 1  ;;  %v114_v29 = vrot.slane %v113_v27, 1 }
  0x88   : > { %110 = vst.msk [vmem:[#allocation2 + $0x6] ss:$8 sm:$0xf] %vm6717_vm0, %v107_v24  ;;  %111 = vst.msk [vmem:[#allocation2 + $0x6] ss:$8 sm:$0x70] %vm6717_vm0, %v107_v24 }
  0x89   : > { %101 = vst.msk [vmem:[#allocation2 + $0x5] ss:$8 sm:$0xf] %vm6717_vm0, %v98_v25  ;;  %102 = vst.msk [vmem:[#allocation2 + $0x5] ss:$8 sm:$0x70] %vm6717_vm0, %v98_v25  ;;  %v125_v30 = vsel %vm124_vm7, %v122_v26, %v123_v28  ;;  %v116_v31 = vsel %vm115_vm8, %v113_v27, %v114_v29 }
  0x8a   : > { %128 = vst.msk [vmem:[#allocation2 + $0x38] ss:$8 sm:$0xf] %vm6717_vm0, %v125_v30  ;;  %129 = vst.msk [vmem:[#allocation2 + $0x38] ss:$8 sm:$0x70] %vm6717_vm0, %v125_v30 }
  0x8b   : > { %119 = vst.msk [vmem:[#allocation2 + $0x7] ss:$8 sm:$0xf] %vm6717_vm0, %v116_v31  ;;  %120 = vst.msk [vmem:[#allocation2 + $0x7] ss:$8 sm:$0x70] %vm6717_vm0, %v116_v31 }
  0x91   : > { %v140_v33 = vld [vmem:[#allocation2 + $0x40] sm:$0xff]  ;;  %v139_v36 = vld [vmem:[#allocation2 + $0x38] sm:$0xff]  ;;  %v142_v38 = vld [vmem:[#allocation2 + $0x50] sm:$0xff] }
  0x92   : > { %v133_v32 = vld [vmem:[#allocation2 + $0x8] sm:$0xff]  ;;  %v132_v34 = vld [vmem:[#allocation2] sm:$0xff]  ;;  %v135_v37 = vld [vmem:[#allocation2 + $0x18] sm:$0xff] }
  0x93   : > { %v5380_v35 = vpack.c.bf16 %v140_v33, %v133_v32  ;;  %v5382_v39 = vpack.c.bf16 %v139_v36, %v132_v34  ;;  %v5384_v40 = vpack.c.bf16 %v142_v38, %v135_v37  ;;  %v134_v41 = vld [vmem:[#allocation2 + $0x10] sm:$0xff]  ;;  %v141_v42 = vld [vmem:[#allocation2 + $0x48] sm:$0xff]  ;;  %v144_v45 = vld [vmem:[#allocation2 + $0x60] sm:$0xff] }
  0x94   : > { %v137_v44 = vld [vmem:[#allocation2 + $0x28] sm:$0xff]  ;;  %v5386_v46 = vpack.c.bf16 %v141_v42, %v134_v41  ;;  %v136_v49 = vld [vmem:[#allocation2 + $0x20] sm:$0xff]  ;;  %v143_v50 = vld [vmem:[#allocation2 + $0x58] sm:$0xff] }
  0x95   : > { %5381 = vmatprep.subr.bf16.mxu1 %v5380_v35  ;;  %v5388_v47 = vpack.c.bf16 %v144_v45, %v137_v44  ;;  %v138_v51 = vld [vmem:[#allocation2 + $0x30] sm:$0xff]  ;;  %v145_v52 = vld [vmem:[#allocation2 + $0x68] sm:$0xff]  ;;  %v5390_v53 = vpack.c.bf16 %v143_v50, %v136_v49 }
  0x96   : > { %5383 = vmatpush1.bf16.msra.mxu1 %v5382_v39  ;;  %v5392_v54 = vpack.c.bf16 %v145_v52, %v138_v51  ;;  %v6836_v49 = vld [vmem:[%s9608_s3 + $0x8] sm:$0xff]  ;;  %v1373_v51 = vld [vmem:[%s9609_s4] sm:$0xff]  ;;  %v1375_v52 = vld [vmem:[%s9609_s4 + $0x10] sm:$0xff] }
  0x97   : > { %5385 = vmatprep.subr.bf16.mxu1 %v5384_v40  ;;  %v151_v55 = vpop.permute.xlu0 %150  ;;  %v156_v58 = vpop.permute.xlu1 %155  ;;  %5353 = vmatprep.mubr.msk.f32.mxu0 %vm158_vm9, %v6836_v49  ;;  %v1374_v50 = vld [vmem:[%s9609_s4 + $0x8] sm:$0xff] }
  0x99   : > { %5345 = vmatmul.mubr.msk.f32.vlgmr.msra.gmra.mrb[0].mxu1 %vm158_vm9, %v130_v43 }
  0x9a   : > { %5387 = vmatpush1.bf16.msra.mxu1 %v5386_v46  ;;  %235 = vmatprep.mubr.f32.mxu1 %v6643_v4 }
  0x9b   : > { %5389 = vmatprep.subr.bf16.mxu1 %v5388_v47 }
  0x9d   : > { %5346 = vmatmul.mubr.msk.f32.gmra.mrb[2].mxu1 %vm158_vm9, %v131_v48 }
  0x9e   : > { %306 = vmatprep.mubr.f32.mxu1 %v6643_v4 }
  0xa1   : > { %5347 = vmatmul.mubr.msk.f32.vlgmr.msra.gmra.mrb[4].mxu1 %vm158_vm9, %v130_v43 }
  0xa2   : > { %5391 = vmatpush1.bf16.msra.mxu1 %v5390_v53  ;;  %312 = vmatprep.mubr.f32.mxu1 %v6643_v4 }
  0xa3   : > { %5393 = vmatprep.subr.bf16.mxu1 %v5392_v54 }
  0xa5   : > { %5348 = vmatmul.mubr.msk.f32.gmra.mrb[6].mxu1 %vm158_vm9, %v131_v48 }
  0xa6   : > { %383 = vmatprep.mubr.f32.mxu1 %v6643_v4 }
  0xa9   : > { %5349 = vmatmul.mubr.msk.f32.vlgmr.msra.gmra.mrb[8].mxu1 %vm158_vm9, %v130_v43 }
  0xaa   : > { %5395 = vmatpush3.bf16.msra.mxu1 %v5392_v54  ;;  %389 = vmatprep.mubr.f32.mxu1 %v6643_v4 }
  0xad   : > { %5350 = vmatmul.mubr.msk.f32.gmra.mrb[10].mxu1 %vm158_vm9, %v131_v48 }
  0xae   : > { %5377 = vmatprep.mubr.msk.f32.mxu1 %vm158_vm9, %v130_v43 }
  0xb1   : > { %5378 = vmatmul.mubr.msk.f32.vlgmr.msra.gmra.mrb[12].mxu1 %vm158_vm9, %v131_v48 }
  0xb2   : > { %5356 = vmatprep.mubr.msk.f32.mxu1 %vm158_vm9, %v6836_v49 }
 0x16c   : > { %v231_v56 = vpop.f32.mrb[0].mxu1 }
 0x16d   : > { %v233_v57 = vpop.f32.mrb[1].mxu1  ;;  %v232_v59 = vadd.f32 %v231_v56, %v151_v55 }
 0x16e   : > { %v234_v60 = vadd.f32 %v233_v57, %v151_v55 }
 0x16f   : > { %v471_v2 = vmax.f32 %v232_v59, 0.0 }
 0x170   : > { %v237_v61 = vpop.f32.mrb[2].mxu1  ;;  %v472_v5 = vmax.f32 %v234_v60, 0.0 }
 0x171   : > { %v238_v62 = vadd.f32 %v237_v61, %v156_v58  ;;  %v239_v63 = vpop.f32.mrb[3].mxu1 }
 0x172   : > { %v240_v1 = vadd.f32 %v239_v63, %v156_v58 }
 0x173   : > { %v478_v3 = vmax.f32 %v238_v62, 0.0 }
 0x174   : > { %v479_v4 = vmax.f32 %v240_v1, 0.0  ;;  %v308_v6 = vpop.f32.mrb[4].mxu1 }
 0x175   : > { %v309_v7 = vadd.f32 %v308_v6, %v151_v55  ;;  %v310_v8 = vpop.f32.mrb[5].mxu1  ;;  %v6351_v9 = vpack.i.bf16 %v478_v3, %v471_v2  ;;  %v5398_v10 = vpack.c.bf16 %v478_v3, %v471_v2 }
 0x176   : > { %v5396_v11 = vpack.c.bf16 %v479_v4, %v472_v5  ;;  %v311_v13 = vadd.f32 %v310_v8, %v151_v55 }
 0x177   : > { %v473_v12 = vmax.f32 %v309_v7, 0.0  ;;  %6352 = vrot.lane.b32.xlu0 %v6351_v9, %s6638_s21  ;;  %6347 = vrot.lane.b32.xlu1 %v6351_v9, %s6636_s19 }
 0x178   : > { %v314_v14 = vpop.f32.mrb[6].mxu1  ;;  %5397 = vmatprep.subr.bf16.mxu0 %v5396_v11  ;;  %v474_v20 = vmax.f32 %v311_v13, 0.0 }
 0x179   : > { %v315_v15 = vadd.f32 %v314_v14, %v156_v58  ;;  %v316_v16 = vpop.f32.mrb[7].mxu1  ;;  %5399 = vmatpush1.bf16.msra.mxu0 %v5398_v10  ;;  %v6391_v17 = vpack.i.bf16 %v473_v12, %v472_v5 }
 0x17a   : > { %v317_v18 = vadd.f32 %v316_v16, %v156_v58 }
 0x17b   : > { %v480_v19 = vmax.f32 %v315_v15, 0.0  ;;  %6362 = vrot.lane.b32.xlu0 %v6351_v9, %s6637_s20  ;;  %6357 = vrot.lane.b32.xlu1 %v6351_v9, %s6635_s18 }
 0x17c   : > { %v481_v21 = vmax.f32 %v317_v18, 0.0  ;;  %v385_v22 = vpop.f32.mrb[8].mxu1 }
 0x17d   : > { %v386_v23 = vadd.f32 %v385_v22, %v151_v55  ;;  %v387_v24 = vpop.f32.mrb[9].mxu1  ;;  %v5434_v25 = vpack.c.bf16 %v480_v19, %v473_v12  ;;  %v6426_v26 = vpack.i.bf16 %v480_v19, %v479_v4 }
 0x17e   : > { %v5432_v27 = vpack.c.bf16 %v481_v21, %v474_v20  ;;  %v388_v29 = vadd.f32 %v387_v24, %v151_v55 }
 0x17f   : > { %v475_v28 = vmax.f32 %v386_v23, 0.0  ;;  %6372 = vrot.lane.b32.xlu0 %v6351_v9, %s6639_s22  ;;  %6367 = vrot.lane.b32.xlu1 %v6351_v9, %s6640_s23 }
 0x180   : > { %v391_v30 = vpop.f32.mrb[10].mxu1  ;;  %5433 = vmatprep.subr.bf16.mxu1 %v5432_v27  ;;  %v476_v36 = vmax.f32 %v388_v29, 0.0 }
 0x181   : > { %v392_v31 = vadd.f32 %v391_v30, %v156_v58  ;;  %v393_v32 = vpop.f32.mrb[11].mxu1  ;;  %5435 = vmatpush1.bf16.msra.mxu1 %v5434_v25  ;;  %v6466_v33 = vpack.i.bf16 %v475_v28, %v474_v20 }
 0x182   : > { %v394_v34 = vadd.f32 %v393_v32, %v156_v58 }
 0x183   : > { %v482_v35 = vmax.f32 %v392_v31, 0.0  ;;  %6382 = vrot.lane.b32.xlu0 %v6351_v9, %s6641_s24  ;;  %6377 = vrot.lane.b32.xlu1 %v6351_v9, %s6642_s25 }
 0x184   : > { %v483_v37 = vmax.f32 %v394_v34, 0.0  ;;  %v5379_v38 = vpop.f32.mrb[12].mxu1 }
 0x185   : > { %v468_v39 = vadd.f32 %v5379_v38, %v156_v58  ;;  %v462_v40 = vpop.f32.mrb[13].mxu1  ;;  %v6506_v41 = vpack.i.bf16 %v482_v35, %v481_v21  ;;  %v6811_v46 = vpack.c.bf16 %v482_v35, %v475_v28 }
 0x186   : > { %v463_v42 = vadd.f32 %v462_v40, %v151_v55  ;;  %v6809_v44 = vpack.c.bf16 %v483_v37, %v476_v36 }
 0x187   : > { %v484_v43 = vmax.f32 %v468_v39, 0.0  ;;  %6392 = vrot.lane.b32.xlu0 %v6391_v17, %s6638_s21  ;;  %6387 = vrot.lane.b32.xlu1 %v6391_v17, %s6636_s19 }
 0x188   : > { %v477_v45 = vmax.f32 %v463_v42, 0.0 }
 0x189   : > { %v6546_v47 = vpack.i.bf16 %v484_v43, %v483_v37 }
 0x18a   : > { %v6581_v48 = vpack.i.bf16 %v477_v45, %v476_v36 }
 0x18b   : > { %6402 = vrot.lane.b32.xlu0 %v6391_v17, %s6637_s20  ;;  %6397 = vrot.lane.b32.xlu1 %v6391_v17, %s6635_s18 }
 0x18f   : > { %6412 = vrot.lane.b32.xlu0 %v6391_v17, %s6639_s22  ;;  %6407 = vrot.lane.b32.xlu1 %v6391_v17, %s6640_s23 }
 0x193   : > { %6422 = vrot.lane.b32.xlu0 %v6391_v17, %s6641_s24  ;;  %6417 = vrot.lane.b32.xlu1 %v6391_v17, %s6642_s25 }
 0x197   : > { %6427 = vrot.lane.b32.xlu0 %v6426_v26, %s6636_s19  ;;  %6432 = vrot.lane.b32.xlu1 %v6426_v26, %s6638_s21 }
 0x19b   : > { %6437 = vrot.lane.b32.xlu0 %v6426_v26, %s6635_s18  ;;  %6442 = vrot.lane.b32.xlu1 %v6426_v26, %s6637_s20 }
 0x19f   : > { %6447 = vrot.lane.b32.xlu0 %v6426_v26, %s6640_s23  ;;  %6452 = vrot.lane.b32.xlu1 %v6426_v26, %s6639_s22 }
 0x1a3   : > { %6457 = vrot.lane.b32.xlu0 %v6426_v26, %s6642_s25  ;;  %6462 = vrot.lane.b32.xlu1 %v6426_v26, %s6641_s24 }
 0x1a7   : > { %6547 = vrot.lane.b32.xlu0 %v6546_v47, %s6636_s19  ;;  %6467 = vrot.lane.b32.xlu1 %v6466_v33, %s6636_s19 }
 0x1ab   : > { %6552 = vrot.lane.b32.xlu0 %v6546_v47, %s6638_s21  ;;  %6472 = vrot.lane.b32.xlu1 %v6466_v33, %s6638_s21 }
 0x1af   : > { %6557 = vrot.lane.b32.xlu0 %v6546_v47, %s6635_s18  ;;  %6477 = vrot.lane.b32.xlu1 %v6466_v33, %s6635_s18 }
 0x1b3   : > { %6562 = vrot.lane.b32.xlu0 %v6546_v47, %s6637_s20  ;;  %6482 = vrot.lane.b32.xlu1 %v6466_v33, %s6637_s20 }
 0x1b7   : > { %6567 = vrot.lane.b32.xlu0 %v6546_v47, %s6640_s23  ;;  %6487 = vrot.lane.b32.xlu1 %v6466_v33, %s6640_s23 }
 0x1bb   : > { %6572 = vrot.lane.b32.xlu0 %v6546_v47, %s6639_s22  ;;  %6492 = vrot.lane.b32.xlu1 %v6466_v33, %s6639_s22 }
 0x1bf   : > { %6577 = vrot.lane.b32.xlu0 %v6546_v47, %s6642_s25  ;;  %6497 = vrot.lane.b32.xlu1 %v6466_v33, %s6642_s25 }
 0x1c3   : > { %6582 = vrot.lane.b32.xlu0 %v6581_v48, %s6636_s19  ;;  %6502 = vrot.lane.b32.xlu1 %v6466_v33, %s6641_s24 }
 0x1c7   : > { %6587 = vrot.lane.b32.xlu0 %v6581_v48, %s6638_s21  ;;  %6507 = vrot.lane.b32.xlu1 %v6506_v41, %s6636_s19 }
 0x1cb   : > { %6592 = vrot.lane.b32.xlu0 %v6581_v48, %s6635_s18  ;;  %6512 = vrot.lane.b32.xlu1 %v6506_v41, %s6638_s21 }
 0x1cf   : > { %6597 = vrot.lane.b32.xlu0 %v6581_v48, %s6637_s20  ;;  %6517 = vrot.lane.b32.xlu1 %v6506_v41, %s6635_s18 }
 0x1d3   : > { %6602 = vrot.lane.b32.xlu0 %v6581_v48, %s6640_s23  ;;  %6522 = vrot.lane.b32.xlu1 %v6506_v41, %s6637_s20 }
 0x1d7   : > { %6607 = vrot.lane.b32.xlu0 %v6581_v48, %s6639_s22  ;;  %6527 = vrot.lane.b32.xlu1 %v6506_v41, %s6640_s23 }
 0x1db   : > { %6612 = vrot.lane.b32.xlu0 %v6581_v48, %s6642_s25  ;;  %6532 = vrot.lane.b32.xlu1 %v6506_v41, %s6639_s22 }
 0x1df   : > { %6617 = vrot.lane.b32.xlu0 %v6581_v48, %s6641_s24  ;;  %6537 = vrot.lane.b32.xlu1 %v6506_v41, %s6642_s25 }
 0x1e3   : > { %6622 = vrot.lane.b32.xlu0 %v6546_v47, %s6641_s24  ;;  %6542 = vrot.lane.b32.xlu1 %v6506_v41, %s6641_s24 }
 0x1e7   : > { %1383 = vperm.xlu0 %6344, %v1374_v50   ;;  %1378 = vperm.xlu1 %6345, %v1373_v51  }
 0x1e9   : > { %v6353_v53 = vpop.permute.xlu0 %6352  ;;  %v6348_v54 = vpop.permute.xlu1 %6347 }
 0x1ea   : > { %v6350_v8 = vunpack.i.h.bf16 %v6348_v54  ;;  %v6349_v9 = vunpack.i.l.bf16 %v6348_v54  ;;  %v6355_v23 = vunpack.i.h.bf16 %v6353_v53  ;;  %v6354_v33 = vunpack.i.l.bf16 %v6353_v53 }
 0x1eb   : > { %1388 = vperm.xlu1 %6345, %v1375_v52  }
 0x1ed   : > { %v6877_v55 = vpop.permute.xlu0 %6362  ;;  %v6879_v56 = vpop.permute.xlu1 %6357 }
 0x1ee   : > { %v6360_v39 = vunpack.i.h.bf16 %v6879_v56  ;;  %v6359_v50 = vunpack.i.l.bf16 %v6879_v56 }
 0x1f1   : > { %v6881_v57 = vpop.permute.xlu0 %6372  ;;  %v6883_v58 = vpop.permute.xlu1 %6367 }
 0x1f5   : > { %v6885_v59 = vpop.permute.xlu0 %6382  ;;  %v6887_v60 = vpop.permute.xlu1 %6377 }
 0x1f9   : > { %v6889_v61 = vpop.permute.xlu0 %6392  ;;  %v6891_v62 = vpop.permute.xlu1 %6387 }
 0x1fa   : > { %v6390_v6 = vunpack.i.h.bf16 %v6891_v62  ;;  %v6389_v7 = vunpack.i.l.bf16 %v6891_v62  ;;  %v6395_v10 = vunpack.i.h.bf16 %v6889_v61  ;;  %v6394_v11 = vunpack.i.l.bf16 %v6889_v61 }
 0x1fc   : > { %v580_v18 = vsel %vm61_vm2, %v6389_v7, %v6390_v6  ;;  %v579_v20 = vsel %vm61_vm2, %v6349_v9, %v6389_v7  ;;  %v672_v28 = vsel %vm70_vm4, %v6394_v11, %v6395_v10  ;;  %v671_v42 = vsel %vm70_vm4, %v6354_v33, %v6394_v11 }
 0x1fd   : > { %v6893_v63 = vpop.permute.xlu0 %6402  ;;  %v6895_v1 = vpop.permute.xlu1 %6397 }
 0x1fe   : > { %v6400_v29 = vunpack.i.h.bf16 %v6895_v1  ;;  %v6399_v30 = vunpack.i.l.bf16 %v6895_v1  ;;  %v6405_v43 = vunpack.i.h.bf16 %v6893_v63  ;;  %v6404_v45 = vunpack.i.l.bf16 %v6893_v63 }
 0x200   : > { %v764_v48 = vsel %vm79_vm1, %v6399_v30, %v6400_v29  ;;  %v763_v56 = vsel %vm79_vm1, %v6359_v50, %v6399_v30  ;;  %v6375_v50 = vunpack.i.h.bf16 %v6881_v57 }
 0x201   : > { %v6897_v2 = vpop.permute.xlu0 %6412  ;;  %v6899_v3 = vpop.permute.xlu1 %6407 }
 0x202   : > { %v9625_v33 = vunpack.i.h.bf16 %v6897_v2 }
 0x205   : > { %v6901_v5 = vpop.permute.xlu0 %6422  ;;  %v6903_v4 = vpop.permute.xlu1 %6417 }
 0x209   : > { %v6909_v12 = vpop.permute.xlu0 %6427  ;;  %v6911_v13 = vpop.permute.xlu1 %6432 }
 0x20a   : > { %v6430_v14 = vunpack.i.h.bf16 %v6909_v12  ;;  %v6429_v15 = vunpack.i.l.bf16 %v6909_v12  ;;  %v9627_v16 = vunpack.i.h.bf16 %v6911_v13  ;;  %v6434_v17 = vunpack.i.l.bf16 %v6911_v13 }
 0x20c   : > { %v586_v19 = vsel %vm61_vm2, %v6429_v15, %v6430_v14  ;;  %v585_v21 = vsel %vm61_vm2, %v6350_v8, %v6429_v15  ;;  %v678_v22 = vsel %vm70_vm4, %v6434_v17, %v9627_v16  ;;  %v677_v35 = vsel %vm70_vm4, %v6355_v23, %v6434_v17 }
 0x20d   : > { %v6928_v24 = vpop.permute.xlu0 %6437  ;;  %v6930_v25 = vpop.permute.xlu1 %6442  ;;  %v5400_v26 = vpack.c.bf16 %v586_v19, %v580_v18  ;;  %v5402_v27 = vpack.c.bf16 %v585_v21, %v579_v20  ;;  %v5404_v34 = vpack.c.bf16 %v678_v22, %v672_v28  ;;  %v5406_v47 = vpack.c.bf16 %v677_v35, %v671_v42 }
 0x20e   : > { %v9626_v31 = vunpack.i.h.bf16 %v6928_v24  ;;  %v6439_v32 = vunpack.i.l.bf16 %v6928_v24  ;;  %v9624_v36 = vunpack.i.h.bf16 %v6930_v25  ;;  %v6444_v37 = vunpack.i.l.bf16 %v6930_v25 }
 0x20f   : > { %5401 = vmatprep.subr.bf16.mxu0 %v5400_v26  ;;  %v6365_v8 = vunpack.i.h.bf16 %v6877_v55  ;;  %v6410_v15 = vunpack.i.h.bf16 %v6899_v3  ;;  %v6409_v17 = vunpack.i.l.bf16 %v6899_v3  ;;  %v856_v19 = vsel %vm88_vm3, %v6404_v45, %v6405_v43 }
 0x210   : > { %5403 = vmatpush1.bf16.msra.mxu0 %v5402_v27  ;;  %v770_v38 = vsel %vm79_vm1, %v6439_v32, %v9626_v31  ;;  %v769_v52 = vsel %vm79_vm1, %v6360_v39, %v6439_v32  ;;  %v862_v7 = vsel %vm88_vm3, %v6444_v37, %v9624_v36  ;;  %v6364_v20 = vunpack.i.l.bf16 %v6877_v55 }
 0x211   : > { %v6946_v40 = vpop.permute.xlu0 %6447  ;;  %v6948_v41 = vpop.permute.xlu1 %6452  ;;  %5405 = vmatprep.subr.bf16.mxu0 %v5404_v34  ;;  %v5408_v51 = vpack.c.bf16 %v770_v38, %v764_v48  ;;  %v5410_v18 = vpack.c.bf16 %v769_v52, %v763_v56  ;;  %v5412_v21 = vpack.c.bf16 %v862_v7, %v856_v19  ;;  %v861_v22 = vsel %vm88_vm3, %v6365_v8, %v6444_v37 }
 0x212   : > { %v9623_v53 = vunpack.i.h.bf16 %v6946_v40  ;;  %v6449_v54 = vunpack.i.l.bf16 %v6946_v40  ;;  %v9621_v23 = vunpack.i.h.bf16 %v6948_v41  ;;  %v6454_v26 = vunpack.i.l.bf16 %v6948_v41 }
 0x213   : > { %v6370_v28 = vunpack.i.h.bf16 %v6883_v58  ;;  %v855_v55 = vsel %vm88_vm3, %v6364_v20, %v6404_v45  ;;  %v6414_v34 = vunpack.i.l.bf16 %v6897_v2  ;;  %v948_v37 = vsel %vm97_vm6, %v6409_v17, %v6410_v15 }
 0x214   : > { %5407 = vmatpush1.bf16.msra.mxu0 %v5406_v47  ;;  %v954_v27 = vsel %vm97_vm6, %v6449_v54, %v9623_v53  ;;  %v5414_v35 = vpack.c.bf16 %v861_v22, %v855_v55  ;;  %v6369_v38 = vunpack.i.l.bf16 %v6883_v58  ;;  %v1046_v45 = vsel %vm106_vm5, %v6454_v26, %v9621_v23 }
 0x215   : > { %v6964_v9 = vpop.permute.xlu0 %6457  ;;  %v6966_v11 = vpop.permute.xlu1 %6462  ;;  %5409 = vmatprep.subr.bf16.mxu0 %v5408_v51  ;;  %v5416_v39 = vpack.c.bf16 %v954_v27, %v948_v37  ;;  %v953_v42 = vsel %vm97_vm6, %v6370_v28, %v6449_v54  ;;  %v9622_v54 = vunpack.i.h.bf16 %v6903_v4  ;;  %v6419_v7 = vunpack.i.l.bf16 %v6903_v4 }
 0x216   : > { %v9620_v47 = vunpack.i.h.bf16 %v6964_v9  ;;  %v6459_v48 = vunpack.i.l.bf16 %v6964_v9  ;;  %v947_v58 = vsel %vm97_vm6, %v6369_v38, %v6409_v17  ;;  %v1040_v56 = vsel %vm106_vm5, %v6414_v34, %v9625_v33 }
 0x217   : > { %v5418_v8 = vpack.c.bf16 %v953_v42, %v947_v58  ;;  %v5420_v19 = vpack.c.bf16 %v1046_v45, %v1040_v56  ;;  %v1045_v20 = vsel %vm106_vm5, %v6375_v50, %v6454_v26  ;;  %v6464_v22 = vunpack.i.l.bf16 %v6966_v11 }
 0x218   : > { %5411 = vmatpush1.bf16.msra.mxu0 %v5410_v18  ;;  %v6374_v18 = vunpack.i.l.bf16 %v6881_v57  ;;  %v1138_v17 = vsel %vm115_vm8, %v6459_v48, %v9620_v47  ;;  %v6380_v27 = vunpack.i.h.bf16 %v6887_v60  ;;  %v9619_v26 = vunpack.i.h.bf16 %v6901_v5 }
 0x219   : > { %v6982_v30 = vpop.permute.xlu0 %6547  ;;  %v6984_v32 = vpop.permute.xlu1 %6467  ;;  %5413 = vmatprep.subr.bf16.mxu0 %v5412_v21  ;;  %v9618_v21 = vunpack.i.h.bf16 %v6966_v11  ;;  %v1132_v38 = vsel %vm115_vm8, %v6419_v7, %v9622_v54 }
 0x21a   : > { %v1039_v57 = vsel %vm106_vm5, %v6374_v18, %v6414_v34  ;;  %v5424_v42 = vpack.c.bf16 %v1138_v17, %v1132_v38  ;;  %v1137_v45 = vsel %vm115_vm8, %v6380_v27, %v6459_v48  ;;  %v6385_v34 = vunpack.i.h.bf16 %v6885_v59 }
 0x21b   : > { %v5422_v37 = vpack.c.bf16 %v1045_v20, %v1039_v57  ;;  %v1230_v50 = vsel %vm124_vm7, %v6464_v22, %v9618_v21  ;;  %v6384_v48 = vunpack.i.l.bf16 %v6885_v59 }
 0x21c   : > { %5415 = vmatpush1.bf16.msra.mxu0 %v5414_v35  ;;  %v6424_v35 = vunpack.i.l.bf16 %v6901_v5  ;;  %v1229_v20 = vsel %vm124_vm7, %v6385_v34, %v6464_v22  ;;  %v7062_v22 = vld [vmem:[%s9608_s3 + $0x18] sm:$0xff]  ;;  %v6470_v34 = vunpack.i.h.bf16 %v6984_v32 }
 0x21d   : > { %v7000_v51 = vpop.permute.xlu0 %6552  ;;  %v7002_v52 = vpop.permute.xlu1 %6472  ;;  %5417 = vmatprep.subr.bf16.mxu0 %v5416_v39  ;;  %v6379_v39 = vunpack.i.l.bf16 %v6887_v60 }
 0x21e   : > { %v1224_v60 = vsel %vm124_vm7, %v6424_v35, %v9619_v26  ;;  %v1223_v57 = vsel %vm124_vm7, %v6384_v48, %v6424_v35  ;;  %v6469_v35 = vunpack.i.l.bf16 %v6984_v32  ;;  %v9633_v48 = vunpack.i.h.bf16 %v7002_v52 }
 0x21f   : > { %v1131_v56 = vsel %vm115_vm8, %v6379_v39, %v6419_v7  ;;  %v7052_v7 = vld [vmem:[%s9608_s3] sm:$0xff]  ;;  %v7072_v39 = vld [vmem:[%s9608_s3 + $0x10] sm:$0xff] }
 0x220   : > { %5419 = vmatpush1.bf16.msra.mxu0 %v5418_v8  ;;  %v5426_v18 = vpack.c.bf16 %v1137_v45, %v1131_v56  ;;  %v7081_v45 = vld [vmem:[%s9608_s3 + $0x28] sm:$0xff]  ;;  %v7089_v56 = vsel %vm61_vm2, %v6390_v6, %v6469_v35  ;;  %v7105_v6 = vld [vmem:[%s9608_s3 + $0x20] sm:$0xff]  ;;  %v582_v36 = vsel %vm61_vm2, %v6469_v35, %v6470_v34 }
 0x221   : > { %v7018_v28 = vpop.permute.xlu0 %6557  ;;  %v7020_v55 = vpop.permute.xlu1 %6477  ;;  %5421 = vmatprep.subr.bf16.mxu0 %v5420_v19  ;;  %v5428_v19 = vpack.c.bf16 %v1230_v50, %v1224_v60  ;;  %v6550_v50 = vunpack.i.h.bf16 %v6982_v30  ;;  %v9632_v60 = vunpack.i.l.bf16 %v7000_v51 }
 0x222   : > { %v9629_v32 = vunpack.i.h.bf16 %v7020_v55  ;;  %v6479_v62 = vunpack.i.l.bf16 %v7020_v55 }
 0x224   : > { %5423 = vmatpush1.bf16.msra.mxu0 %v5422_v37  ;;  %v5430_v37 = vpack.c.bf16 %v1229_v20, %v1223_v57  ;;  %v6560_v20 = vunpack.i.h.bf16 %v7018_v28  ;;  %v7131_v35 = vsel %vm79_vm1, %v6400_v29, %v6479_v62 }
 0x225   : > { %v7034_v58 = vpop.permute.xlu0 %6562  ;;  %v7036_v8 = vpop.permute.xlu1 %6482  ;;  %5425 = vmatprep.subr.bf16.mxu0 %v5424_v42 }
 0x226   : > { %v6565_v57 = vunpack.i.h.bf16 %v7034_v58  ;;  %v9631_v0 = vunpack.i.h.bf16 %v7036_v8  ;;  %v6484_v21 = vunpack.i.l.bf16 %v7036_v8 }
 0x228   : > { %5427 = vmatpush1.bf16.msra.mxu0 %v5426_v18  ;;  %v6555_v18 = vunpack.i.h.bf16 %v7000_v51  ;;  %v7149_v1 = vsel %vm88_vm3, %v6405_v43, %v6484_v21 }
 0x229   : > { %v7044_v17 = vpop.permute.xlu0 %6567  ;;  %v7046_v27 = vpop.permute.xlu1 %6487  ;;  %5429 = vmatprep.subr.bf16.mxu0 %v5428_v19  ;;  %v6474_v19 = vunpack.i.l.bf16 %v7002_v52 }
 0x22a   : > { %v6489_v31 = vunpack.i.l.bf16 %v7046_v27  ;;  %v682_v16 = vsel %vm70_vm4, %v9632_v60, %v6555_v18  ;;  %v6570_v43 = vunpack.i.h.bf16 %v7044_v17 }
 0x22b   : > { %v7118_v33 = vsel %vm70_vm4, %v6395_v10, %v6474_v19 }
 0x22c   : > { %5431 = vmatpush1.bf16.msra.mxu0 %v5430_v37  ;;  %v9630_v37 = vunpack.i.l.bf16 %v7034_v58 }
 0x22d   : > { %v7054_v38 = vpop.permute.xlu0 %6572  ;;  %v7056_v59 = vpop.permute.xlu1 %6492  ;;  %5469 = vmatprep.subr.bf16.mxu0 %v6809_v44 }
 0x22f   : > { %1465 = vmatmul.mubr.f32.vlgmr.msra.gmra.mrb[0].mxu0 %v7052_v7 }
 0x230   : > { %5471 = vmatpush1.bf16.msra.mxu0 %v6811_v46  ;;  %5354 = vmatprep.mubr.msk.f32.mxu0 %vm158_vm9, %v7062_v22  ;;  %v6549_v46 = vunpack.i.l.bf16 %v6982_v30  ;;  %v9628_v30 = vunpack.i.l.bf16 %v7018_v28 }
 0x231   : > { %v7074_v44 = vpop.permute.xlu0 %6577  ;;  %v7076_v42 = vpop.permute.xlu1 %6497 }
 0x232   : > { %v590_v53 = vsel %vm61_vm2, %v6549_v46, %v6550_v50  ;;  %v7137_v10 = vsel %vm79_vm1, %v9628_v30, %v6560_v20  ;;  %v7142_v50 = vsel %vm79_vm1, %v6479_v62, %v9629_v32  ;;  %v7159_v20 = vsel %vm88_vm3, %v6484_v21, %v9631_v0 }
 0x233   : > { %1471 = vmatmul.mubr.f32.gmra.mrb[2].mxu0 %v7072_v39 }
 0x234   : > { %5355 = vmatprep.mubr.msk.f32.mxu0 %vm158_vm9, %v7081_v45 }
 0x235   : > { %v6583_v26 = vpop.permute.xlu0 %6582  ;;  %v7111_v47 = vpop.permute.xlu1 %6502 }
 0x236   : > { %v6585_v23 = vunpack.i.h.bf16 %v6583_v26  ;;  %v6584_v54 = vunpack.i.l.bf16 %v6583_v26  ;;  %v674_v26 = vsel %vm70_vm4, %v6474_v19, %v9633_v48  ;;  %v7154_v19 = vsel %vm88_vm3, %v9630_v37, %v6565_v57 }
 0x237   : > { %1477 = vmatmul.mubr.f32.gmra.mrb[4].mxu0 %v7105_v6  ;;  %v7167_v57 = vsel %vm97_vm6, %v6410_v15, %v6489_v31 }
 0x238   : > { %v584_v61 = vsel %vm61_vm2, %v6584_v54, %v6585_v23  ;;  %5359 = vmatprep.mubr.msk.f32.mxu0 %vm158_vm9, %v6836_v49 }
 0x239   : > { %v6588_v29 = vpop.permute.xlu0 %6587  ;;  %v6508_v23 = vpop.permute.xlu1 %6507  ;;  %v5472_v18 = vpack.c.bf16 %v590_v53, %v584_v61  ;;  %v583_v61 = vsel %vm61_vm2, %v6470_v34, %v6584_v54 }
 0x23a   : > { %v6590_v62 = vunpack.i.h.bf16 %v6588_v29  ;;  %v6589_v49 = vunpack.i.l.bf16 %v6588_v29  ;;  %v6510_v30 = vunpack.i.h.bf16 %v6508_v23  ;;  %v6509_v63 = vunpack.i.l.bf16 %v6508_v23 }
 0x23b   : > { %5473 = vmatprep.subr.bf16.mxu0 %v5472_v18 }
 0x23c   : > { %v589_v21 = vsel %vm61_vm2, %v6510_v30, %v6549_v46  ;;  %v587_v29 = vsel %vm61_vm2, %v6430_v14, %v6509_v63  ;;  %v588_v23 = vsel %vm61_vm2, %v6509_v63, %v6510_v30  ;;  %v676_v15 = vsel %vm70_vm4, %v6589_v49, %v6590_v62 }
 0x23d   : > { %v5438_v37 = vpack.c.bf16 %v587_v29, %v7089_v56  ;;  %v5474_v0 = vpack.c.bf16 %v589_v21, %v583_v61  ;;  %v6593_v60 = vpop.permute.xlu0 %6592  ;;  %v6513_v48 = vpop.permute.xlu1 %6512  ;;  %v5436_v3 = vpack.c.bf16 %v588_v23, %v582_v36  ;;  %v6575_v46 = vunpack.i.h.bf16 %v7054_v38 }
 0x23e   : > { %v6595_v53 = vunpack.i.h.bf16 %v6593_v60  ;;  %v6594_v18 = vunpack.i.l.bf16 %v6593_v60  ;;  %v6515_v32 = vunpack.i.h.bf16 %v6513_v48  ;;  %v6514_v54 = vunpack.i.l.bf16 %v6513_v48 }
 0x23f   : > { %5437 = vmatprep.subr.bf16.mxu1 %v5436_v3  ;;  %5475 = vmatpush1.bf16.msra.mxu0 %v5474_v0  ;;  %v5476_v12 = vpack.c.bf16 %v682_v16, %v676_v15  ;;  %v9637_v14 = vunpack.i.l.bf16 %v7044_v17  ;;  %v9638_v56 = vunpack.i.h.bf16 %v7046_v27  ;;  %v9639_v30 = vunpack.i.h.bf16 %v7002_v52 }
 0x240   : > { %v9640_v48 = vunpack.i.l.bf16 %v7000_v51  ;;  %v9641_v0 = vunpack.i.h.bf16 %v6911_v13  ;;  %5439 = vmatpush1.bf16.msra.mxu1 %v5438_v37  ;;  %v680_v63 = vsel %vm70_vm4, %v6514_v54, %v6515_v32  ;;  %v6574_v13 = vunpack.i.l.bf16 %v7054_v38 }
 0x241   : > { %v7181_v34 = vsel %vm97_vm6, %v9637_v14, %v6570_v43  ;;  %v7186_v36 = vsel %vm97_vm6, %v6489_v31, %v9638_v56  ;;  %v675_v60 = vsel %vm70_vm4, %v9639_v30, %v6589_v49  ;;  %5477 = vmatprep.subr.bf16.mxu0 %v5476_v12  ;;  %v6598_v31 = vpop.permute.xlu0 %6597  ;;  %v6518_v21 = vpop.permute.xlu1 %6517  ;;  %v5440_v52 = vpack.c.bf16 %v680_v63, %v674_v26 }
 0x242   : > { %v681_v62 = vsel %vm70_vm4, %v6515_v32, %v9640_v48  ;;  %v679_v16 = vsel %vm70_vm4, %v9641_v0, %v6514_v54  ;;  %v768_v49 = vsel %vm79_vm1, %v6594_v18, %v6595_v53  ;;  %v6600_v29 = vunpack.i.h.bf16 %v6598_v31 }
 0x243   : > { %v5442_v43 = vpack.c.bf16 %v679_v16, %v7118_v33  ;;  %v5478_v61 = vpack.c.bf16 %v681_v62, %v675_v60  ;;  %v6599_v51 = vunpack.i.l.bf16 %v6598_v31  ;;  %v6520_v23 = vunpack.i.h.bf16 %v6518_v21  ;;  %5441 = vmatprep.subr.bf16.mxu1 %v5440_v52 }
 0x244   : > { %v6519_v3 = vunpack.i.l.bf16 %v6518_v21  ;;  %v6495_v15 = vunpack.i.h.bf16 %v7056_v59  ;;  %v6494_v37 = vunpack.i.l.bf16 %v7056_v59  ;;  %v5480_v33 = vpack.c.bf16 %v7137_v10, %v768_v49 }
 0x245   : > { %5479 = vmatpush1.bf16.msra.mxu0 %v5478_v61  ;;  %v9642_v32 = vunpack.i.h.bf16 %v7020_v55  ;;  %v9643_v53 = vunpack.i.l.bf16 %v7018_v28  ;;  %v9644_v12 = vunpack.i.h.bf16 %v6928_v24  ;;  %5443 = vmatpush1.bf16.msra.mxu1 %v5442_v43  ;;  %v6603_v10 = vpop.permute.xlu0 %6602  ;;  %v6523_v48 = vpop.permute.xlu1 %6522  ;;  %v9645_v24 = vunpack.i.h.bf16 %v6897_v2 }
 0x246   : > { %v772_v56 = vsel %vm79_vm1, %v6519_v3, %v6520_v23  ;;  %5481 = vmatprep.subr.bf16.mxu0 %v5480_v33  ;;  %v6605_v28 = vunpack.i.h.bf16 %v6603_v10  ;;  %v6604_v62 = vunpack.i.l.bf16 %v6603_v10  ;;  %v6525_v0 = vunpack.i.h.bf16 %v6523_v48 }
 0x247   : > { %v767_v26 = vsel %vm79_vm1, %v9642_v32, %v6594_v18  ;;  %v773_v54 = vsel %vm79_vm1, %v6520_v23, %v9643_v53  ;;  %v771_v14 = vsel %vm79_vm1, %v9644_v12, %v6519_v3  ;;  %v5444_v55 = vpack.c.bf16 %v772_v56, %v7142_v50 }
 0x248   : > { %v5446_v30 = vpack.c.bf16 %v771_v14, %v7131_v35  ;;  %v5482_v60 = vpack.c.bf16 %v773_v54, %v767_v26  ;;  %v860_v18 = vsel %vm88_vm3, %v6599_v51, %v6600_v29  ;;  %v6524_v16 = vunpack.i.l.bf16 %v6523_v48 }
 0x249   : > { %v7222_v63 = vsel %vm106_vm5, %v9645_v24, %v6494_v37  ;;  %v6580_v35 = vunpack.i.h.bf16 %v7074_v44  ;;  %5445 = vmatprep.subr.bf16.mxu1 %v5444_v55  ;;  %v5484_v43 = vpack.c.bf16 %v7154_v19, %v860_v18  ;;  %v1050_v50 = vsel %vm106_vm5, %v6574_v13, %v6575_v46  ;;  %v6608_v46 = vpop.permute.xlu0 %6607  ;;  %v6528_v3 = vpop.permute.xlu1 %6527 }
 0x24a   : > { %5483 = vmatpush1.bf16.msra.mxu0 %v5482_v60  ;;  %v9646_v61 = vunpack.i.h.bf16 %v7036_v8  ;;  %v9647_v21 = vunpack.i.l.bf16 %v7034_v58  ;;  %v9648_v52 = vunpack.i.h.bf16 %v6930_v25  ;;  %5447 = vmatpush1.bf16.msra.mxu1 %v5446_v30  ;;  %v864_v29 = vsel %vm88_vm3, %v6524_v16, %v6525_v0 }
 0x24b   : > { %5485 = vmatprep.subr.bf16.mxu0 %v5484_v43  ;;  %v5448_v8 = vpack.c.bf16 %v864_v29, %v7159_v20  ;;  %v6610_v58 = vunpack.i.h.bf16 %v6608_v46  ;;  %v6609_v33 = vunpack.i.l.bf16 %v6608_v46  ;;  %v6530_v32 = vunpack.i.h.bf16 %v6528_v3 }
 0x24c   : > { %v859_v31 = vsel %vm88_vm3, %v9646_v61, %v6599_v51  ;;  %v865_v2 = vsel %vm88_vm3, %v6525_v0, %v9647_v21  ;;  %v863_v49 = vsel %vm88_vm3, %v9648_v52, %v6524_v16  ;;  %v952_v51 = vsel %vm97_vm6, %v6604_v62, %v6605_v28 }
 0x24d   : > { %v5450_v19 = vpack.c.bf16 %v863_v49, %v7149_v1  ;;  %v5486_v23 = vpack.c.bf16 %v865_v2, %v859_v31  ;;  %v6529_v26 = vunpack.i.l.bf16 %v6528_v3  ;;  %v6579_v25 = vunpack.i.l.bf16 %v7074_v44  ;;  %5449 = vmatprep.subr.bf16.mxu1 %v5448_v8  ;;  %v6533_v55 = vpop.permute.xlu1 %6532 }
 0x24e   : > { %v6500_v53 = vunpack.i.h.bf16 %v7076_v42  ;;  %v6499_v54 = vunpack.i.l.bf16 %v7076_v42  ;;  %v5488_v1 = vpack.c.bf16 %v7181_v34, %v952_v51  ;;  %v9649_v12 = vunpack.i.h.bf16 %v7046_v27  ;;  %v6613_v34 = vpop.permute.xlu0 %6612 }
 0x24f   : > { %5487 = vmatpush1.bf16.msra.mxu0 %v5486_v23  ;;  %v9650_v14 = vunpack.i.l.bf16 %v7044_v17  ;;  %v9651_v30 = vunpack.i.h.bf16 %v6946_v40  ;;  %5451 = vmatpush1.bf16.msra.mxu1 %v5450_v19  ;;  %v956_v10 = vsel %vm97_vm6, %v6529_v26, %v6530_v32  ;;  %v1044_v18 = vsel %vm106_vm5, %v6609_v33, %v6610_v58 }
 0x250   : > { %v951_v20 = vsel %vm97_vm6, %v9649_v12, %v6604_v62  ;;  %5489 = vmatprep.subr.bf16.mxu0 %v5488_v1  ;;  %v5452_v27 = vpack.c.bf16 %v956_v10, %v7186_v36  ;;  %v6615_v17 = vunpack.i.h.bf16 %v6613_v34  ;;  %v6614_v28 = vunpack.i.l.bf16 %v6613_v34 }
 0x251   : > { %v957_v56 = vsel %vm97_vm6, %v6530_v32, %v9650_v14  ;;  %v955_v60 = vsel %vm97_vm6, %v9651_v30, %v6529_v26  ;;  %v6535_v62 = vunpack.i.h.bf16 %v6533_v55  ;;  %v6534_v0 = vunpack.i.l.bf16 %v6533_v55  ;;  %v6538_v52 = vpop.permute.xlu1 %6537 }
 0x252   : > { %v5454_v42 = vpack.c.bf16 %v955_v60, %v7167_v57  ;;  %v5490_v48 = vpack.c.bf16 %v957_v56, %v951_v20  ;;  %v9652_v40 = vunpack.i.h.bf16 %v6903_v4  ;;  %v6504_v24 = vunpack.i.l.bf16 %v7111_v47  ;;  %5453 = vmatprep.subr.bf16.mxu1 %v5452_v27 }
 0x253   : > { %v5492_v57 = vpack.c.bf16 %v1050_v50, %v1044_v18  ;;  %v1042_v36 = vsel %vm106_vm5, %v6494_v37, %v6495_v15  ;;  %v1043_v43 = vsel %vm106_vm5, %v6495_v15, %v6609_v33  ;;  %v1049_v4 = vsel %vm106_vm5, %v6535_v62, %v6574_v13  ;;  %v6618_v37 = vpop.permute.xlu0 %6617 }
 0x254   : > { %v1133_v16 = vsel %vm115_vm8, %v9652_v40, %v6499_v54  ;;  %5491 = vmatpush1.bf16.msra.mxu0 %v5490_v48  ;;  %v9653_v61 = vunpack.i.h.bf16 %v6948_v41  ;;  %5455 = vmatpush1.bf16.msra.mxu1 %v5454_v42  ;;  %v1048_v50 = vsel %vm106_vm5, %v6534_v0, %v6535_v62  ;;  %v5494_v2 = vpack.c.bf16 %v1049_v4, %v1043_v43 }
 0x255   : > { %5493 = vmatprep.subr.bf16.mxu0 %v5492_v57  ;;  %v5456_v59 = vpack.c.bf16 %v1048_v50, %v1042_v36  ;;  %v1136_v15 = vsel %vm115_vm8, %v6614_v28, %v6615_v17  ;;  %v6540_v49 = vunpack.i.h.bf16 %v6538_v52  ;;  %v6539_v38 = vunpack.i.l.bf16 %v6538_v52  ;;  %v6543_v26 = vpop.permute.xlu1 %6542 }
 0x256   : > { %v1047_v31 = vsel %vm106_vm5, %v9653_v61, %v6534_v0  ;;  %v1142_v41 = vsel %vm115_vm8, %v6579_v25, %v6580_v35  ;;  %v1134_v13 = vsel %vm115_vm8, %v6499_v54, %v6500_v53  ;;  %v6505_v29 = vunpack.i.h.bf16 %v7111_v47 }
 0x257   : > { %v5458_v21 = vpack.c.bf16 %v1047_v31, %v7222_v63  ;;  %v6620_v19 = vunpack.i.h.bf16 %v6618_v37  ;;  %v6619_v23 = vunpack.i.l.bf16 %v6618_v37  ;;  %5457 = vmatprep.subr.bf16.mxu1 %v5456_v59  ;;  %v5496_v63 = vpack.c.bf16 %v1142_v41, %v1136_v15  ;;  %v6623_v32 = vpop.permute.xlu0 %6622 }
 0x258   : > { %5495 = vmatpush1.bf16.msra.mxu0 %v5494_v2  ;;  %v1135_v46 = vsel %vm115_vm8, %v6500_v53, %v6614_v28  ;;  %v1141_v3 = vsel %vm115_vm8, %v6540_v49, %v6579_v25  ;;  %v9654_v8 = vunpack.i.h.bf16 %v6964_v9  ;;  %v1140_v44 = vsel %vm115_vm8, %v6539_v38, %v6540_v49 }
 0x259   : > { %5459 = vmatpush1.bf16.msra.mxu1 %v5458_v21  ;;  %v9655_v35 = vunpack.i.h.bf16 %v6901_v5  ;;  %v5498_v33 = vpack.c.bf16 %v1141_v3, %v1135_v46  ;;  %5497 = vmatprep.subr.bf16.mxu0 %v5496_v63  ;;  %v5460_v54 = vpack.c.bf16 %v1140_v44, %v1134_v13  ;;  %v6625_v53 = vunpack.i.h.bf16 %v6623_v32 }
 0x25a   : > { %v1139_v51 = vsel %vm115_vm8, %v9654_v8, %v6539_v38  ;;  %v6624_v1 = vunpack.i.l.bf16 %v6623_v32  ;;  %v6545_v25 = vunpack.i.h.bf16 %v6543_v26  ;;  %v6544_v12 = vunpack.i.l.bf16 %v6543_v26 }
 0x25b   : > { %v1225_v47 = vsel %vm124_vm7, %v9655_v35, %v6504_v24  ;;  %v5462_v58 = vpack.c.bf16 %v1139_v51, %v1133_v16  ;;  %v1227_v9 = vsel %vm124_vm7, %v6505_v29, %v6619_v23  ;;  %5461 = vmatprep.subr.bf16.mxu1 %v5460_v54  ;;  %v1226_v20 = vsel %vm124_vm7, %v6504_v24, %v6505_v29 }
 0x25c   : > { %5499 = vmatpush1.bf16.msra.mxu0 %v5498_v33  ;;  %v1228_v5 = vsel %vm124_vm7, %v6619_v23, %v6620_v19  ;;  %v1233_v14 = vsel %vm124_vm7, %v6545_v25, %v6624_v1  ;;  %v9656_v56 = vunpack.i.h.bf16 %v6966_v11  ;;  %v1232_v60 = vsel %vm124_vm7, %v6544_v12, %v6545_v25 }
 0x25d   : > { %5463 = vmatpush1.bf16.msra.mxu1 %v5462_v58  ;;  %v1234_v10 = vsel %vm124_vm7, %v6624_v1, %v6625_v53  ;;  %v5502_v48 = vpack.c.bf16 %v1233_v14, %v1227_v9  ;;  %v5464_v34 = vpack.c.bf16 %v1232_v60, %v1226_v20 }
 0x25e   : > { %v1231_v30 = vsel %vm124_vm7, %v9656_v56, %v6544_v12  ;;  %v5500_v55 = vpack.c.bf16 %v1234_v10, %v1228_v5 }
 0x25f   : > { %v5466_v42 = vpack.c.bf16 %v1231_v30, %v1225_v47  ;;  %5465 = vmatprep.subr.bf16.mxu1 %v5464_v34 }
 0x260   : > { %5501 = vmatprep.subr.bf16.mxu0 %v5500_v55 }
 0x261   : > { %5467 = vmatpush1.bf16.msra.mxu1 %v5466_v42  ;;  %5503 = vmatpush1.bf16.msra.mxu0 %v5502_v48 }
 0x264   : > { %1548 = vmatmul.mubr.f32.vlgmr.msra.gmra.mrb[14].mxu1 %v7052_v7  ;;  %1631 = vmatmul.mubr.f32.vlgmr.msra.gmra.mrb[6].mxu0 %v7052_v7 }
 0x265   : > { %5357 = vmatprep.mubr.msk.f32.mxu1 %vm158_vm9, %v7062_v22  ;;  %5360 = vmatprep.mubr.msk.f32.mxu0 %vm158_vm9, %v7062_v22 }
 0x266   : > { %v1379_v11 = vpop.permute.xlu1 %1378 }
 0x268   : > { %1554 = vmatmul.mubr.f32.gmra.mrb[16].mxu1 %v7072_v39  ;;  %1637 = vmatmul.mubr.f32.gmra.mrb[8].mxu0 %v7072_v39  ;;  %v1384_v39 = vpop.permute.xlu0 %1383 }
 0x269   : > { %5358 = vmatprep.mubr.msk.f32.mxu1 %vm158_vm9, %v7081_v45  ;;  %5361 = vmatprep.mubr.msk.f32.mxu0 %vm158_vm9, %v7081_v45 }
 0x26a   : > { %v1389_v50 = vpop.permute.xlu1 %1388 }
 0x26c   : > { %1560 = vmatmul.mubr.f32.gmra.mrb[18].mxu1 %v7105_v6  ;;  %1643 = vmatmul.mubr.f32.gmra.mrb[10].mxu0 %v7105_v6 }
 0x302   : > { %v1466_v7 = vpop.f32.mrb[0].mxu0 }
 0x303   : > { %v7317_v27 = vadd.f32 %v1466_v7, %v1379_v11  ;;  %v1468_v18 = vpop.f32.mrb[1].mxu0 }
 0x304   : > { %v7319_v22 = vadd.f32 %v1468_v18, %v1379_v11 }
 0x305   : > { %v1649_v17 = vmax.f32 %v7317_v27, 0.0 }
 0x306   : > { %v1650_v28 = vmax.f32 %v7319_v22, 0.0  ;;  %v1472_v62 = vpop.f32.mrb[2].mxu0 }
 0x307   : > { %v7323_v0 = vadd.f32 %v1472_v62, %v1384_v39  ;;  %v1474_v45 = vpop.f32.mrb[3].mxu0  ;;  %1736 = vrot.lane.b32.xlu0 %v1649_v17, %s6636_s19 }
 0x308   : > { %v7328_v6 = vadd.f32 %v1474_v45, %v1384_v39  ;;  %1738 = vrot.lane.b32.xlu1 %v1650_v28, %s6636_s19 }
 0x309   : > { %v1655_v40 = vmax.f32 %v7323_v0, 0.0 }
 0x30a   : > { %v1656_v16 = vmax.f32 %v7328_v6, 0.0  ;;  %v1478_v24 = vpop.f32.mrb[4].mxu0 }
 0x30b   : > { %v1480_v57 = vpop.f32.mrb[5].mxu0  ;;  %1748 = vrot.lane.b32.xlu0 %v1655_v40, %s6636_s19  ;;  %v7345_v2 = vadd.f32 %v1478_v24, %v1389_v50 }
 0x30c   : > { %1750 = vrot.lane.b32.xlu1 %v1656_v16, %s6636_s19  ;;  %v7348_v52 = vadd.f32 %v1480_v57, %v1389_v50 }
 0x30d   : > { %v1661_v13 = vmax.f32 %v7345_v2, 0.0 }
 0x30e   : > { %v1662_v19 = vmax.f32 %v7348_v52, 0.0 }
 0x337   : > { %v1549_v36 = vpop.f32.mrb[14].mxu1  ;;  %v1632_v43 = vpop.f32.mrb[6].mxu0 }
 0x338   : > { %v7341_v4 = vadd.f32 %v1549_v36, %v1379_v11  ;;  %v1551_v61 = vpop.f32.mrb[15].mxu1  ;;  %v1634_v31 = vpop.f32.mrb[7].mxu0  ;;  %v7377_v58 = vadd.f32 %v1632_v43, %v1379_v11 }
 0x339   : > { %v7343_v21 = vadd.f32 %v1551_v61, %v1379_v11  ;;  %v7380_v32 = vadd.f32 %v1634_v31, %v1379_v11 }
 0x33a   : > { %v1651_v37 = vmax.f32 %v7341_v4, 0.0  ;;  %v1653_v54 = vmax.f32 %v7377_v58, 0.0 }
 0x33b   : > { %v1652_v59 = vmax.f32 %v7343_v21, 0.0  ;;  %v1555_v15 = vpop.f32.mrb[16].mxu1  ;;  %v1638_v49 = vpop.f32.mrb[8].mxu0  ;;  %v1654_v1 = vmax.f32 %v7380_v32, 0.0 }
 0x33c   : > { %v1557_v38 = vpop.f32.mrb[17].mxu1  ;;  %v1640_v41 = vpop.f32.mrb[9].mxu0  ;;  %1740 = vrot.lane.b32.xlu0 %v1651_v37, %s6636_s19  ;;  %v7358_v29 = vadd.f32 %v1555_v15, %v1384_v39  ;;  %v7388_v53 = vadd.f32 %v1638_v49, %v1384_v39 }
 0x33d   : > { %1742 = vrot.lane.b32.xlu1 %v1652_v59, %s6636_s19  ;;  %v7361_v23 = vadd.f32 %v1557_v38, %v1384_v39  ;;  %v7391_v25 = vadd.f32 %v1640_v41, %v1384_v39 }
 0x33e   : > { %v1657_v51 = vmax.f32 %v7358_v29, 0.0  ;;  %v1659_v12 = vmax.f32 %v7388_v53, 0.0 }
 0x33f   : > { %v1561_v63 = vpop.f32.mrb[18].mxu1  ;;  %v1644_v46 = vpop.f32.mrb[10].mxu0  ;;  %v1658_v35 = vmax.f32 %v7361_v23, 0.0  ;;  %v1660_v20 = vmax.f32 %v7391_v25, 0.0 }
 0x340   : > { %v1563_v3 = vpop.f32.mrb[19].mxu1  ;;  %v1646_v8 = vpop.f32.mrb[11].mxu0  ;;  %1760 = vrot.lane.b32.xlu0 %v1661_v13, %s6636_s19  ;;  %v7368_v44 = vadd.f32 %v1561_v63, %v1389_v50  ;;  %v7398_v9 = vadd.f32 %v1644_v46, %v1389_v50 }
 0x341   : > { %1762 = vrot.lane.b32.xlu1 %v1662_v19, %s6636_s19  ;;  %v7371_v47 = vadd.f32 %v1563_v3, %v1389_v50  ;;  %v7401_v5 = vadd.f32 %v1646_v8, %v1389_v50 }
 0x342   : > { %v1663_v33 = vmax.f32 %v7368_v44, 0.0  ;;  %v1665_v14 = vmax.f32 %v7398_v9, 0.0 }
 0x343   : > { %v1664_v26 = vmax.f32 %v7371_v47, 0.0  ;;  %v1666_v56 = vmax.f32 %v7401_v5, 0.0 }
 0x344   : > { %1752 = vrot.lane.b32.xlu0 %v1657_v51, %s6636_s19 }
 0x345   : > { %1754 = vrot.lane.b32.xlu1 %v1658_v35, %s6636_s19 }
 0x348   : > { %1764 = vrot.lane.b32.xlu0 %v1663_v33, %s6636_s19 }
 0x349   : > { %1766 = vrot.lane.b32.xlu1 %v1664_v26, %s6636_s19 }
 0x34c   : > { %1744 = vrot.lane.b32.xlu0 %v1653_v54, %s6636_s19 }
 0x34d   : > { %1746 = vrot.lane.b32.xlu1 %v1654_v1, %s6636_s19 }
 0x350   : > { %1756 = vrot.lane.b32.xlu0 %v1659_v12, %s6636_s19 }
 0x351   : > { %1758 = vrot.lane.b32.xlu1 %v1660_v20, %s6636_s19 }
 0x354   : > { %1768 = vrot.lane.b32.xlu0 %v1665_v14, %s6636_s19 }
 0x355   : > { %1770 = vrot.lane.b32.xlu1 %v1666_v56, %s6636_s19  ;;  %s1937_s19 = smul.u32 24, %s6632_s13  ;;  %s47_s13 = sadd.s32 1, %s6632_s13  }
 0x356   : > { %p44_p0 = scmp.ge.s32.totalorder %s47_s13, 32  }
 0x357   : > { %s1938_s16 = sshra.s32 %s1937_s19, 3  ;;  %vm5326_vm10 = vcmask (%p44_p0), 80896  }
 0x358   : > { %s5368_s17 = smul.u32 40, %s1938_s16 }
 0x35a   : > { %s7525_s21 = scalar_lea.vmem [#allocation6], %s5368_s17 }
 0x379   : > { %v1737_v30 = vpop.permute.xlu0 %1736 }
 0x37a   : > { %v1739_v60 = vpop.permute.xlu1 %1738 }
 0x37b   : > { %v1772_v10 = vsel %vm61_vm2, %v1737_v30, %v1739_v60 }
 0x37c   : > { %v7420_v42 = vmax.f32 %v1649_v17, %v1772_v10 }
 0x37d   : > { %v1749_v48 = vpop.permute.xlu0 %1748 }
 0x37e   : > { %v1751_v34 = vpop.permute.xlu1 %1750  ;;  %1856 = vrot.lane.b32.xlu0 %v7420_v42, %s6635_s18 }
 0x37f   : > { %v1777_v55 = vsel %vm61_vm2, %v1749_v48, %v1751_v34 }
 0x380   : > { %v7427_v11 = vmax.f32 %v1655_v40, %v1777_v55 }
 0x382   : > { %1868 = vrot.lane.b32.xlu0 %v7427_v11, %s6635_s18 }
 0x3ae   : > { %v1741_v7 = vpop.permute.xlu0 %1740 }
 0x3af   : > { %v1773_v18 = vsel %vm61_vm2, %v1739_v60, %v1741_v7  ;;  %v1743_v27 = vpop.permute.xlu1 %1742 }
 0x3b0   : > { %v7434_v17 = vmax.f32 %v1650_v28, %v1773_v18  ;;  %v1774_v39 = vsel %vm61_vm2, %v1741_v7, %v1743_v27 }
 0x3b1   : > { %v7439_v62 = vmax.f32 %v1651_v37, %v1774_v39 }
 0x3b2   : > { %1858 = vrot.lane.b32.xlu1 %v7434_v17, %s6635_s18  ;;  %v1761_v0 = vpop.permute.xlu0 %1760 }
 0x3b3   : > { %v1763_v45 = vpop.permute.xlu1 %1762  ;;  %1860 = vrot.lane.b32.xlu0 %v7439_v62, %s6635_s18 }
 0x3b4   : > { %v1782_v40 = vsel %vm61_vm2, %v1761_v0, %v1763_v45 }
 0x3b5   : > { %v7446_v24 = vmax.f32 %v1661_v13, %v1782_v40 }
 0x3b6   : > { %v1753_v22 = vpop.permute.xlu0 %1752 }
 0x3b7   : > { %v1778_v28 = vsel %vm61_vm2, %v1751_v34, %v1753_v22  ;;  %v1755_v57 = vpop.permute.xlu1 %1754  ;;  %1880 = vrot.lane.b32.xlu0 %v7446_v24, %s6635_s18 }
 0x3b8   : > { %v7453_v36 = vmax.f32 %v1656_v16, %v1778_v28  ;;  %v1779_v43 = vsel %vm61_vm2, %v1753_v22, %v1755_v57 }
 0x3b9   : > { %v7456_v4 = vmax.f32 %v1657_v51, %v1779_v43 }
 0x3ba   : > { %1870 = vrot.lane.b32.xlu1 %v7453_v36, %s6635_s18  ;;  %v1765_v61 = vpop.permute.xlu0 %1764 }
 0x3bb   : > { %v1783_v31 = vsel %vm61_vm2, %v1763_v45, %v1765_v61  ;;  %v1767_v50 = vpop.permute.xlu1 %1766  ;;  %1872 = vrot.lane.b32.xlu0 %v7456_v4, %s6635_s18 }
 0x3bc   : > { %v7465_v2 = vmax.f32 %v1662_v19, %v1783_v31  ;;  %v1784_v6 = vsel %vm61_vm2, %v1765_v61, %v1767_v50 }
 0x3bd   : > { %v7468_v16 = vmax.f32 %v1663_v33, %v1784_v6 }
 0x3be   : > { %1882 = vrot.lane.b32.xlu1 %v7465_v2, %s6635_s18  ;;  %v1745_v37 = vpop.permute.xlu0 %1744 }
 0x3bf   : > { %v1775_v15 = vsel %vm61_vm2, %v1743_v27, %v1745_v37  ;;  %v1747_v49 = vpop.permute.xlu1 %1746  ;;  %1884 = vrot.lane.b32.xlu0 %v7468_v16, %s6635_s18 }
 0x3c0   : > { %v7477_v38 = vmax.f32 %v1652_v59, %v1775_v15  ;;  %v1776_v52 = vsel %vm61_vm2, %v1745_v37, %v1747_v49  ;;  %v1825_v19 = vmax.f32 %v1654_v1, %v1747_v49 }
 0x3c1   : > { %v7480_v41 = vmax.f32 %v1653_v54, %v1776_v52 }
 0x3c2   : > { %1862 = vrot.lane.b32.xlu1 %v7477_v38, %s6635_s18  ;;  %v1757_v13 = vpop.permute.xlu0 %1756 }
 0x3c3   : > { %v1759_v29 = vpop.permute.xlu1 %1758  ;;  %1864 = vrot.lane.b32.xlu0 %v7480_v41, %s6635_s18  ;;  %v1780_v21 = vsel %vm61_vm2, %v1755_v57, %v1757_v13 }
 0x3c4   : > { %v1781_v63 = vsel %vm61_vm2, %v1757_v13, %v1759_v29  ;;  %v1810_v8 = vmax.f32 %v1658_v35, %v1780_v21  ;;  %v1831_v58 = vmax.f32 %v1660_v20, %v1759_v29  ;;  %v2505_v13 = vld [vmem:[%s9610_s5 + $0x218] sm:$0xff] (%p44_p0)  ;;  %v2502_v29 = vld [vmem:[%s9610_s5 + $0x200] sm:$0xff] (%p44_p0)  ;;  %v2507_v21 = vld [vmem:[%s9610_s5 + $0x228] sm:$0xff] (%p44_p0) }
 0x3c5   : > { %v7492_v59 = vmax.f32 %v1659_v12, %v1781_v63  ;;  %v2504_v63 = vld [vmem:[%s9610_s5 + $0x210] sm:$0xff] (%p44_p0) }
 0x3c6   : > { %1866 = vrot.lane.b32.xlu1 %v1825_v19, %s6635_s18  ;;  %v1769_v46 = vpop.permute.xlu0 %1768 }
 0x3c7   : > { %v1771_v3 = vpop.permute.xlu1 %1770  ;;  %1876 = vrot.lane.b32.xlu0 %v7492_v59, %s6635_s18  ;;  %v1785_v33 = vsel %vm61_vm2, %v1767_v50, %v1769_v46 }
 0x3c8   : > { %v1786_v51 = vsel %vm61_vm2, %v1769_v46, %v1771_v3  ;;  %v7513_v23 = vmax.f32 %v1664_v26, %v1785_v33  ;;  %v1837_v35 = vmax.f32 %v1666_v56, %v1771_v3  ;;  %v7590_v46 = vpack.c.bf16 (%p44_p0), %v2504_v63, %v2502_v29  ;;  %v2443_v29 = vld [vmem:[%s9610_s5 + $0x28] sm:$0xff] (%p44_p0)  ;;  %v2545_v63 = vld [vmem:[%s9610_s5 + $0x358] sm:$0xff] (%p44_p0) }
 0x3c9   : > { %v7502_v44 = vmax.f32 %v1665_v14, %v1786_v51  ;;  %v2508_v51 = vld [vmem:[%s9610_s5 + $0x230] sm:$0xff] (%p44_p0) }
 0x3ca   : > { %1874 = vrot.lane.b32.xlu1 %v1810_v8, %s6635_s18 }
 0x3cb   : > { %1888 = vrot.lane.b32.xlu0 %v7502_v44, %s6635_s18 }
 0x3ce   : > { %1878 = vrot.lane.b32.xlu1 %v1831_v58, %s6635_s18  ;;  %v2513_v58 = vld [vmem:[%s9610_s5 + $0x258] sm:$0xff] (%p44_p0) }
 0x3d2   : > { %1886 = vrot.lane.b32.xlu1 %v7513_v23, %s6635_s18 }
 0x3d6   : > { %1890 = vrot.lane.b32.xlu1 %v1837_v35, %s6635_s18  ;;  %v2510_v35 = vld [vmem:[%s9610_s5 + $0x240] sm:$0xff] (%p44_p0) }
 0x3f0   : > { %v1857_v32 = vpop.permute.xlu0 %1856 }
 0x3f4   : > { %v1869_v54 = vpop.permute.xlu0 %1868 }
 0x424   : > { %v1859_v53 = vpop.permute.xlu1 %1858 }
 0x425   : > { %v1892_v1 = vsel %vm79_vm1, %v1857_v32, %v1859_v53  ;;  %v1861_v25 = vpop.permute.xlu0 %1860  ;;  %v2512_v32 = vld [vmem:[%s9610_s5 + $0x250] sm:$0xff] (%p44_p0) }
 0x426   : > { %v1922_v47 = vmax.f32 %v7420_v42, %v1892_v1  ;;  %v1893_v26 = vsel %vm79_vm1, %v1859_v53, %v1861_v25  ;;  %v2517_v53 = vld [vmem:[%s9610_s5 + $0x278] sm:$0xff] (%p44_p0)  ;;  %v7626_v1 = vpack.c.bf16 (%p44_p0), %v2512_v32, %v2510_v35  ;;  %v2542_v32 = vld [vmem:[%s9610_s5 + $0x340] sm:$0xff] (%p44_p0) }
 0x427   : > { %v1923_v12 = vmax.f32 %v7434_v17, %v1893_v26  ;;  %v2516_v26 = vld [vmem:[%s9610_s5 + $0x270] sm:$0xff] (%p44_p0) }
 0x428   : > { %1943 = vst [vmem:[%s7525_s21] sm:$0xff] %v1922_v47  ;;  %v2514_v47 = vld [vmem:[%s9610_s5 + $0x260] sm:$0xff] (%p44_p0) }
 0x429   : > { %1944 = vst [vmem:[%s7525_s21 + $0x8] sm:$0xff] %v1923_v12  ;;  %v1881_v9 = vpop.permute.xlu0 %1880  ;;  %v2519_v12 = vld [vmem:[%s9610_s5 + $0x288] sm:$0xff] (%p44_p0) }
 0x42c   : > { %v1871_v20 = vpop.permute.xlu1 %1870 }
 0x42d   : > { %v1897_v5 = vsel %vm79_vm1, %v1869_v54, %v1871_v20  ;;  %v1873_v14 = vpop.permute.xlu0 %1872  ;;  %v2515_v54 = vld [vmem:[%s9610_s5 + $0x268] sm:$0xff] (%p44_p0) }
 0x42e   : > { %v1927_v56 = vmax.f32 %v7427_v11, %v1897_v5  ;;  %v1898_v30 = vsel %vm79_vm1, %v1871_v20, %v1873_v14  ;;  %v7644_v20 = vpack.c.bf16 (%p44_p0), %v2516_v26, %v2514_v47  ;;  %v2449_v47 = vld [vmem:[%s9610_s5 + $0x58] sm:$0xff] (%p44_p0) }
 0x42f   : > { %v1928_v60 = vmax.f32 %v7453_v36, %v1898_v30  ;;  %v2523_v30 = vld [vmem:[%s9610_s5 + $0x2a8] sm:$0xff] (%p44_p0) }
 0x430   : > { %1948 = vst [vmem:[%s7525_s21 + $0x28] sm:$0xff] %v1927_v56  ;;  %v1883_v10 = vpop.permute.xlu1 %1882  ;;  %v2520_v56 = vld [vmem:[%s9610_s5 + $0x290] sm:$0xff] (%p44_p0) }
 0x431   : > { %1949 = vst [vmem:[%s7525_s21 + $0x30] sm:$0xff] %v1928_v60  ;;  %v1902_v42 = vsel %vm79_vm1, %v1881_v9, %v1883_v10  ;;  %v1885_v48 = vpop.permute.xlu0 %1884  ;;  %v2521_v9 = vld [vmem:[%s9610_s5 + $0x298] sm:$0xff] (%p44_p0) }
 0x432   : > { %v1932_v34 = vmax.f32 %v7446_v24, %v1902_v42  ;;  %v1903_v55 = vsel %vm79_vm1, %v1883_v10, %v1885_v48  ;;  %v7647_v5 = vpack.c.bf16 (%p44_p0), %v2521_v9, %v2519_v12  ;;  %v2525_v60 = vld [vmem:[%s9610_s5 + $0x2b8] sm:$0xff] (%p44_p0)  ;;  %v2547_v12 = vld [vmem:[%s9610_s5 + $0x368] sm:$0xff] (%p44_p0) }
 0x433   : > { %v1933_v7 = vmax.f32 %v7465_v2, %v1903_v55  ;;  %v7665_v42 = vpack.c.bf16 (%p44_p0), %v2525_v60, %v2523_v30  ;;  %v2527_v55 = vld [vmem:[%s9610_s5 + $0x2c8] sm:$0xff] (%p44_p0)  ;;  %v2549_v30 = vld [vmem:[%s9610_s5 + $0x378] sm:$0xff] (%p44_p0) }
 0x434   : > { %1953 = vst [vmem:[%s7525_s21 + $0x50] sm:$0xff] %v1932_v34  ;;  %v1863_v11 = vpop.permute.xlu1 %1862  ;;  %v2524_v34 = vld [vmem:[%s9610_s5 + $0x2b0] sm:$0xff] (%p44_p0)  ;;  %v2451_v60 = vld [vmem:[%s9610_s5 + $0x68] sm:$0xff] (%p44_p0) }
 0x435   : > { %1954 = vst [vmem:[%s7525_s21 + $0x58] sm:$0xff] %v1933_v7  ;;  %v1894_v18 = vsel %vm79_vm1, %v1861_v25, %v1863_v11  ;;  %v1865_v27 = vpop.permute.xlu0 %1864  ;;  %v7629_v25 = vpack.c.bf16 (%p44_p0), %v2517_v53, %v2515_v54  ;;  %v2529_v7 = vld [vmem:[%s9610_s5 + $0x2d8] sm:$0xff] (%p44_p0)  ;;  %v2544_v54 = vld [vmem:[%s9610_s5 + $0x350] sm:$0xff] (%p44_p0) }
 0x436   : > { %v1924_v17 = vmax.f32 %v7439_v62, %v1894_v18  ;;  %v1895_v39 = vsel %vm79_vm1, %v1863_v11, %v1865_v27  ;;  %v7683_v18 = vpack.c.bf16 (%p44_p0), %v2529_v7, %v2527_v55  ;;  %v2546_v55 = vld [vmem:[%s9610_s5 + $0x360] sm:$0xff] (%p44_p0)  ;;  %v2548_v7 = vld [vmem:[%s9610_s5 + $0x370] sm:$0xff] (%p44_p0) }
 0x437   : > { %v1925_v0 = vmax.f32 %v7477_v38, %v1895_v39 }
 0x438   : > { %1945 = vst [vmem:[%s7525_s21 + $0x10] sm:$0xff] %v1924_v17  ;;  %v1867_v45 = vpop.permute.xlu1 %1866  ;;  %v2528_v17 = vld [vmem:[%s9610_s5 + $0x2d0] sm:$0xff] (%p44_p0) }
 0x439   : > { %1946 = vst [vmem:[%s7525_s21 + $0x18] sm:$0xff] %v1925_v0  ;;  %v1896_v40 = vsel %vm79_vm1, %v1865_v27, %v1867_v45  ;;  %v1877_v22 = vpop.permute.xlu0 %1876  ;;  %v2526_v27 = vld [vmem:[%s9610_s5 + $0x2c0] sm:$0xff] (%p44_p0)  ;;  %v2531_v0 = vld [vmem:[%s9610_s5 + $0x2e8] sm:$0xff] (%p44_p0)  ;;  %v2533_v45 = vld [vmem:[%s9610_s5 + $0x2f8] sm:$0xff] (%p44_p0) }
 0x43a   : > { %v1926_v24 = vmax.f32 %v7480_v41, %v1896_v40  ;;  %v7698_v40 = vpack.c.bf16 (%p44_p0), %v2528_v17, %v2526_v27  ;;  %v7821_v17 = vpack.c.bf16 (%p44_p0), %v2549_v30, %v2547_v12 }
 0x43c   : > { %1947 = vst [vmem:[%s7525_s21 + $0x20] sm:$0xff] %v1926_v24  ;;  %v1875_v28 = vpop.permute.xlu1 %1874  ;;  %v7701_v24 = vpack.c.bf16 (%p44_p0), %v2533_v45, %v2531_v0  ;;  %v2450_v45 = vld [vmem:[%s9610_s5 + $0x60] sm:$0xff] (%p44_p0) }
 0x43d   : > { %v1899_v57 = vsel %vm79_vm1, %v1873_v14, %v1875_v28  ;;  %v1900_v62 = vsel %vm79_vm1, %v1875_v28, %v1877_v22  ;;  %v1889_v2 = vpop.permute.xlu0 %1888  ;;  %v2518_v14 = vld [vmem:[%s9610_s5 + $0x280] sm:$0xff] (%p44_p0)  ;;  %v2532_v28 = vld [vmem:[%s9610_s5 + $0x2f0] sm:$0xff] (%p44_p0) }
 0x43e   : > { %v1929_v36 = vmax.f32 %v7456_v4, %v1899_v57  ;;  %v1930_v43 = vmax.f32 %v1810_v8, %v1900_v62  ;;  %v2506_v8 = vld [vmem:[%s9610_s5 + $0x220] sm:$0xff] (%p44_p0)  ;;  %v7662_v10 = vpack.c.bf16 (%p44_p0), %v2520_v56, %v2518_v14  ;;  %v2535_v57 = vld [vmem:[%s9610_s5 + $0x308] sm:$0xff] (%p44_p0)  ;;  %v2537_v62 = vld [vmem:[%s9610_s5 + $0x318] sm:$0xff] (%p44_p0) }
 0x43f   :  { %v7608_v33 = vpack.c.bf16 (%p44_p0), %v2508_v51, %v2506_v8  ;;  %v2442_v8 = vld [vmem:[%s9610_s5 + $0x20] sm:$0xff] (%p44_p0)  ;;  %v2448_v56 = vld [vmem:[%s9610_s5 + $0x50] sm:$0xff] (%p44_p0) }
 0x440   : > { %1950 = vst [vmem:[%s7525_s21 + $0x38] sm:$0xff] %v1929_v36  ;;  %1951 = vst [vmem:[%s7525_s21 + $0x40] sm:$0xff] %v1930_v43  ;;  %v1879_v61 = vpop.permute.xlu1 %1878  ;;  %v7719_v43 = vpack.c.bf16 (%p44_p0), %v2537_v62, %v2535_v57  ;;  %v2446_v14 = vld [vmem:[%s9610_s5 + $0x40] sm:$0xff] (%p44_p0)  ;;  %v2455_v57 = vld [vmem:[%s9610_s5 + $0x88] sm:$0xff] (%p44_p0) }
 0x441   : > { %v1901_v31 = vsel %vm79_vm1, %v1877_v22, %v1879_v61  ;;  %v2530_v22 = vld [vmem:[%s9610_s5 + $0x2e0] sm:$0xff] (%p44_p0)  ;;  %v5514_v27 = vpack.c.bf16 (%p44_p0), %v2448_v56, %v2446_v14  ;;  %v2457_v62 = vld [vmem:[%s9610_s5 + $0x98] sm:$0xff] (%p44_p0)  ;;  %v2560_v14 = vld [vmem:[%s9610_s5 + $0x3d0] sm:$0xff] (%p44_p0) }
 0x442   : > { %v1931_v50 = vmax.f32 %v7492_v59, %v1901_v31  ;;  %v2509_v59 = vld [vmem:[%s9610_s5 + $0x238] sm:$0xff] (%p44_p0)  ;;  %v7716_v36 = vpack.c.bf16 (%p44_p0), %v2532_v28, %v2530_v22  ;;  %v2534_v61 = vld [vmem:[%s9610_s5 + $0x300] sm:$0xff] (%p44_p0)  ;;  %v2536_v31 = vld [vmem:[%s9610_s5 + $0x310] sm:$0xff] (%p44_p0) }
 0x443   :  { %v7592_v3 = vpack.c.bf16 (%p44_p0), %v2509_v59, %v2507_v21  ;;  %v2445_v59 = vld [vmem:[%s9610_s5 + $0x38] sm:$0xff] (%p44_p0)  ;;  %v2452_v22 = vld [vmem:[%s9610_s5 + $0x70] sm:$0xff] (%p44_p0) }
 0x444   : > { %1952 = vst [vmem:[%s7525_s21 + $0x48] sm:$0xff] %v1931_v50  ;;  %v1887_v6 = vpop.permute.xlu1 %1886  ;;  %v2539_v50 = vld [vmem:[%s9610_s5 + $0x328] sm:$0xff] (%p44_p0)  ;;  %v5508_v51 = vpack.c.bf16 (%p44_p0), %v2445_v59, %v2443_v29  ;;  %v2553_v28 = vld [vmem:[%s9610_s5 + $0x398] sm:$0xff] (%p44_p0) }
 0x445   : > { %v1904_v37 = vsel %vm79_vm1, %v1885_v48, %v1887_v6  ;;  %v1905_v15 = vsel %vm79_vm1, %v1887_v6, %v1889_v2  ;;  %v2522_v48 = vld [vmem:[%s9610_s5 + $0x2a0] sm:$0xff] (%p44_p0) }
 0x446   : > { %v1934_v49 = vmax.f32 %v7468_v16, %v1904_v37  ;;  %v1935_v4 = vmax.f32 %v7513_v23, %v1905_v15  ;;  %46 = sbr.rel (!%p44_p0) target bundleno = 5 (0x5), region = 77  ;;  %v2503_v16 = vld [vmem:[%s9610_s5 + $0x208] sm:$0xff] (%p44_p0)  ;;  %v7680_v11 = vpack.c.bf16 (%p44_p0), %v2524_v34, %v2522_v48  ;;  %v2538_v6 = vld [vmem:[%s9610_s5 + $0x320] sm:$0xff] (%p44_p0)  ;;  %v7740_v15 = vpack.c.bf16 (%p44_p0), %v2536_v31, %v2534_v61  ;;  %v2453_v48 = vld [vmem:[%s9610_s5 + $0x78] sm:$0xff] (%p44_p0) }
 0x447   :  { %v7579_v19 = vpack.c.bf16 (%p44_p0), %v2505_v13, %v2503_v16  ;;  %v2439_v37 = vld [vmem:[%s9610_s5 + $0x8] sm:$0xff] (%p44_p0)  ;;  %v2440_v13 = vld [vmem:[%s9610_s5 + $0x10] sm:$0xff] (%p44_p0)  ;;  %v7812_v34 = vpack.c.bf16 (%p44_p0), %v2544_v54, %v2542_v32  ;;  %v5516_v0 = vpack.c.bf16 (%p44_p0), %v2453_v48, %v2451_v60  ;;  %v7842_v61 = vpack.c.bf16 (%p44_p0), %v2548_v7, %v2546_v55  ;;  %v2550_v31 = vld [vmem:[%s9610_s5 + $0x380] sm:$0xff] (%p44_p0) }
 0x448   : > { %1955 = vst [vmem:[%s7525_s21 + $0x60] sm:$0xff] %v1934_v49  ;;  %1956 = vst [vmem:[%s7525_s21 + $0x68] sm:$0xff] %v1935_v4  ;;  %v1891_v38 = vpop.permute.xlu1 %1890  ;;  %v2540_v49 = vld [vmem:[%s9610_s5 + $0x330] sm:$0xff] (%p44_p0)  ;;  %v2441_v4 = vld [vmem:[%s9610_s5 + $0x18] sm:$0xff] (%p44_p0) }
 0x449   : > { %v1906_v52 = vsel %vm79_vm1, %v1889_v2, %v1891_v38  ;;  %5569 = vmatprep.subr.bf16.mxu0 (%p44_p0), %v7579_v19  ;;  %v2541_v2 = vld [vmem:[%s9610_s5 + $0x338] sm:$0xff] (%p44_p0)  ;;  %v2438_v38 = vld [vmem:[%s9610_s5] sm:$0xff] (%p44_p0)  ;;  %v5504_v16 = vpack.c.bf16 (%p44_p0), %v2441_v4, %v2439_v37  ;;  %v7779_v35 = vpack.c.bf16 (%p44_p0), %v2540_v49, %v2538_v6  ;;  %v2555_v37 = vld [vmem:[%s9610_s5 + $0x3a8] sm:$0xff] (%p44_p0)  ;;  %v5520_v49 = vpack.c.bf16 (%p44_p0), %v2457_v62, %v2455_v57 }
 0x44a   : > { %v1936_v41 = vmax.f32 %v7502_v44, %v1906_v52  ;;  %v2511_v44 = vld [vmem:[%s9610_s5 + $0x248] sm:$0xff] (%p44_p0)  ;;  %5571 = vmatpush1.bf16.msra.mxu0 (%p44_p0), %v7590_v46  ;;  %v7752_v52 = vpack.c.bf16 (%p44_p0), %v2541_v2, %v2539_v50  ;;  %v5506_v21 = vpack.c.bf16 (%p44_p0), %v2440_v13, %v2438_v38  ;;  %v2552_v50 = vld [vmem:[%s9610_s5 + $0x390] sm:$0xff] (%p44_p0)  ;;  %v5518_v2 = vpack.c.bf16 (%p44_p0), %v2452_v22, %v2450_v45  ;;  %v2454_v4 = vld [vmem:[%s9610_s5 + $0x80] sm:$0xff] (%p44_p0) }
 0x44b   :  { %5573 = vmatprep.subr.bf16.mxu0 (%p44_p0), %v7592_v3  ;;  %v7611_v23 = vpack.c.bf16 (%p44_p0), %v2513_v58, %v2511_v44  ;;  %5505 = vmatprep.subr.bf16.mxu1 (%p44_p0), %v5504_v16  ;;  %v2444_v44 = vld [vmem:[%s9610_s5 + $0x30] sm:$0xff] (%p44_p0)  ;;  %v2447_v58 = vld [vmem:[%s9610_s5 + $0x48] sm:$0xff] (%p44_p0)  ;;  %v2461_v13 = vld [vmem:[%s9610_s5 + $0xb8] sm:$0xff] (%p44_p0)  ;;  %v7872_v29 = vpack.c.bf16 (%p44_p0), %v2552_v50, %v2550_v31 }
 0x44c   : > { %1957 = vst [vmem:[%s7525_s21 + $0x70] sm:$0xff] %v1936_v41  ;;  %v2543_v41 = vld [vmem:[%s9610_s5 + $0x348] sm:$0xff] (%p44_p0)  ;;  %5507 = vmatpush1.bf16.msra.mxu1 (%p44_p0), %v5506_v21  ;;  %v5510_v53 = vpack.c.bf16 (%p44_p0), %v2444_v44, %v2442_v8  ;;  %v5512_v9 = vpack.c.bf16 (%p44_p0), %v2449_v47, %v2447_v58  ;;  %v2456_v38 = vld [vmem:[%s9610_s5 + $0x90] sm:$0xff] (%p44_p0)  ;;  %v2458_v58 = vld [vmem:[%s9610_s5 + $0xa0] sm:$0xff] (%p44_p0) }
 0x44d   :  { %v7791_v26 = vpack.c.bf16 %v2545_v63, %v2543_v41  ;;  %5509 = vmatprep.subr.bf16.mxu1 %v5508_v51  ;;  %v2557_v41 = vld [vmem:[%s9610_s5 + $0x3b8] sm:$0xff]  ;;  %v2459_v16 = vld [vmem:[%s9610_s5 + $0xa8] sm:$0xff]  ;;  %v2554_v63 = vld [vmem:[%s9610_s5 + $0x3a0] sm:$0xff]  ;;  %v5522_v59 = vpack.c.bf16 %v2456_v38, %v2454_v4 }
 0x44e   :  { %5575 = vmatpush1.bf16.msra.mxu0 %v7608_v33  ;;  %v2556_v21 = vld [vmem:[%s9610_s5 + $0x3b0] sm:$0xff]  ;;  %v7881_v8 = vpack.c.bf16 %v2557_v41, %v2555_v37  ;;  %v2559_v51 = vld [vmem:[%s9610_s5 + $0x3c8] sm:$0xff]  ;;  %v5524_v44 = vpack.c.bf16 %v2461_v13, %v2459_v16  ;;  %v2561_v54 = vld [vmem:[%s9610_s5 + $0x3d8] sm:$0xff] }
 0x44f   :  { %5577 = vmatprep.subr.bf16.mxu0 %v7611_v23  ;;  %v2460_v32 = vld [vmem:[%s9610_s5 + $0xb0] sm:$0xff]  ;;  %v2465_v47 = vld [vmem:[%s9610_s5 + $0xd8] sm:$0xff]  ;;  %v7902_v12 = vpack.c.bf16 %v2556_v21, %v2554_v63  ;;  %v7911_v30 = vpack.c.bf16 %v2561_v54, %v2559_v51  ;;  %v2563_v60 = vld [vmem:[%s9610_s5 + $0x3e8] sm:$0xff] }
 0x450   :  { %5511 = vmatpush1.bf16.msra.mxu1 %v5510_v53  ;;  %v2463_v53 = vld [vmem:[%s9610_s5 + $0xc8] sm:$0xff]  ;;  %v5526_v56 = vpack.c.bf16 %v2460_v32, %v2458_v58  ;;  %v2462_v55 = vld [vmem:[%s9610_s5 + $0xc0] sm:$0xff]  ;;  %v2464_v7 = vld [vmem:[%s9610_s5 + $0xd0] sm:$0xff] }
 0x451   :  { %5513 = vmatprep.subr.bf16.mxu1 %v5512_v9  ;;  %v2558_v9 = vld [vmem:[%s9610_s5 + $0x3c0] sm:$0xff]  ;;  %v5528_v48 = vpack.c.bf16 %v2465_v47, %v2463_v53  ;;  %v5530_v57 = vpack.c.bf16 %v2464_v7, %v2462_v55  ;;  %v2567_v31 = vld [vmem:[%s9610_s5 + $0x408] sm:$0xff]  ;;  %v2468_v37 = vld [vmem:[%s9610_s5 + $0xf0] sm:$0xff] }
 0x452   :  { %5579 = vmatpush1.bf16.msra.mxu0 %v7626_v1  ;;  %v7932_v45 = vpack.c.bf16 %v2560_v14, %v2558_v9  ;;  %v2562_v22 = vld [vmem:[%s9610_s5 + $0x3e0] sm:$0xff]  ;;  %v2471_v4 = vld [vmem:[%s9610_s5 + $0x108] sm:$0xff]  ;;  %v2473_v38 = vld [vmem:[%s9610_s5 + $0x118] sm:$0xff] }
 0x453   :  { %5581 = vmatprep.subr.bf16.mxu0 %v7629_v25  ;;  %v1961_v39 = vld [vmem:[#allocation6 + $0x18] sm:$0xff]  ;;  %v2566_v63 = vld [vmem:[%s9610_s5 + $0x400] sm:$0xff]  ;;  %v2568_v21 = vld [vmem:[%s9610_s5 + $0x410] sm:$0xff]  ;;  %v5536_v51 = vpack.c.bf16 %v2473_v38, %v2471_v4 }
 0x454   :  { %3303 = vmatprep.mubr.f32.mxu0 %v1961_v39  ;;  %v2551_v39 = vld [vmem:[%s9610_s5 + $0x388] sm:$0xff]  ;;  %5515 = vmatpush1.bf16.msra.mxu1 %v5514_v27  ;;  %v2565_v27 = vld [vmem:[%s9610_s5 + $0x3f8] sm:$0xff]  ;;  %v2470_v58 = vld [vmem:[%s9610_s5 + $0x100] sm:$0xff]  ;;  %v5634_v9 = vpack.c.bf16 %v2568_v21, %v2566_v63 }
 0x455   :  { %v7851_v6 = vpack.c.bf16 %v2553_v28, %v2551_v39  ;;  %5517 = vmatprep.subr.bf16.mxu1 %v5516_v0  ;;  %v2467_v39 = vld [vmem:[%s9610_s5 + $0xe8] sm:$0xff]  ;;  %v2469_v0 = vld [vmem:[%s9610_s5 + $0xf8] sm:$0xff]  ;;  %v2564_v28 = vld [vmem:[%s9610_s5 + $0x3f0] sm:$0xff]  ;;  %v7941_v62 = vpack.c.bf16 %v2565_v27, %v2563_v60 }
 0x456   :  { %5583 = vmatpush1.bf16.msra.mxu0 %v7644_v20  ;;  %v5532_v50 = vpack.c.bf16 %v2469_v0, %v2467_v39  ;;  %v7962_v41 = vpack.c.bf16 %v2564_v28, %v2562_v22  ;;  %v2472_v32 = vld [vmem:[%s9610_s5 + $0x110] sm:$0xff]  ;;  %v2475_v54 = vld [vmem:[%s9610_s5 + $0x128] sm:$0xff]  ;;  %v2477_v53 = vld [vmem:[%s9610_s5 + $0x138] sm:$0xff] }
 0x457   :  { %5585 = vmatprep.subr.bf16.mxu0 %v7647_v5  ;;  %v1960_v47 = vld [vmem:[#allocation6 + $0x10] sm:$0xff]  ;;  %v1966_v14 = vld [vmem:[#allocation6 + $0x40] sm:$0xff]  ;;  %v2575_v7 = vld [vmem:[%s9610_s5 + $0x448] sm:$0xff]  ;;  %v5538_v27 = vpack.c.bf16 %v2472_v32, %v2470_v58  ;;  %v5540_v0 = vpack.c.bf16 %v2477_v53, %v2475_v54 }
 0x458   :  { %5519 = vmatpush1.bf16.msra.mxu1 %v5518_v2  ;;  %v2466_v2 = vld [vmem:[%s9610_s5 + $0xe0] sm:$0xff]  ;;  %v2572_v55 = vld [vmem:[%s9610_s5 + $0x430] sm:$0xff]  ;;  %v2577_v39 = vld [vmem:[%s9610_s5 + $0x458] sm:$0xff] }
 0x459   :  { %5521 = vmatprep.subr.bf16.mxu1 %v5520_v49  ;;  %v2569_v49 = vld [vmem:[%s9610_s5 + $0x418] sm:$0xff]  ;;  %v5534_v16 = vpack.c.bf16 %v2468_v37, %v2466_v2  ;;  %v2474_v22 = vld [vmem:[%s9610_s5 + $0x120] sm:$0xff]  ;;  %v2476_v28 = vld [vmem:[%s9610_s5 + $0x130] sm:$0xff] }
 0x45a   :  { %5587 = vmatpush1.bf16.msra.mxu0 %v7662_v10  ;;  %v5632_v13 = vpack.c.bf16 %v2569_v49, %v2567_v31  ;;  %v2481_v31 = vld [vmem:[%s9610_s5 + $0x158] sm:$0xff]  ;;  %v5640_v49 = vpack.c.bf16 %v2577_v39, %v2575_v7  ;;  %v2574_v4 = vld [vmem:[%s9610_s5 + $0x440] sm:$0xff]  ;;  %v2576_v38 = vld [vmem:[%s9610_s5 + $0x450] sm:$0xff] }
 0x45b   :  { %5589 = vmatprep.subr.bf16.mxu0 %v7665_v42  ;;  %v1971_v2 = vld [vmem:[#allocation6 + $0x68] sm:$0xff]  ;;  %v2480_v21 = vld [vmem:[%s9610_s5 + $0x150] sm:$0xff]  ;;  %v5642_v54 = vpack.c.bf16 %v2576_v38, %v2574_v4  ;;  %v1976_v53 = vld [vmem:[#allocation6 + $0x90] sm:$0xff] }
 0x45c   :  { %5523 = vmatpush1.bf16.msra.mxu1 %v5522_v59  ;;  %v2571_v59 = vld [vmem:[%s9610_s5 + $0x428] sm:$0xff]  ;;  %v2485_v58 = vld [vmem:[%s9610_s5 + $0x178] sm:$0xff]  ;;  %v1970_v32 = vld [vmem:[#allocation6 + $0x60] sm:$0xff] }
 0x45d   :  { %5525 = vmatprep.subr.bf16.mxu1 %v5524_v44  ;;  %v2573_v44 = vld [vmem:[%s9610_s5 + $0x438] sm:$0xff]  ;;  %v2487_v7 = vld [vmem:[%s9610_s5 + $0x188] sm:$0xff]  ;;  %v1986_v4 = vld [vmem:[#allocation6 + $0xe0] sm:$0xff] }
 0x45e   :  { %5591 = vmatpush1.bf16.msra.mxu0 %v7680_v11  ;;  %v5636_v60 = vpack.c.bf16 %v2573_v44, %v2571_v59  ;;  %v2579_v59 = vld [vmem:[%s9610_s5 + $0x468] sm:$0xff]  ;;  %v1975_v39 = vld [vmem:[#allocation6 + $0x88] sm:$0xff] }
 0x45f   :  { %5593 = vmatprep.subr.bf16.mxu0 %v7683_v18  ;;  %v2483_v44 = vld [vmem:[%s9610_s5 + $0x168] sm:$0xff] }
 0x460   :  { %5527 = vmatpush1.bf16.msra.mxu1 %v5526_v56  ;;  %v1959_v56 = vld [vmem:[#allocation6 + $0x8] sm:$0xff] }
 0x461   :  { %5529 = vmatprep.subr.bf16.mxu1 %v5528_v48  ;;  %v2570_v48 = vld [vmem:[%s9610_s5 + $0x420] sm:$0xff]  ;;  %2662 = vmatprep.mubr.f32.mxu1 %v1959_v56  ;;  %v2580_v56 = vld [vmem:[%s9610_s5 + $0x470] sm:$0xff] }
 0x462   :  { %5595 = vmatpush1.bf16.msra.mxu0 %v7698_v40  ;;  %v5638_v37 = vpack.c.bf16 %v2572_v55, %v2570_v48  ;;  %v2482_v48 = vld [vmem:[%s9610_s5 + $0x160] sm:$0xff]  ;;  %v2484_v55 = vld [vmem:[%s9610_s5 + $0x170] sm:$0xff] }
 0x463   :  { %5597 = vmatprep.subr.bf16.mxu0 %v7701_v24 }
 0x464   :  { %5531 = vmatpush1.bf16.msra.mxu1 %v5530_v57  ;;  %v2479_v57 = vld [vmem:[%s9610_s5 + $0x148] sm:$0xff] }
 0x465   :  { %5533 = vmatprep.subr.bf16.mxu1 %v5532_v50  ;;  %v1965_v50 = vld [vmem:[#allocation6 + $0x38] sm:$0xff]  ;;  %v5544_v63 = vpack.c.bf16 %v2481_v31, %v2479_v57  ;;  %v2486_v31 = vld [vmem:[%s9610_s5 + $0x180] sm:$0xff] }
 0x466   :  { %5599 = vmatpush1.bf16.msra.mxu0 %v7716_v36 }
 0x467   :  { %5601 = vmatprep.subr.bf16.mxu0 %v7719_v43 }
 0x468   :  { %5535 = vmatpush1.bf16.msra.mxu1 %v5534_v16  ;;  %v5542_v16 = vpack.c.bf16 %v2476_v28, %v2474_v22  ;;  %v1981_v22 = vld [vmem:[#allocation6 + $0xb8] sm:$0xff]  ;;  %v5550_v28 = vpack.c.bf16 %v2484_v55, %v2482_v48  ;;  %v2496_v48 = vld [vmem:[%s9610_s5 + $0x1d0] sm:$0xff] }
 0x469   :  { %5537 = vmatprep.subr.bf16.mxu1 %v5536_v51  ;;  %v2581_v51 = vld [vmem:[%s9610_s5 + $0x478] sm:$0xff]  ;;  %v2499_v55 = vld [vmem:[%s9610_s5 + $0x1e8] sm:$0xff] }
 0x46a   :  { %5603 = vmatpush1.bf16.msra.mxu0 %v7740_v15 }
 0x46b   :  { %5605 = vmatprep.subr.bf16.mxu0 %v7752_v52 }
 0x46c   :  { %5539 = vmatpush1.bf16.msra.mxu1 %v5538_v27  ;;  %v2489_v27 = vld [vmem:[%s9610_s5 + $0x198] sm:$0xff] }
 0x46d   :  { %5541 = vmatprep.subr.bf16.mxu1 %v5540_v0  ;;  %v5552_v57 = vpack.c.bf16 %v2489_v27, %v2487_v7  ;;  %v2501_v7 = vld [vmem:[%s9610_s5 + $0x1f8] sm:$0xff]  ;;  %v1990_v27 = vld [vmem:[#allocation6 + $0x100] sm:$0xff] }
 0x46e   :  { %5607 = vmatpush1.bf16.msra.mxu0 %v7779_v35 }
 0x46f   :  { %5609 = vmatprep.subr.bf16.mxu0 %v7791_v26 }
 0x470   :  { %5543 = vmatpush1.bf16.msra.mxu1 %v5542_v16 }
 0x471   :  { %5545 = vmatprep.subr.bf16.mxu1 %v5544_v63  ;;  %v2492_v63 = vld [vmem:[%s9610_s5 + $0x1b0] sm:$0xff] }
 0x472   :  { %5611 = vmatpush1.bf16.msra.mxu0 %v7812_v34 }
 0x473   :  { %5613 = vmatprep.subr.bf16.mxu0 %v7821_v17 }
 0x476   :  { %5615 = vmatpush1.bf16.msra.mxu0 %v7842_v61 }
 0x477   :  { %5617 = vmatprep.subr.bf16.mxu0 %v7851_v6 }
 0x47a   :  { %5619 = vmatpush1.bf16.msra.mxu0 %v7872_v29 }
 0x47b   :  { %5621 = vmatprep.subr.bf16.mxu0 %v7881_v8 }
 0x47e   :  { %5623 = vmatpush1.bf16.msra.mxu0 %v7902_v12 }
 0x47f   :  { %5625 = vmatprep.subr.bf16.mxu0 %v7911_v30 }
 0x482   :  { %5627 = vmatpush1.bf16.msra.mxu0 %v7932_v45 }
 0x483   :  { %5629 = vmatprep.subr.bf16.mxu0 %v7941_v62 }
 0x486   :  { %5631 = vmatpush1.bf16.msra.mxu0 %v7962_v41 }
 0x487   :  { %5633 = vmatprep.subr.bf16.mxu0 %v5632_v13  ;;  %v2478_v13 = vld [vmem:[%s9610_s5 + $0x140] sm:$0xff] }
 0x489   :  { %3304 = vmatmul.mubr.f32.vlgmr.msra.gmra.mrb[0].mxu0 %v1960_v47  ;;  %v5546_v47 = vpack.c.bf16 %v2480_v21, %v2478_v13  ;;  %v2490_v13 = vld [vmem:[%s9610_s5 + $0x1a0] sm:$0xff]  ;;  %v2495_v21 = vld [vmem:[%s9610_s5 + $0x1c8] sm:$0xff] }
 0x48a   :  { %5635 = vmatpush1.bf16.msra.mxu0 %v5634_v9  ;;  %3309 = vmatprep.mubr.f32.mxu0 %v1966_v14  ;;  %v5644_v9 = vpack.c.bf16 %v2581_v51, %v2579_v59  ;;  %v2578_v14 = vld [vmem:[%s9610_s5 + $0x460] sm:$0xff]  ;;  %v2497_v59 = vld [vmem:[%s9610_s5 + $0x1d8] sm:$0xff]  ;;  %v2583_v51 = vld [vmem:[%s9610_s5 + $0x488] sm:$0xff] }
 0x48b   :  { %5637 = vmatprep.subr.bf16.mxu0 %v5636_v60  ;;  %v5548_v60 = vpack.c.bf16 %v2485_v58, %v2483_v44  ;;  %v5646_v0 = vpack.c.bf16 %v2580_v56, %v2578_v14  ;;  %5547 = vmatpush1.bf16.msra.mxu1 %v5546_v47  ;;  %v2585_v44 = vld [vmem:[%s9610_s5 + $0x498] sm:$0xff]  ;;  %v1985_v58 = vld [vmem:[#allocation6 + $0xd8] sm:$0xff]  ;;  %v5560_v56 = vpack.c.bf16 %v2497_v59, %v2495_v21  ;;  %v2010_v59 = vld [vmem:[#allocation6 + $0x1a0] sm:$0xff] }
 0x48c   :  { %v1991_v47 = vld [vmem:[#allocation6 + $0x108] sm:$0xff]  ;;  %v1969_v21 = vld [vmem:[#allocation6 + $0x58] sm:$0xff] }
 0x48d   :  { %3310 = vmatmul.mubr.f32.gmra.mrb[2].mxu0 %v1965_v50  ;;  %5549 = vmatprep.subr.bf16.mxu1 %v5548_v60  ;;  %v2488_v50 = vld [vmem:[%s9610_s5 + $0x190] sm:$0xff]  ;;  %v2494_v60 = vld [vmem:[%s9610_s5 + $0x1c0] sm:$0xff] }
 0x48e   :  { %3315 = vmatprep.mubr.f32.mxu0 %v1971_v2  ;;  %5639 = vmatpush1.bf16.msra.mxu0 %v5638_v37  ;;  %v2491_v2 = vld [vmem:[%s9610_s5 + $0x1a8] sm:$0xff]  ;;  %v2493_v37 = vld [vmem:[%s9610_s5 + $0x1b8] sm:$0xff]  ;;  %v5554_v38 = vpack.c.bf16 %v2488_v50, %v2486_v31 }
 0x48f   :  { %5641 = vmatprep.subr.bf16.mxu0 %v5640_v49  ;;  %v1980_v49 = vld [vmem:[#allocation6 + $0xb0] sm:$0xff]  ;;  %5551 = vmatpush1.bf16.msra.mxu1 %v5550_v28  ;;  %v5556_v16 = vpack.c.bf16 %v2493_v37, %v2491_v2  ;;  %v1995_v31 = vld [vmem:[#allocation6 + $0x128] sm:$0xff]  ;;  %v2001_v50 = vld [vmem:[#allocation6 + $0x158] sm:$0xff] }
 0x490   :  { %5553 = vmatprep.subr.bf16.mxu1 %v5552_v57  ;;  %v2498_v28 = vld [vmem:[%s9610_s5 + $0x1e0] sm:$0xff]  ;;  %v2500_v57 = vld [vmem:[%s9610_s5 + $0x1f0] sm:$0xff] }
 0x491   :  { %3316 = vmatmul.mubr.f32.gmra.mrb[4].mxu0 %v1970_v32  ;;  %v5648_v32 = vpack.c.bf16 %v2585_v44, %v2583_v51  ;;  %v5566_v2 = vpack.c.bf16 %v2500_v57, %v2498_v28  ;;  %v2000_v37 = vld [vmem:[#allocation6 + $0x150] sm:$0xff]  ;;  %v1998_v28 = vld [vmem:[#allocation6 + $0x140] sm:$0xff] }
 0x492   :  { %3321 = vmatprep.mubr.f32.mxu0 %v1976_v53  ;;  %5643 = vmatpush1.bf16.msra.mxu0 %v5642_v54  ;;  %v2582_v54 = vld [vmem:[%s9610_s5 + $0x480] sm:$0xff]  ;;  %v2584_v53 = vld [vmem:[%s9610_s5 + $0x490] sm:$0xff] }
 0x493   :  { %5645 = vmatprep.subr.bf16.mxu0 %v5644_v9  ;;  %5555 = vmatpush1.bf16.msra.mxu1 %v5554_v38  ;;  %v5558_v9 = vpack.c.bf16 %v2492_v63, %v2490_v13  ;;  %v5650_v14 = vpack.c.bf16 %v2584_v53, %v2582_v54  ;;  %v1964_v38 = vld [vmem:[#allocation6 + $0x30] sm:$0xff]  ;;  %v2011_v13 = vld [vmem:[#allocation6 + $0x1a8] sm:$0xff]  ;;  %v1978_v53 = vld [vmem:[#allocation6 + $0xa0] sm:$0xff] }
 0x494   :  { %5557 = vmatprep.subr.bf16.mxu1 %v5556_v16  ;;  %v2005_v16 = vld [vmem:[#allocation6 + $0x178] sm:$0xff]  ;;  %v1963_v63 = vld [vmem:[#allocation6 + $0x28] sm:$0xff]  ;;  %v2016_v51 = vld [vmem:[#allocation6 + $0x1d0] sm:$0xff] }
 0x495   :  { %3322 = vmatmul.mubr.f32.gmra.mrb[6].mxu0 %v1975_v39  ;;  %v1996_v39 = vld [vmem:[#allocation6 + $0x130] sm:$0xff] }
 0x496   :  { %3327 = vmatprep.mubr.f32.mxu0 %v1981_v22  ;;  %5647 = vmatpush1.bf16.msra.mxu0 %v5646_v0  ;;  %v5562_v0 = vpack.c.bf16 %v2496_v48, %v2494_v60  ;;  %v5564_v22 = vpack.c.bf16 %v2501_v7, %v2499_v55  ;;  %v1968_v44 = vld [vmem:[#allocation6 + $0x50] sm:$0xff]  ;;  %v2588_v55 = vld [vmem:[%s9610_s5 + $0x4b0] sm:$0xff]  ;;  %v2035_v7 = vld [vmem:[#allocation6 + $0x268] sm:$0xff] }
 0x497   :  { %5649 = vmatprep.subr.bf16.mxu0 %v5648_v32  ;;  %5559 = vmatpush1.bf16.msra.mxu1 %v5558_v9  ;;  %v1973_v32 = vld [vmem:[#allocation6 + $0x78] sm:$0xff]  ;;  %v2020_v54 = vld [vmem:[#allocation6 + $0x1f0] sm:$0xff]  ;;  %v1983_v9 = vld [vmem:[#allocation6 + $0xc8] sm:$0xff] }
 0x498   :  { %5561 = vmatprep.subr.bf16.mxu1 %v5560_v56  ;;  %v2036_v56 = vld [vmem:[#allocation6 + $0x270] sm:$0xff] }
 0x499   :  { %3328 = vmatmul.mubr.f32.gmra.mrb[8].mxu0 %v1980_v49  ;;  %v2006_v49 = vld [vmem:[#allocation6 + $0x180] sm:$0xff]  ;;  %v1988_v60 = vld [vmem:[#allocation6 + $0xf0] sm:$0xff] }
 0x49a   :  { %3333 = vmatprep.mubr.f32.mxu0 %v1986_v4  ;;  %5651 = vmatpush1.bf16.msra.mxu0 %v5650_v14  ;;  %v1958_v4 = vld [vmem:[#allocation6] sm:$0xff]  ;;  %v2004_v57 = vld [vmem:[#allocation6 + $0x170] sm:$0xff] }
 0x49b   :  { %5563 = vmatpush1.bf16.msra.mxu1 %v5562_v0  ;;  %v2030_v14 = vld [vmem:[#allocation6 + $0x240] sm:$0xff]  ;;  %v2040_v0 = vld [vmem:[#allocation6 + $0x290] sm:$0xff] }
 0x49c   :  { %5565 = vmatprep.subr.bf16.mxu1 %v5564_v22  ;;  %v2046_v22 = vld [vmem:[#allocation6 + $0x2c0] sm:$0xff] }
 0x49d   :  { %3334 = vmatmul.mubr.f32.gmra.mrb[10].mxu0 %v1985_v58  ;;  %v2015_v58 = vld [vmem:[#allocation6 + $0x1c8] sm:$0xff] }
 0x49e   :  { %3339 = vmatprep.mubr.f32.mxu0 %v1991_v47  ;;  %v2025_v47 = vld [vmem:[#allocation6 + $0x218] sm:$0xff] }
 0x49f   :  { %5567 = vmatpush1.bf16.msra.mxu1 %v5566_v2  ;;  %v2050_v2 = vld [vmem:[#allocation6 + $0x2e0] sm:$0xff] }
 0x4a0   :  { %5892 = vmatprep.subr.bf16.mxu1 %v7579_v19  ;;  %v1974_v19 = vld [vmem:[#allocation6 + $0x80] sm:$0xff] }
 0x4a1   :  { %3340 = vmatmul.mubr.f32.gmra.mrb[12].mxu0 %v1990_v27 }
 0x4a2   :  { %3345 = vmatprep.mubr.f32.mxu0 %v1996_v39  ;;  %2663 = vmatmul.mubr.f32.vlgmr.msra.gmra.mrb[0].mxu1 %v1958_v4  ;;  %v2041_v39 = vld [vmem:[#allocation6 + $0x298] sm:$0xff] }
 0x4a3   :  { %2668 = vmatprep.mubr.f32.mxu1 %v1964_v38  ;;  %5908 = vmatpush1.bf16.msra.mxu1 %v7590_v46  ;;  %v2021_v46 = vld [vmem:[#allocation6 + $0x1f8] sm:$0xff]  ;;  %v2060_v38 = vld [vmem:[#allocation6 + $0x330] sm:$0xff] }
 0x4a4   :  { %5893 = vmatprep.subr.bf16.mxu1 %v7592_v3  ;;  %v1979_v3 = vld [vmem:[#allocation6 + $0xa8] sm:$0xff]  ;;  %v2013_v4 = vld [vmem:[#allocation6 + $0x1b8] sm:$0xff] }
 0x4a5   :  { %3346 = vmatmul.mubr.f32.gmra.mrb[14].mxu0 %v1995_v31  ;;  %v2045_v31 = vld [vmem:[#allocation6 + $0x2b8] sm:$0xff] }
 0x4a6   :  { %3351 = vmatprep.mubr.f32.mxu0 %v2001_v50  ;;  %2669 = vmatmul.mubr.f32.gmra.mrb[2].mxu1 %v1963_v63  ;;  %v2003_v50 = vld [vmem:[#allocation6 + $0x168] sm:$0xff] }
 0x4a7   :  { %2674 = vmatprep.mubr.f32.mxu1 %v1969_v21  ;;  %5909 = vmatpush1.bf16.msra.mxu1 %v7608_v33  ;;  %v2026_v33 = vld [vmem:[#allocation6 + $0x220] sm:$0xff]  ;;  %v2023_v63 = vld [vmem:[#allocation6 + $0x208] sm:$0xff] }
 0x4a8   :  { %5894 = vmatprep.subr.bf16.mxu1 %v7611_v23  ;;  %v1984_v23 = vld [vmem:[#allocation6 + $0xd0] sm:$0xff]  ;;  %v2070_v21 = vld [vmem:[#allocation6 + $0x380] sm:$0xff] }
 0x4a9   :  { %3352 = vmatmul.mubr.f32.gmra.mrb[16].mxu0 %v2000_v37  ;;  %v2008_v37 = vld [vmem:[#allocation6 + $0x190] sm:$0xff] }
 0x4aa   :  { %3357 = vmatprep.mubr.f32.mxu0 %v2006_v49  ;;  %2675 = vmatmul.mubr.f32.gmra.mrb[4].mxu1 %v1968_v44  ;;  %v2055_v49 = vld [vmem:[#allocation6 + $0x308] sm:$0xff]  ;;  %v2081_v44 = vld [vmem:[#allocation6 + $0x3d8] sm:$0xff] }
 0x4ab   :  { %2680 = vmatprep.mubr.f32.mxu1 %v1974_v19  ;;  %5910 = vmatpush1.bf16.msra.mxu1 %v7626_v1  ;;  %v2031_v1 = vld [vmem:[#allocation6 + $0x248] sm:$0xff]  ;;  %v2033_v19 = vld [vmem:[#allocation6 + $0x258] sm:$0xff] }
 0x4ac   :  { %5895 = vmatprep.subr.bf16.mxu1 %v7629_v25  ;;  %v1989_v25 = vld [vmem:[#allocation6 + $0xf8] sm:$0xff] }
 0x4ad   :  { %3358 = vmatmul.mubr.f32.gmra.mrb[18].mxu0 %v2005_v16  ;;  %v2018_v16 = vld [vmem:[#allocation6 + $0x1e0] sm:$0xff] }
 0x4ae   :  { %3363 = vmatprep.mubr.f32.mxu0 %v2011_v13  ;;  %2681 = vmatmul.mubr.f32.gmra.mrb[6].mxu1 %v1973_v32  ;;  %v2065_v13 = vld [vmem:[#allocation6 + $0x358] sm:$0xff]  ;;  %v2080_v32 = vld [vmem:[#allocation6 + $0x3d0] sm:$0xff] }
 0x4af   :  { %2686 = vmatprep.mubr.f32.mxu1 %v1979_v3  ;;  %5911 = vmatpush1.bf16.msra.mxu1 %v7644_v20  ;;  %v2587_v20 = vld [vmem:[%s9610_s5 + $0x4a8] sm:$0xff] }
 0x4b0   :  { %5896 = vmatprep.subr.bf16.mxu1 %v7647_v5  ;;  %v2589_v5 = vld [vmem:[%s9610_s5 + $0x4b8] sm:$0xff] }
 0x4b1   :  { %3364 = vmatmul.mubr.f32.gmra.mrb[20].mxu0 %v2010_v59  ;;  %v5652_v48 = vpack.c.bf16 %v2589_v5, %v2587_v20  ;;  %v2028_v59 = vld [vmem:[#allocation6 + $0x230] sm:$0xff]  ;;  %v2101_v20 = vld [vmem:[#allocation6 + $0x478] sm:$0xff] }
 0x4b2   :  { %3369 = vmatprep.mubr.f32.mxu0 %v2016_v51  ;;  %2687 = vmatmul.mubr.f32.gmra.mrb[8].mxu1 %v1978_v53  ;;  %v2075_v51 = vld [vmem:[#allocation6 + $0x3a8] sm:$0xff]  ;;  %v2053_v5 = vld [vmem:[#allocation6 + $0x2f8] sm:$0xff] }
 0x4b3   :  { %2692 = vmatprep.mubr.f32.mxu1 %v1984_v23  ;;  %5912 = vmatpush1.bf16.msra.mxu1 %v7662_v10  ;;  %v1994_v10 = vld [vmem:[#allocation6 + $0x120] sm:$0xff]  ;;  %v2091_v53 = vld [vmem:[#allocation6 + $0x428] sm:$0xff] }
 0x4b4   :  { %5897 = vmatprep.subr.bf16.mxu1 %v7665_v42  ;;  %5653 = vmatprep.subr.bf16.mxu0 %v5652_v48  ;;  %v2586_v42 = vld [vmem:[%s9610_s5 + $0x4a0] sm:$0xff]  ;;  %v2043_v23 = vld [vmem:[#allocation6 + $0x2a8] sm:$0xff]  ;;  %v2106_v48 = vld [vmem:[#allocation6 + $0x4a0] sm:$0xff] }
 0x4b5   :  { %3370 = vmatmul.mubr.f32.gmra.mrb[22].mxu0 %v2015_v58  ;;  %v5654_v27 = vpack.c.bf16 %v2588_v55, %v2586_v42  ;;  %v2064_v42 = vld [vmem:[#allocation6 + $0x350] sm:$0xff]  ;;  %v2105_v55 = vld [vmem:[#allocation6 + $0x498] sm:$0xff] }
 0x4b6   :  { %3375 = vmatprep.mubr.f32.mxu0 %v2021_v46  ;;  %2693 = vmatmul.mubr.f32.gmra.mrb[10].mxu1 %v1983_v9  ;;  %v2592_v46 = vld [vmem:[%s9610_s5 + $0x4d0] sm:$0xff]  ;;  %v2096_v9 = vld [vmem:[#allocation6 + $0x450] sm:$0xff] }
 0x4b7   :  { %2698 = vmatprep.mubr.f32.mxu1 %v1989_v25  ;;  %5913 = vmatpush1.bf16.msra.mxu1 %v7680_v11  ;;  %v1993_v11 = vld [vmem:[#allocation6 + $0x118] sm:$0xff]  ;;  %v2048_v25 = vld [vmem:[#allocation6 + $0x2d0] sm:$0xff] }
 0x4b8   :  { %5898 = vmatprep.subr.bf16.mxu1 %v7683_v18  ;;  %v1999_v18 = vld [vmem:[#allocation6 + $0x148] sm:$0xff]  ;;  %5655 = vmatpush1.bf16.msra.mxu0 %v5654_v27 }
 0x4b9   :  { %3376 = vmatmul.mubr.f32.gmra.mrb[24].mxu0 %v2020_v54  ;;  %v2086_v54 = vld [vmem:[#allocation6 + $0x400] sm:$0xff]  ;;  %v2063_v27 = vld [vmem:[#allocation6 + $0x348] sm:$0xff] }
 0x4ba   :  { %3381 = vmatprep.mubr.f32.mxu0 %v2026_v33  ;;  %2699 = vmatmul.mubr.f32.gmra.mrb[12].mxu1 %v1988_v60  ;;  %v2085_v33 = vld [vmem:[#allocation6 + $0x3f8] sm:$0xff]  ;;  %v2100_v60 = vld [vmem:[#allocation6 + $0x470] sm:$0xff] }
 0x4bb   :  { %2704 = vmatprep.mubr.f32.mxu1 %v1994_v10  ;;  %5914 = vmatpush1.bf16.msra.mxu1 %v7698_v40  ;;  %v2051_v40 = vld [vmem:[#allocation6 + $0x2e8] sm:$0xff]  ;;  %v2058_v10 = vld [vmem:[#allocation6 + $0x320] sm:$0xff] }
 0x4bc   :  { %5899 = vmatprep.subr.bf16.mxu1 %v7701_v24  ;;  %v2009_v24 = vld [vmem:[#allocation6 + $0x198] sm:$0xff] }
 0x4bd   :  { %3382 = vmatmul.mubr.f32.gmra.mrb[26].mxu0 %v2025_v47  ;;  %v2049_v47 = vld [vmem:[#allocation6 + $0x2d8] sm:$0xff] }
 0x4be   :  { %3387 = vmatprep.mubr.f32.mxu0 %v2031_v1  ;;  %2705 = vmatmul.mubr.f32.gmra.mrb[14].mxu1 %v1993_v11  ;;  %v2090_v1 = vld [vmem:[#allocation6 + $0x420] sm:$0xff] }
 0x4bf   :  { %2710 = vmatprep.mubr.f32.mxu1 %v1999_v18  ;;  %5915 = vmatpush1.bf16.msra.mxu1 %v7716_v36  ;;  %v2056_v36 = vld [vmem:[#allocation6 + $0x310] sm:$0xff]  ;;  %v2110_v11 = vld [vmem:[#allocation6 + $0x4c0] sm:$0xff] }
 0x4c0   :  { %5900 = vmatprep.subr.bf16.mxu1 %v7719_v43  ;;  %v2014_v43 = vld [vmem:[#allocation6 + $0x1c0] sm:$0xff]  ;;  %v2116_v18 = vld [vmem:[#allocation6 + $0x4f0] sm:$0xff] }
 0x4c1   :  { %3388 = vmatmul.mubr.f32.gmra.mrb[28].mxu0 %v2030_v14  ;;  %v2054_v14 = vld [vmem:[#allocation6 + $0x300] sm:$0xff] }
 0x4c2   :  { %3393 = vmatprep.mubr.f32.mxu0 %v2036_v56  ;;  %2711 = vmatmul.mubr.f32.gmra.mrb[16].mxu1 %v1998_v28  ;;  %v2059_v56 = vld [vmem:[#allocation6 + $0x328] sm:$0xff] }
 0x4c3   :  { %2716 = vmatprep.mubr.f32.mxu1 %v2004_v57  ;;  %5916 = vmatpush1.bf16.msra.mxu1 %v7740_v15  ;;  %v2061_v15 = vld [vmem:[#allocation6 + $0x338] sm:$0xff]  ;;  %v2115_v28 = vld [vmem:[#allocation6 + $0x4e8] sm:$0xff] }
 0x4c4   :  { %5901 = vmatprep.subr.bf16.mxu1 %v7752_v52  ;;  %v2019_v52 = vld [vmem:[#allocation6 + $0x1e8] sm:$0xff]  ;;  %v2121_v57 = vld [vmem:[#allocation6 + $0x518] sm:$0xff] }
 0x4c5   :  { %3394 = vmatmul.mubr.f32.gmra.mrb[30].mxu0 %v2035_v7  ;;  %v2111_v7 = vld [vmem:[#allocation6 + $0x4c8] sm:$0xff] }
 0x4c6   :  { %3399 = vmatprep.mubr.f32.mxu0 %v2041_v39  ;;  %2717 = vmatmul.mubr.f32.gmra.mrb[18].mxu1 %v2003_v50  ;;  %v2069_v39 = vld [vmem:[#allocation6 + $0x378] sm:$0xff]  ;;  %v2120_v50 = vld [vmem:[#allocation6 + $0x510] sm:$0xff] }
 0x4c7   :  { %2722 = vmatprep.mubr.f32.mxu1 %v2009_v24  ;;  %5917 = vmatpush1.bf16.msra.mxu1 %v7779_v35  ;;  %v2066_v35 = vld [vmem:[#allocation6 + $0x360] sm:$0xff] }
 0x4c8   :  { %5902 = vmatprep.subr.bf16.mxu1 %v7791_v26  ;;  %v2024_v26 = vld [vmem:[#allocation6 + $0x210] sm:$0xff]  ;;  %v2126_v24 = vld [vmem:[#allocation6 + $0x540] sm:$0xff] }
 0x4c9   :  { %3400 = vmatmul.mubr.f32.gmra.mrb[32].mxu0 %v2040_v0  ;;  %v2068_v0 = vld [vmem:[#allocation6 + $0x370] sm:$0xff] }
 0x4ca   :  { %3405 = vmatprep.mubr.f32.mxu0 %v2046_v22  ;;  %2723 = vmatmul.mubr.f32.gmra.mrb[20].mxu1 %v2008_v37  ;;  %v2074_v22 = vld [vmem:[#allocation6 + $0x3a0] sm:$0xff]  ;;  %v2595_v37 = vld [vmem:[%s9610_s5 + $0x4e8] sm:$0xff] }
 0x4cb   :  { %2728 = vmatprep.mubr.f32.mxu1 %v2014_v43  ;;  %5918 = vmatpush1.bf16.msra.mxu1 %v7812_v34  ;;  %v2071_v34 = vld [vmem:[#allocation6 + $0x388] sm:$0xff] }
 0x4cc   :  { %5903 = vmatprep.subr.bf16.mxu1 %v7821_v17  ;;  %v2029_v17 = vld [vmem:[#allocation6 + $0x238] sm:$0xff]  ;;  %v2597_v43 = vld [vmem:[%s9610_s5 + $0x4f8] sm:$0xff] }
 0x4cd   :  { %3406 = vmatmul.mubr.f32.gmra.mrb[34].mxu0 %v2045_v31  ;;  %v2073_v31 = vld [vmem:[#allocation6 + $0x398] sm:$0xff] }
 0x4ce   :  { %3411 = vmatprep.mubr.f32.mxu0 %v2051_v40  ;;  %2729 = vmatmul.mubr.f32.gmra.mrb[22].mxu1 %v2013_v4  ;;  %v2079_v40 = vld [vmem:[#allocation6 + $0x3c8] sm:$0xff]  ;;  %v5660_v4 = vpack.c.bf16 %v2597_v43, %v2595_v37  ;;  %v2153_v37 = vld [vmem:[#allocation6 + $0x618] sm:$0xff] }
 0x4cf   :  { %2734 = vmatprep.mubr.f32.mxu1 %v2019_v52  ;;  %5919 = vmatpush1.bf16.msra.mxu1 %v7842_v61  ;;  %v2076_v61 = vld [vmem:[#allocation6 + $0x3b0] sm:$0xff]  ;;  %v2596_v52 = vld [vmem:[%s9610_s5 + $0x4f0] sm:$0xff]  ;;  %v2159_v43 = vld [vmem:[#allocation6 + $0x648] sm:$0xff] }
 0x4d0   :  { %5904 = vmatprep.subr.bf16.mxu1 %v7851_v6  ;;  %v2034_v6 = vld [vmem:[#allocation6 + $0x260] sm:$0xff] }
 0x4d1   :  { %3412 = vmatmul.mubr.f32.gmra.mrb[36].mxu0 %v2050_v2  ;;  %v2078_v2 = vld [vmem:[#allocation6 + $0x3c0] sm:$0xff] }
 0x4d2   :  { %3417 = vmatprep.mubr.f32.mxu0 %v2056_v36  ;;  %2735 = vmatmul.mubr.f32.gmra.mrb[24].mxu1 %v2018_v16  ;;  %v2084_v36 = vld [vmem:[#allocation6 + $0x3f0] sm:$0xff] }
 0x4d3   :  { %2740 = vmatprep.mubr.f32.mxu1 %v2024_v26  ;;  %5920 = vmatpush1.bf16.msra.mxu1 %v7872_v29  ;;  %v2591_v29 = vld [vmem:[%s9610_s5 + $0x4c8] sm:$0xff] }
 0x4d4   :  { %5905 = vmatprep.subr.bf16.mxu1 %v7881_v8  ;;  %v2593_v8 = vld [vmem:[%s9610_s5 + $0x4d8] sm:$0xff]  ;;  %v2089_v26 = vld [vmem:[#allocation6 + $0x418] sm:$0xff] }
 0x4d5   :  { %3418 = vmatmul.mubr.f32.gmra.mrb[38].mxu0 %v2055_v49  ;;  %v5656_v58 = vpack.c.bf16 %v2593_v8, %v2591_v29  ;;  %v2594_v49 = vld [vmem:[%s9610_s5 + $0x4e0] sm:$0xff]  ;;  %v2146_v29 = vld [vmem:[#allocation6 + $0x5e0] sm:$0xff] }
 0x4d6   :  { %3423 = vmatprep.mubr.f32.mxu0 %v2061_v15  ;;  %2741 = vmatmul.mubr.f32.gmra.mrb[26].mxu1 %v2023_v63  ;;  %v2125_v15 = vld [vmem:[#allocation6 + $0x538] sm:$0xff]  ;;  %v5662_v16 = vpack.c.bf16 %v2596_v52, %v2594_v49  ;;  %v2088_v63 = vld [vmem:[#allocation6 + $0x410] sm:$0xff]  ;;  %v2098_v8 = vld [vmem:[#allocation6 + $0x460] sm:$0xff] }
 0x4d7   :  { %2746 = vmatprep.mubr.f32.mxu1 %v2029_v17  ;;  %5921 = vmatpush1.bf16.msra.mxu1 %v7902_v12  ;;  %v2039_v12 = vld [vmem:[#allocation6 + $0x288] sm:$0xff]  ;;  %v2094_v17 = vld [vmem:[#allocation6 + $0x440] sm:$0xff]  ;;  %v2200_v49 = vld [vmem:[#allocation6 + $0x790] sm:$0xff] }
 0x4d8   :  { %5906 = vmatprep.subr.bf16.mxu1 %v7911_v30  ;;  %5657 = vmatprep.subr.bf16.mxu0 %v5656_v58  ;;  %v2590_v30 = vld [vmem:[%s9610_s5 + $0x4c0] sm:$0xff]  ;;  %v2151_v58 = vld [vmem:[#allocation6 + $0x608] sm:$0xff] }
 0x4d9   :  { %3424 = vmatmul.mubr.f32.gmra.mrb[40].mxu0 %v2060_v38  ;;  %v5658_v3 = vpack.c.bf16 %v2592_v46, %v2590_v30  ;;  %v2131_v38 = vld [vmem:[#allocation6 + $0x568] sm:$0xff]  ;;  %v2109_v30 = vld [vmem:[#allocation6 + $0x4b8] sm:$0xff]  ;;  %v2150_v46 = vld [vmem:[#allocation6 + $0x600] sm:$0xff] }
 0x4da   :  { %3429 = vmatprep.mubr.f32.mxu0 %v2066_v35  ;;  %2747 = vmatmul.mubr.f32.gmra.mrb[28].mxu1 %v2028_v59  ;;  %v2083_v35 = vld [vmem:[#allocation6 + $0x3e8] sm:$0xff]  ;;  %v2093_v59 = vld [vmem:[#allocation6 + $0x438] sm:$0xff]  ;;  %v2164_v52 = vld [vmem:[#allocation6 + $0x670] sm:$0xff] }
 0x4db   :  { %2752 = vmatprep.mubr.f32.mxu1 %v2034_v6  ;;  %5922 = vmatpush1.bf16.msra.mxu1 %v7932_v45  ;;  %v2038_v45 = vld [vmem:[#allocation6 + $0x280] sm:$0xff]  ;;  %v2099_v6 = vld [vmem:[#allocation6 + $0x468] sm:$0xff] }
 0x4dc   :  { %5907 = vmatprep.subr.bf16.mxu1 %v7941_v62  ;;  %v2044_v62 = vld [vmem:[#allocation6 + $0x2b0] sm:$0xff]  ;;  %5659 = vmatpush1.bf16.msra.mxu0 %v5658_v3 }
 0x4dd   :  { %3430 = vmatmul.mubr.f32.gmra.mrb[42].mxu0 %v2065_v13  ;;  %5661 = vmatprep.subr.bf16.mxu0 %v5660_v4  ;;  %v2130_v13 = vld [vmem:[#allocation6 + $0x560] sm:$0xff]  ;;  %v2108_v3 = vld [vmem:[#allocation6 + $0x4b0] sm:$0xff] }
 0x4de   :  { %3435 = vmatprep.mubr.f32.mxu0 %v2071_v34  ;;  %2753 = vmatmul.mubr.f32.gmra.mrb[30].mxu1 %v2033_v19  ;;  %v2136_v34 = vld [vmem:[#allocation6 + $0x590] sm:$0xff]  ;;  %v2145_v19 = vld [vmem:[#allocation6 + $0x5d8] sm:$0xff]  ;;  %v2158_v4 = vld [vmem:[#allocation6 + $0x640] sm:$0xff] }
 0x4df   :  { %2758 = vmatprep.mubr.f32.mxu1 %v2039_v12  ;;  %5923 = vmatpush1.bf16.msra.mxu1 %v7962_v41  ;;  %v2095_v41 = vld [vmem:[#allocation6 + $0x448] sm:$0xff] }
 0x4e0   :  { %5663 = vmatpush1.bf16.msra.mxu0 %v5662_v16  ;;  %v2103_v12 = vld [vmem:[#allocation6 + $0x488] sm:$0xff] }
 0x4e1   :  { %3436 = vmatmul.mubr.f32.gmra.mrb[44].mxu0 %v2070_v21  ;;  %v2135_v21 = vld [vmem:[#allocation6 + $0x588] sm:$0xff] }
 0x4e2   :  { %3441 = vmatprep.mubr.f32.mxu0 %v2076_v61  ;;  %2759 = vmatmul.mubr.f32.gmra.mrb[32].mxu1 %v2038_v45  ;;  %v2141_v61 = vld [vmem:[#allocation6 + $0x5b8] sm:$0xff]  ;;  %v2155_v45 = vld [vmem:[#allocation6 + $0x628] sm:$0xff] }
 0x4e3   :  { %2764 = vmatprep.mubr.f32.mxu1 %v2044_v62  ;;  %v2161_v62 = vld [vmem:[#allocation6 + $0x658] sm:$0xff]  ;;  %v2163_v16 = vld [vmem:[#allocation6 + $0x668] sm:$0xff] }
 0x4e5   :  { %3442 = vmatmul.mubr.f32.gmra.mrb[46].mxu0 %v2075_v51  ;;  %v2140_v51 = vld [vmem:[#allocation6 + $0x5b0] sm:$0xff] }
 0x4e6   :  { %3447 = vmatprep.mubr.f32.mxu0 %v2081_v44  ;;  %2765 = vmatmul.mubr.f32.gmra.mrb[34].mxu1 %v2043_v23  ;;  %v2104_v44 = vld [vmem:[#allocation6 + $0x490] sm:$0xff] }
 0x4e7   :  { %2770 = vmatprep.mubr.f32.mxu1 %v2049_v47  ;;  %v2160_v23 = vld [vmem:[#allocation6 + $0x650] sm:$0xff]  ;;  %v2166_v47 = vld [vmem:[#allocation6 + $0x680] sm:$0xff] }
 0x4e9   :  { %3448 = vmatmul.mubr.f32.gmra.mrb[48].mxu0 %v2080_v32  ;;  %v2156_v32 = vld [vmem:[#allocation6 + $0x630] sm:$0xff] }
 0x4ea   :  { %3453 = vmatprep.mubr.f32.mxu0 %v2086_v54  ;;  %2771 = vmatmul.mubr.f32.gmra.mrb[36].mxu1 %v2048_v25  ;;  %v2114_v54 = vld [vmem:[#allocation6 + $0x4e0] sm:$0xff]  ;;  %v2165_v25 = vld [vmem:[#allocation6 + $0x678] sm:$0xff] }
 0x4eb   :  { %2776 = vmatprep.mubr.f32.mxu1 %v2054_v14  ;;  %v2171_v14 = vld [vmem:[#allocation6 + $0x6a8] sm:$0xff] }
 0x4ed   :  { %3454 = vmatmul.mubr.f32.gmra.mrb[50].mxu0 %v2085_v33  ;;  %v2113_v33 = vld [vmem:[#allocation6 + $0x4d8] sm:$0xff] }
 0x4ee   :  { %3459 = vmatprep.mubr.f32.mxu0 %v2091_v53  ;;  %2777 = vmatmul.mubr.f32.gmra.mrb[38].mxu1 %v2053_v5  ;;  %v2119_v53 = vld [vmem:[#allocation6 + $0x508] sm:$0xff]  ;;  %v2170_v5 = vld [vmem:[#allocation6 + $0x6a0] sm:$0xff] }
 0x4ef   :  { %2782 = vmatprep.mubr.f32.mxu1 %v2059_v56  ;;  %v2176_v56 = vld [vmem:[#allocation6 + $0x6d0] sm:$0xff] }
 0x4f1   :  { %3460 = vmatmul.mubr.f32.gmra.mrb[52].mxu0 %v2090_v1  ;;  %v2118_v1 = vld [vmem:[#allocation6 + $0x500] sm:$0xff] }
 0x4f2   :  { %3465 = vmatprep.mubr.f32.mxu0 %v2096_v9  ;;  %2783 = vmatmul.mubr.f32.gmra.mrb[40].mxu1 %v2058_v10  ;;  %v2124_v9 = vld [vmem:[#allocation6 + $0x530] sm:$0xff]  ;;  %v2175_v10 = vld [vmem:[#allocation6 + $0x6c8] sm:$0xff] }
 0x4f3   :  { %2788 = vmatprep.mubr.f32.mxu1 %v2064_v42  ;;  %v2181_v42 = vld [vmem:[#allocation6 + $0x6f8] sm:$0xff] }
 0x4f5   :  { %3466 = vmatmul.mubr.f32.gmra.mrb[54].mxu0 %v2095_v41  ;;  %v2123_v41 = vld [vmem:[#allocation6 + $0x528] sm:$0xff] }
 0x4f6   :  { %3471 = vmatprep.mubr.f32.mxu0 %v2101_v20  ;;  %2789 = vmatmul.mubr.f32.gmra.mrb[42].mxu1 %v2063_v27  ;;  %v2129_v20 = vld [vmem:[#allocation6 + $0x558] sm:$0xff]  ;;  %v2180_v27 = vld [vmem:[#allocation6 + $0x6f0] sm:$0xff] }
 0x4f7   :  { %2794 = vmatprep.mubr.f32.mxu1 %v2069_v39  ;;  %v2186_v39 = vld [vmem:[#allocation6 + $0x720] sm:$0xff] }
 0x4f9   :  { %3472 = vmatmul.mubr.f32.gmra.mrb[56].mxu0 %v2100_v60  ;;  %v2128_v60 = vld [vmem:[#allocation6 + $0x550] sm:$0xff] }
 0x4fa   :  { %3477 = vmatprep.mubr.f32.mxu0 %v2106_v48  ;;  %2795 = vmatmul.mubr.f32.gmra.mrb[44].mxu1 %v2068_v0  ;;  %v2134_v48 = vld [vmem:[#allocation6 + $0x580] sm:$0xff]  ;;  %v2185_v0 = vld [vmem:[#allocation6 + $0x718] sm:$0xff] }
 0x4fb   :  { %2800 = vmatprep.mubr.f32.mxu1 %v2074_v22  ;;  %v2191_v22 = vld [vmem:[#allocation6 + $0x748] sm:$0xff] }
 0x4fd   :  { %3478 = vmatmul.mubr.f32.gmra.mrb[58].mxu0 %v2105_v55  ;;  %v2133_v55 = vld [vmem:[#allocation6 + $0x578] sm:$0xff] }
 0x4fe   :  { %3483 = vmatprep.mubr.f32.mxu0 %v2111_v7  ;;  %2801 = vmatmul.mubr.f32.gmra.mrb[46].mxu1 %v2073_v31  ;;  %v2139_v7 = vld [vmem:[#allocation6 + $0x5a8] sm:$0xff]  ;;  %v2190_v31 = vld [vmem:[#allocation6 + $0x740] sm:$0xff] }
 0x4ff   :  { %2806 = vmatprep.mubr.f32.mxu1 %v2079_v40  ;;  %v2196_v40 = vld [vmem:[#allocation6 + $0x770] sm:$0xff] }
 0x501   :  { %3484 = vmatmul.mubr.f32.gmra.mrb[60].mxu0 %v2110_v11  ;;  %v2138_v11 = vld [vmem:[#allocation6 + $0x5a0] sm:$0xff] }
 0x502   :  { %3489 = vmatprep.mubr.f32.mxu0 %v2116_v18  ;;  %2807 = vmatmul.mubr.f32.gmra.mrb[48].mxu1 %v2078_v2  ;;  %v2144_v18 = vld [vmem:[#allocation6 + $0x5d0] sm:$0xff]  ;;  %v2195_v2 = vld [vmem:[#allocation6 + $0x768] sm:$0xff] }
 0x503   :  { %2812 = vmatprep.mubr.f32.mxu1 %v2084_v36  ;;  %v2201_v36 = vld [vmem:[#allocation6 + $0x798] sm:$0xff] }
 0x505   :  { %3490 = vmatmul.mubr.f32.gmra.mrb[62].mxu0 %v2115_v28  ;;  %v2143_v28 = vld [vmem:[#allocation6 + $0x5c8] sm:$0xff] }
 0x506   :  { %3495 = vmatprep.mubr.f32.mxu0 %v2121_v57  ;;  %2813 = vmatmul.mubr.f32.gmra.mrb[50].mxu1 %v2083_v35  ;;  %v2149_v57 = vld [vmem:[#allocation6 + $0x5f8] sm:$0xff]  ;;  %v2211_v35 = vld [vmem:[#allocation6 + $0x7e8] sm:$0xff] }
 0x507   :  { %2818 = vmatprep.mubr.f32.mxu1 %v2089_v26  ;;  %v2169_v26 = vld [vmem:[#allocation6 + $0x698] sm:$0xff] }
 0x509   :  { %3496 = vmatmul.mubr.f32.gmra.mrb[64].mxu0 %v2120_v50  ;;  %v2148_v50 = vld [vmem:[#allocation6 + $0x5f0] sm:$0xff] }
 0x50a   :  { %3501 = vmatprep.mubr.f32.mxu0 %v2126_v24  ;;  %2819 = vmatmul.mubr.f32.gmra.mrb[52].mxu1 %v2088_v63  ;;  %v2154_v24 = vld [vmem:[#allocation6 + $0x620] sm:$0xff]  ;;  %v2168_v63 = vld [vmem:[#allocation6 + $0x690] sm:$0xff] }
 0x50b   :  { %2824 = vmatprep.mubr.f32.mxu1 %v2094_v17  ;;  %v2174_v17 = vld [vmem:[#allocation6 + $0x6c0] sm:$0xff] }
 0x50d   :  { %3502 = vmatmul.mubr.f32.gmra.mrb[66].mxu0 %v2125_v15  ;;  %v2206_v15 = vld [vmem:[#allocation6 + $0x7c0] sm:$0xff] }
 0x50e   :  { %3507 = vmatprep.mubr.f32.mxu0 %v2131_v38  ;;  %2825 = vmatmul.mubr.f32.gmra.mrb[54].mxu1 %v2093_v59  ;;  %v2205_v38 = vld [vmem:[#allocation6 + $0x7b8] sm:$0xff] }
 0x50f   :  { %2830 = vmatprep.mubr.f32.mxu1 %v2099_v6  ;;  %v2173_v59 = vld [vmem:[#allocation6 + $0x6b8] sm:$0xff]  ;;  %v2179_v6 = vld [vmem:[#allocation6 + $0x6e8] sm:$0xff] }
 0x511   :  { %3508 = vmatmul.mubr.f32.gmra.mrb[68].mxu0 %v2130_v13  ;;  %v2210_v13 = vld [vmem:[#allocation6 + $0x7e0] sm:$0xff] }
 0x512   :  { %3513 = vmatprep.mubr.f32.mxu0 %v2136_v34  ;;  %2831 = vmatmul.mubr.f32.gmra.mrb[56].mxu1 %v2098_v8  ;;  %v2216_v34 = vld [vmem:[#allocation6 + $0x810] sm:$0xff]  ;;  %v2178_v8 = vld [vmem:[#allocation6 + $0x6e0] sm:$0xff] }
 0x513   :  { %2836 = vmatprep.mubr.f32.mxu1 %v2104_v44  ;;  %v2184_v44 = vld [vmem:[#allocation6 + $0x710] sm:$0xff] }
 0x515   :  { %3514 = vmatmul.mubr.f32.gmra.mrb[70].mxu0 %v2135_v21  ;;  %v2215_v21 = vld [vmem:[#allocation6 + $0x808] sm:$0xff] }
 0x516   :  { %3519 = vmatprep.mubr.f32.mxu0 %v2141_v61  ;;  %2837 = vmatmul.mubr.f32.gmra.mrb[58].mxu1 %v2103_v12  ;;  %v2221_v61 = vld [vmem:[#allocation6 + $0x838] sm:$0xff]  ;;  %v2183_v12 = vld [vmem:[#allocation6 + $0x708] sm:$0xff] }
 0x517   :  { %2842 = vmatprep.mubr.f32.mxu1 %v2109_v30  ;;  %v2189_v30 = vld [vmem:[#allocation6 + $0x738] sm:$0xff] }
 0x519   :  { %3520 = vmatmul.mubr.f32.gmra.mrb[72].mxu0 %v2140_v51  ;;  %v2220_v51 = vld [vmem:[#allocation6 + $0x830] sm:$0xff] }
 0x51a   :  { %3525 = vmatprep.mubr.f32.mxu0 %v2146_v29  ;;  %2843 = vmatmul.mubr.f32.gmra.mrb[60].mxu1 %v2108_v3  ;;  %v2226_v29 = vld [vmem:[#allocation6 + $0x860] sm:$0xff]  ;;  %v2188_v3 = vld [vmem:[#allocation6 + $0x730] sm:$0xff] }
 0x51b   :  { %2848 = vmatprep.mubr.f32.mxu1 %v2114_v54  ;;  %v2194_v54 = vld [vmem:[#allocation6 + $0x760] sm:$0xff] }
 0x51d   :  { %3526 = vmatmul.mubr.f32.gmra.mrb[74].mxu0 %v2145_v19  ;;  %v2225_v19 = vld [vmem:[#allocation6 + $0x858] sm:$0xff] }
 0x51e   :  { %3531 = vmatprep.mubr.f32.mxu0 %v2151_v58  ;;  %2849 = vmatmul.mubr.f32.gmra.mrb[62].mxu1 %v2113_v33  ;;  %v2231_v58 = vld [vmem:[#allocation6 + $0x888] sm:$0xff]  ;;  %v2193_v33 = vld [vmem:[#allocation6 + $0x758] sm:$0xff] }
 0x51f   :  { %2854 = vmatprep.mubr.f32.mxu1 %v2119_v53  ;;  %v2199_v53 = vld [vmem:[#allocation6 + $0x788] sm:$0xff] }
 0x521   :  { %3532 = vmatmul.mubr.f32.gmra.mrb[76].mxu0 %v2150_v46  ;;  %v2230_v46 = vld [vmem:[#allocation6 + $0x880] sm:$0xff] }
 0x522   :  { %3537 = vmatprep.mubr.f32.mxu0 %v2156_v32  ;;  %2855 = vmatmul.mubr.f32.gmra.mrb[64].mxu1 %v2118_v1  ;;  %v2236_v32 = vld [vmem:[#allocation6 + $0x8b0] sm:$0xff]  ;;  %v2198_v1 = vld [vmem:[#allocation6 + $0x780] sm:$0xff] }
 0x523   :  { %2860 = vmatprep.mubr.f32.mxu1 %v2124_v9  ;;  %v2204_v9 = vld [vmem:[#allocation6 + $0x7b0] sm:$0xff] }
 0x525   :  { %3538 = vmatmul.mubr.f32.gmra.mrb[78].mxu0 %v2155_v45  ;;  %v2235_v45 = vld [vmem:[#allocation6 + $0x8a8] sm:$0xff] }
 0x526   :  { %3543 = vmatprep.mubr.f32.mxu0 %v2161_v62  ;;  %2861 = vmatmul.mubr.f32.gmra.mrb[66].mxu1 %v2123_v41  ;;  %v2241_v62 = vld [vmem:[#allocation6 + $0x8d8] sm:$0xff]  ;;  %v2203_v41 = vld [vmem:[#allocation6 + $0x7a8] sm:$0xff] }
 0x527   :  { %2866 = vmatprep.mubr.f32.mxu1 %v2129_v20  ;;  %v2209_v20 = vld [vmem:[#allocation6 + $0x7d8] sm:$0xff] }
 0x529   :  { %3544 = vmatmul.mubr.f32.gmra.mrb[80].mxu0 %v2160_v23  ;;  %v2240_v23 = vld [vmem:[#allocation6 + $0x8d0] sm:$0xff] }
 0x52a   :  { %3549 = vmatprep.mubr.f32.mxu0 %v2166_v47  ;;  %2867 = vmatmul.mubr.f32.gmra.mrb[68].mxu1 %v2128_v60  ;;  %v2246_v47 = vld [vmem:[#allocation6 + $0x900] sm:$0xff]  ;;  %v2208_v60 = vld [vmem:[#allocation6 + $0x7d0] sm:$0xff] }
 0x52b   :  { %2872 = vmatprep.mubr.f32.mxu1 %v2134_v48  ;;  %v2214_v48 = vld [vmem:[#allocation6 + $0x800] sm:$0xff] }
 0x52d   :  { %3550 = vmatmul.mubr.f32.gmra.mrb[82].mxu0 %v2165_v25  ;;  %v2245_v25 = vld [vmem:[#allocation6 + $0x8f8] sm:$0xff] }
 0x52e   :  { %3555 = vmatprep.mubr.f32.mxu0 %v2171_v14  ;;  %2873 = vmatmul.mubr.f32.gmra.mrb[70].mxu1 %v2133_v55  ;;  %v2251_v14 = vld [vmem:[#allocation6 + $0x928] sm:$0xff]  ;;  %v2213_v55 = vld [vmem:[#allocation6 + $0x7f8] sm:$0xff] }
 0x52f   :  { %2878 = vmatprep.mubr.f32.mxu1 %v2139_v7  ;;  %v2219_v7 = vld [vmem:[#allocation6 + $0x828] sm:$0xff] }
 0x531   :  { %3556 = vmatmul.mubr.f32.gmra.mrb[84].mxu0 %v2170_v5  ;;  %v2250_v5 = vld [vmem:[#allocation6 + $0x920] sm:$0xff] }
 0x532   :  { %3561 = vmatprep.mubr.f32.mxu0 %v2176_v56  ;;  %2879 = vmatmul.mubr.f32.gmra.mrb[72].mxu1 %v2138_v11  ;;  %v2256_v56 = vld [vmem:[#allocation6 + $0x950] sm:$0xff]  ;;  %v2218_v11 = vld [vmem:[#allocation6 + $0x820] sm:$0xff] }
 0x533   :  { %2884 = vmatprep.mubr.f32.mxu1 %v2144_v18  ;;  %v2224_v18 = vld [vmem:[#allocation6 + $0x850] sm:$0xff] }
 0x535   :  { %3562 = vmatmul.mubr.f32.gmra.mrb[86].mxu0 %v2175_v10  ;;  %v2255_v10 = vld [vmem:[#allocation6 + $0x948] sm:$0xff] }
 0x536   :  { %3567 = vmatprep.mubr.f32.mxu0 %v2181_v42  ;;  %2885 = vmatmul.mubr.f32.gmra.mrb[74].mxu1 %v2143_v28  ;;  %v2261_v42 = vld [vmem:[#allocation6 + $0x978] sm:$0xff]  ;;  %v2223_v28 = vld [vmem:[#allocation6 + $0x848] sm:$0xff] }
 0x537   :  { %2890 = vmatprep.mubr.f32.mxu1 %v2149_v57  ;;  %v2229_v57 = vld [vmem:[#allocation6 + $0x878] sm:$0xff] }
 0x539   :  { %3568 = vmatmul.mubr.f32.gmra.mrb[88].mxu0 %v2180_v27  ;;  %v2260_v27 = vld [vmem:[#allocation6 + $0x970] sm:$0xff] }
 0x53a   :  { %3573 = vmatprep.mubr.f32.mxu0 %v2186_v39  ;;  %2891 = vmatmul.mubr.f32.gmra.mrb[76].mxu1 %v2148_v50  ;;  %v2266_v39 = vld [vmem:[#allocation6 + $0x9a0] sm:$0xff]  ;;  %v2228_v50 = vld [vmem:[#allocation6 + $0x870] sm:$0xff] }
 0x53b   :  { %2896 = vmatprep.mubr.f32.mxu1 %v2154_v24  ;;  %v2234_v24 = vld [vmem:[#allocation6 + $0x8a0] sm:$0xff] }
 0x53d   :  { %3574 = vmatmul.mubr.f32.gmra.mrb[90].mxu0 %v2185_v0  ;;  %v2265_v0 = vld [vmem:[#allocation6 + $0x998] sm:$0xff] }
 0x53e   :  { %3579 = vmatprep.mubr.f32.mxu0 %v2191_v22  ;;  %2897 = vmatmul.mubr.f32.gmra.mrb[78].mxu1 %v2153_v37  ;;  %v2271_v22 = vld [vmem:[#allocation6 + $0x9c8] sm:$0xff]  ;;  %v2233_v37 = vld [vmem:[#allocation6 + $0x898] sm:$0xff] }
 0x53f   :  { %2902 = vmatprep.mubr.f32.mxu1 %v2159_v43  ;;  %v2239_v43 = vld [vmem:[#allocation6 + $0x8c8] sm:$0xff] }
 0x541   :  { %3580 = vmatmul.mubr.f32.gmra.mrb[92].mxu0 %v2190_v31  ;;  %v2270_v31 = vld [vmem:[#allocation6 + $0x9c0] sm:$0xff] }
 0x542   :  { %3585 = vmatprep.mubr.f32.mxu0 %v2196_v40  ;;  %2903 = vmatmul.mubr.f32.gmra.mrb[80].mxu1 %v2158_v4  ;;  %v2276_v40 = vld [vmem:[#allocation6 + $0x9f0] sm:$0xff]  ;;  %v2238_v4 = vld [vmem:[#allocation6 + $0x8c0] sm:$0xff] }
 0x543   :  { %2908 = vmatprep.mubr.f32.mxu1 %v2164_v52  ;;  %v2244_v52 = vld [vmem:[#allocation6 + $0x8f0] sm:$0xff] }
 0x545   :  { %3586 = vmatmul.mubr.f32.gmra.mrb[94].mxu0 %v2195_v2  ;;  %v2275_v2 = vld [vmem:[#allocation6 + $0x9e8] sm:$0xff] }
 0x546   :  { %3591 = vmatprep.mubr.f32.mxu0 %v2201_v36  ;;  %2909 = vmatmul.mubr.f32.gmra.mrb[82].mxu1 %v2163_v16  ;;  %v2281_v36 = vld [vmem:[#allocation6 + $0xa18] sm:$0xff]  ;;  %v2243_v16 = vld [vmem:[#allocation6 + $0x8e8] sm:$0xff] }
 0x547   :  { %2914 = vmatprep.mubr.f32.mxu1 %v2169_v26  ;;  %v2249_v26 = vld [vmem:[#allocation6 + $0x918] sm:$0xff] }
 0x549   :  { %3592 = vmatmul.mubr.f32.gmra.mrb[96].mxu0 %v2200_v49  ;;  %v2280_v49 = vld [vmem:[#allocation6 + $0xa10] sm:$0xff] }
 0x54a   :  { %3597 = vmatprep.mubr.f32.mxu0 %v2206_v15  ;;  %2915 = vmatmul.mubr.f32.gmra.mrb[84].mxu1 %v2168_v63  ;;  %v2286_v15 = vld [vmem:[#allocation6 + $0xa40] sm:$0xff]  ;;  %v2248_v63 = vld [vmem:[#allocation6 + $0x910] sm:$0xff] }
 0x54b   :  { %2920 = vmatprep.mubr.f32.mxu1 %v2174_v17  ;;  %v2254_v17 = vld [vmem:[#allocation6 + $0x940] sm:$0xff] }
 0x54d   :  { %3598 = vmatmul.mubr.f32.gmra.mrb[98].mxu0 %v2205_v38  ;;  %v2285_v38 = vld [vmem:[#allocation6 + $0xa38] sm:$0xff] }
 0x54e   :  { %3603 = vmatprep.mubr.f32.mxu0 %v2211_v35  ;;  %2921 = vmatmul.mubr.f32.gmra.mrb[86].mxu1 %v2173_v59  ;;  %v2291_v35 = vld [vmem:[#allocation6 + $0xa68] sm:$0xff]  ;;  %v2253_v59 = vld [vmem:[#allocation6 + $0x938] sm:$0xff] }
 0x54f   :  { %2926 = vmatprep.mubr.f32.mxu1 %v2179_v6  ;;  %v2259_v6 = vld [vmem:[#allocation6 + $0x968] sm:$0xff] }
 0x551   :  { %3604 = vmatmul.mubr.f32.gmra.mrb[100].mxu0 %v2210_v13  ;;  %v2290_v13 = vld [vmem:[#allocation6 + $0xa60] sm:$0xff] }
 0x552   :  { %3609 = vmatprep.mubr.f32.mxu0 %v2216_v34  ;;  %2927 = vmatmul.mubr.f32.gmra.mrb[88].mxu1 %v2178_v8  ;;  %v2296_v34 = vld [vmem:[#allocation6 + $0xa90] sm:$0xff]  ;;  %v2258_v8 = vld [vmem:[#allocation6 + $0x960] sm:$0xff] }
 0x553   :  { %2932 = vmatprep.mubr.f32.mxu1 %v2184_v44  ;;  %v2264_v44 = vld [vmem:[#allocation6 + $0x990] sm:$0xff] }
 0x555   :  { %3610 = vmatmul.mubr.f32.gmra.mrb[102].mxu0 %v2215_v21  ;;  %v2295_v21 = vld [vmem:[#allocation6 + $0xa88] sm:$0xff] }
 0x556   :  { %3615 = vmatprep.mubr.f32.mxu0 %v2221_v61  ;;  %2933 = vmatmul.mubr.f32.gmra.mrb[90].mxu1 %v2183_v12  ;;  %v2301_v61 = vld [vmem:[#allocation6 + $0xab8] sm:$0xff]  ;;  %v2263_v12 = vld [vmem:[#allocation6 + $0x988] sm:$0xff] }
 0x557   :  { %2938 = vmatprep.mubr.f32.mxu1 %v2189_v30  ;;  %v2269_v30 = vld [vmem:[#allocation6 + $0x9b8] sm:$0xff] }
 0x559   :  { %3616 = vmatmul.mubr.f32.gmra.mrb[104].mxu0 %v2220_v51  ;;  %v2300_v51 = vld [vmem:[#allocation6 + $0xab0] sm:$0xff] }
 0x55a   :  { %3621 = vmatprep.mubr.f32.mxu0 %v2226_v29  ;;  %2939 = vmatmul.mubr.f32.gmra.mrb[92].mxu1 %v2188_v3  ;;  %v2306_v29 = vld [vmem:[#allocation6 + $0xae0] sm:$0xff]  ;;  %v2268_v3 = vld [vmem:[#allocation6 + $0x9b0] sm:$0xff] }
 0x55b   :  { %2944 = vmatprep.mubr.f32.mxu1 %v2194_v54  ;;  %v2274_v54 = vld [vmem:[#allocation6 + $0x9e0] sm:$0xff] }
 0x55d   :  { %3622 = vmatmul.mubr.f32.gmra.mrb[106].mxu0 %v2225_v19  ;;  %v2305_v19 = vld [vmem:[#allocation6 + $0xad8] sm:$0xff] }
 0x55e   :  { %3627 = vmatprep.mubr.f32.mxu0 %v2231_v58  ;;  %2945 = vmatmul.mubr.f32.gmra.mrb[94].mxu1 %v2193_v33  ;;  %v2311_v58 = vld [vmem:[#allocation6 + $0xb08] sm:$0xff] }
 0x55f   :  { %2950 = vmatprep.mubr.f32.mxu1 %v2199_v53  ;;  %v2321_v53 = vld [vmem:[#allocation6 + $0xb58] sm:$0xff] }
 0x561   :  { %3628 = vmatmul.mubr.f32.gmra.mrb[108].mxu0 %v2230_v46  ;;  %v2310_v46 = vld [vmem:[#allocation6 + $0xb00] sm:$0xff] }
 0x562   :  { %3633 = vmatprep.mubr.f32.mxu0 %v2236_v32  ;;  %2951 = vmatmul.mubr.f32.gmra.mrb[96].mxu1 %v2198_v1  ;;  %v2316_v32 = vld [vmem:[#allocation6 + $0xb30] sm:$0xff] }
 0x563   :  { %2956 = vmatprep.mubr.f32.mxu1 %v2204_v9  ;;  %v2320_v9 = vld [vmem:[#allocation6 + $0xb50] sm:$0xff] }
 0x565   :  { %3634 = vmatmul.mubr.f32.gmra.mrb[110].mxu0 %v2235_v45 }
 0x566   :  { %3639 = vmatprep.mubr.f32.mxu0 %v2241_v62  ;;  %2957 = vmatmul.mubr.f32.gmra.mrb[98].mxu1 %v2203_v41  ;;  %v2315_v62 = vld [vmem:[#allocation6 + $0xb28] sm:$0xff]  ;;  %v2284_v41 = vld [vmem:[#allocation6 + $0xa30] sm:$0xff] }
 0x567   :  { %2962 = vmatprep.mubr.f32.mxu1 %v2209_v20 }
 0x569   :  { %3640 = vmatmul.mubr.f32.gmra.mrb[112].mxu0 %v2240_v23  ;;  %v2273_v23 = vld [vmem:[#allocation6 + $0x9d8] sm:$0xff] }
 0x56a   :  { %3645 = vmatprep.mubr.f32.mxu0 %v2246_v47  ;;  %2963 = vmatmul.mubr.f32.gmra.mrb[100].mxu1 %v2208_v60  ;;  %v2279_v47 = vld [vmem:[#allocation6 + $0xa08] sm:$0xff] }
 0x56b   :  { %2968 = vmatprep.mubr.f32.mxu1 %v2214_v48  ;;  %v2283_v48 = vld [vmem:[#allocation6 + $0xa28] sm:$0xff] }
 0x56d   :  { %3646 = vmatmul.mubr.f32.gmra.mrb[114].mxu0 %v2245_v25 }
 0x56e   :  { %3651 = vmatprep.mubr.f32.mxu0 %v2251_v14  ;;  %2969 = vmatmul.mubr.f32.gmra.mrb[102].mxu1 %v2213_v55  ;;  %v2278_v14 = vld [vmem:[#allocation6 + $0xa00] sm:$0xff]  ;;  %v1967_v55 = vld [vmem:[#allocation6 + $0x48] sm:$0xff] }
 0x56f   :  { %2974 = vmatprep.mubr.f32.mxu1 %v2219_v7 }
 0x571   :  { %3652 = vmatmul.mubr.f32.gmra.mrb[116].mxu0 %v2250_v5  ;;  %v9657_v5 = vmov 0.0  }
 0x572   :  { %3657 = vmatprep.mubr.f32.mxu0 %v2256_v56  ;;  %2975 = vmatmul.mubr.f32.gmra.mrb[104].mxu1 %v2218_v11  ;;  %v1962_v56 = vld [vmem:[#allocation6 + $0x20] sm:$0xff] }
 0x573   :  { %2980 = vmatprep.mubr.f32.mxu1 %v2224_v18  ;;  %v1972_v18 = vld [vmem:[#allocation6 + $0x70] sm:$0xff] }
 0x575   :  { %3658 = vmatmul.mubr.f32.gmra.mrb[118].mxu0 %v2255_v10  ;;  %v8178_v45 = vpop.f32.mrb[0].mxu1  ;;  %v2289_v10 = vld [vmem:[#allocation6 + $0xa58] sm:$0xff] }
 0x576   :  { %3663 = vmatprep.mubr.f32.mxu0 %v2261_v42  ;;  %2981 = vmatmul.mubr.f32.gmra.mrb[106].mxu1 %v2223_v28  ;;  %v8180_v33 = vpop.f32.mrb[1].mxu1  ;;  %v2299_v28 = vld [vmem:[#allocation6 + $0xaa8] sm:$0xff] }
 0x577   :  { %2986 = vmatprep.mubr.f32.mxu1 %v2229_v57 }
 0x579   :  { %3664 = vmatmul.mubr.f32.gmra.mrb[120].mxu0 %v2260_v27  ;;  %v8182_v1 = vpop.f32.mrb[2].mxu1  ;;  %v2288_v27 = vld [vmem:[#allocation6 + $0xa50] sm:$0xff] }
 0x57a   :  { %3669 = vmatprep.mubr.f32.mxu0 %v2266_v39  ;;  %2987 = vmatmul.mubr.f32.gmra.mrb[108].mxu1 %v2228_v50  ;;  %v8184_v25 = vpop.f32.mrb[3].mxu1  ;;  %v2294_v39 = vld [vmem:[#allocation6 + $0xa80] sm:$0xff] }
 0x57b   :  { %2992 = vmatprep.mubr.f32.mxu1 %v2234_v24  ;;  %v2298_v50 = vld [vmem:[#allocation6 + $0xaa0] sm:$0xff]  ;;  %v2304_v24 = vld [vmem:[#allocation6 + $0xad0] sm:$0xff] }
 0x57d   :  { %3670 = vmatmul.mubr.f32.gmra.mrb[122].mxu0 %v2265_v0  ;;  %v8186_v20 = vpop.f32.mrb[4].mxu1 }
 0x57e   :  { %3675 = vmatprep.mubr.f32.mxu0 %v2271_v22  ;;  %2993 = vmatmul.mubr.f32.gmra.mrb[110].mxu1 %v2233_v37  ;;  %v8189_v60 = vpop.f32.mrb[5].mxu1  ;;  %v2293_v22 = vld [vmem:[#allocation6 + $0xa78] sm:$0xff] }
 0x57f   :  { %2998 = vmatprep.mubr.f32.mxu1 %v2239_v43  ;;  %v2303_v43 = vld [vmem:[#allocation6 + $0xac8] sm:$0xff] }
 0x581   :  { %3676 = vmatmul.mubr.f32.gmra.mrb[124].mxu0 %v2270_v31  ;;  %v8191_v42 = vpop.f32.mrb[6].mxu1  ;;  %v1977_v31 = vld [vmem:[#allocation6 + $0x98] sm:$0xff] }
 0x582   :  { %3681 = vmatprep.mubr.f32.mxu0 %v2276_v40  ;;  %2999 = vmatmul.mubr.f32.gmra.mrb[112].mxu1 %v2238_v4  ;;  %v8194_v7 = vpop.f32.mrb[7].mxu1  ;;  %v1987_v4 = vld [vmem:[#allocation6 + $0xe8] sm:$0xff] }
 0x583   :  { %3004 = vmatprep.mubr.f32.mxu1 %v2244_v52 }
 0x585   :  { %3682 = vmatmul.mubr.f32.gmra.mrb[126].mxu0 %v2275_v2  ;;  %v8196_v11 = vpop.f32.mrb[8].mxu1 }
 0x586   :  { %3687 = vmatprep.mubr.f32.mxu0 %v2281_v36  ;;  %3005 = vmatmul.mubr.f32.gmra.mrb[114].mxu1 %v2243_v16  ;;  %v8199_v0 = vpop.f32.mrb[9].mxu1  ;;  %v1982_v36 = vld [vmem:[#allocation6 + $0xc0] sm:$0xff] }
 0x587   :  { %3010 = vmatprep.mubr.f32.mxu1 %v2249_v26  ;;  %v1992_v26 = vld [vmem:[#allocation6 + $0x110] sm:$0xff] }
 0x589   :  { %3688 = vmatmul.mubr.f32.gmra.mrb[128].mxu0 %v2280_v49  ;;  %v8201_v57 = vpop.f32.mrb[10].mxu1  ;;  %v2309_v49 = vld [vmem:[#allocation6 + $0xaf8] sm:$0xff] }
 0x58a   :  { %3693 = vmatprep.mubr.f32.mxu0 %v2286_v15  ;;  %3011 = vmatmul.mubr.f32.gmra.mrb[116].mxu1 %v2248_v63  ;;  %v8204_v40 = vpop.f32.mrb[11].mxu1  ;;  %v2319_v63 = vld [vmem:[#allocation6 + $0xb48] sm:$0xff] }
 0x58b   :  { %3016 = vmatprep.mubr.f32.mxu1 %v2254_v17 }
 0x58d   :  { %3694 = vmatmul.mubr.f32.gmra.mrb[130].mxu0 %v2285_v38  ;;  %v8206_v2 = vpop.f32.mrb[12].mxu1  ;;  %v2308_v38 = vld [vmem:[#allocation6 + $0xaf0] sm:$0xff] }
 0x58e   :  { %3699 = vmatprep.mubr.f32.mxu0 %v2291_v35  ;;  %3017 = vmatmul.mubr.f32.gmra.mrb[118].mxu1 %v2253_v59  ;;  %v8209_v37 = vpop.f32.mrb[13].mxu1  ;;  %v2314_v35 = vld [vmem:[#allocation6 + $0xb20] sm:$0xff] }
 0x58f   :  { %3022 = vmatprep.mubr.f32.mxu1 %v2259_v6  ;;  %v2318_v59 = vld [vmem:[#allocation6 + $0xb40] sm:$0xff]  ;;  %v2324_v6 = vld [vmem:[#allocation6 + $0xb70] sm:$0xff] }
 0x591   :  { %3700 = vmatmul.mubr.f32.gmra.mrb[132].mxu0 %v2290_v13  ;;  %v8211_v15 = vpop.f32.mrb[14].mxu1 }
 0x592   :  { %3705 = vmatprep.mubr.f32.mxu0 %v2296_v34  ;;  %3023 = vmatmul.mubr.f32.gmra.mrb[120].mxu1 %v2258_v8  ;;  %v8214_v52 = vpop.f32.mrb[15].mxu1  ;;  %v2313_v34 = vld [vmem:[#allocation6 + $0xb18] sm:$0xff] }
 0x593   :  { %3028 = vmatprep.mubr.f32.mxu1 %v2264_v44  ;;  %v2323_v44 = vld [vmem:[#allocation6 + $0xb68] sm:$0xff] }
 0x595   :  { %3706 = vmatmul.mubr.f32.gmra.mrb[134].mxu0 %v2295_v21  ;;  %v8216_v16 = vpop.f32.mrb[16].mxu1  ;;  %v1997_v21 = vld [vmem:[#allocation6 + $0x138] sm:$0xff] }
 0x596   :  { %3711 = vmatprep.mubr.f32.mxu0 %v2301_v61  ;;  %3029 = vmatmul.mubr.f32.gmra.mrb[122].mxu1 %v2263_v12  ;;  %v8219_v13 = vpop.f32.mrb[17].mxu1  ;;  %v2007_v12 = vld [vmem:[#allocation6 + $0x188] sm:$0xff] }
 0x597   :  { %3034 = vmatprep.mubr.f32.mxu1 %v2269_v30 }
 0x599   :  { %3712 = vmatmul.mubr.f32.gmra.mrb[136].mxu0 %v2300_v51  ;;  %v8221_v17 = vpop.f32.mrb[18].mxu1 }
 0x59a   :  { %3717 = vmatprep.mubr.f32.mxu0 %v2306_v29  ;;  %3035 = vmatmul.mubr.f32.gmra.mrb[124].mxu1 %v2268_v3  ;;  %v8224_v61 = vpop.f32.mrb[19].mxu1  ;;  %v2002_v29 = vld [vmem:[#allocation6 + $0x160] sm:$0xff] }
 0x59b   :  { %3040 = vmatprep.mubr.f32.mxu1 %v2274_v54  ;;  %v2012_v54 = vld [vmem:[#allocation6 + $0x1b0] sm:$0xff] }
 0x59d   :  { %3718 = vmatmul.mubr.f32.gmra.mrb[138].mxu0 %v2305_v19  ;;  %v8226_v51 = vpop.f32.mrb[20].mxu1  ;;  %v2329_v19 = vld [vmem:[#allocation6 + $0xb98] sm:$0xff] }
 0x59e   :  { %3723 = vmatprep.mubr.f32.mxu0 %v2311_v58  ;;  %3041 = vmatmul.mubr.f32.gmra.mrb[126].mxu1 %v2273_v23  ;;  %v8229_v8 = vpop.f32.mrb[21].mxu1  ;;  %v2339_v23 = vld [vmem:[#allocation6 + $0xbe8] sm:$0xff] }
 0x59f   :  { %3046 = vmatprep.mubr.f32.mxu1 %v2279_v47 }
 0x5a1   :  { %3724 = vmatmul.mubr.f32.gmra.mrb[140].mxu0 %v2310_v46  ;;  %v8231_v58 = vpop.f32.mrb[22].mxu1  ;;  %v2328_v46 = vld [vmem:[#allocation6 + $0xb90] sm:$0xff] }
 0x5a2   :  { %3729 = vmatprep.mubr.f32.mxu0 %v2316_v32  ;;  %3047 = vmatmul.mubr.f32.gmra.mrb[128].mxu1 %v2278_v14  ;;  %v8234_v30 = vpop.f32.mrb[23].mxu1  ;;  %v2334_v32 = vld [vmem:[#allocation6 + $0xbc0] sm:$0xff] }
 0x5a3   :  { %3052 = vmatprep.mubr.f32.mxu1 %v2284_v41  ;;  %v2338_v41 = vld [vmem:[#allocation6 + $0xbe0] sm:$0xff] }
 0x5a5   :  { %3730 = vmatmul.mubr.f32.gmra.mrb[142].mxu0 %v2315_v62  ;;  %v8236_v3 = vpop.f32.mrb[24].mxu1 }
 0x5a6   :  { %3735 = vmatprep.mubr.f32.mxu0 %v2321_v53  ;;  %3053 = vmatmul.mubr.f32.gmra.mrb[130].mxu1 %v2283_v48  ;;  %v8239_v62 = vpop.f32.mrb[25].mxu1  ;;  %v2333_v53 = vld [vmem:[#allocation6 + $0xbb8] sm:$0xff] }
 0x5a7   :  { %3058 = vmatprep.mubr.f32.mxu1 %v2289_v10  ;;  %v2022_v10 = vld [vmem:[#allocation6 + $0x200] sm:$0xff] }
 0x5a9   :  { %3736 = vmatmul.mubr.f32.gmra.mrb[144].mxu0 %v2320_v9  ;;  %v8241_v47 = vpop.f32.mrb[26].mxu1  ;;  %v2017_v9 = vld [vmem:[#allocation6 + $0x1d8] sm:$0xff] }
 0x5aa   :  { %3944 = vmatprep.mubr.f32.mxu0 %v9657_v5  ;;  %3059 = vmatmul.mubr.f32.gmra.mrb[132].mxu1 %v2288_v27  ;;  %v8244_v14 = vpop.f32.mrb[27].mxu1  ;;  %v2343_v27 = vld [vmem:[#allocation6 + $0xc08] sm:$0xff] }
 0x5ab   :  { %3064 = vmatprep.mubr.f32.mxu1 %v2294_v39  ;;  %v2349_v39 = vld [vmem:[#allocation6 + $0xc38] sm:$0xff] }
 0x5ad   :  { %3945 = vmatmul.mubr.f32.vlgmr.msra.gmra.mrb[0].mxu0 %v1962_v56  ;;  %v2344_v56 = vld [vmem:[#allocation6 + $0xc10] sm:$0xff]  ;;  %v8246_v48 = vpop.f32.mrb[28].mxu1 }
 0x5ae   :  { %3950 = vmatprep.mubr.f32.mxu0 %v9657_v5  ;;  %3065 = vmatmul.mubr.f32.gmra.mrb[134].mxu1 %v2293_v22  ;;  %v2027_v22 = vld [vmem:[#allocation6 + $0x228] sm:$0xff] }
 0x5af   :  { %3070 = vmatprep.mubr.f32.mxu1 %v2299_v28 }
 0x5b1   :  { %3951 = vmatmul.mubr.f32.gmra.mrb[2].mxu0 %v1967_v55  ;;  %v8249_v55 = vpop.f32.mrb[29].mxu1 }
 0x5b2   :  { %3956 = vmatprep.mubr.f32.mxu0 %v9657_v5  ;;  %3071 = vmatmul.mubr.f32.gmra.mrb[136].mxu1 %v2298_v50  ;;  %v2354_v50 = vld [vmem:[#allocation6 + $0xc60] sm:$0xff] }
 0x5b3   :  { %3076 = vmatprep.mubr.f32.mxu1 %v2304_v24 }
 0x5b5   :  { %3957 = vmatmul.mubr.f32.gmra.mrb[4].mxu0 %v1972_v18  ;;  %v8251_v18 = vpop.f32.mrb[30].mxu1 }
 0x5b6   :  { %3962 = vmatprep.mubr.f32.mxu0 %v9657_v5  ;;  %3077 = vmatmul.mubr.f32.gmra.mrb[138].mxu1 %v2303_v43  ;;  %v8254_v28 = vpop.f32.mrb[31].mxu1 }
 0x5b7   :  { %3082 = vmatprep.mubr.f32.mxu1 %v2309_v49  ;;  %v8256_v24 = vpop.f32.mrb[32].mxu1  ;;  %v2353_v49 = vld [vmem:[#allocation6 + $0xc58] sm:$0xff] }
 0x5b8   :  { %v8259_v43 = vpop.f32.mrb[33].mxu1 }
 0x5b9   :  { %3963 = vmatmul.mubr.f32.gmra.mrb[6].mxu0 %v1977_v31  ;;  %v2348_v31 = vld [vmem:[#allocation6 + $0xc30] sm:$0xff] }
 0x5ba   :  { %3968 = vmatprep.mubr.f32.mxu0 %v9657_v5  ;;  %3083 = vmatmul.mubr.f32.gmra.mrb[140].mxu1 %v2308_v38  ;;  %v8261_v38 = vpop.f32.mrb[34].mxu1 }
 0x5bb   :  { %3088 = vmatprep.mubr.f32.mxu1 %v2314_v35  ;;  %v2037_v35 = vld [vmem:[#allocation6 + $0x278] sm:$0xff] }
 0x5bd   :  { %3969 = vmatmul.mubr.f32.gmra.mrb[8].mxu0 %v1982_v36  ;;  %v2032_v36 = vld [vmem:[#allocation6 + $0x250] sm:$0xff] }
 0x5be   :  { %3974 = vmatprep.mubr.f32.mxu0 %v9657_v5  ;;  %3089 = vmatmul.mubr.f32.gmra.mrb[142].mxu1 %v2313_v34  ;;  %v2358_v34 = vld [vmem:[#allocation6 + $0xc80] sm:$0xff] }
 0x5bf   :  { %3094 = vmatprep.mubr.f32.mxu1 %v2319_v63  ;;  %v2364_v63 = vld [vmem:[#allocation6 + $0xcb0] sm:$0xff] }
 0x5c1   :  { %3975 = vmatmul.mubr.f32.gmra.mrb[10].mxu0 %v1987_v4  ;;  %v2359_v4 = vld [vmem:[#allocation6 + $0xc88] sm:$0xff] }
 0x5c2   :  { %3980 = vmatprep.mubr.f32.mxu0 %v9657_v5  ;;  %3095 = vmatmul.mubr.f32.gmra.mrb[144].mxu1 %v2318_v59  ;;  %v2042_v59 = vld [vmem:[#allocation6 + $0x2a0] sm:$0xff] }
 0x5c3   :  { %3100 = vmatprep.mubr.f32.mxu1 %v2324_v6 }
 0x5c5   :  { %3981 = vmatmul.mubr.f32.gmra.mrb[12].mxu0 %v1992_v26  ;;  %v8264_v26 = vpop.f32.mrb[35].mxu1 }
 0x5c6   :  { %3986 = vmatprep.mubr.f32.mxu0 %v9657_v5  ;;  %3101 = vmatmul.mubr.f32.gmra.mrb[146].mxu1 %v2323_v44  ;;  %v2369_v44 = vld [vmem:[#allocation6 + $0xcd8] sm:$0xff] }
 0x5c7   :  { %3106 = vmatprep.mubr.f32.mxu1 %v2329_v19 }
 0x5c9   :  { %3987 = vmatmul.mubr.f32.gmra.mrb[14].mxu0 %v1997_v21  ;;  %v8266_v21 = vpop.f32.mrb[36].mxu1 }
 0x5ca   :  { %3992 = vmatprep.mubr.f32.mxu0 %v9657_v5  ;;  %3107 = vmatmul.mubr.f32.gmra.mrb[148].mxu1 %v2328_v46  ;;  %v8269_v6 = vpop.f32.mrb[37].mxu1 }
 0x5cb   :  { %3112 = vmatprep.mubr.f32.mxu1 %v2334_v32  ;;  %v8271_v19 = vpop.f32.mrb[38].mxu1  ;;  %v2368_v32 = vld [vmem:[#allocation6 + $0xcd0] sm:$0xff] }
 0x5cc   :  { %v8274_v46 = vpop.f32.mrb[39].mxu1 }
 0x5cd   :  { %3993 = vmatmul.mubr.f32.gmra.mrb[16].mxu0 %v2002_v29  ;;  %v2363_v29 = vld [vmem:[#allocation6 + $0xca8] sm:$0xff] }
 0x5ce   :  { %3998 = vmatprep.mubr.f32.mxu0 %v9657_v5  ;;  %3113 = vmatmul.mubr.f32.gmra.mrb[150].mxu1 %v2333_v53  ;;  %v8276_v53 = vpop.f32.mrb[40].mxu1 }
 0x5cf   :  { %3118 = vmatprep.mubr.f32.mxu1 %v2339_v23  ;;  %v2052_v23 = vld [vmem:[#allocation6 + $0x2f0] sm:$0xff] }
 0x5d1   :  { %3999 = vmatmul.mubr.f32.gmra.mrb[18].mxu0 %v2007_v12  ;;  %v2047_v12 = vld [vmem:[#allocation6 + $0x2c8] sm:$0xff] }
 0x5d2   :  { %4004 = vmatprep.mubr.f32.mxu0 %v9657_v5  ;;  %3119 = vmatmul.mubr.f32.gmra.mrb[152].mxu1 %v2338_v41  ;;  %v2373_v41 = vld [vmem:[#allocation6 + $0xcf8] sm:$0xff] }
 0x5d3   :  { %3124 = vmatprep.mubr.f32.mxu1 %v2344_v56  ;;  %v2379_v56 = vld [vmem:[#allocation6 + $0xd28] sm:$0xff] }
 0x5d5   :  { %4005 = vmatmul.mubr.f32.gmra.mrb[20].mxu0 %v2012_v54  ;;  %v2374_v54 = vld [vmem:[#allocation6 + $0xd00] sm:$0xff] }
 0x5d6   :  { %4010 = vmatprep.mubr.f32.mxu0 %v9657_v5  ;;  %3125 = vmatmul.mubr.f32.gmra.mrb[154].mxu1 %v2343_v27  ;;  %v2057_v27 = vld [vmem:[#allocation6 + $0x318] sm:$0xff] }
 0x5d7   :  { %3130 = vmatprep.mubr.f32.mxu1 %v2349_v39 }
 0x5d9   :  { %4011 = vmatmul.mubr.f32.gmra.mrb[22].mxu0 %v2017_v9  ;;  %v8279_v9 = vpop.f32.mrb[41].mxu1 }
 0x5da   :  { %4016 = vmatprep.mubr.f32.mxu0 %v9657_v5  ;;  %3131 = vmatmul.mubr.f32.gmra.mrb[156].mxu1 %v2348_v31  ;;  %v2384_v31 = vld [vmem:[#allocation6 + $0xd50] sm:$0xff] }
 0x5db   :  { %3136 = vmatprep.mubr.f32.mxu1 %v2354_v50 }
 0x5dd   :  { %4017 = vmatmul.mubr.f32.gmra.mrb[24].mxu0 %v2022_v10  ;;  %v8281_v10 = vpop.f32.mrb[42].mxu1 }
 0x5de   :  { %4022 = vmatprep.mubr.f32.mxu0 %v9657_v5  ;;  %3137 = vmatmul.mubr.f32.gmra.mrb[158].mxu1 %v2353_v49  ;;  %v8284_v39 = vpop.f32.mrb[43].mxu1 }
 0x5df   :  { %3142 = vmatprep.mubr.f32.mxu1 %v2359_v4  ;;  %v8286_v50 = vpop.f32.mrb[44].mxu1  ;;  %v2383_v4 = vld [vmem:[#allocation6 + $0xd48] sm:$0xff] }
 0x5e0   :  { %v8289_v49 = vpop.f32.mrb[45].mxu1 }
 0x5e1   :  { %4023 = vmatmul.mubr.f32.gmra.mrb[26].mxu0 %v2027_v22  ;;  %v2378_v22 = vld [vmem:[#allocation6 + $0xd20] sm:$0xff]  ;;  %9658 = vst [vmem:[#allocation7_spill] sm:$0xff] %v8289_v49 }
 0x5e2   :  { %4028 = vmatprep.mubr.f32.mxu0 %v9657_v5  ;;  %3143 = vmatmul.mubr.f32.gmra.mrb[160].mxu1 %v2358_v34  ;;  %v8291_v34 = vpop.f32.mrb[46].mxu1 }
 0x5e3   :  { %3148 = vmatprep.mubr.f32.mxu1 %v2364_v63  ;;  %9659 = vst [vmem:[#allocation8_spill] sm:$0xff] %v8291_v34  ;;  %v2067_v63 = vld [vmem:[#allocation6 + $0x368] sm:$0xff] }
 0x5e5   :  { %4029 = vmatmul.mubr.f32.gmra.mrb[28].mxu0 %v2032_v36  ;;  %v2062_v36 = vld [vmem:[#allocation6 + $0x340] sm:$0xff] }
 0x5e6   :  { %4034 = vmatprep.mubr.f32.mxu0 %v9657_v5  ;;  %3149 = vmatmul.mubr.f32.gmra.mrb[162].mxu1 %v2363_v29  ;;  %v2394_v29 = vld [vmem:[#allocation6 + $0xda0] sm:$0xff] }
 0x5e7   :  { %3154 = vmatprep.mubr.f32.mxu1 %v2369_v44  ;;  %v8294_v44 = vpop.f32.mrb[47].mxu1 }
 0x5e8   :  { %9660 = vst [vmem:[#allocation9_spill] sm:$0xff] %v8294_v44 }
 0x5e9   :  { %4035 = vmatmul.mubr.f32.gmra.mrb[30].mxu0 %v2037_v35  ;;  %v2389_v35 = vld [vmem:[#allocation6 + $0xd78] sm:$0xff] }
 0x5ea   :  { %4040 = vmatprep.mubr.f32.mxu0 %v9657_v5  ;;  %3155 = vmatmul.mubr.f32.gmra.mrb[164].mxu1 %v2368_v32  ;;  %v2393_v32 = vld [vmem:[#allocation6 + $0xd98] sm:$0xff] }
 0x5eb   :  { %3160 = vmatprep.mubr.f32.mxu1 %v2374_v54  ;;  %v8297_v54 = vpop.f32.mrb[48].mxu1 }
 0x5ec   :  { %9661 = vst [vmem:[#allocation10_spill] sm:$0xff] %v8297_v54 }
 0x5ed   :  { %4041 = vmatmul.mubr.f32.gmra.mrb[32].mxu0 %v2042_v59  ;;  %v2388_v59 = vld [vmem:[#allocation6 + $0xd70] sm:$0xff] }
 0x5ee   :  { %4046 = vmatprep.mubr.f32.mxu0 %v9657_v5  ;;  %3161 = vmatmul.mubr.f32.gmra.mrb[166].mxu1 %v2373_v41  ;;  %v8299_v41 = vpop.f32.mrb[49].mxu1 }
 0x5ef   :  { %3166 = vmatprep.mubr.f32.mxu1 %v2379_v56  ;;  %9662 = vst [vmem:[#allocation11_spill] sm:$0xff] %v8299_v41  ;;  %v2077_v56 = vld [vmem:[#allocation6 + $0x3b8] sm:$0xff] }
 0x5f1   :  { %4047 = vmatmul.mubr.f32.gmra.mrb[34].mxu0 %v2047_v12  ;;  %v2072_v12 = vld [vmem:[#allocation6 + $0x390] sm:$0xff] }
 0x5f2   :  { %4052 = vmatprep.mubr.f32.mxu0 %v9657_v5  ;;  %3167 = vmatmul.mubr.f32.gmra.mrb[168].mxu1 %v2378_v22  ;;  %v8302_v22 = vpop.f32.mrb[50].mxu1 }
 0x5f3   :  { %3172 = vmatprep.mubr.f32.mxu1 %v2384_v31  ;;  %9663 = vst [vmem:[#allocation12_spill] sm:$0xff] %v8302_v22  ;;  %v2404_v31 = vld [vmem:[#allocation6 + $0xdf0] sm:$0xff] }
 0x5f5   :  { %4053 = vmatmul.mubr.f32.gmra.mrb[36].mxu0 %v2052_v23  ;;  %v2399_v23 = vld [vmem:[#allocation6 + $0xdc8] sm:$0xff] }
 0x5f6   :  { %4058 = vmatprep.mubr.f32.mxu0 %v9657_v5  ;;  %3173 = vmatmul.mubr.f32.gmra.mrb[170].mxu1 %v2383_v4  ;;  %v2082_v4 = vld [vmem:[#allocation6 + $0x3e0] sm:$0xff] }
 0x5f7   :  { %3178 = vmatprep.mubr.f32.mxu1 %v2389_v35  ;;  %v2403_v35 = vld [vmem:[#allocation6 + $0xde8] sm:$0xff] }
 0x5f9   :  { %4059 = vmatmul.mubr.f32.gmra.mrb[38].mxu0 %v2057_v27  ;;  %v2398_v27 = vld [vmem:[#allocation6 + $0xdc0] sm:$0xff] }
 0x5fa   :  { %4064 = vmatprep.mubr.f32.mxu0 %v9657_v5  ;;  %3179 = vmatmul.mubr.f32.gmra.mrb[172].mxu1 %v2388_v59  ;;  %v2409_v59 = vld [vmem:[#allocation6 + $0xe18] sm:$0xff] }
 0x5fb   :  { %3184 = vmatprep.mubr.f32.mxu1 %v2394_v29 }
 0x5fd   :  { %4065 = vmatmul.mubr.f32.gmra.mrb[40].mxu0 %v2062_v36  ;;  %v8304_v36 = vpop.f32.mrb[51].mxu1 }
 0x5fe   :  { %4070 = vmatprep.mubr.f32.mxu0 %v9657_v5  ;;  %3185 = vmatmul.mubr.f32.gmra.mrb[174].mxu1 %v2393_v32  ;;  %9664 = vst [vmem:[#allocation13_spill] sm:$0xff] %v8304_v36  ;;  %v2408_v32 = vld [vmem:[#allocation6 + $0xe10] sm:$0xff] }
 0x5ff   :  { %3190 = vmatprep.mubr.f32.mxu1 %v2399_v23 }
 0x601   :  { %4071 = vmatmul.mubr.f32.gmra.mrb[42].mxu0 %v2067_v63  ;;  %v8307_v63 = vpop.f32.mrb[52].mxu1 }
 0x602   :  { %4076 = vmatprep.mubr.f32.mxu0 %v9657_v5  ;;  %3191 = vmatmul.mubr.f32.gmra.mrb[176].mxu1 %v2398_v27  ;;  %9665 = vst [vmem:[#allocation14_spill] sm:$0xff] %v8307_v63  ;;  %v8309_v29 = vpop.f32.mrb[53].mxu1  ;;  %v2092_v27 = vld [vmem:[#allocation6 + $0x430] sm:$0xff] }
 0x603   :  { %3196 = vmatprep.mubr.f32.mxu1 %v2404_v31  ;;  %9666 = vst [vmem:[#allocation15_spill] sm:$0xff] %v8309_v29  ;;  %v8312_v23 = vpop.f32.mrb[54].mxu1  ;;  %v2413_v31 = vld [vmem:[#allocation6 + $0xe38] sm:$0xff] }
 0x604   :  { %9667 = vst [vmem:[#allocation16_spill] sm:$0xff] %v8312_v23  ;;  %v8314_v36 = vpop.f32.mrb[55].mxu1 }
 0x605   :  { %4077 = vmatmul.mubr.f32.gmra.mrb[44].mxu0 %v2072_v12  ;;  %v2087_v12 = vld [vmem:[#allocation6 + $0x408] sm:$0xff]  ;;  %9668 = vst [vmem:[#allocation17_spill] sm:$0xff] %v8314_v36  ;;  %v8317_v29 = vpop.f32.mrb[56].mxu1 }
 0x606   :  { %4082 = vmatprep.mubr.f32.mxu0 %v9657_v5  ;;  %3197 = vmatmul.mubr.f32.gmra.mrb[178].mxu1 %v2403_v35  ;;  %9669 = vst [vmem:[#allocation18_spill] sm:$0xff] %v8317_v29  ;;  %v8319_v63 = vpop.f32.mrb[57].mxu1  ;;  %v2097_v35 = vld [vmem:[#allocation6 + $0x458] sm:$0xff] }
 0x607   :  { %3202 = vmatprep.mubr.f32.mxu1 %v2409_v59  ;;  %9670 = vst [vmem:[#allocation19_spill] sm:$0xff] %v8319_v63  ;;  %v2418_v59 = vld [vmem:[#allocation6 + $0xe60] sm:$0xff]  ;;  %v8322_v36 = vpop.f32.mrb[58].mxu1 }
 0x608   :  { %9671 = vst [vmem:[#allocation20_spill] sm:$0xff] %v8322_v36  ;;  %v8324_v23 = vpop.f32.mrb[59].mxu1 }
 0x609   :  { %4083 = vmatmul.mubr.f32.gmra.mrb[46].mxu0 %v2077_v56  ;;  %v2414_v56 = vld [vmem:[#allocation6 + $0xe40] sm:$0xff]  ;;  %9672 = vst [vmem:[#allocation21_spill] sm:$0xff] %v8324_v23  ;;  %v8327_v63 = vpop.f32.mrb[60].mxu1 }
 0x60a   :  { %4088 = vmatprep.mubr.f32.mxu0 %v9657_v5  ;;  %3203 = vmatmul.mubr.f32.gmra.mrb[180].mxu1 %v2408_v32  ;;  %v2102_v32 = vld [vmem:[#allocation6 + $0x480] sm:$0xff]  ;;  %9673 = vst [vmem:[#allocation22_spill] sm:$0xff] %v8327_v63  ;;  %v8329_v29 = vpop.f32.mrb[61].mxu1 }
 0x60b   :  { %3208 = vmatprep.mubr.f32.mxu1 %v2414_v56  ;;  %v2423_v56 = vld [vmem:[#allocation6 + $0xe88] sm:$0xff]  ;;  %9674 = vst [vmem:[#allocation23_spill] sm:$0xff] %v8329_v29  ;;  %v8332_v23 = vpop.f32.mrb[62].mxu1 }
 0x60c   :  { %9675 = vst [vmem:[#allocation24_spill] sm:$0xff] %v8332_v23  ;;  %v8334_v36 = vpop.f32.mrb[63].mxu1 }
 0x60d   :  { %4089 = vmatmul.mubr.f32.gmra.mrb[48].mxu0 %v2082_v4  ;;  %v2419_v4 = vld [vmem:[#allocation6 + $0xe68] sm:$0xff]  ;;  %9676 = vst [vmem:[#allocation25_spill] sm:$0xff] %v8334_v36  ;;  %v8337_v29 = vpop.f32.mrb[64].mxu1 }
 0x60e   :  { %4094 = vmatprep.mubr.f32.mxu0 %v9657_v5  ;;  %3209 = vmatmul.mubr.f32.gmra.mrb[182].mxu1 %v2413_v31  ;;  %v2107_v31 = vld [vmem:[#allocation6 + $0x4a8] sm:$0xff]  ;;  %9677 = vst [vmem:[#allocation26_spill] sm:$0xff] %v8337_v29  ;;  %v8339_v63 = vpop.f32.mrb[65].mxu1 }
 0x60f   :  { %3214 = vmatprep.mubr.f32.mxu1 %v2419_v4  ;;  %v2428_v4 = vld [vmem:[#allocation6 + $0xeb0] sm:$0xff]  ;;  %9678 = vst [vmem:[#allocation27_spill] sm:$0xff] %v8339_v63  ;;  %v8342_v36 = vpop.f32.mrb[66].mxu1 }
 0x610   :  { %9679 = vst [vmem:[#allocation28_spill] sm:$0xff] %v8342_v36  ;;  %v8344_v23 = vpop.f32.mrb[67].mxu1 }
 0x611   :  { %4095 = vmatmul.mubr.f32.gmra.mrb[50].mxu0 %v2087_v12  ;;  %v2424_v12 = vld [vmem:[#allocation6 + $0xe90] sm:$0xff]  ;;  %9680 = vst [vmem:[#allocation29_spill] sm:$0xff] %v8344_v23  ;;  %v8347_v63 = vpop.f32.mrb[68].mxu1 }
 0x612   :  { %4100 = vmatprep.mubr.f32.mxu0 %v9657_v5  ;;  %3215 = vmatmul.mubr.f32.gmra.mrb[184].mxu1 %v2418_v59  ;;  %v2112_v59 = vld [vmem:[#allocation6 + $0x4d0] sm:$0xff]  ;;  %9681 = vst [vmem:[#allocation30_spill] sm:$0xff] %v8347_v63  ;;  %v8349_v29 = vpop.f32.mrb[69].mxu1 }
 0x613   :  { %3220 = vmatprep.mubr.f32.mxu1 %v2424_v12  ;;  %v2433_v12 = vld [vmem:[#allocation6 + $0xed8] sm:$0xff]  ;;  %9682 = vst [vmem:[#allocation31_spill] sm:$0xff] %v8349_v29  ;;  %v8352_v23 = vpop.f32.mrb[70].mxu1 }
 0x614   :  { %9683 = vst [vmem:[#allocation32_spill] sm:$0xff] %v8352_v23  ;;  %v8354_v36 = vpop.f32.mrb[71].mxu1 }
 0x615   :  { %4101 = vmatmul.mubr.f32.gmra.mrb[52].mxu0 %v2092_v27  ;;  %v2429_v27 = vld [vmem:[#allocation6 + $0xeb8] sm:$0xff]  ;;  %9684 = vst [vmem:[#allocation33_spill] sm:$0xff] %v8354_v36  ;;  %v8357_v29 = vpop.f32.mrb[72].mxu1 }
 0x616   :  { %4106 = vmatprep.mubr.f32.mxu0 %v9657_v5  ;;  %3221 = vmatmul.mubr.f32.gmra.mrb[186].mxu1 %v2423_v56  ;;  %v2117_v56 = vld [vmem:[#allocation6 + $0x4f8] sm:$0xff]  ;;  %9685 = vst [vmem:[#allocation34_spill] sm:$0xff] %v8357_v29  ;;  %v8359_v63 = vpop.f32.mrb[73].mxu1 }
 0x617   :  { %3226 = vmatprep.mubr.f32.mxu1 %v2429_v27  ;;  %v2325_v27 = vld [vmem:[#allocation6 + $0xb78] sm:$0xff]  ;;  %9686 = vst [vmem:[#allocation35_spill] sm:$0xff] %v8359_v63  ;;  %v8362_v36 = vpop.f32.mrb[74].mxu1 }
 0x618   :  { %9687 = vst [vmem:[#allocation36_spill] sm:$0xff] %v8362_v36  ;;  %v8364_v23 = vpop.f32.mrb[75].mxu1 }
 0x619   :  { %4107 = vmatmul.mubr.f32.gmra.mrb[54].mxu0 %v2097_v35  ;;  %v2434_v35 = vld [vmem:[#allocation6 + $0xee0] sm:$0xff]  ;;  %9688 = vst [vmem:[#allocation37_spill] sm:$0xff] %v8364_v23  ;;  %v8367_v63 = vpop.f32.mrb[76].mxu1 }
 0x61a   :  { %4112 = vmatprep.mubr.f32.mxu0 %v9657_v5  ;;  %3227 = vmatmul.mubr.f32.gmra.mrb[188].mxu1 %v2428_v4  ;;  %v2122_v4 = vld [vmem:[#allocation6 + $0x520] sm:$0xff]  ;;  %9689 = vst [vmem:[#allocation38_spill] sm:$0xff] %v8367_v63  ;;  %v8369_v29 = vpop.f32.mrb[77].mxu1 }
 0x61b   :  { %3232 = vmatprep.mubr.f32.mxu1 %v2434_v35  ;;  %v2330_v35 = vld [vmem:[#allocation6 + $0xba0] sm:$0xff]  ;;  %9690 = vst [vmem:[#allocation39_spill] sm:$0xff] %v8369_v29  ;;  %v8372_v23 = vpop.f32.mrb[78].mxu1 }
 0x61c   :  { %9691 = vst [vmem:[#allocation40_spill] sm:$0xff] %v8372_v23  ;;  %v8374_v36 = vpop.f32.mrb[79].mxu1 }
 0x61d   :  { %4113 = vmatmul.mubr.f32.gmra.mrb[56].mxu0 %v2102_v32  ;;  %v2326_v32 = vld [vmem:[#allocation6 + $0xb80] sm:$0xff]  ;;  %9692 = vst [vmem:[#allocation41_spill] sm:$0xff] %v8374_v36  ;;  %v8377_v29 = vpop.f32.mrb[80].mxu1 }
 0x61e   :  { %4118 = vmatprep.mubr.f32.mxu0 %v9657_v5  ;;  %3233 = vmatmul.mubr.f32.gmra.mrb[190].mxu1 %v2433_v12  ;;  %v2127_v12 = vld [vmem:[#allocation6 + $0x548] sm:$0xff]  ;;  %9693 = vst [vmem:[#allocation42_spill] sm:$0xff] %v8377_v29  ;;  %v8379_v63 = vpop.f32.mrb[81].mxu1 }
 0x61f   :  { %3741 = vmatprep.mubr.f32.mxu1 %v2326_v32  ;;  %v2335_v32 = vld [vmem:[#allocation6 + $0xbc8] sm:$0xff]  ;;  %9694 = vst [vmem:[#allocation43_spill] sm:$0xff] %v8379_v63  ;;  %v8382_v36 = vpop.f32.mrb[82].mxu1 }
 0x620   :  { %9695 = vst [vmem:[#allocation44_spill] sm:$0xff] %v8382_v36  ;;  %v8384_v23 = vpop.f32.mrb[83].mxu1 }
 0x621   :  { %4119 = vmatmul.mubr.f32.gmra.mrb[58].mxu0 %v2107_v31  ;;  %v2331_v31 = vld [vmem:[#allocation6 + $0xba8] sm:$0xff]  ;;  %9696 = vst [vmem:[#allocation45_spill] sm:$0xff] %v8384_v23  ;;  %v8387_v63 = vpop.f32.mrb[84].mxu1 }
 0x622   :  { %4124 = vmatprep.mubr.f32.mxu0 %v9657_v5  ;;  %3742 = vmatmul.mubr.f32.vlgmr.msra.gmra.mrb[146].mxu1 %v2325_v27  ;;  %v2132_v27 = vld [vmem:[#allocation6 + $0x570] sm:$0xff]  ;;  %9697 = vst [vmem:[#allocation46_spill] sm:$0xff] %v8387_v63  ;;  %v8389_v29 = vpop.f32.mrb[85].mxu1 }
 0x623   :  { %3747 = vmatprep.mubr.f32.mxu1 %v2331_v31  ;;  %v2340_v31 = vld [vmem:[#allocation6 + $0xbf0] sm:$0xff]  ;;  %9698 = vst [vmem:[#allocation47_spill] sm:$0xff] %v8389_v29  ;;  %v8392_v23 = vpop.f32.mrb[86].mxu1 }
 0x624   :  { %9699 = vst [vmem:[#allocation48_spill] sm:$0xff] %v8392_v23  ;;  %v8394_v36 = vpop.f32.mrb[87].mxu1 }
 0x625   :  { %4125 = vmatmul.mubr.f32.gmra.mrb[60].mxu0 %v2112_v59  ;;  %v2336_v59 = vld [vmem:[#allocation6 + $0xbd0] sm:$0xff]  ;;  %9700 = vst [vmem:[#allocation49_spill] sm:$0xff] %v8394_v36  ;;  %v8397_v29 = vpop.f32.mrb[88].mxu1 }
 0x626   :  { %4130 = vmatprep.mubr.f32.mxu0 %v9657_v5  ;;  %3748 = vmatmul.mubr.f32.gmra.mrb[148].mxu1 %v2330_v35  ;;  %v2137_v35 = vld [vmem:[#allocation6 + $0x598] sm:$0xff]  ;;  %9701 = vst [vmem:[#allocation50_spill] sm:$0xff] %v8397_v29  ;;  %v8399_v63 = vpop.f32.mrb[89].mxu1 }
 0x627   :  { %3753 = vmatprep.mubr.f32.mxu1 %v2336_v59  ;;  %v2345_v59 = vld [vmem:[#allocation6 + $0xc18] sm:$0xff]  ;;  %9702 = vst [vmem:[#allocation51_spill] sm:$0xff] %v8399_v63 }
 0x629   :  { %4131 = vmatmul.mubr.f32.gmra.mrb[62].mxu0 %v2117_v56  ;;  %v2341_v56 = vld [vmem:[#allocation6 + $0xbf8] sm:$0xff]  ;;  %v8402_v36 = vpop.f32.mrb[90].mxu1 }
 0x62a   :  { %4136 = vmatprep.mubr.f32.mxu0 %v9657_v5  ;;  %3754 = vmatmul.mubr.f32.gmra.mrb[150].mxu1 %v2335_v32  ;;  %v2142_v32 = vld [vmem:[#allocation6 + $0x5c0] sm:$0xff]  ;;  %9703 = vst [vmem:[#allocation52_spill] sm:$0xff] %v8402_v36  ;;  %v8404_v23 = vpop.f32.mrb[91].mxu1 }
 0x62b   :  { %3759 = vmatprep.mubr.f32.mxu1 %v2341_v56  ;;  %v2350_v56 = vld [vmem:[#allocation6 + $0xc40] sm:$0xff]  ;;  %9704 = vst [vmem:[#allocation53_spill] sm:$0xff] %v8404_v23 }
 0x62d   :  { %4137 = vmatmul.mubr.f32.gmra.mrb[64].mxu0 %v2122_v4  ;;  %v2346_v4 = vld [vmem:[#allocation6 + $0xc20] sm:$0xff]  ;;  %v8407_v63 = vpop.f32.mrb[92].mxu1 }
 0x62e   :  { %4142 = vmatprep.mubr.f32.mxu0 %v9657_v5  ;;  %3760 = vmatmul.mubr.f32.gmra.mrb[152].mxu1 %v2340_v31  ;;  %v2147_v31 = vld [vmem:[#allocation6 + $0x5e8] sm:$0xff]  ;;  %9705 = vst [vmem:[#allocation54_spill] sm:$0xff] %v8407_v63  ;;  %v8409_v29 = vpop.f32.mrb[93].mxu1 }
 0x62f   :  { %3765 = vmatprep.mubr.f32.mxu1 %v2346_v4  ;;  %v2355_v4 = vld [vmem:[#allocation6 + $0xc68] sm:$0xff]  ;;  %9706 = vst [vmem:[#allocation55_spill] sm:$0xff] %v8409_v29 }
 0x631   :  { %4143 = vmatmul.mubr.f32.gmra.mrb[66].mxu0 %v2127_v12  ;;  %v2351_v12 = vld [vmem:[#allocation6 + $0xc48] sm:$0xff]  ;;  %v8412_v23 = vpop.f32.mrb[94].mxu1 }
 0x632   :  { %4148 = vmatprep.mubr.f32.mxu0 %v9657_v5  ;;  %3766 = vmatmul.mubr.f32.gmra.mrb[154].mxu1 %v2345_v59  ;;  %v2152_v59 = vld [vmem:[#allocation6 + $0x610] sm:$0xff]  ;;  %9707 = vst [vmem:[#allocation56_spill] sm:$0xff] %v8412_v23  ;;  %v8414_v36 = vpop.f32.mrb[95].mxu1 }
 0x633   :  { %3771 = vmatprep.mubr.f32.mxu1 %v2351_v12  ;;  %v2360_v12 = vld [vmem:[#allocation6 + $0xc90] sm:$0xff]  ;;  %9708 = vst [vmem:[#allocation57_spill] sm:$0xff] %v8414_v36 }
 0x635   :  { %4149 = vmatmul.mubr.f32.gmra.mrb[68].mxu0 %v2132_v27  ;;  %v2356_v27 = vld [vmem:[#allocation6 + $0xc70] sm:$0xff]  ;;  %v8417_v29 = vpop.f32.mrb[96].mxu1 }
 0x636   :  { %4154 = vmatprep.mubr.f32.mxu0 %v9657_v5  ;;  %3772 = vmatmul.mubr.f32.gmra.mrb[156].mxu1 %v2350_v56  ;;  %v2157_v56 = vld [vmem:[#allocation6 + $0x638] sm:$0xff]  ;;  %9709 = vst [vmem:[#allocation58_spill] sm:$0xff] %v8417_v29  ;;  %v8419_v63 = vpop.f32.mrb[97].mxu1 }
 0x637   :  { %3777 = vmatprep.mubr.f32.mxu1 %v2356_v27  ;;  %v2365_v27 = vld [vmem:[#allocation6 + $0xcb8] sm:$0xff]  ;;  %9710 = vst [vmem:[#allocation59_spill] sm:$0xff] %v8419_v63 }
 0x639   :  { %4155 = vmatmul.mubr.f32.gmra.mrb[70].mxu0 %v2137_v35  ;;  %v2361_v35 = vld [vmem:[#allocation6 + $0xc98] sm:$0xff]  ;;  %v8422_v36 = vpop.f32.mrb[98].mxu1 }
 0x63a   :  { %4160 = vmatprep.mubr.f32.mxu0 %v9657_v5  ;;  %3778 = vmatmul.mubr.f32.gmra.mrb[158].mxu1 %v2355_v4  ;;  %v2162_v4 = vld [vmem:[#allocation6 + $0x660] sm:$0xff]  ;;  %9711 = vst [vmem:[#allocation60_spill] sm:$0xff] %v8422_v36  ;;  %v8424_v23 = vpop.f32.mrb[99].mxu1 }
 0x63b   :  { %3783 = vmatprep.mubr.f32.mxu1 %v2361_v35  ;;  %v2370_v35 = vld [vmem:[#allocation6 + $0xce0] sm:$0xff]  ;;  %9712 = vst [vmem:[#allocation61_spill] sm:$0xff] %v8424_v23 }
 0x63d   :  { %4161 = vmatmul.mubr.f32.gmra.mrb[72].mxu0 %v2142_v32  ;;  %v2366_v32 = vld [vmem:[#allocation6 + $0xcc0] sm:$0xff]  ;;  %v8427_v63 = vpop.f32.mrb[100].mxu1 }
 0x63e   :  { %4166 = vmatprep.mubr.f32.mxu0 %v9657_v5  ;;  %3784 = vmatmul.mubr.f32.gmra.mrb[160].mxu1 %v2360_v12  ;;  %v2167_v12 = vld [vmem:[#allocation6 + $0x688] sm:$0xff]  ;;  %9713 = vst [vmem:[#allocation62_spill] sm:$0xff] %v8427_v63  ;;  %v8429_v29 = vpop.f32.mrb[101].mxu1 }
 0x63f   :  { %3789 = vmatprep.mubr.f32.mxu1 %v2366_v32  ;;  %v2375_v32 = vld [vmem:[#allocation6 + $0xd08] sm:$0xff]  ;;  %9714 = vst [vmem:[#allocation63_spill] sm:$0xff] %v8429_v29 }
 0x641   :  { %4167 = vmatmul.mubr.f32.gmra.mrb[74].mxu0 %v2147_v31  ;;  %v2371_v31 = vld [vmem:[#allocation6 + $0xce8] sm:$0xff]  ;;  %v8432_v23 = vpop.f32.mrb[102].mxu1 }
 0x642   :  { %4172 = vmatprep.mubr.f32.mxu0 %v9657_v5  ;;  %3790 = vmatmul.mubr.f32.gmra.mrb[162].mxu1 %v2365_v27  ;;  %v2172_v27 = vld [vmem:[#allocation6 + $0x6b0] sm:$0xff]  ;;  %9715 = vst [vmem:[#allocation64_spill] sm:$0xff] %v8432_v23  ;;  %v8434_v36 = vpop.f32.mrb[103].mxu1 }
 0x643   :  { %3795 = vmatprep.mubr.f32.mxu1 %v2371_v31  ;;  %v2380_v31 = vld [vmem:[#allocation6 + $0xd30] sm:$0xff]  ;;  %9716 = vst [vmem:[#allocation65_spill] sm:$0xff] %v8434_v36 }
 0x645   :  { %4173 = vmatmul.mubr.f32.gmra.mrb[76].mxu0 %v2152_v59  ;;  %v2376_v59 = vld [vmem:[#allocation6 + $0xd10] sm:$0xff]  ;;  %v8437_v29 = vpop.f32.mrb[104].mxu1 }
 0x646   :  { %4178 = vmatprep.mubr.f32.mxu0 %v9657_v5  ;;  %3796 = vmatmul.mubr.f32.gmra.mrb[164].mxu1 %v2370_v35  ;;  %v2177_v35 = vld [vmem:[#allocation6 + $0x6d8] sm:$0xff]  ;;  %9717 = vst [vmem:[#allocation66_spill] sm:$0xff] %v8437_v29  ;;  %v8439_v63 = vpop.f32.mrb[105].mxu1 }
 0x647   :  { %3801 = vmatprep.mubr.f32.mxu1 %v2376_v59  ;;  %v2385_v59 = vld [vmem:[#allocation6 + $0xd58] sm:$0xff]  ;;  %9718 = vst [vmem:[#allocation67_spill] sm:$0xff] %v8439_v63 }
 0x649   :  { %4179 = vmatmul.mubr.f32.gmra.mrb[78].mxu0 %v2157_v56  ;;  %v2381_v56 = vld [vmem:[#allocation6 + $0xd38] sm:$0xff]  ;;  %v8442_v36 = vpop.f32.mrb[106].mxu1 }
 0x64a   :  { %4184 = vmatprep.mubr.f32.mxu0 %v9657_v5  ;;  %3802 = vmatmul.mubr.f32.gmra.mrb[166].mxu1 %v2375_v32  ;;  %v2182_v32 = vld [vmem:[#allocation6 + $0x700] sm:$0xff]  ;;  %9719 = vst [vmem:[#allocation68_spill] sm:$0xff] %v8442_v36  ;;  %v8444_v23 = vpop.f32.mrb[107].mxu1 }
 0x64b   :  { %3807 = vmatprep.mubr.f32.mxu1 %v2381_v56  ;;  %v2390_v56 = vld [vmem:[#allocation6 + $0xd80] sm:$0xff]  ;;  %9720 = vst [vmem:[#allocation69_spill] sm:$0xff] %v8444_v23 }
 0x64d   :  { %4185 = vmatmul.mubr.f32.gmra.mrb[80].mxu0 %v2162_v4  ;;  %v2386_v4 = vld [vmem:[#allocation6 + $0xd60] sm:$0xff]  ;;  %v8447_v63 = vpop.f32.mrb[108].mxu1 }
 0x64e   :  { %4190 = vmatprep.mubr.f32.mxu0 %v9657_v5  ;;  %3808 = vmatmul.mubr.f32.gmra.mrb[168].mxu1 %v2380_v31  ;;  %v2187_v31 = vld [vmem:[#allocation6 + $0x728] sm:$0xff]  ;;  %9721 = vst [vmem:[#allocation70_spill] sm:$0xff] %v8447_v63  ;;  %v8449_v29 = vpop.f32.mrb[109].mxu1 }
 0x64f   :  { %3813 = vmatprep.mubr.f32.mxu1 %v2386_v4  ;;  %v2395_v4 = vld [vmem:[#allocation6 + $0xda8] sm:$0xff]  ;;  %9722 = vst [vmem:[#allocation71_spill] sm:$0xff] %v8449_v29 }
 0x651   :  { %4191 = vmatmul.mubr.f32.gmra.mrb[82].mxu0 %v2167_v12  ;;  %v2391_v12 = vld [vmem:[#allocation6 + $0xd88] sm:$0xff]  ;;  %v8452_v23 = vpop.f32.mrb[110].mxu1 }
 0x652   :  { %4196 = vmatprep.mubr.f32.mxu0 %v9657_v5  ;;  %3814 = vmatmul.mubr.f32.gmra.mrb[170].mxu1 %v2385_v59  ;;  %v2192_v59 = vld [vmem:[#allocation6 + $0x750] sm:$0xff]  ;;  %9723 = vst [vmem:[#allocation72_spill] sm:$0xff] %v8452_v23  ;;  %v8454_v36 = vpop.f32.mrb[111].mxu1 }
 0x653   :  { %3819 = vmatprep.mubr.f32.mxu1 %v2391_v12  ;;  %v2400_v12 = vld [vmem:[#allocation6 + $0xdd0] sm:$0xff]  ;;  %9724 = vst [vmem:[#allocation73_spill] sm:$0xff] %v8454_v36  ;;  %v4523_v36 = vld [vmem:[%s9611_s6 + $0x10] sm:$0xff] }
 0x655   :  { %4197 = vmatmul.mubr.f32.gmra.mrb[84].mxu0 %v2172_v27  ;;  %v2396_v27 = vld [vmem:[#allocation6 + $0xdb0] sm:$0xff]  ;;  %v8459_v29 = vpop.f32.mrb[112].mxu1 }
 0x656   :  { %4202 = vmatprep.mubr.f32.mxu0 %v9657_v5  ;;  %3820 = vmatmul.mubr.f32.gmra.mrb[172].mxu1 %v2390_v56  ;;  %v2197_v56 = vld [vmem:[#allocation6 + $0x778] sm:$0xff]  ;;  %9725 = vst [vmem:[#allocation74_spill] sm:$0xff] %v8459_v29 }
 0x657   :  { %3825 = vmatprep.mubr.f32.mxu1 %v2396_v27  ;;  %v2405_v27 = vld [vmem:[#allocation6 + $0xdf8] sm:$0xff] }
 0x658   :  { %v2237_v29 = vld [vmem:[#allocation6 + $0x8b8] sm:$0xff] }
 0x659   :  { %4203 = vmatmul.mubr.f32.gmra.mrb[86].mxu0 %v2177_v35  ;;  %v2401_v35 = vld [vmem:[#allocation6 + $0xdd8] sm:$0xff] }
 0x65a   :  { %4208 = vmatprep.mubr.f32.mxu0 %v9657_v5  ;;  %3826 = vmatmul.mubr.f32.gmra.mrb[174].mxu1 %v2395_v4  ;;  %v2202_v4 = vld [vmem:[#allocation6 + $0x7a0] sm:$0xff] }
 0x65b   :  { %3831 = vmatprep.mubr.f32.mxu1 %v2401_v35  ;;  %v2410_v35 = vld [vmem:[#allocation6 + $0xe20] sm:$0xff] }
 0x65d   :  { %4209 = vmatmul.mubr.f32.gmra.mrb[88].mxu0 %v2182_v32  ;;  %v2406_v32 = vld [vmem:[#allocation6 + $0xe00] sm:$0xff] }
 0x65e   :  { %4214 = vmatprep.mubr.f32.mxu0 %v9657_v5  ;;  %3832 = vmatmul.mubr.f32.gmra.mrb[176].mxu1 %v2400_v12  ;;  %v2207_v12 = vld [vmem:[#allocation6 + $0x7c8] sm:$0xff] }
 0x65f   :  { %3837 = vmatprep.mubr.f32.mxu1 %v2406_v32  ;;  %v2415_v32 = vld [vmem:[#allocation6 + $0xe48] sm:$0xff] }
 0x661   :  { %4215 = vmatmul.mubr.f32.gmra.mrb[90].mxu0 %v2187_v31  ;;  %v2411_v31 = vld [vmem:[#allocation6 + $0xe28] sm:$0xff] }
 0x662   :  { %4220 = vmatprep.mubr.f32.mxu0 %v9657_v5  ;;  %3838 = vmatmul.mubr.f32.gmra.mrb[178].mxu1 %v2405_v27  ;;  %v2212_v27 = vld [vmem:[#allocation6 + $0x7f0] sm:$0xff] }
 0x663   :  { %3843 = vmatprep.mubr.f32.mxu1 %v2411_v31  ;;  %v2420_v31 = vld [vmem:[#allocation6 + $0xe70] sm:$0xff] }
 0x665   :  { %4221 = vmatmul.mubr.f32.gmra.mrb[92].mxu0 %v2192_v59  ;;  %v2416_v59 = vld [vmem:[#allocation6 + $0xe50] sm:$0xff] }
 0x666   :  { %4226 = vmatprep.mubr.f32.mxu0 %v9657_v5  ;;  %3844 = vmatmul.mubr.f32.gmra.mrb[180].mxu1 %v2410_v35  ;;  %v2217_v35 = vld [vmem:[#allocation6 + $0x818] sm:$0xff] }
 0x667   :  { %3849 = vmatprep.mubr.f32.mxu1 %v2416_v59  ;;  %v2425_v59 = vld [vmem:[#allocation6 + $0xe98] sm:$0xff] }
 0x669   :  { %4227 = vmatmul.mubr.f32.gmra.mrb[94].mxu0 %v2197_v56  ;;  %v2421_v56 = vld [vmem:[#allocation6 + $0xe78] sm:$0xff] }
 0x66a   :  { %4232 = vmatprep.mubr.f32.mxu0 %v9657_v5  ;;  %3850 = vmatmul.mubr.f32.gmra.mrb[182].mxu1 %v2415_v32  ;;  %v2222_v32 = vld [vmem:[#allocation6 + $0x840] sm:$0xff] }
 0x66b   :  { %3855 = vmatprep.mubr.f32.mxu1 %v2421_v56  ;;  %v2430_v56 = vld [vmem:[#allocation6 + $0xec0] sm:$0xff] }
 0x66d   :  { %4233 = vmatmul.mubr.f32.gmra.mrb[96].mxu0 %v2202_v4  ;;  %v2426_v4 = vld [vmem:[#allocation6 + $0xea0] sm:$0xff] }
 0x66e   :  { %4238 = vmatprep.mubr.f32.mxu0 %v9657_v5  ;;  %3856 = vmatmul.mubr.f32.gmra.mrb[184].mxu1 %v2420_v31  ;;  %v2227_v31 = vld [vmem:[#allocation6 + $0x868] sm:$0xff] }
 0x66f   :  { %3861 = vmatprep.mubr.f32.mxu1 %v2426_v4  ;;  %v2435_v4 = vld [vmem:[#allocation6 + $0xee8] sm:$0xff] }
 0x671   :  { %4239 = vmatmul.mubr.f32.gmra.mrb[98].mxu0 %v2207_v12  ;;  %v2431_v12 = vld [vmem:[#allocation6 + $0xec8] sm:$0xff] }
 0x672   :  { %4244 = vmatprep.mubr.f32.mxu0 %v9657_v5  ;;  %3862 = vmatmul.mubr.f32.gmra.mrb[186].mxu1 %v2425_v59 }
 0x673   :  { %3867 = vmatprep.mubr.f32.mxu1 %v2431_v12 }
 0x675   :  { %4245 = vmatmul.mubr.f32.gmra.mrb[100].mxu0 %v2212_v27  ;;  %v2436_v27 = vld [vmem:[#allocation6 + $0xef0] sm:$0xff] }
 0x676   :  { %4250 = vmatprep.mubr.f32.mxu0 %v9657_v5  ;;  %3868 = vmatmul.mubr.f32.gmra.mrb[188].mxu1 %v2430_v56  ;;  %v4521_v56 = vld [vmem:[%s9611_s6] sm:$0xff] }
 0x677   :  { %3873 = vmatprep.mubr.f32.mxu1 %v2436_v27 }
 0x679   :  { %4251 = vmatmul.mubr.f32.gmra.mrb[102].mxu0 %v2217_v35 }
 0x67a   :  { %4256 = vmatprep.mubr.f32.mxu0 %v9657_v5  ;;  %3874 = vmatmul.mubr.f32.gmra.mrb[190].mxu1 %v2435_v4 }
 0x67d   :  { %4257 = vmatmul.mubr.f32.gmra.mrb[104].mxu0 %v2222_v32  ;;  %v2232_v32 = vld [vmem:[#allocation6 + $0x890] sm:$0xff] }
 0x67e   :  { %4262 = vmatprep.mubr.f32.mxu0 %v9657_v5 }
 0x680   :  { %v3946_v35 = vpop.f32.mrb[0].mxu0 }
 0x681   :  { %v5924_v59 = vadd.f32 %v3946_v35, %v8178_v45  ;;  %v3948_v12 = vpop.f32.mrb[1].mxu0  ;;  %4263 = vmatmul.mubr.f32.gmra.mrb[106].mxu0 %v2227_v31  ;;  %v8467_v45 = vpop.f32.mrb[113].mxu1  ;;  %v4524_v35 = vld [vmem:[%s9611_s6 + $0x18] sm:$0xff] }
 0x682   :  { %v5925_v63 = vadd.f32 %v3948_v12, %v8180_v33  ;;  %4268 = vmatprep.mubr.f32.mxu0 %v9657_v5  ;;  %9726 = vst [vmem:[#allocation75_spill] sm:$0xff] %v8467_v45  ;;  %v4522_v33 = vld [vmem:[%s9611_s6 + $0x8] sm:$0xff]  ;;  %v8478_v45 = vpop.f32.mrb[114].mxu1 }
 0x683   :  { %v4713_v23 = vmul.f32 %v5924_v59, %v4521_v56  ;;  %v8480_v34 = vpop.f32.mrb[115].mxu1 }
 0x684   :  { %v3952_v27 = vpop.f32.mrb[2].mxu0  ;;  %v4714_v41 = vmul.f32 %v5925_v63, %v4522_v33  ;;  %v8485_v59 = vpop.f32.mrb[116].mxu1 }
 0x685   :  { %v5926_v31 = vadd.f32 %v3952_v27, %v8182_v1  ;;  %v3954_v4 = vpop.f32.mrb[3].mxu0  ;;  %4269 = vmatmul.mubr.f32.gmra.mrb[108].mxu0 %v2232_v32 }
 0x686   :  { %v5927_v12 = vadd.f32 %v3954_v4, %v8184_v25  ;;  %4274 = vmatprep.mubr.f32.mxu0 %v9657_v5  ;;  %v2242_v4 = vld [vmem:[#allocation6 + $0x8e0] sm:$0xff] }
 0x687   :  { %v4715_v22 = vmul.f32 %v5926_v31, %v4523_v36  ;;  %v4906_v36 = vld [vmem:[%s9612_s7 + $0x8] sm:$0xff] }
 0x688   :  { %v4716_v54 = vmul.f32 %v5927_v12, %v4524_v35  ;;  %v3958_v44 = vpop.f32.mrb[4].mxu0  ;;  %4993 = vmatprep.mubr.f32.mxu1 %v4906_v36 }
 0x689   :  { %v5666_v1 = vpack.c.bf16 %v4715_v22, %v4713_v23  ;;  %v5928_v27 = vadd.f32 %v3958_v44, %v8186_v20  ;;  %v3960_v49 = vpop.f32.mrb[5].mxu0  ;;  %4275 = vmatmul.mubr.f32.gmra.mrb[110].mxu0 %v2237_v29  ;;  %v4525_v22 = vld [vmem:[%s9611_s6 + $0x20] sm:$0xff]  ;;  %v4527_v20 = vld [vmem:[%s9611_s6 + $0x30] sm:$0xff]  ;;  %v2247_v23 = vld [vmem:[#allocation6 + $0x908] sm:$0xff] }
 0x68a   :  { %v5929_v32 = vadd.f32 %v3960_v49, %v8189_v60  ;;  %4280 = vmatprep.mubr.f32.mxu0 %v9657_v5  ;;  %v5664_v25 = vpack.c.bf16 %v4716_v54, %v4714_v41  ;;  %v8496_v60 = vpop.f32.mrb[117].mxu1  ;;  %v4526_v49 = vld [vmem:[%s9611_s6 + $0x28] sm:$0xff]  ;;  %v4528_v41 = vld [vmem:[%s9611_s6 + $0x38] sm:$0xff] }
 0x68b   :  { %9727 = vst [vmem:[#allocation76_spill] sm:$0xff] %v8496_v60  ;;  %v4717_v56 = vmul.f32 %v5928_v27, %v4525_v22  ;;  %v8507_v31 = vpop.f32.mrb[118].mxu1 }
 0x68c   :  { %v3964_v63 = vpop.f32.mrb[6].mxu0  ;;  %5665 = vmatprep.subr.bf16.mxu1 %v5664_v25  ;;  %v4718_v35 = vmul.f32 %v5929_v32, %v4526_v49  ;;  %v4529_v32 = vld [vmem:[%s9611_s6 + $0x40] sm:$0xff] }
 0x68d   :  { %v5930_v44 = vadd.f32 %v3964_v63, %v8191_v42  ;;  %v3966_v54 = vpop.f32.mrb[7].mxu0  ;;  %4281 = vmatmul.mubr.f32.gmra.mrb[112].mxu0 %v2242_v4  ;;  %5667 = vmatpush1.bf16.msra.mxu1 %v5666_v1  ;;  %v8509_v42 = vpop.f32.mrb[119].mxu1  ;;  %v2252_v4 = vld [vmem:[#allocation6 + $0x930] sm:$0xff] }
 0x68e   :  { %v5931_v29 = vadd.f32 %v3966_v54, %v8194_v7  ;;  %4286 = vmatprep.mubr.f32.mxu0 %v9657_v5  ;;  %v8514_v27 = vpop.f32.mrb[120].mxu1 }
 0x68f   :  { %v4719_v33 = vmul.f32 %v5930_v44, %v4527_v20  ;;  %v4531_v20 = vld [vmem:[%s9611_s6 + $0x50] sm:$0xff]  ;;  %v4532_v44 = vld [vmem:[%s9611_s6 + $0x58] sm:$0xff] }
 0x690   :  { %v4720_v12 = vmul.f32 %v5931_v29, %v4528_v41  ;;  %v3970_v25 = vpop.f32.mrb[8].mxu0  ;;  %v2257_v41 = vld [vmem:[#allocation6 + $0x958] sm:$0xff] }
 0x691   :  { %v5670_v36 = vpack.c.bf16 %v4719_v33, %v4717_v56  ;;  %v5932_v63 = vadd.f32 %v3970_v25, %v8196_v11  ;;  %v3972_v60 = vpop.f32.mrb[9].mxu0  ;;  %4287 = vmatmul.mubr.f32.gmra.mrb[114].mxu0 %v2247_v23  ;;  %v8522_v11 = vpop.f32.mrb[121].mxu1 }
 0x692   :  { %v5933_v1 = vadd.f32 %v3972_v60, %v8199_v0  ;;  %4292 = vmatprep.mubr.f32.mxu0 %v9657_v5  ;;  %v5668_v7 = vpack.c.bf16 %v4720_v12, %v4718_v35  ;;  %v4530_v0 = vld [vmem:[%s9611_s6 + $0x48] sm:$0xff]  ;;  %v8533_v56 = vpop.f32.mrb[122].mxu1 }
 0x693   :  { %v4721_v29 = vmul.f32 %v5932_v63, %v4529_v32 }
 0x694   :  { %v3976_v22 = vpop.f32.mrb[10].mxu0  ;;  %5669 = vmatprep.subr.bf16.mxu1 %v5668_v7  ;;  %v4722_v33 = vmul.f32 %v5933_v1, %v4530_v0  ;;  %v4533_v1 = vld [vmem:[%s9611_s6 + $0x60] sm:$0xff] }
 0x695   :  { %v5934_v60 = vadd.f32 %v3976_v22, %v8201_v57  ;;  %v3978_v49 = vpop.f32.mrb[11].mxu0  ;;  %4293 = vmatmul.mubr.f32.gmra.mrb[116].mxu0 %v2252_v4  ;;  %5671 = vmatpush1.bf16.msra.mxu1 %v5670_v36  ;;  %v8535_v57 = vpop.f32.mrb[123].mxu1  ;;  %v2262_v4 = vld [vmem:[#allocation6 + $0x980] sm:$0xff] }
 0x696   :  { %v5935_v54 = vadd.f32 %v3978_v49, %v8204_v40  ;;  %4298 = vmatprep.mubr.f32.mxu0 %v9657_v5  ;;  %v8540_v63 = vpop.f32.mrb[124].mxu1  ;;  %v4536_v49 = vld [vmem:[%s9611_s6 + $0x78] sm:$0xff] }
 0x697   :  { %v4723_v23 = vmul.f32 %v5934_v60, %v4531_v20  ;;  %v4535_v20 = vld [vmem:[%s9611_s6 + $0x70] sm:$0xff] }
 0x698   :  { %v4724_v35 = vmul.f32 %v5935_v54, %v4532_v44  ;;  %v3982_v12 = vpop.f32.mrb[12].mxu0  ;;  %v2267_v54 = vld [vmem:[#allocation6 + $0x9a8] sm:$0xff] }
 0x699   :  { %v5674_v25 = vpack.c.bf16 %v4723_v23, %v4721_v29  ;;  %v5936_v7 = vadd.f32 %v3982_v12, %v8206_v2  ;;  %v3984_v22 = vpop.f32.mrb[13].mxu0  ;;  %4299 = vmatmul.mubr.f32.gmra.mrb[118].mxu0 %v2257_v41  ;;  %v8548_v2 = vpop.f32.mrb[125].mxu1 }
 0x69a   :  { %v5937_v36 = vadd.f32 %v3984_v22, %v8209_v37  ;;  %4304 = vmatprep.mubr.f32.mxu0 %v9657_v5  ;;  %v5672_v40 = vpack.c.bf16 %v4724_v35, %v4722_v33  ;;  %v4534_v37 = vld [vmem:[%s9611_s6 + $0x68] sm:$0xff]  ;;  %v8559_v23 = vpop.f32.mrb[126].mxu1 }
 0x69b   :  { %v4725_v41 = vmul.f32 %v5936_v7, %v4533_v1 }
 0x69c   :  { %v3988_v32 = vpop.f32.mrb[14].mxu0  ;;  %5673 = vmatprep.subr.bf16.mxu1 %v5672_v40  ;;  %v4726_v33 = vmul.f32 %v5937_v36, %v4534_v37  ;;  %v4537_v36 = vld [vmem:[%s9611_s6 + $0x80] sm:$0xff] }
 0x69d   :  { %v5938_v0 = vadd.f32 %v3988_v32, %v8211_v15  ;;  %v3990_v60 = vpop.f32.mrb[15].mxu0  ;;  %4305 = vmatmul.mubr.f32.gmra.mrb[120].mxu0 %v2262_v4  ;;  %5675 = vmatpush1.bf16.msra.mxu1 %v5674_v25  ;;  %v8561_v15 = vpop.f32.mrb[127].mxu1  ;;  %v2272_v4 = vld [vmem:[#allocation6 + $0x9d0] sm:$0xff] }
 0x69e   :  { %v5939_v44 = vadd.f32 %v3990_v60, %v8214_v52  ;;  %4310 = vmatprep.mubr.f32.mxu0 %v9657_v5  ;;  %v8566_v7 = vpop.f32.mrb[128].mxu1  ;;  %v4540_v60 = vld [vmem:[%s9611_s6 + $0x98] sm:$0xff] }
 0x69f   :  { %v4727_v29 = vmul.f32 %v5938_v0, %v4535_v20  ;;  %v4539_v20 = vld [vmem:[%s9611_s6 + $0x90] sm:$0xff] }
 0x6a0   :  { %v4728_v35 = vmul.f32 %v5939_v44, %v4536_v49  ;;  %v3994_v12 = vpop.f32.mrb[16].mxu0  ;;  %v2277_v44 = vld [vmem:[#allocation6 + $0x9f8] sm:$0xff] }
 0x6a1   :  { %v5678_v22 = vpack.c.bf16 %v4727_v29, %v4725_v41  ;;  %v5940_v40 = vadd.f32 %v3994_v12, %v8216_v16  ;;  %v3996_v32 = vpop.f32.mrb[17].mxu0  ;;  %4311 = vmatmul.mubr.f32.gmra.mrb[122].mxu0 %v2267_v54  ;;  %v8574_v16 = vpop.f32.mrb[129].mxu1 }
 0x6a2   :  { %v5941_v25 = vadd.f32 %v3996_v32, %v8219_v13  ;;  %4316 = vmatprep.mubr.f32.mxu0 %v9657_v5  ;;  %v5676_v52 = vpack.c.bf16 %v4728_v35, %v4726_v33  ;;  %v4538_v13 = vld [vmem:[%s9611_s6 + $0x88] sm:$0xff]  ;;  %v8585_v29 = vpop.f32.mrb[130].mxu1 }
 0x6a3   :  { %v4729_v54 = vmul.f32 %v5940_v40, %v4537_v36 }
 0x6a4   :  { %v4000_v1 = vpop.f32.mrb[18].mxu0  ;;  %5677 = vmatprep.subr.bf16.mxu1 %v5676_v52  ;;  %v4730_v33 = vmul.f32 %v5941_v25, %v4538_v13  ;;  %v4541_v25 = vld [vmem:[%s9611_s6 + $0xa0] sm:$0xff] }
 0x6a5   :  { %v5942_v37 = vadd.f32 %v4000_v1, %v8221_v17  ;;  %v4002_v0 = vpop.f32.mrb[19].mxu0  ;;  %4317 = vmatmul.mubr.f32.gmra.mrb[124].mxu0 %v2272_v4  ;;  %5679 = vmatpush1.bf16.msra.mxu1 %v5678_v22  ;;  %v8587_v17 = vpop.f32.mrb[131].mxu1  ;;  %v2282_v4 = vld [vmem:[#allocation6 + $0xa20] sm:$0xff] }
 0x6a6   :  { %v5943_v49 = vadd.f32 %v4002_v0, %v8224_v61  ;;  %4322 = vmatprep.mubr.f32.mxu0 %v9657_v5  ;;  %v8592_v40 = vpop.f32.mrb[132].mxu1  ;;  %v4544_v0 = vld [vmem:[%s9611_s6 + $0xb8] sm:$0xff] }
 0x6a7   :  { %v4731_v41 = vmul.f32 %v5942_v37, %v4539_v20  ;;  %v4543_v20 = vld [vmem:[%s9611_s6 + $0xb0] sm:$0xff] }
 0x6a8   :  { %v4732_v35 = vmul.f32 %v5943_v49, %v4540_v60  ;;  %v4006_v12 = vpop.f32.mrb[20].mxu0  ;;  %v2287_v49 = vld [vmem:[#allocation6 + $0xa48] sm:$0xff] }
 0x6a9   :  { %v5682_v32 = vpack.c.bf16 %v4731_v41, %v4729_v54  ;;  %v5944_v52 = vadd.f32 %v4006_v12, %v8226_v51  ;;  %v4008_v1 = vpop.f32.mrb[21].mxu0  ;;  %4323 = vmatmul.mubr.f32.gmra.mrb[126].mxu0 %v2277_v44  ;;  %v8600_v51 = vpop.f32.mrb[133].mxu1 }
 0x6aa   :  { %v5945_v22 = vadd.f32 %v4008_v1, %v8229_v8  ;;  %4328 = vmatprep.mubr.f32.mxu0 %v9657_v5  ;;  %v5680_v61 = vpack.c.bf16 %v4732_v35, %v4730_v33  ;;  %v4542_v8 = vld [vmem:[%s9611_s6 + $0xa8] sm:$0xff]  ;;  %v8611_v41 = vpop.f32.mrb[134].mxu1 }
 0x6ab   :  { %v4733_v44 = vmul.f32 %v5944_v52, %v4541_v25 }
 0x6ac   :  { %v4012_v36 = vpop.f32.mrb[22].mxu0  ;;  %5681 = vmatprep.subr.bf16.mxu1 %v5680_v61  ;;  %v4734_v33 = vmul.f32 %v5945_v22, %v4542_v8  ;;  %v4545_v22 = vld [vmem:[%s9611_s6 + $0xc0] sm:$0xff] }
 0x6ad   :  { %v5946_v13 = vadd.f32 %v4012_v36, %v8231_v58  ;;  %v4014_v37 = vpop.f32.mrb[23].mxu0  ;;  %4329 = vmatmul.mubr.f32.gmra.mrb[128].mxu0 %v2282_v4  ;;  %5683 = vmatpush1.bf16.msra.mxu1 %v5682_v32  ;;  %v8613_v58 = vpop.f32.mrb[135].mxu1  ;;  %v2292_v4 = vld [vmem:[#allocation6 + $0xa70] sm:$0xff] }
 0x6ae   :  { %v5947_v60 = vadd.f32 %v4014_v37, %v8234_v30  ;;  %4334 = vmatprep.mubr.f32.mxu0 %v9657_v5  ;;  %v8618_v52 = vpop.f32.mrb[136].mxu1  ;;  %v4548_v37 = vld [vmem:[%s9611_s6 + $0xd8] sm:$0xff] }
 0x6af   :  { %v4735_v54 = vmul.f32 %v5946_v13, %v4543_v20  ;;  %v4547_v20 = vld [vmem:[%s9611_s6 + $0xd0] sm:$0xff] }
 0x6b0   :  { %v4736_v35 = vmul.f32 %v5947_v60, %v4544_v0  ;;  %v4018_v12 = vpop.f32.mrb[24].mxu0  ;;  %v2297_v60 = vld [vmem:[#allocation6 + $0xa98] sm:$0xff] }
 0x6b1   :  { %v5686_v1 = vpack.c.bf16 %v4735_v54, %v4733_v44  ;;  %v5948_v61 = vadd.f32 %v4018_v12, %v8236_v3  ;;  %v4020_v36 = vpop.f32.mrb[25].mxu0  ;;  %4335 = vmatmul.mubr.f32.gmra.mrb[130].mxu0 %v2287_v49  ;;  %v8626_v3 = vpop.f32.mrb[137].mxu1 }
 0x6b2   :  { %v5949_v32 = vadd.f32 %v4020_v36, %v8239_v62  ;;  %4340 = vmatprep.mubr.f32.mxu0 %v9657_v5  ;;  %v5684_v30 = vpack.c.bf16 %v4736_v35, %v4734_v33  ;;  %v4546_v62 = vld [vmem:[%s9611_s6 + $0xc8] sm:$0xff]  ;;  %v8637_v54 = vpop.f32.mrb[138].mxu1 }
 0x6b3   :  { %v4737_v49 = vmul.f32 %v5948_v61, %v4545_v22 }
 0x6b4   :  { %v4024_v25 = vpop.f32.mrb[26].mxu0  ;;  %5685 = vmatprep.subr.bf16.mxu1 %v5684_v30  ;;  %v4738_v33 = vmul.f32 %v5949_v32, %v4546_v62  ;;  %v4549_v32 = vld [vmem:[%s9611_s6 + $0xe0] sm:$0xff] }
 0x6b5   :  { %v5950_v8 = vadd.f32 %v4024_v25, %v8241_v47  ;;  %v4026_v13 = vpop.f32.mrb[27].mxu0  ;;  %4341 = vmatmul.mubr.f32.gmra.mrb[132].mxu0 %v2292_v4  ;;  %5687 = vmatpush1.bf16.msra.mxu1 %v5686_v1  ;;  %v8639_v47 = vpop.f32.mrb[139].mxu1  ;;  %v2302_v4 = vld [vmem:[#allocation6 + $0xac0] sm:$0xff] }
 0x6b6   :  { %v5951_v0 = vadd.f32 %v4026_v13, %v8244_v14  ;;  %4346 = vmatprep.mubr.f32.mxu0 %v9657_v5  ;;  %v8644_v61 = vpop.f32.mrb[140].mxu1  ;;  %v4552_v13 = vld [vmem:[%s9611_s6 + $0xf8] sm:$0xff] }
 0x6b7   :  { %v4739_v44 = vmul.f32 %v5950_v8, %v4547_v20  ;;  %v4551_v20 = vld [vmem:[%s9611_s6 + $0xf0] sm:$0xff] }
 0x6b8   :  { %v4740_v35 = vmul.f32 %v5951_v0, %v4548_v37  ;;  %v4030_v12 = vpop.f32.mrb[28].mxu0  ;;  %v2307_v0 = vld [vmem:[#allocation6 + $0xae8] sm:$0xff] }
 0x6b9   :  { %v5690_v36 = vpack.c.bf16 %v4739_v44, %v4737_v49  ;;  %v5952_v30 = vadd.f32 %v4030_v12, %v8246_v48  ;;  %v4032_v25 = vpop.f32.mrb[29].mxu0  ;;  %4347 = vmatmul.mubr.f32.gmra.mrb[134].mxu0 %v2297_v60  ;;  %v8652_v48 = vpop.f32.mrb[141].mxu1 }
 0x6ba   :  { %v5953_v1 = vadd.f32 %v4032_v25, %v8249_v55  ;;  %4352 = vmatprep.mubr.f32.mxu0 %v9657_v5  ;;  %v5688_v14 = vpack.c.bf16 %v4740_v35, %v4738_v33  ;;  %v4550_v55 = vld [vmem:[%s9611_s6 + $0xe8] sm:$0xff]  ;;  %v8663_v44 = vpop.f32.mrb[142].mxu1 }
 0x6bb   :  { %v4741_v60 = vmul.f32 %v5952_v30, %v4549_v32 }
 0x6bc   :  { %v4036_v22 = vpop.f32.mrb[30].mxu0  ;;  %5689 = vmatprep.subr.bf16.mxu1 %v5688_v14  ;;  %v4742_v33 = vmul.f32 %v5953_v1, %v4550_v55  ;;  %v4553_v1 = vld [vmem:[%s9611_s6 + $0x100] sm:$0xff] }
 0x6bd   :  { %v5954_v62 = vadd.f32 %v4036_v22, %v8251_v18  ;;  %v4038_v8 = vpop.f32.mrb[31].mxu0  ;;  %4353 = vmatmul.mubr.f32.gmra.mrb[136].mxu0 %v2302_v4  ;;  %5691 = vmatpush1.bf16.msra.mxu1 %v5690_v36  ;;  %v8665_v18 = vpop.f32.mrb[143].mxu1  ;;  %v2312_v4 = vld [vmem:[#allocation6 + $0xb10] sm:$0xff] }
 0x6be   :  { %v5955_v37 = vadd.f32 %v4038_v8, %v8254_v28  ;;  %4358 = vmatprep.mubr.f32.mxu0 %v9657_v5  ;;  %v8670_v30 = vpop.f32.mrb[144].mxu1  ;;  %v4556_v8 = vld [vmem:[%s9611_s6 + $0x118] sm:$0xff] }
 0x6bf   :  { %v4743_v49 = vmul.f32 %v5954_v62, %v4551_v20  ;;  %v4555_v20 = vld [vmem:[%s9611_s6 + $0x110] sm:$0xff] }
 0x6c0   :  { %v4744_v35 = vmul.f32 %v5955_v37, %v4552_v13  ;;  %v4042_v12 = vpop.f32.mrb[32].mxu0  ;;  %v2317_v37 = vld [vmem:[#allocation6 + $0xb38] sm:$0xff] }
 0x6c1   :  { %v5694_v25 = vpack.c.bf16 %v4743_v49, %v4741_v60  ;;  %v5956_v14 = vadd.f32 %v4042_v12, %v8256_v24  ;;  %v4044_v22 = vpop.f32.mrb[33].mxu0  ;;  %4359 = vmatmul.mubr.f32.gmra.mrb[138].mxu0 %v2307_v0  ;;  %v8678_v24 = vpop.f32.mrb[145].mxu1 }
 0x6c2   :  { %v5957_v36 = vadd.f32 %v4044_v22, %v8259_v43  ;;  %4364 = vmatprep.mubr.f32.mxu0 %v9657_v5  ;;  %v5692_v28 = vpack.c.bf16 %v4744_v35, %v4742_v33  ;;  %v4554_v43 = vld [vmem:[%s9611_s6 + $0x108] sm:$0xff] }
 0x6c3   :  { %v4745_v0 = vmul.f32 %v5956_v14, %v4553_v1 }
 0x6c4   :  { %v4048_v32 = vpop.f32.mrb[34].mxu0  ;;  %5693 = vmatprep.subr.bf16.mxu1 %v5692_v28  ;;  %v4746_v49 = vmul.f32 %v5957_v36, %v4554_v43  ;;  %v4559_v36 = vld [vmem:[%s9611_s6 + $0x130] sm:$0xff]  ;;  %v2327_v43 = vld [vmem:[#allocation6 + $0xb88] sm:$0xff] }
 0x6c5   :  { %v5958_v55 = vadd.f32 %v4048_v32, %v8261_v38  ;;  %v4050_v62 = vpop.f32.mrb[35].mxu0  ;;  %4365 = vmatmul.mubr.f32.gmra.mrb[140].mxu0 %v2312_v4  ;;  %5695 = vmatpush1.bf16.msra.mxu1 %v5694_v25  ;;  %v2322_v4 = vld [vmem:[#allocation6 + $0xb60] sm:$0xff]  ;;  %v4560_v32 = vld [vmem:[%s9611_s6 + $0x138] sm:$0xff] }
 0x6c6   :  { %v5959_v13 = vadd.f32 %v4050_v62, %v8264_v26  ;;  %4370 = vmatprep.mubr.f32.mxu0 %v9657_v5  ;;  %v4557_v26 = vld [vmem:[%s9611_s6 + $0x120] sm:$0xff] }
 0x6c7   :  { %v4747_v60 = vmul.f32 %v5958_v55, %v4555_v20 }
 0x6c8   :  { %v4748_v33 = vmul.f32 %v5959_v13, %v4556_v8  ;;  %v4054_v35 = vpop.f32.mrb[36].mxu0 }
 0x6c9   :  { %v5698_v12 = vpack.c.bf16 %v4747_v60, %v4745_v0  ;;  %v5960_v38 = vadd.f32 %v4054_v35, %v8266_v21  ;;  %v4056_v22 = vpop.f32.mrb[37].mxu0  ;;  %4371 = vmatmul.mubr.f32.gmra.mrb[142].mxu0 %v2317_v37  ;;  %v4558_v21 = vld [vmem:[%s9611_s6 + $0x128] sm:$0xff]  ;;  %v2332_v35 = vld [vmem:[#allocation6 + $0xbb0] sm:$0xff] }
 0x6ca   :  { %v5961_v28 = vadd.f32 %v4056_v22, %v8269_v6  ;;  %4376 = vmatprep.mubr.f32.mxu0 %v9657_v5  ;;  %v5696_v25 = vpack.c.bf16 %v4748_v33, %v4746_v49 }
 0x6cb   :  { %v4749_v55 = vmul.f32 %v5960_v38, %v4557_v26  ;;  %v4563_v38 = vld [vmem:[%s9611_s6 + $0x150] sm:$0xff] }
 0x6cc   :  { %v4060_v14 = vpop.f32.mrb[38].mxu0  ;;  %5697 = vmatprep.subr.bf16.mxu1 %v5696_v25  ;;  %v4750_v8 = vmul.f32 %v5961_v28, %v4558_v21  ;;  %v4564_v28 = vld [vmem:[%s9611_s6 + $0x158] sm:$0xff] }
 0x6cd   :  { %v5962_v6 = vadd.f32 %v4060_v14, %v8271_v19  ;;  %v4062_v1 = vpop.f32.mrb[39].mxu0  ;;  %4377 = vmatmul.mubr.f32.gmra.mrb[144].mxu0 %v2322_v4  ;;  %5699 = vmatpush1.bf16.msra.mxu1 %v5698_v12  ;;  %v2337_v4 = vld [vmem:[#allocation6 + $0xbd8] sm:$0xff] }
 0x6ce   :  { %v5963_v20 = vadd.f32 %v4062_v1, %v8274_v46  ;;  %4382 = vmatprep.mubr.f32.mxu0 %v9657_v5  ;;  %v4561_v46 = vld [vmem:[%s9611_s6 + $0x140] sm:$0xff] }
 0x6cf   :  { %v4751_v62 = vmul.f32 %v5962_v6, %v4559_v36 }
 0x6d0   :  { %v4752_v13 = vmul.f32 %v5963_v20, %v4560_v32  ;;  %v4066_v37 = vpop.f32.mrb[40].mxu0  ;;  %v9728_v20 = vld [vmem:[#allocation7_spill] sm:$0xff] }
 0x6d1   :  { %v5702_v0 = vpack.c.bf16 %v4751_v62, %v4749_v55  ;;  %v5964_v19 = vadd.f32 %v4066_v37, %v8276_v53  ;;  %v4068_v60 = vpop.f32.mrb[41].mxu0  ;;  %4383 = vmatmul.mubr.f32.gmra.mrb[146].mxu0 %v2327_v43  ;;  %v4562_v53 = vld [vmem:[%s9611_s6 + $0x148] sm:$0xff]  ;;  %v2342_v62 = vld [vmem:[#allocation6 + $0xc00] sm:$0xff]  ;;  %v9729_v37 = vld [vmem:[#allocation8_spill] sm:$0xff] }
 0x6d2   :  { %v5965_v49 = vadd.f32 %v4068_v60, %v8279_v9  ;;  %4388 = vmatprep.mubr.f32.mxu0 %v9657_v5  ;;  %v5700_v33 = vpack.c.bf16 %v4752_v13, %v4750_v8  ;;  %v4567_v13 = vld [vmem:[%s9611_s6 + $0x170] sm:$0xff]  ;;  %v4568_v60 = vld [vmem:[%s9611_s6 + $0x178] sm:$0xff] }
 0x6d3   :  { %v4753_v26 = vmul.f32 %v5964_v19, %v4561_v46 }
 0x6d4   :  { %v4072_v12 = vpop.f32.mrb[42].mxu0  ;;  %5701 = vmatprep.subr.bf16.mxu1 %v5700_v33  ;;  %v4754_v36 = vmul.f32 %v5965_v49, %v4562_v53  ;;  %v9730_v49 = vld [vmem:[#allocation9_spill] sm:$0xff] }
 0x6d5   :  { %v5966_v9 = vadd.f32 %v4072_v12, %v8281_v10  ;;  %v4074_v22 = vpop.f32.mrb[43].mxu0  ;;  %4389 = vmatmul.mubr.f32.gmra.mrb[148].mxu0 %v2332_v35  ;;  %5703 = vmatpush1.bf16.msra.mxu1 %v5702_v0  ;;  %v2347_v35 = vld [vmem:[#allocation6 + $0xc28] sm:$0xff] }
 0x6d6   :  { %v5967_v25 = vadd.f32 %v4074_v22, %v8284_v39  ;;  %4394 = vmatprep.mubr.f32.mxu0 %v9657_v5  ;;  %v4565_v39 = vld [vmem:[%s9611_s6 + $0x160] sm:$0xff] }
 0x6d7   :  { %v4755_v14 = vmul.f32 %v5966_v9, %v4563_v38 }
 0x6d8   :  { %v4756_v21 = vmul.f32 %v5967_v25, %v4564_v28  ;;  %v4078_v6 = vpop.f32.mrb[44].mxu0  ;;  %v9731_v28 = vld [vmem:[#allocation10_spill] sm:$0xff] }
 0x6d9   :  { %v5706_v1 = vpack.c.bf16 %v4755_v14, %v4753_v26  ;;  %v5968_v10 = vadd.f32 %v4078_v6, %v8286_v50  ;;  %v4080_v32 = vpop.f32.mrb[45].mxu0  ;;  %4395 = vmatmul.mubr.f32.gmra.mrb[150].mxu0 %v2337_v4  ;;  %v4566_v50 = vld [vmem:[%s9611_s6 + $0x168] sm:$0xff]  ;;  %v9732_v26 = vld [vmem:[#allocation11_spill] sm:$0xff]  ;;  %v4569_v6 = vld [vmem:[%s9611_s6 + $0x180] sm:$0xff] }
 0x6da   :  { %v5969_v43 = vadd.f32 %v4080_v32, %v9728_v20  ;;  %4400 = vmatprep.mubr.f32.mxu0 %v9657_v5  ;;  %v5704_v55 = vpack.c.bf16 %v4756_v21, %v4754_v36  ;;  %v2352_v21 = vld [vmem:[#allocation6 + $0xc50] sm:$0xff]  ;;  %v4570_v32 = vld [vmem:[%s9611_s6 + $0x188] sm:$0xff]  ;;  %v9733_v20 = vld [vmem:[#allocation12_spill] sm:$0xff] }
 0x6db   :  { %v4757_v46 = vmul.f32 %v5968_v10, %v4565_v39  ;;  %v4571_v10 = vld [vmem:[%s9611_s6 + $0x190] sm:$0xff]  ;;  %v9734_v39 = vld [vmem:[#allocation13_spill] sm:$0xff] }
 0x6dc   :  { %v4084_v8 = vpop.f32.mrb[46].mxu0  ;;  %5705 = vmatprep.subr.bf16.mxu1 %v5704_v55  ;;  %v4758_v38 = vmul.f32 %v5969_v43, %v4566_v50 }
 0x6dd   :  { %v5970_v0 = vadd.f32 %v4084_v8, %v9729_v37  ;;  %v4086_v19 = vpop.f32.mrb[47].mxu0  ;;  %4401 = vmatmul.mubr.f32.gmra.mrb[152].mxu0 %v2342_v62  ;;  %5707 = vmatpush1.bf16.msra.mxu1 %v5706_v1  ;;  %v4572_v62 = vld [vmem:[%s9611_s6 + $0x198] sm:$0xff] }
 0x6de   :  { %v5971_v33 = vadd.f32 %v4086_v19, %v9730_v49  ;;  %4406 = vmatprep.mubr.f32.mxu0 %v9657_v5 }
 0x6df   :  { %v4759_v12 = vmul.f32 %v5970_v0, %v4567_v13  ;;  %v2357_v13 = vld [vmem:[#allocation6 + $0xc78] sm:$0xff] }
 0x6e0   :  { %v4760_v53 = vmul.f32 %v5971_v33, %v4568_v60  ;;  %v4090_v9 = vpop.f32.mrb[48].mxu0  ;;  %v9735_v33 = vld [vmem:[#allocation14_spill] sm:$0xff] }
 0x6e1   :  { %v5710_v22 = vpack.c.bf16 %v4759_v12, %v4757_v46  ;;  %v5972_v25 = vadd.f32 %v4090_v9, %v9731_v28  ;;  %v4092_v4 = vpop.f32.mrb[49].mxu0  ;;  %4407 = vmatmul.mubr.f32.gmra.mrb[154].mxu0 %v2347_v35  ;;  %v9736_v12 = vld [vmem:[#allocation15_spill] sm:$0xff] }
 0x6e2   :  { %v5973_v14 = vadd.f32 %v4092_v4, %v9732_v26  ;;  %4412 = vmatprep.mubr.f32.mxu0 %v9657_v5  ;;  %v5708_v36 = vpack.c.bf16 %v4760_v53, %v4758_v38  ;;  %v2362_v9 = vld [vmem:[#allocation6 + $0xca0] sm:$0xff]  ;;  %v4574_v4 = vld [vmem:[%s9611_s6 + $0x1a8] sm:$0xff]  ;;  %v9737_v26 = vld [vmem:[#allocation16_spill] sm:$0xff] }
 0x6e3   :  { %v4761_v50 = vmul.f32 %v5972_v25, %v4569_v6  ;;  %v4575_v25 = vld [vmem:[%s9611_s6 + $0x1b0] sm:$0xff]  ;;  %v9738_v6 = vld [vmem:[#allocation17_spill] sm:$0xff] }
 0x6e4   :  { %v4096_v1 = vpop.f32.mrb[50].mxu0  ;;  %5709 = vmatprep.subr.bf16.mxu1 %v5708_v36  ;;  %v4762_v0 = vmul.f32 %v5973_v14, %v4570_v32 }
 0x6e5   :  { %v5974_v43 = vadd.f32 %v4096_v1, %v9733_v20  ;;  %v4098_v55 = vpop.f32.mrb[51].mxu0  ;;  %4413 = vmatmul.mubr.f32.gmra.mrb[156].mxu0 %v2352_v21  ;;  %5711 = vmatpush1.bf16.msra.mxu1 %v5710_v22  ;;  %v4573_v22 = vld [vmem:[%s9611_s6 + $0x1a0] sm:$0xff]  ;;  %v4576_v21 = vld [vmem:[%s9611_s6 + $0x1b8] sm:$0xff] }
 0x6e6   :  { %v5975_v8 = vadd.f32 %v4098_v55, %v9734_v39  ;;  %4418 = vmatprep.mubr.f32.mxu0 %v9657_v5 }
 0x6e7   :  { %v4763_v37 = vmul.f32 %v5974_v43, %v4571_v10  ;;  %v2367_v10 = vld [vmem:[#allocation6 + $0xcc8] sm:$0xff] }
 0x6e8   :  { %v4764_v19 = vmul.f32 %v5975_v8, %v4572_v62  ;;  %v4102_v60 = vpop.f32.mrb[52].mxu0  ;;  %v9739_v8 = vld [vmem:[#allocation18_spill] sm:$0xff] }
 0x6e9   :  { %v5714_v49 = vpack.c.bf16 %v4763_v37, %v4761_v50  ;;  %v5976_v35 = vadd.f32 %v4102_v60, %v9735_v33  ;;  %v4104_v46 = vpop.f32.mrb[53].mxu0  ;;  %4419 = vmatmul.mubr.f32.gmra.mrb[158].mxu0 %v2357_v13  ;;  %v9740_v37 = vld [vmem:[#allocation19_spill] sm:$0xff]  ;;  %v2372_v60 = vld [vmem:[#allocation6 + $0xcf0] sm:$0xff] }
 0x6ea   :  { %v5977_v38 = vadd.f32 %v4104_v46, %v9736_v12  ;;  %4424 = vmatprep.mubr.f32.mxu0 %v9657_v5  ;;  %v5712_v53 = vpack.c.bf16 %v4764_v19, %v4762_v0  ;;  %v4578_v46 = vld [vmem:[%s9611_s6 + $0x1c8] sm:$0xff]  ;;  %v9741_v12 = vld [vmem:[#allocation20_spill] sm:$0xff] }
 0x6eb   :  { %v4765_v32 = vmul.f32 %v5976_v35, %v4573_v22  ;;  %v4579_v35 = vld [vmem:[%s9611_s6 + $0x1d0] sm:$0xff]  ;;  %v9742_v22 = vld [vmem:[#allocation21_spill] sm:$0xff] }
 0x6ec   :  { %v4108_v28 = vpop.f32.mrb[54].mxu0  ;;  %5713 = vmatprep.subr.bf16.mxu1 %v5712_v53  ;;  %v4766_v43 = vmul.f32 %v5977_v38, %v4574_v4 }
 0x6ed   :  { %v5978_v14 = vadd.f32 %v4108_v28, %v9737_v26  ;;  %v4110_v36 = vpop.f32.mrb[55].mxu0  ;;  %4425 = vmatmul.mubr.f32.gmra.mrb[160].mxu0 %v2362_v9  ;;  %5715 = vmatpush1.bf16.msra.mxu1 %v5714_v49  ;;  %v4577_v49 = vld [vmem:[%s9611_s6 + $0x1c0] sm:$0xff]  ;;  %v4580_v9 = vld [vmem:[%s9611_s6 + $0x1d8] sm:$0xff] }
 0x6ee   :  { %v5979_v1 = vadd.f32 %v4110_v36, %v9738_v6  ;;  %4430 = vmatprep.mubr.f32.mxu0 %v9657_v5 }
 0x6ef   :  { %v4767_v20 = vmul.f32 %v5978_v14, %v4575_v25  ;;  %v2377_v25 = vld [vmem:[#allocation6 + $0xd18] sm:$0xff] }
 0x6f0   :  { %v4768_v55 = vmul.f32 %v5979_v1, %v4576_v21  ;;  %v4114_v62 = vpop.f32.mrb[56].mxu0  ;;  %v9743_v1 = vld [vmem:[#allocation22_spill] sm:$0xff] }
 0x6f1   :  { %v5718_v39 = vpack.c.bf16 %v4767_v20, %v4765_v32  ;;  %v5980_v13 = vadd.f32 %v4114_v62, %v9739_v8  ;;  %v4116_v50 = vpop.f32.mrb[57].mxu0  ;;  %4431 = vmatmul.mubr.f32.gmra.mrb[162].mxu0 %v2367_v10  ;;  %v9744_v20 = vld [vmem:[#allocation23_spill] sm:$0xff] }
 0x6f2   :  { %v5981_v0 = vadd.f32 %v4116_v50, %v9740_v37  ;;  %4436 = vmatprep.mubr.f32.mxu0 %v9657_v5  ;;  %v5716_v19 = vpack.c.bf16 %v4768_v55, %v4766_v43  ;;  %v2382_v62 = vld [vmem:[#allocation6 + $0xd40] sm:$0xff]  ;;  %v4582_v50 = vld [vmem:[%s9611_s6 + $0x1e8] sm:$0xff]  ;;  %v9745_v37 = vld [vmem:[#allocation24_spill] sm:$0xff] }
 0x6f3   :  { %v4769_v4 = vmul.f32 %v5980_v13, %v4577_v49  ;;  %v4583_v13 = vld [vmem:[%s9611_s6 + $0x1f0] sm:$0xff] }
 0x6f4   :  { %v4120_v33 = vpop.f32.mrb[58].mxu0  ;;  %5717 = vmatprep.subr.bf16.mxu1 %v5716_v19  ;;  %v4770_v14 = vmul.f32 %v5981_v0, %v4578_v46  ;;  %v2387_v46 = vld [vmem:[#allocation6 + $0xd68] sm:$0xff] }
 0x6f5   :  { %v5982_v38 = vadd.f32 %v4120_v33, %v9741_v12  ;;  %v4122_v53 = vpop.f32.mrb[59].mxu0  ;;  %4437 = vmatmul.mubr.f32.gmra.mrb[164].mxu0 %v2372_v60  ;;  %5719 = vmatpush1.bf16.msra.mxu1 %v5718_v39  ;;  %v4581_v39 = vld [vmem:[%s9611_s6 + $0x1e0] sm:$0xff]  ;;  %v4584_v60 = vld [vmem:[%s9611_s6 + $0x1f8] sm:$0xff]  ;;  %v8813_v49 = vpop.f32.mrb[146].mxu1 }
 0x6f6   :  { %v5983_v28 = vadd.f32 %v4122_v53, %v9742_v22  ;;  %4442 = vmatprep.mubr.f32.mxu0 %v9657_v5  ;;  %v9746_v33 = vld [vmem:[#allocation25_spill] sm:$0xff]  ;;  %v8817_v12 = vpop.f32.mrb[147].mxu1 }
 0x6f7   :  { %v4771_v26 = vmul.f32 %v5982_v38, %v4579_v35 }
 0x6f8   :  { %v4772_v36 = vmul.f32 %v5983_v28, %v4580_v9  ;;  %v4126_v21 = vpop.f32.mrb[60].mxu0 }
 0x6f9   :  { %v5722_v6 = vpack.c.bf16 %v4771_v26, %v4769_v4  ;;  %v5984_v10 = vadd.f32 %v4126_v21, %v9743_v1  ;;  %v4128_v32 = vpop.f32.mrb[61].mxu0  ;;  %4443 = vmatmul.mubr.f32.gmra.mrb[166].mxu0 %v2377_v25  ;;  %v9747_v4 = vld [vmem:[#allocation26_spill] sm:$0xff]  ;;  %v9748_v21 = vld [vmem:[#allocation27_spill] sm:$0xff] }
 0x6fa   :  { %v5985_v43 = vadd.f32 %v4128_v32, %v9744_v20  ;;  %4448 = vmatprep.mubr.f32.mxu0 %v9657_v5  ;;  %v5720_v55 = vpack.c.bf16 %v4772_v36, %v4770_v14  ;;  %v8820_v36 = vpop.f32.mrb[148].mxu1  ;;  %v2392_v32 = vld [vmem:[#allocation6 + $0xd90] sm:$0xff] }
 0x6fb   :  { %v4773_v38 = vmul.f32 %v5984_v10, %v4581_v39  ;;  %v8824_v20 = vpop.f32.mrb[149].mxu1  ;;  %v4585_v10 = vld [vmem:[%s9611_s6 + $0x200] sm:$0xff]  ;;  %v9749_v39 = vld [vmem:[#allocation28_spill] sm:$0xff] }
 0x6fc   :  { %v4132_v8 = vpop.f32.mrb[62].mxu0  ;;  %5721 = vmatprep.subr.bf16.mxu1 %v5720_v55  ;;  %v4774_v9 = vmul.f32 %v5985_v43, %v4582_v50  ;;  %v4587_v55 = vld [vmem:[%s9611_s6 + $0x210] sm:$0xff]  ;;  %v4588_v50 = vld [vmem:[%s9611_s6 + $0x218] sm:$0xff] }
 0x6fd   :  { %v5986_v0 = vadd.f32 %v4132_v8, %v9745_v37  ;;  %v4134_v19 = vpop.f32.mrb[63].mxu0  ;;  %4449 = vmatmul.mubr.f32.gmra.mrb[168].mxu0 %v2382_v62  ;;  %5723 = vmatpush1.bf16.msra.mxu1 %v5722_v6  ;;  %v4586_v62 = vld [vmem:[%s9611_s6 + $0x208] sm:$0xff]  ;;  %v4905_v37 = vld [vmem:[%s9612_s7] sm:$0xff] }
 0x6fe   :  { %v5987_v35 = vadd.f32 %v4134_v19, %v9746_v33  ;;  %4454 = vmatprep.mubr.f32.mxu0 %v9657_v5  ;;  %v9750_v19 = vld [vmem:[#allocation29_spill] sm:$0xff]  ;;  %v2397_v33 = vld [vmem:[#allocation6 + $0xdb8] sm:$0xff] }
 0x6ff   :  { %v4775_v53 = vmul.f32 %v5986_v0, %v4583_v13  ;;  %v8842_v0 = vpop.f32.mrb[150].mxu1 }
 0x700   :  { %v4776_v22 = vmul.f32 %v5987_v35, %v4584_v60  ;;  %v4138_v28 = vpop.f32.mrb[64].mxu0  ;;  %v8846_v35 = vpop.f32.mrb[151].mxu1 }
 0x701   :  { %v5726_v25 = vpack.c.bf16 %v4775_v53, %v4773_v38  ;;  %v5988_v26 = vadd.f32 %v4138_v28, %v9747_v4  ;;  %v4140_v14 = vpop.f32.mrb[65].mxu0  ;;  %4455 = vmatmul.mubr.f32.gmra.mrb[170].mxu0 %v2387_v46  ;;  %v4912_v46 = vld [vmem:[%s9612_s7 + $0x38] sm:$0xff]  ;;  %v9751_v4 = vld [vmem:[#allocation30_spill] sm:$0xff] }
 0x702   :  { %v5989_v6 = vadd.f32 %v4140_v14, %v9748_v21  ;;  %4460 = vmatprep.mubr.f32.mxu0 %v9657_v5  ;;  %v5724_v1 = vpack.c.bf16 %v4776_v22, %v4774_v9 }
 0x703   :  { %v4777_v38 = vmul.f32 %v5988_v26, %v4585_v10 }
 0x704   :  { %v4144_v43 = vpop.f32.mrb[66].mxu0  ;;  %5725 = vmatprep.subr.bf16.mxu1 %v5724_v1  ;;  %v4778_v9 = vmul.f32 %v5989_v6, %v4586_v62  ;;  %v8852_v1 = vpop.f32.mrb[152].mxu1  ;;  %v2402_v6 = vld [vmem:[#allocation6 + $0xde0] sm:$0xff]  ;;  %v4589_v62 = vld [vmem:[%s9611_s6 + $0x220] sm:$0xff] }
 0x705   :  { %v5990_v8 = vadd.f32 %v4144_v43, %v9749_v39  ;;  %v4146_v13 = vpop.f32.mrb[67].mxu0  ;;  %4461 = vmatmul.mubr.f32.gmra.mrb[172].mxu0 %v2392_v32  ;;  %5727 = vmatpush1.bf16.msra.mxu1 %v5726_v25  ;;  %v4911_v32 = vld [vmem:[%s9612_s7 + $0x30] sm:$0xff]  ;;  %v8859_v10 = vpop.f32.mrb[153].mxu1 }
 0x706   :  { %v5991_v60 = vadd.f32 %v4146_v13, %v9750_v19  ;;  %4466 = vmatprep.mubr.f32.mxu0 %v9657_v5  ;;  %v9752_v43 = vld [vmem:[#allocation31_spill] sm:$0xff]  ;;  %9753 = vst [vmem:[#allocation7_spill] sm:$0xff] %v8859_v10 }
 0x707   :  { %v4779_v53 = vmul.f32 %v5990_v8, %v4587_v55  ;;  %v4918_v55 = vld [vmem:[%s9612_s7 + $0x68] sm:$0xff]  ;;  %v4591_v13 = vld [vmem:[%s9611_s6 + $0x230] sm:$0xff] }
 0x708   :  { %v4780_v22 = vmul.f32 %v5991_v60, %v4588_v50  ;;  %v4150_v28 = vpop.f32.mrb[68].mxu0  ;;  %4994 = vmatmul.mubr.f32.vlgmr.msra.gmra.mrb[192].mxu1 %v4905_v37  ;;  %v4590_v50 = vld [vmem:[%s9611_s6 + $0x228] sm:$0xff]  ;;  %v9754_v37 = vld [vmem:[#allocation32_spill] sm:$0xff]  ;;  %v2422_v10 = vld [vmem:[#allocation6 + $0xe80] sm:$0xff] }
 0x709   :  { %v5730_v25 = vpack.c.bf16 %v4779_v53, %v4777_v38  ;;  %v5992_v14 = vadd.f32 %v4150_v28, %v9751_v4  ;;  %v4152_v21 = vpop.f32.mrb[69].mxu0  ;;  %4467 = vmatmul.mubr.f32.gmra.mrb[174].mxu0 %v2397_v33  ;;  %4999 = vmatprep.mubr.f32.mxu1 %v4912_v46  ;;  %v4592_v33 = vld [vmem:[%s9611_s6 + $0x238] sm:$0xff]  ;;  %v8877_v46 = vpop.f32.mrb[154].mxu1  ;;  %v4917_v38 = vld [vmem:[%s9612_s7 + $0x60] sm:$0xff] }
 0x70a   :  { %v5993_v39 = vadd.f32 %v4152_v21, %v9752_v43  ;;  %4472 = vmatprep.mubr.f32.mxu0 %v9657_v5  ;;  %v5728_v26 = vpack.c.bf16 %v4780_v22, %v4778_v9  ;;  %9755 = vst [vmem:[#allocation8_spill] sm:$0xff] %v8877_v46  ;;  %v9756_v53 = vld [vmem:[#allocation33_spill] sm:$0xff]  ;;  %v2407_v22 = vld [vmem:[#allocation6 + $0xe08] sm:$0xff]  ;;  %v8884_v28 = vpop.f32.mrb[155].mxu1 }
 0x70b   :  { %9757 = vst [vmem:[#allocation9_spill] sm:$0xff] %v8884_v28  ;;  %v4924_v4 = vld [vmem:[%s9612_s7 + $0x98] sm:$0xff]  ;;  %v4781_v21 = vmul.f32 %v5992_v14, %v4589_v62  ;;  %v9760_v28 = vld [vmem:[#allocation35_spill] sm:$0xff] }
 0x70c   :  { %v4156_v8 = vpop.f32.mrb[70].mxu0  ;;  %5729 = vmatprep.subr.bf16.mxu1 %v5728_v26  ;;  %5000 = vmatmul.mubr.f32.gmra.mrb[194].mxu1 %v4911_v32  ;;  %v4782_v32 = vmul.f32 %v5993_v39, %v4590_v50  ;;  %v2412_v39 = vld [vmem:[#allocation6 + $0xe30] sm:$0xff] }
 0x70d   :  { %v5994_v19 = vadd.f32 %v4156_v8, %v9754_v37  ;;  %v4158_v60 = vpop.f32.mrb[71].mxu0  ;;  %4473 = vmatmul.mubr.f32.gmra.mrb[176].mxu0 %v2402_v6  ;;  %5731 = vmatpush1.bf16.msra.mxu1 %v5730_v25  ;;  %v9758_v8 = vld [vmem:[#allocation34_spill] sm:$0xff]  ;;  %v4593_v50 = vld [vmem:[%s9611_s6 + $0x240] sm:$0xff] }
 0x70e   :  { %v5995_v9 = vadd.f32 %v4158_v60, %v9756_v53  ;;  %4478 = vmatprep.mubr.f32.mxu0 %v9657_v5  ;;  %5005 = vmatprep.mubr.f32.mxu1 %v4918_v55  ;;  %v8890_v53 = vpop.f32.mrb[156].mxu1  ;;  %v4923_v55 = vld [vmem:[%s9612_s7 + $0x90] sm:$0xff] }
 0x70f   :  { %v4783_v25 = vmul.f32 %v5994_v19, %v4591_v13  ;;  %9759 = vst [vmem:[#allocation10_spill] sm:$0xff] %v8890_v53  ;;  %v8897_v62 = vpop.f32.mrb[157].mxu1  ;;  %v4908_v13 = vld [vmem:[%s9612_s7 + $0x18] sm:$0xff] }
 0x710   :  { %v4784_v43 = vmul.f32 %v5995_v9, %v4592_v33  ;;  %v4162_v26 = vpop.f32.mrb[72].mxu0  ;;  %5006 = vmatmul.mubr.f32.gmra.mrb[196].mxu1 %v4917_v38  ;;  %9761 = vst [vmem:[#allocation11_spill] sm:$0xff] %v8897_v62  ;;  %v4595_v33 = vld [vmem:[%s9611_s6 + $0x250] sm:$0xff]  ;;  %v4594_v38 = vld [vmem:[%s9611_s6 + $0x248] sm:$0xff]  ;;  %v9762_v9 = vld [vmem:[#allocation36_spill] sm:$0xff] }
 0x711   :  { %v5734_v6 = vpack.c.bf16 %v4783_v25, %v4781_v21  ;;  %v5996_v37 = vadd.f32 %v4162_v26, %v9758_v8  ;;  %v4164_v60 = vpop.f32.mrb[73].mxu0  ;;  %4479 = vmatmul.mubr.f32.gmra.mrb[178].mxu0 %v2407_v22  ;;  %5011 = vmatprep.mubr.f32.mxu1 %v4924_v4  ;;  %v4596_v4 = vld [vmem:[%s9611_s6 + $0x258] sm:$0xff]  ;;  %v8915_v21 = vpop.f32.mrb[158].mxu1  ;;  %v9764_v25 = vld [vmem:[#allocation37_spill] sm:$0xff]  ;;  %v9766_v62 = vld [vmem:[#allocation38_spill] sm:$0xff] }
 0x712   :  { %v5997_v46 = vadd.f32 %v4164_v60, %v9760_v28  ;;  %4484 = vmatprep.mubr.f32.mxu0 %v9657_v5  ;;  %v5732_v14 = vpack.c.bf16 %v4784_v43, %v4782_v32  ;;  %9763 = vst [vmem:[#allocation12_spill] sm:$0xff] %v8915_v21  ;;  %v2417_v43 = vld [vmem:[#allocation6 + $0xe58] sm:$0xff]  ;;  %v8919_v26 = vpop.f32.mrb[159].mxu1  ;;  %v9768_v21 = vld [vmem:[#allocation39_spill] sm:$0xff] }
 0x713   :  { %9765 = vst [vmem:[#allocation13_spill] sm:$0xff] %v8919_v26  ;;  %v4785_v8 = vmul.f32 %v5996_v37, %v4593_v50  ;;  %v9770_v50 = vld [vmem:[#allocation40_spill] sm:$0xff] }
 0x714   :  { %v4168_v19 = vpop.f32.mrb[74].mxu0  ;;  %5733 = vmatprep.subr.bf16.mxu1 %v5732_v14  ;;  %5012 = vmatmul.mubr.f32.gmra.mrb[198].mxu1 %v4923_v55  ;;  %v4786_v55 = vmul.f32 %v5997_v46, %v4594_v38  ;;  %v4597_v46 = vld [vmem:[%s9611_s6 + $0x260] sm:$0xff] }
 0x715   :  { %v5998_v22 = vadd.f32 %v4168_v19, %v9762_v9  ;;  %v4170_v28 = vpop.f32.mrb[75].mxu0  ;;  %4485 = vmatmul.mubr.f32.gmra.mrb[180].mxu0 %v2412_v39  ;;  %5735 = vmatpush1.bf16.msra.mxu1 %v5734_v6  ;;  %v8922_v6 = vpop.f32.mrb[160].mxu1 }
 0x716   :  { %v5999_v32 = vadd.f32 %v4170_v28, %v9764_v25  ;;  %4490 = vmatprep.mubr.f32.mxu0 %v9657_v5  ;;  %5082 = vmatprep.mubr.f32.mxu1 %v4908_v13  ;;  %9767 = vst [vmem:[#allocation14_spill] sm:$0xff] %v8922_v6  ;;  %v8926_v26 = vpop.f32.mrb[161].mxu1  ;;  %v4598_v13 = vld [vmem:[%s9611_s6 + $0x268] sm:$0xff] }
 0x717   :  { %v4787_v60 = vmul.f32 %v5998_v22, %v4595_v33  ;;  %9769 = vst [vmem:[#allocation15_spill] sm:$0xff] %v8926_v26  ;;  %v4600_v22 = vld [vmem:[%s9611_s6 + $0x278] sm:$0xff] }
 0x718   :  { %v4788_v14 = vmul.f32 %v5999_v32, %v4596_v4  ;;  %v4174_v19 = vpop.f32.mrb[76].mxu0  ;;  %v8941_v4 = vpop.f32.mrb[162].mxu1 }
 0x719   :  { %v5738_v9 = vpack.c.bf16 %v4787_v60, %v4785_v8  ;;  %v6000_v53 = vadd.f32 %v4174_v19, %v9766_v62  ;;  %v4176_v39 = vpop.f32.mrb[77].mxu0  ;;  %4491 = vmatmul.mubr.f32.gmra.mrb[182].mxu0 %v2417_v43  ;;  %v4599_v62 = vld [vmem:[%s9611_s6 + $0x270] sm:$0xff]  ;;  %9771 = vst [vmem:[#allocation16_spill] sm:$0xff] %v8941_v4  ;;  %v2427_v43 = vld [vmem:[#allocation6 + $0xea8] sm:$0xff]  ;;  %v8945_v8 = vpop.f32.mrb[163].mxu1 }
 0x71a   :  { %v6001_v28 = vadd.f32 %v4176_v39, %v9768_v21  ;;  %4496 = vmatprep.mubr.f32.mxu0 %v9657_v5  ;;  %v5736_v25 = vpack.c.bf16 %v4788_v14, %v4786_v55  ;;  %v9772_v21 = vld [vmem:[#allocation41_spill] sm:$0xff]  ;;  %9773 = vst [vmem:[#allocation17_spill] sm:$0xff] %v8945_v8 }
 0x71b   :  { %v4789_v60 = vmul.f32 %v6000_v53, %v4597_v46  ;;  %v4601_v53 = vld [vmem:[%s9611_s6 + $0x280] sm:$0xff]  ;;  %v4603_v46 = vld [vmem:[%s9611_s6 + $0x290] sm:$0xff] }
 0x71c   :  { %v4180_v37 = vpop.f32.mrb[78].mxu0  ;;  %5737 = vmatprep.subr.bf16.mxu1 %v5736_v25  ;;  %v4790_v14 = vmul.f32 %v6001_v28, %v4598_v13 }
 0x71d   :  { %v6002_v33 = vadd.f32 %v4180_v37, %v9770_v50  ;;  %v4182_v38 = vpop.f32.mrb[79].mxu0  ;;  %4497 = vmatmul.mubr.f32.gmra.mrb[184].mxu0 %v2422_v10  ;;  %5739 = vmatpush1.bf16.msra.mxu1 %v5738_v9  ;;  %v9774_v37 = vld [vmem:[#allocation42_spill] sm:$0xff]  ;;  %v8948_v10 = vpop.f32.mrb[164].mxu1  ;;  %v9776_v9 = vld [vmem:[#allocation43_spill] sm:$0xff] }
 0x71e   :  { %v6003_v32 = vadd.f32 %v4182_v38, %v9772_v21  ;;  %4502 = vmatprep.mubr.f32.mxu0 %v9657_v5  ;;  %9775 = vst [vmem:[#allocation18_spill] sm:$0xff] %v8948_v10  ;;  %v2432_v21 = vld [vmem:[#allocation6 + $0xed0] sm:$0xff]  ;;  %v8952_v6 = vpop.f32.mrb[165].mxu1 }
 0x71f   :  { %v4791_v55 = vmul.f32 %v6002_v33, %v4599_v62  ;;  %9777 = vst [vmem:[#allocation19_spill] sm:$0xff] %v8952_v6  ;;  %v9778_v62 = vld [vmem:[#allocation44_spill] sm:$0xff] }
 0x720   :  { %v4792_v19 = vmul.f32 %v6003_v32, %v4600_v22  ;;  %v4186_v39 = vpop.f32.mrb[80].mxu0  ;;  %v4604_v22 = vld [vmem:[%s9611_s6 + $0x298] sm:$0xff]  ;;  %v8967_v32 = vpop.f32.mrb[166].mxu1 }
 0x721   :  { %v5742_v25 = vpack.c.bf16 %v4791_v55, %v4789_v60  ;;  %v6004_v50 = vadd.f32 %v4186_v39, %v9774_v37  ;;  %v4188_v26 = vpop.f32.mrb[81].mxu0  ;;  %4503 = vmatmul.mubr.f32.gmra.mrb[186].mxu0 %v2427_v43  ;;  %9779 = vst [vmem:[#allocation20_spill] sm:$0xff] %v8967_v32  ;;  %v9780_v43 = vld [vmem:[#allocation45_spill] sm:$0xff]  ;;  %v2437_v55 = vld [vmem:[#allocation6 + $0xef8] sm:$0xff] }
 0x722   :  { %v6005_v4 = vadd.f32 %v4188_v26, %v9776_v9  ;;  %4508 = vmatprep.mubr.f32.mxu0 %v9657_v5  ;;  %v5740_v38 = vpack.c.bf16 %v4792_v19, %v4790_v14  ;;  %v4602_v26 = vld [vmem:[%s9611_s6 + $0x288] sm:$0xff]  ;;  %v8971_v14 = vpop.f32.mrb[167].mxu1 }
 0x723   :  { %9781 = vst [vmem:[#allocation21_spill] sm:$0xff] %v8971_v14  ;;  %v4793_v19 = vmul.f32 %v6004_v50, %v4601_v53  ;;  %v4605_v50 = vld [vmem:[%s9611_s6 + $0x2a0] sm:$0xff] }
 0x724   :  { %v4192_v28 = vpop.f32.mrb[82].mxu0  ;;  %5741 = vmatprep.subr.bf16.mxu1 %v5740_v38  ;;  %v4794_v37 = vmul.f32 %v6005_v4, %v4602_v26  ;;  %v4607_v4 = vld [vmem:[%s9611_s6 + $0x2b0] sm:$0xff]  ;;  %v9786_v26 = vld [vmem:[#allocation48_spill] sm:$0xff] }
 0x725   :  { %v6006_v13 = vadd.f32 %v4192_v28, %v9778_v62  ;;  %v4194_v33 = vpop.f32.mrb[83].mxu0  ;;  %4509 = vmatmul.mubr.f32.gmra.mrb[188].mxu0 %v2432_v21  ;;  %5743 = vmatpush1.bf16.msra.mxu1 %v5742_v25  ;;  %v9782_v62 = vld [vmem:[#allocation46_spill] sm:$0xff]  ;;  %v8974_v25 = vpop.f32.mrb[168].mxu1  ;;  %v9784_v21 = vld [vmem:[#allocation47_spill] sm:$0xff] }
 0x726   :  { %v6007_v60 = vadd.f32 %v4194_v33, %v9780_v43  ;;  %4514 = vmatprep.mubr.f32.mxu0 %v9657_v5  ;;  %9783 = vst [vmem:[#allocation22_spill] sm:$0xff] %v8974_v25  ;;  %v8977_v43 = vpop.f32.mrb[169].mxu1  ;;  %v9790_v5 = vld [vmem:[#allocation50_spill] sm:$0xff]  ;;  %v9792_v25 = vld [vmem:[#allocation51_spill] sm:$0xff] }
 0x727   :  { %v4795_v39 = vmul.f32 %v6006_v13, %v4603_v46  ;;  %9785 = vst [vmem:[#allocation23_spill] sm:$0xff] %v8977_v43  ;;  %v4606_v46 = vld [vmem:[%s9611_s6 + $0x2a8] sm:$0xff] }
 0x728   :  { %v4796_v9 = vmul.f32 %v6007_v60, %v4604_v22  ;;  %v4198_v38 = vpop.f32.mrb[84].mxu0  ;;  %v4608_v22 = vld [vmem:[%s9611_s6 + $0x2b8] sm:$0xff]  ;;  %v8992_v60 = vpop.f32.mrb[170].mxu1 }
 0x729   :  { %v5746_v28 = vpack.c.bf16 %v4795_v39, %v4793_v19  ;;  %v6008_v6 = vadd.f32 %v4198_v38, %v9782_v62  ;;  %v4200_v10 = vpop.f32.mrb[85].mxu0  ;;  %4515 = vmatmul.mubr.f32.gmra.mrb[190].mxu0 %v2437_v55  ;;  %9787 = vst [vmem:[#allocation24_spill] sm:$0xff] %v8992_v60  ;;  %v9788_v55 = vld [vmem:[#allocation49_spill] sm:$0xff]  ;;  %v8995_v39 = vpop.f32.mrb[171].mxu1 }
 0x72a   :  { %v6009_v32 = vadd.f32 %v4200_v10, %v9784_v21  ;;  %v5744_v33 = vpack.c.bf16 %v4796_v9, %v4794_v37  ;;  %9789 = vst [vmem:[#allocation25_spill] sm:$0xff] %v8995_v39  ;;  %v8998_v43 = vpop.f32.mrb[172].mxu1 }
 0x72b   :  { %v4797_v37 = vmul.f32 %v6008_v6, %v4605_v50  ;;  %9791 = vst [vmem:[#allocation26_spill] sm:$0xff] %v8998_v43  ;;  %v9001_v8 = vpop.f32.mrb[173].mxu1  ;;  %v9794_v50 = vld [vmem:[#allocation52_spill] sm:$0xff]  ;;  %v9800_v43 = vld [vmem:[#allocation55_spill] sm:$0xff] }
 0x72c   :  { %v4204_v53 = vpop.f32.mrb[86].mxu0  ;;  %5745 = vmatprep.subr.bf16.mxu1 %v5744_v33  ;;  %v4798_v38 = vmul.f32 %v6009_v32, %v4606_v46  ;;  %9793 = vst [vmem:[#allocation27_spill] sm:$0xff] %v9001_v8  ;;  %v4611_v32 = vld [vmem:[%s9611_s6 + $0x2d0] sm:$0xff]  ;;  %v4612_v46 = vld [vmem:[%s9611_s6 + $0x2d8] sm:$0xff] }
 0x72d   :  { %v6010_v13 = vadd.f32 %v4204_v53, %v9786_v26  ;;  %v4206_v10 = vpop.f32.mrb[87].mxu0  ;;  %5747 = vmatpush1.bf16.msra.mxu1 %v5746_v28 }
 0x72e   :  { %v6011_v19 = vadd.f32 %v4206_v10, %v9788_v55  ;;  %v4609_v10 = vld [vmem:[%s9611_s6 + $0x2c0] sm:$0xff] }
 0x72f   :  { %v4799_v9 = vmul.f32 %v6010_v13, %v4607_v4  ;;  %v9016_v13 = vpop.f32.mrb[174].mxu1 }
 0x730   :  { %v4800_v62 = vmul.f32 %v6011_v19, %v4608_v22  ;;  %v4210_v21 = vpop.f32.mrb[88].mxu0  ;;  %9795 = vst [vmem:[#allocation28_spill] sm:$0xff] %v9016_v13  ;;  %v9796_v22 = vld [vmem:[#allocation53_spill] sm:$0xff]  ;;  %v9019_v19 = vpop.f32.mrb[175].mxu1 }
 0x731   :  { %v5750_v33 = vpack.c.bf16 %v4799_v9, %v4797_v37  ;;  %v6012_v53 = vadd.f32 %v4210_v21, %v9790_v5  ;;  %v4212_v26 = vpop.f32.mrb[89].mxu0  ;;  %v4610_v5 = vld [vmem:[%s9611_s6 + $0x2c8] sm:$0xff]  ;;  %9797 = vst [vmem:[#allocation29_spill] sm:$0xff] %v9019_v19  ;;  %v9022_v8 = vpop.f32.mrb[176].mxu1 }
 0x732   :  { %v6013_v14 = vadd.f32 %v4212_v26, %v9792_v25  ;;  %v5748_v28 = vpack.c.bf16 %v4800_v62, %v4798_v38  ;;  %9799 = vst [vmem:[#allocation30_spill] sm:$0xff] %v9022_v8  ;;  %v9025_v60 = vpop.f32.mrb[177].mxu1  ;;  %v9808_v8 = vld [vmem:[#allocation59_spill] sm:$0xff] }
 0x733   :  { %v4801_v37 = vmul.f32 %v6012_v53, %v4609_v10  ;;  %9801 = vst [vmem:[#allocation31_spill] sm:$0xff] %v9025_v60  ;;  %v4614_v10 = vld [vmem:[%s9611_s6 + $0x2e8] sm:$0xff] }
 0x734   :  { %v4216_v6 = vpop.f32.mrb[90].mxu0  ;;  %5749 = vmatprep.subr.bf16.mxu1 %v5748_v28  ;;  %v4802_v38 = vmul.f32 %v6013_v14, %v4610_v5  ;;  %v9798_v28 = vld [vmem:[#allocation54_spill] sm:$0xff]  ;;  %v4615_v14 = vld [vmem:[%s9611_s6 + $0x2f0] sm:$0xff] }
 0x735   :  { %v6014_v4 = vadd.f32 %v4216_v6, %v9794_v50  ;;  %v4218_v25 = vpop.f32.mrb[91].mxu0  ;;  %5751 = vmatpush1.bf16.msra.mxu1 %v5750_v33 }
 0x736   :  { %v6015_v55 = vadd.f32 %v4218_v25, %v9796_v22  ;;  %v4613_v25 = vld [vmem:[%s9611_s6 + $0x2e0] sm:$0xff] }
 0x737   :  { %v4803_v9 = vmul.f32 %v6014_v4, %v4611_v32  ;;  %v9802_v32 = vld [vmem:[#allocation56_spill] sm:$0xff]  ;;  %v9804_v22 = vld [vmem:[#allocation57_spill] sm:$0xff] }
 0x738   :  { %v4804_v62 = vmul.f32 %v6015_v55, %v4612_v46  ;;  %v4222_v21 = vpop.f32.mrb[92].mxu0  ;;  %v4616_v4 = vld [vmem:[%s9611_s6 + $0x2f8] sm:$0xff]  ;;  %v9040_v46 = vpop.f32.mrb[178].mxu1 }
 0x739   :  { %v5754_v26 = vpack.c.bf16 %v4803_v9, %v4801_v37  ;;  %v6016_v6 = vadd.f32 %v4222_v21, %v9798_v28  ;;  %v4224_v50 = vpop.f32.mrb[93].mxu0  ;;  %9803 = vst [vmem:[#allocation32_spill] sm:$0xff] %v9040_v46  ;;  %v9043_v37 = vpop.f32.mrb[179].mxu1 }
 0x73a   :  { %v6017_v39 = vadd.f32 %v4224_v50, %v9800_v43  ;;  %v5752_v33 = vpack.c.bf16 %v4804_v62, %v4802_v38  ;;  %9805 = vst [vmem:[#allocation33_spill] sm:$0xff] %v9043_v37  ;;  %v9046_v60 = vpop.f32.mrb[180].mxu1 }
 0x73b   :  { %v4805_v9 = vmul.f32 %v6016_v6, %v4613_v25  ;;  %9807 = vst [vmem:[#allocation34_spill] sm:$0xff] %v9046_v60  ;;  %v9049_v13 = vpop.f32.mrb[181].mxu1  ;;  %v4618_v25 = vld [vmem:[%s9611_s6 + $0x308] sm:$0xff]  ;;  %v9816_v60 = vld [vmem:[#allocation63_spill] sm:$0xff] }
 0x73c   :  { %v4228_v53 = vpop.f32.mrb[94].mxu0  ;;  %5753 = vmatprep.subr.bf16.mxu1 %v5752_v33  ;;  %v4806_v62 = vmul.f32 %v6017_v39, %v4614_v10  ;;  %v9806_v33 = vld [vmem:[#allocation58_spill] sm:$0xff]  ;;  %9809 = vst [vmem:[#allocation35_spill] sm:$0xff] %v9049_v13  ;;  %v4619_v39 = vld [vmem:[%s9611_s6 + $0x310] sm:$0xff] }
 0x73d   :  { %v6018_v5 = vadd.f32 %v4228_v53, %v9802_v32  ;;  %v4230_v43 = vpop.f32.mrb[95].mxu0  ;;  %5755 = vmatpush1.bf16.msra.mxu1 %v5754_v26 }
 0x73e   :  { %v6019_v55 = vadd.f32 %v4230_v43, %v9804_v22  ;;  %v4617_v43 = vld [vmem:[%s9611_s6 + $0x300] sm:$0xff] }
 0x73f   :  { %v4807_v38 = vmul.f32 %v6018_v5, %v4615_v14  ;;  %v9810_v14 = vld [vmem:[#allocation60_spill] sm:$0xff]  ;;  %v9812_v22 = vld [vmem:[#allocation61_spill] sm:$0xff] }
 0x740   :  { %v4808_v21 = vmul.f32 %v6019_v55, %v4616_v4  ;;  %v4234_v28 = vpop.f32.mrb[96].mxu0  ;;  %v4620_v5 = vld [vmem:[%s9611_s6 + $0x318] sm:$0xff]  ;;  %v9064_v4 = vpop.f32.mrb[182].mxu1 }
 0x741   :  { %v5758_v50 = vpack.c.bf16 %v4807_v38, %v4805_v9  ;;  %v6020_v53 = vadd.f32 %v4234_v28, %v9806_v33  ;;  %v4236_v32 = vpop.f32.mrb[97].mxu0  ;;  %9811 = vst [vmem:[#allocation36_spill] sm:$0xff] %v9064_v4  ;;  %v9067_v9 = vpop.f32.mrb[183].mxu1 }
 0x742   :  { %v6021_v19 = vadd.f32 %v4236_v32, %v9808_v8  ;;  %v5756_v26 = vpack.c.bf16 %v4808_v21, %v4806_v62  ;;  %9813 = vst [vmem:[#allocation37_spill] sm:$0xff] %v9067_v9  ;;  %v9070_v13 = vpop.f32.mrb[184].mxu1 }
 0x743   :  { %v4809_v38 = vmul.f32 %v6020_v53, %v4617_v43  ;;  %9815 = vst [vmem:[#allocation38_spill] sm:$0xff] %v9070_v13  ;;  %v9073_v46 = vpop.f32.mrb[185].mxu1  ;;  %v4622_v43 = vld [vmem:[%s9611_s6 + $0x328] sm:$0xff]  ;;  %v9823_v13 = vld [vmem:[#allocation67_spill] sm:$0xff] }
 0x744   :  { %v4240_v6 = vpop.f32.mrb[98].mxu0  ;;  %5757 = vmatprep.subr.bf16.mxu1 %v5756_v26  ;;  %v4810_v21 = vmul.f32 %v6021_v19, %v4618_v25  ;;  %v9814_v26 = vld [vmem:[#allocation62_spill] sm:$0xff]  ;;  %9817 = vst [vmem:[#allocation39_spill] sm:$0xff] %v9073_v46  ;;  %v4623_v19 = vld [vmem:[%s9611_s6 + $0x330] sm:$0xff] }
 0x745   :  { %v6022_v10 = vadd.f32 %v4240_v6, %v9810_v14  ;;  %v4242_v8 = vpop.f32.mrb[99].mxu0  ;;  %5759 = vmatpush1.bf16.msra.mxu1 %v5758_v50 }
 0x746   :  { %v6023_v55 = vadd.f32 %v4242_v8, %v9812_v22  ;;  %v4621_v8 = vld [vmem:[%s9611_s6 + $0x320] sm:$0xff] }
 0x747   :  { %v4811_v62 = vmul.f32 %v6022_v10, %v4619_v39  ;;  %v9818_v39 = vld [vmem:[#allocation64_spill] sm:$0xff]  ;;  %v9819_v22 = vld [vmem:[#allocation65_spill] sm:$0xff] }
 0x748   :  { %v4812_v28 = vmul.f32 %v6023_v55, %v4620_v5  ;;  %v4246_v33 = vpop.f32.mrb[100].mxu0  ;;  %v4624_v10 = vld [vmem:[%s9611_s6 + $0x338] sm:$0xff]  ;;  %v9088_v5 = vpop.f32.mrb[186].mxu1 }
 0x749   :  { %v5762_v32 = vpack.c.bf16 %v4811_v62, %v4809_v38  ;;  %v6024_v6 = vadd.f32 %v4246_v33, %v9814_v26  ;;  %v4248_v14 = vpop.f32.mrb[101].mxu0  ;;  %v9091_v38 = vpop.f32.mrb[187].mxu1 }
 0x74a   :  { %v6025_v37 = vadd.f32 %v4248_v14, %v9816_v60  ;;  %v5760_v50 = vpack.c.bf16 %v4812_v28, %v4810_v21  ;;  %9820 = vst [vmem:[#allocation40_spill] sm:$0xff] %v9091_v38  ;;  %v9094_v46 = vpop.f32.mrb[188].mxu1 }
 0x74b   :  { %v4813_v62 = vmul.f32 %v6024_v6, %v4621_v8  ;;  %9822 = vst [vmem:[#allocation41_spill] sm:$0xff] %v9094_v46  ;;  %v9097_v4 = vpop.f32.mrb[189].mxu1  ;;  %v4626_v8 = vld [vmem:[%s9611_s6 + $0x348] sm:$0xff] }
 0x74c   :  { %v4252_v53 = vpop.f32.mrb[102].mxu0  ;;  %5761 = vmatprep.subr.bf16.mxu1 %v5760_v50  ;;  %v4814_v28 = vmul.f32 %v6025_v37, %v4622_v43  ;;  %v9821_v50 = vld [vmem:[#allocation66_spill] sm:$0xff]  ;;  %9824 = vst [vmem:[#allocation42_spill] sm:$0xff] %v9097_v4  ;;  %v4627_v37 = vld [vmem:[%s9611_s6 + $0x350] sm:$0xff] }
 0x74d   :  { %v6026_v25 = vadd.f32 %v4252_v53, %v9818_v39  ;;  %v4254_v60 = vpop.f32.mrb[103].mxu0  ;;  %5763 = vmatpush1.bf16.msra.mxu1 %v5762_v32  ;;  %v9830_v4 = vld [vmem:[#allocation71_spill] sm:$0xff] }
 0x74e   :  { %v6027_v55 = vadd.f32 %v4254_v60, %v9819_v22  ;;  %v4625_v60 = vld [vmem:[%s9611_s6 + $0x340] sm:$0xff] }
 0x74f   :  { %v4815_v21 = vmul.f32 %v6026_v25, %v4623_v19  ;;  %v9825_v19 = vld [vmem:[#allocation68_spill] sm:$0xff]  ;;  %v9827_v22 = vld [vmem:[#allocation69_spill] sm:$0xff] }
 0x750   :  { %v4816_v33 = vmul.f32 %v6027_v55, %v4624_v10  ;;  %v4258_v26 = vpop.f32.mrb[104].mxu0  ;;  %v4628_v25 = vld [vmem:[%s9611_s6 + $0x358] sm:$0xff]  ;;  %v9112_v10 = vpop.f32.mrb[190].mxu1 }
 0x751   :  { %v5766_v14 = vpack.c.bf16 %v4815_v21, %v4813_v62  ;;  %v6028_v53 = vadd.f32 %v4258_v26, %v9821_v50  ;;  %v4260_v39 = vpop.f32.mrb[105].mxu0  ;;  %9826 = vst [vmem:[#allocation43_spill] sm:$0xff] %v9112_v10  ;;  %v9115_v62 = vpop.f32.mrb[191].mxu1 }
 0x752   :  { %v6029_v9 = vadd.f32 %v4260_v39, %v9823_v13  ;;  %v5764_v32 = vpack.c.bf16 %v4816_v33, %v4814_v28  ;;  %9828 = vst [vmem:[#allocation44_spill] sm:$0xff] %v9115_v62 }
 0x753   :  { %v4817_v21 = vmul.f32 %v6028_v53, %v4625_v60  ;;  %v4631_v53 = vld [vmem:[%s9611_s6 + $0x370] sm:$0xff]  ;;  %v9831_v60 = vld [vmem:[#allocation72_spill] sm:$0xff] }
 0x754   :  { %v4264_v6 = vpop.f32.mrb[106].mxu0  ;;  %5765 = vmatprep.subr.bf16.mxu1 %v5764_v32  ;;  %v4818_v33 = vmul.f32 %v6029_v9, %v4626_v8  ;;  %v9829_v32 = vld [vmem:[#allocation70_spill] sm:$0xff] }
 0x755   :  { %v6030_v43 = vadd.f32 %v4264_v6, %v9825_v19  ;;  %v4266_v13 = vpop.f32.mrb[107].mxu0  ;;  %5767 = vmatpush1.bf16.msra.mxu1 %v5766_v14  ;;  %v4629_v14 = vld [vmem:[%s9611_s6 + $0x360] sm:$0xff]  ;;  %v4630_v9 = vld [vmem:[%s9611_s6 + $0x368] sm:$0xff] }
 0x756   :  { %v6031_v55 = vadd.f32 %v4266_v13, %v9827_v22 }
 0x757   :  { %v4819_v28 = vmul.f32 %v6030_v43, %v4627_v37  ;;  %v9832_v43 = vld [vmem:[#allocation73_spill] sm:$0xff] }
 0x758   :  { %v4820_v26 = vmul.f32 %v6031_v55, %v4628_v25  ;;  %v4270_v50 = vpop.f32.mrb[108].mxu0 }
 0x759   :  { %v5770_v39 = vpack.c.bf16 %v4819_v28, %v4817_v21  ;;  %v6032_v6 = vadd.f32 %v4270_v50, %v9829_v32  ;;  %v4272_v19 = vpop.f32.mrb[109].mxu0  ;;  %v9834_v32 = vld [vmem:[#allocation75_spill] sm:$0xff] }
 0x75a   :  { %v6033_v46 = vadd.f32 %v4272_v19, %v9830_v4  ;;  %v5768_v38 = vpack.c.bf16 %v4820_v26, %v4818_v33  ;;  %v4632_v4 = vld [vmem:[%s9611_s6 + $0x378] sm:$0xff]  ;;  %v9833_v33 = vld [vmem:[#allocation74_spill] sm:$0xff] }
 0x75b   :  { %v4821_v25 = vmul.f32 %v6032_v6, %v4629_v14 }
 0x75c   :  { %v4276_v10 = vpop.f32.mrb[110].mxu0  ;;  %5769 = vmatprep.subr.bf16.mxu1 %v5768_v38  ;;  %v4822_v55 = vmul.f32 %v6033_v46, %v4630_v9  ;;  %v4634_v46 = vld [vmem:[%s9611_s6 + $0x388] sm:$0xff] }
 0x75d   :  { %v6034_v37 = vadd.f32 %v4276_v10, %v9831_v60  ;;  %v4278_v8 = vpop.f32.mrb[111].mxu0  ;;  %5771 = vmatpush1.bf16.msra.mxu1 %v5770_v39  ;;  %v4633_v60 = vld [vmem:[%s9611_s6 + $0x380] sm:$0xff]  ;;  %v4635_v39 = vld [vmem:[%s9611_s6 + $0x390] sm:$0xff] }
 0x75e   :  { %v6035_v13 = vadd.f32 %v4278_v8, %v9832_v43 }
 0x75f   :  { %v4823_v22 = vmul.f32 %v6034_v37, %v4631_v53  ;;  %v4636_v53 = vld [vmem:[%s9611_s6 + $0x398] sm:$0xff] }
 0x760   :  { %v4824_v21 = vmul.f32 %v6035_v13, %v4632_v4  ;;  %v4282_v28 = vpop.f32.mrb[112].mxu0 }
 0x761   :  { %v5774_v38 = vpack.c.bf16 %v4823_v22, %v4821_v25  ;;  %v6036_v26 = vadd.f32 %v4282_v28, %v9833_v33  ;;  %v4284_v50 = vpop.f32.mrb[113].mxu0 }
 0x762   :  { %v6037_v19 = vadd.f32 %v4284_v50, %v9834_v32  ;;  %v5772_v10 = vpack.c.bf16 %v4824_v21, %v4822_v55  ;;  %v9835_v21 = vld [vmem:[#allocation76_spill] sm:$0xff] }
 0x763   :  { %v4825_v37 = vmul.f32 %v6036_v26, %v4633_v60  ;;  %v4640_v50 = vld [vmem:[%s9611_s6 + $0x3b8] sm:$0xff] }
 0x764   :  { %v4288_v62 = vpop.f32.mrb[114].mxu0  ;;  %5773 = vmatprep.subr.bf16.mxu1 %v5772_v10  ;;  %v4826_v4 = vmul.f32 %v6037_v19, %v4634_v46 }
 0x765   :  { %v6038_v6 = vadd.f32 %v4288_v62, %v8478_v45  ;;  %v4290_v14 = vpop.f32.mrb[115].mxu0  ;;  %5775 = vmatpush1.bf16.msra.mxu1 %v5774_v38  ;;  %v4637_v62 = vld [vmem:[%s9611_s6 + $0x3a0] sm:$0xff]  ;;  %v4638_v38 = vld [vmem:[%s9611_s6 + $0x3a8] sm:$0xff] }
 0x766   :  { %v6039_v9 = vadd.f32 %v4290_v14, %v8480_v34  ;;  %v4639_v34 = vld [vmem:[%s9611_s6 + $0x3b0] sm:$0xff] }
 0x767   :  { %v4827_v8 = vmul.f32 %v6038_v6, %v4635_v39 }
 0x768   :  { %v4828_v43 = vmul.f32 %v6039_v9, %v4636_v53  ;;  %v4294_v13 = vpop.f32.mrb[116].mxu0 }
 0x769   :  { %v5778_v25 = vpack.c.bf16 %v4827_v8, %v4825_v37  ;;  %v6040_v22 = vadd.f32 %v4294_v13, %v8485_v59  ;;  %v4296_v55 = vpop.f32.mrb[117].mxu0  ;;  %v4641_v37 = vld [vmem:[%s9611_s6 + $0x3c0] sm:$0xff] }
 0x76a   :  { %v6041_v28 = vadd.f32 %v4296_v55, %v9835_v21  ;;  %v5776_v45 = vpack.c.bf16 %v4828_v43, %v4826_v4  ;;  %v4642_v4 = vld [vmem:[%s9611_s6 + $0x3c8] sm:$0xff] }
 0x76b   :  { %v4829_v19 = vmul.f32 %v6040_v22, %v4637_v62 }
 0x76c   :  { %v4300_v33 = vpop.f32.mrb[118].mxu0  ;;  %5777 = vmatprep.subr.bf16.mxu1 %v5776_v45  ;;  %v4830_v60 = vmul.f32 %v6041_v28, %v4638_v38  ;;  %v4645_v38 = vld [vmem:[%s9611_s6 + $0x3e0] sm:$0xff] }
 0x76d   :  { %v6042_v59 = vadd.f32 %v4300_v33, %v8507_v31  ;;  %v4302_v26 = vpop.f32.mrb[119].mxu0  ;;  %5779 = vmatpush1.bf16.msra.mxu1 %v5778_v25 }
 0x76e   :  { %v6043_v32 = vadd.f32 %v4302_v26, %v8509_v42  ;;  %v4643_v42 = vld [vmem:[%s9611_s6 + $0x3d0] sm:$0xff]  ;;  %v4646_v26 = vld [vmem:[%s9611_s6 + $0x3e8] sm:$0xff] }
 0x76f   :  { %v4831_v10 = vmul.f32 %v6042_v59, %v4639_v34 }
 0x770   :  { %v4832_v39 = vmul.f32 %v6043_v32, %v4640_v50  ;;  %v4306_v46 = vpop.f32.mrb[120].mxu0 }
 0x771   :  { %v5782_v6 = vpack.c.bf16 %v4831_v10, %v4829_v19  ;;  %v6044_v14 = vadd.f32 %v4306_v46, %v8514_v27  ;;  %v4308_v53 = vpop.f32.mrb[121].mxu0 }
 0x772   :  { %v6045_v9 = vadd.f32 %v4308_v53, %v8522_v11  ;;  %v5780_v31 = vpack.c.bf16 %v4832_v39, %v4830_v60  ;;  %v4644_v11 = vld [vmem:[%s9611_s6 + $0x3d8] sm:$0xff] }
 0x773   :  { %v4833_v25 = vmul.f32 %v6044_v14, %v4641_v37 }
 0x774   :  { %v4312_v8 = vpop.f32.mrb[122].mxu0  ;;  %5781 = vmatprep.subr.bf16.mxu1 %v5780_v31  ;;  %v4834_v55 = vmul.f32 %v6045_v9, %v4642_v4  ;;  %v4649_v31 = vld [vmem:[%s9611_s6 + $0x400] sm:$0xff]  ;;  %v4907_v4 = vld [vmem:[%s9612_s7 + $0x10] sm:$0xff] }
 0x775   :  { %v6046_v27 = vadd.f32 %v4312_v8, %v8533_v56  ;;  %v4314_v43 = vpop.f32.mrb[123].mxu0  ;;  %5783 = vmatpush1.bf16.msra.mxu1 %v5782_v6  ;;  %v4650_v8 = vld [vmem:[%s9611_s6 + $0x408] sm:$0xff] }
 0x776   :  { %v6047_v13 = vadd.f32 %v4314_v43, %v8535_v57  ;;  %v4647_v57 = vld [vmem:[%s9611_s6 + $0x3f0] sm:$0xff]  ;;  %v4914_v43 = vld [vmem:[%s9612_s7 + $0x48] sm:$0xff] }
 0x777   :  { %v4835_v22 = vmul.f32 %v6046_v27, %v4643_v42 }
 0x778   :  { %v4836_v21 = vmul.f32 %v6047_v13, %v4644_v11  ;;  %v4318_v28 = vpop.f32.mrb[124].mxu0 }
 0x779   :  { %v5786_v45 = vpack.c.bf16 %v4835_v22, %v4833_v25  ;;  %v6048_v62 = vadd.f32 %v4318_v28, %v8540_v63  ;;  %v4320_v33 = vpop.f32.mrb[125].mxu0 }
 0x77a   :  { %v6049_v34 = vadd.f32 %v4320_v33, %v8548_v2  ;;  %v5784_v56 = vpack.c.bf16 %v4836_v21, %v4834_v55  ;;  %v4648_v2 = vld [vmem:[%s9611_s6 + $0x3f8] sm:$0xff] }
 0x77b   :  { %v4837_v19 = vmul.f32 %v6048_v62, %v4645_v38  ;;  %v4920_v33 = vld [vmem:[%s9612_s7 + $0x78] sm:$0xff] }
 0x77c   :  { %v4324_v59 = vpop.f32.mrb[126].mxu0  ;;  %5785 = vmatprep.subr.bf16.mxu1 %v5784_v56  ;;  %v4838_v60 = vmul.f32 %v6049_v34, %v4646_v26  ;;  %v4653_v34 = vld [vmem:[%s9611_s6 + $0x420] sm:$0xff]  ;;  %v4919_v26 = vld [vmem:[%s9612_s7 + $0x70] sm:$0xff] }
 0x77d   :  { %v6050_v63 = vadd.f32 %v4324_v59, %v8559_v23  ;;  %v4326_v50 = vpop.f32.mrb[127].mxu0  ;;  %5787 = vmatpush1.bf16.msra.mxu1 %v5786_v45  ;;  %v4913_v45 = vld [vmem:[%s9612_s7 + $0x40] sm:$0xff] }
 0x77e   :  { %v6051_v32 = vadd.f32 %v4326_v50, %v8561_v15  ;;  %v4651_v15 = vld [vmem:[%s9611_s6 + $0x410] sm:$0xff]  ;;  %v4926_v50 = vld [vmem:[%s9612_s7 + $0xa8] sm:$0xff] }
 0x77f   :  { %v4839_v10 = vmul.f32 %v6050_v63, %v4647_v57  ;;  %v4656_v57 = vld [vmem:[%s9611_s6 + $0x438] sm:$0xff] }
 0x780   :  { %v4840_v39 = vmul.f32 %v6051_v32, %v4648_v2  ;;  %v4330_v46 = vpop.f32.mrb[128].mxu0 }
 0x781   :  { %v5790_v6 = vpack.c.bf16 %v4839_v10, %v4837_v19  ;;  %v6052_v14 = vadd.f32 %v4330_v46, %v8566_v7  ;;  %v4332_v53 = vpop.f32.mrb[129].mxu0 }
 0x782   :  { %v6053_v9 = vadd.f32 %v4332_v53, %v8574_v16  ;;  %v5788_v23 = vpack.c.bf16 %v4840_v39, %v4838_v60  ;;  %v4652_v16 = vld [vmem:[%s9611_s6 + $0x418] sm:$0xff]  ;;  %v4910_v53 = vld [vmem:[%s9612_s7 + $0x28] sm:$0xff] }
 0x783   :  { %v4841_v11 = vmul.f32 %v6052_v14, %v4649_v31 }
 0x784   :  { %v4336_v37 = vpop.f32.mrb[130].mxu0  ;;  %5789 = vmatprep.subr.bf16.mxu1 %v5788_v23  ;;  %v4842_v25 = vmul.f32 %v6053_v9, %v4650_v8  ;;  %v4657_v9 = vld [vmem:[%s9611_s6 + $0x440] sm:$0xff] }
 0x785   :  { %v6054_v7 = vadd.f32 %v4336_v37, %v8585_v29  ;;  %v4338_v42 = vpop.f32.mrb[131].mxu0  ;;  %5791 = vmatpush1.bf16.msra.mxu1 %v5790_v6  ;;  %v4925_v6 = vld [vmem:[%s9612_s7 + $0xa0] sm:$0xff] }
 0x786   :  { %v6055_v27 = vadd.f32 %v4338_v42, %v8587_v17 }
 0x787   :  { %v4843_v13 = vmul.f32 %v6054_v7, %v4651_v15  ;;  %v4660_v15 = vld [vmem:[%s9611_s6 + $0x458] sm:$0xff] }
 0x788   :  { %v4844_v29 = vmul.f32 %v6055_v27, %v4652_v16  ;;  %v4342_v22 = vpop.f32.mrb[132].mxu0  ;;  %5083 = vmatmul.mubr.f32.vlgmr.msra.gmra.mrb[192].mxu1 %v4907_v4 }
 0x789   :  { %v5794_v55 = vpack.c.bf16 %v4843_v13, %v4841_v11  ;;  %v6056_v21 = vadd.f32 %v4342_v22, %v8592_v40  ;;  %v4344_v28 = vpop.f32.mrb[133].mxu0  ;;  %5088 = vmatprep.mubr.f32.mxu1 %v4914_v43  ;;  %v4655_v40 = vld [vmem:[%s9611_s6 + $0x430] sm:$0xff] }
 0x78a   :  { %v6057_v17 = vadd.f32 %v4344_v28, %v8600_v51  ;;  %v5792_v62 = vpack.c.bf16 %v4844_v29, %v4842_v25  ;;  %v4654_v51 = vld [vmem:[%s9611_s6 + $0x428] sm:$0xff]  ;;  %v4661_v29 = vld [vmem:[%s9611_s6 + $0x460] sm:$0xff] }
 0x78b   :  { %v4845_v2 = vmul.f32 %v6056_v21, %v4653_v34 }
 0x78c   :  { %v4348_v56 = vpop.f32.mrb[134].mxu0  ;;  %5793 = vmatprep.subr.bf16.mxu1 %v5792_v62  ;;  %5089 = vmatmul.mubr.f32.gmra.mrb[194].mxu1 %v4913_v45 }
 0x78d   :  { %v6058_v38 = vadd.f32 %v4348_v56, %v8611_v41  ;;  %v4350_v59 = vpop.f32.mrb[135].mxu0  ;;  %5795 = vmatpush1.bf16.msra.mxu1 %v5794_v55  ;;  %5094 = vmatprep.mubr.f32.mxu1 %v4920_v33  ;;  %v4846_v41 = vmul.f32 %v6057_v17, %v4654_v51  ;;  %v4662_v55 = vld [vmem:[%s9611_s6 + $0x468] sm:$0xff] }
 0x78e   :  { %v6059_v63 = vadd.f32 %v4350_v59, %v8613_v58  ;;  %v4665_v59 = vld [vmem:[%s9611_s6 + $0x480] sm:$0xff] }
 0x78f   :  { %v4847_v32 = vmul.f32 %v6058_v38, %v4655_v40 }
 0x790   :  { %v4848_v19 = vmul.f32 %v6059_v63, %v4656_v57  ;;  %v4354_v10 = vpop.f32.mrb[136].mxu0  ;;  %5095 = vmatmul.mubr.f32.gmra.mrb[196].mxu1 %v4919_v26  ;;  %v4666_v26 = vld [vmem:[%s9611_s6 + $0x488] sm:$0xff] }
 0x791   :  { %v5798_v60 = vpack.c.bf16 %v4847_v32, %v4845_v2  ;;  %v6060_v39 = vadd.f32 %v4354_v10, %v8618_v52  ;;  %v4356_v46 = vpop.f32.mrb[137].mxu0  ;;  %5100 = vmatprep.mubr.f32.mxu1 %v4926_v50  ;;  %v4659_v52 = vld [vmem:[%s9611_s6 + $0x450] sm:$0xff] }
 0x792   :  { %v6061_v58 = vadd.f32 %v4356_v46, %v8626_v3  ;;  %v5796_v14 = vpack.c.bf16 %v4848_v19, %v4846_v41  ;;  %v4658_v3 = vld [vmem:[%s9611_s6 + $0x448] sm:$0xff] }
 0x793   :  { %v4849_v7 = vmul.f32 %v6060_v39, %v4657_v9 }
 0x794   :  { %v4360_v23 = vpop.f32.mrb[138].mxu0  ;;  %5797 = vmatprep.subr.bf16.mxu1 %v5796_v14  ;;  %5101 = vmatmul.mubr.f32.gmra.mrb[198].mxu1 %v4925_v6  ;;  %v4850_v16 = vmul.f32 %v6061_v58, %v4658_v3  ;;  %v4669_v58 = vld [vmem:[%s9611_s6 + $0x4a0] sm:$0xff] }
 0x795   :  { %v6062_v31 = vadd.f32 %v4360_v23, %v8637_v54  ;;  %v4362_v37 = vpop.f32.mrb[139].mxu0  ;;  %5799 = vmatpush1.bf16.msra.mxu1 %v5798_v60  ;;  %5171 = vmatprep.mubr.f32.mxu1 %v4910_v53  ;;  %v4670_v53 = vld [vmem:[%s9611_s6 + $0x4a8] sm:$0xff] }
 0x796   :  { %v6063_v8 = vadd.f32 %v4362_v37, %v8639_v47  ;;  %v4663_v47 = vld [vmem:[%s9611_s6 + $0x470] sm:$0xff] }
 0x797   :  { %v4851_v42 = vmul.f32 %v6062_v31, %v4659_v52 }
 0x798   :  { %v4852_v4 = vmul.f32 %v6063_v8, %v4660_v15  ;;  %v4366_v27 = vpop.f32.mrb[140].mxu0 }
 0x799   :  { %v5802_v43 = vpack.c.bf16 %v4851_v42, %v4849_v7  ;;  %v6064_v11 = vadd.f32 %v4366_v27, %v8644_v61  ;;  %v4368_v13 = vpop.f32.mrb[141].mxu0  ;;  %v4673_v27 = vld [vmem:[%s9611_s6 + $0x4c0] sm:$0xff] }
 0x79a   :  { %v6065_v54 = vadd.f32 %v4368_v13, %v8652_v48  ;;  %v5800_v25 = vpack.c.bf16 %v4852_v4, %v4850_v16  ;;  %v4664_v48 = vld [vmem:[%s9611_s6 + $0x478] sm:$0xff]  ;;  %v9836_v16 = vld [vmem:[#allocation7_spill] sm:$0xff] }
 0x79b   :  { %v4853_v45 = vmul.f32 %v6064_v11, %v4661_v29  ;;  %v4674_v11 = vld [vmem:[%s9611_s6 + $0x4c8] sm:$0xff]  ;;  %v9837_v13 = vld [vmem:[#allocation8_spill] sm:$0xff]  ;;  %v9838_v29 = vld [vmem:[#allocation9_spill] sm:$0xff] }
 0x79c   :  { %v4372_v22 = vpop.f32.mrb[142].mxu0  ;;  %5801 = vmatprep.subr.bf16.mxu1 %v5800_v25  ;;  %v4854_v62 = vmul.f32 %v6065_v54, %v4662_v55  ;;  %v4676_v25 = vld [vmem:[%s9611_s6 + $0x4d8] sm:$0xff] }
 0x79d   :  { %v6066_v61 = vadd.f32 %v4372_v22, %v8663_v44  ;;  %v4374_v21 = vpop.f32.mrb[143].mxu0  ;;  %5803 = vmatpush1.bf16.msra.mxu1 %v5802_v43 }
 0x79e   :  { %v6067_v28 = vadd.f32 %v4374_v21, %v8665_v18  ;;  %v4667_v18 = vld [vmem:[%s9611_s6 + $0x490] sm:$0xff] }
 0x79f   :  { %v4855_v17 = vmul.f32 %v6066_v61, %v4663_v47 }
 0x7a0   :  { %v4856_v33 = vmul.f32 %v6067_v28, %v4664_v48  ;;  %v4378_v34 = vpop.f32.mrb[144].mxu0 }
 0x7a1   :  { %v5806_v56 = vpack.c.bf16 %v4855_v17, %v4853_v45  ;;  %v6068_v40 = vadd.f32 %v4378_v34, %v8670_v30  ;;  %v4380_v51 = vpop.f32.mrb[145].mxu0  ;;  %v9839_v45 = vld [vmem:[#allocation10_spill] sm:$0xff] }
 0x7a2   :  { %v6069_v38 = vadd.f32 %v4380_v51, %v8678_v24  ;;  %v5804_v44 = vpack.c.bf16 %v4856_v33, %v4854_v62  ;;  %v4668_v24 = vld [vmem:[%s9611_s6 + $0x498] sm:$0xff]  ;;  %v9840_v33 = vld [vmem:[#allocation11_spill] sm:$0xff] }
 0x7a3   :  { %v4857_v2 = vmul.f32 %v6068_v40, %v4665_v59  ;;  %v4677_v40 = vld [vmem:[%s9611_s6 + $0x4e0] sm:$0xff]  ;;  %v9841_v59 = vld [vmem:[#allocation12_spill] sm:$0xff] }
 0x7a4   :  { %v4384_v57 = vpop.f32.mrb[146].mxu0  ;;  %5805 = vmatprep.subr.bf16.mxu1 %v5804_v44  ;;  %v4858_v41 = vmul.f32 %v6069_v38, %v4666_v26  ;;  %v4679_v38 = vld [vmem:[%s9611_s6 + $0x4f0] sm:$0xff]  ;;  %v4678_v44 = vld [vmem:[%s9611_s6 + $0x4e8] sm:$0xff]  ;;  %v4680_v26 = vld [vmem:[%s9611_s6 + $0x4f8] sm:$0xff] }
 0x7a5   :  { %v6070_v30 = vadd.f32 %v4384_v57, %v8813_v49  ;;  %v4386_v63 = vpop.f32.mrb[147].mxu0  ;;  %5807 = vmatpush1.bf16.msra.mxu1 %v5806_v56 }
 0x7a6   :  { %v6071_v50 = vadd.f32 %v4386_v63, %v8817_v12  ;;  %v4671_v12 = vld [vmem:[%s9611_s6 + $0x4b0] sm:$0xff] }
 0x7a7   :  { %v4859_v32 = vmul.f32 %v6070_v30, %v4667_v18  ;;  %v9842_v30 = vld [vmem:[#allocation13_spill] sm:$0xff] }
 0x7a8   :  { %v4860_v19 = vmul.f32 %v6071_v50, %v4668_v24  ;;  %v4390_v10 = vpop.f32.mrb[148].mxu0 }
 0x7a9   :  { %v5810_v60 = vpack.c.bf16 %v4859_v32, %v4857_v2  ;;  %v6072_v39 = vadd.f32 %v4390_v10, %v8820_v36  ;;  %v4392_v46 = vpop.f32.mrb[149].mxu0  ;;  %v9843_v10 = vld [vmem:[#allocation14_spill] sm:$0xff] }
 0x7aa   :  { %v6073_v6 = vadd.f32 %v4392_v46, %v8824_v20  ;;  %v5808_v49 = vpack.c.bf16 %v4860_v19, %v4858_v41  ;;  %v4672_v20 = vld [vmem:[%s9611_s6 + $0x4b8] sm:$0xff]  ;;  %v9844_v46 = vld [vmem:[#allocation15_spill] sm:$0xff] }
 0x7ab   :  { %v4861_v52 = vmul.f32 %v6072_v39, %v4669_v58  ;;  %v4681_v58 = vld [vmem:[%s9611_s6 + $0x500] sm:$0xff] }
 0x7ac   :  { %v4396_v14 = vpop.f32.mrb[150].mxu0  ;;  %5809 = vmatprep.subr.bf16.mxu1 %v5808_v49  ;;  %v4862_v31 = vmul.f32 %v6073_v6, %v4670_v53  ;;  %v4682_v53 = vld [vmem:[%s9611_s6 + $0x508] sm:$0xff] }
 0x7ad   :  { %v6074_v36 = vadd.f32 %v4396_v14, %v8842_v0  ;;  %v4398_v9 = vpop.f32.mrb[151].mxu0  ;;  %5811 = vmatpush1.bf16.msra.mxu1 %v5810_v60 }
 0x7ae   :  { %v6075_v23 = vadd.f32 %v4398_v9, %v8846_v35  ;;  %v4675_v35 = vld [vmem:[%s9611_s6 + $0x4d0] sm:$0xff] }
 0x7af   :  { %v4863_v3 = vmul.f32 %v6074_v36, %v4671_v12  ;;  %v4683_v12 = vld [vmem:[%s9611_s6 + $0x510] sm:$0xff]  ;;  %v9845_v36 = vld [vmem:[#allocation16_spill] sm:$0xff] }
 0x7b0   :  { %v4864_v37 = vmul.f32 %v6075_v23, %v4672_v20  ;;  %v4402_v15 = vpop.f32.mrb[152].mxu0  ;;  %v4684_v23 = vld [vmem:[%s9611_s6 + $0x518] sm:$0xff] }
 0x7b1   :  { %v5814_v8 = vpack.c.bf16 %v4863_v3, %v4861_v52  ;;  %v6076_v7 = vadd.f32 %v4402_v15, %v8852_v1  ;;  %v4404_v42 = vpop.f32.mrb[153].mxu0  ;;  %v9846_v52 = vld [vmem:[#allocation17_spill] sm:$0xff] }
 0x7b2   :  { %v6077_v4 = vadd.f32 %v4404_v42, %v9836_v16  ;;  %v5812_v0 = vpack.c.bf16 %v4864_v37, %v4862_v31  ;;  %v9847_v16 = vld [vmem:[#allocation18_spill] sm:$0xff] }
 0x7b3   :  { %v4865_v47 = vmul.f32 %v6076_v7, %v4673_v27  ;;  %v9848_v27 = vld [vmem:[#allocation19_spill] sm:$0xff] }
 0x7b4   :  { %v4408_v43 = vpop.f32.mrb[154].mxu0  ;;  %5813 = vmatprep.subr.bf16.mxu1 %v5812_v0  ;;  %v4866_v61 = vmul.f32 %v6077_v4, %v4674_v11  ;;  %v4685_v11 = vld [vmem:[%s9611_s6 + $0x520] sm:$0xff] }
 0x7b5   :  { %v6078_v1 = vadd.f32 %v4408_v43, %v9837_v13  ;;  %v4410_v54 = vpop.f32.mrb[155].mxu0  ;;  %5815 = vmatpush1.bf16.msra.mxu1 %v5814_v8 }
 0x7b6   :  { %v6079_v22 = vadd.f32 %v4410_v54, %v9838_v29  ;;  %v4686_v54 = vld [vmem:[%s9611_s6 + $0x528] sm:$0xff] }
 0x7b7   :  { %v4867_v55 = vmul.f32 %v6078_v1, %v4675_v35  ;;  %v4687_v1 = vld [vmem:[%s9611_s6 + $0x530] sm:$0xff] }
 0x7b8   :  { %v4868_v21 = vmul.f32 %v6079_v22, %v4676_v25  ;;  %v4414_v48 = vpop.f32.mrb[156].mxu0  ;;  %v9849_v25 = vld [vmem:[#allocation20_spill] sm:$0xff] }
 0x7b9   :  { %v5818_v28 = vpack.c.bf16 %v4867_v55, %v4865_v47  ;;  %v6080_v17 = vadd.f32 %v4414_v48, %v9839_v45  ;;  %v4416_v62 = vpop.f32.mrb[157].mxu0  ;;  %v4688_v47 = vld [vmem:[%s9611_s6 + $0x538] sm:$0xff]  ;;  %v9850_v55 = vld [vmem:[#allocation21_spill] sm:$0xff] }
 0x7ba   :  { %v6081_v34 = vadd.f32 %v4416_v62, %v9840_v33  ;;  %v5816_v56 = vpack.c.bf16 %v4868_v21, %v4866_v61  ;;  %v9851_v33 = vld [vmem:[#allocation22_spill] sm:$0xff] }
 0x7bb   :  { %v4869_v24 = vmul.f32 %v6080_v17, %v4677_v40  ;;  %v9852_v40 = vld [vmem:[#allocation23_spill] sm:$0xff] }
 0x7bc   :  { %v4420_v51 = vpop.f32.mrb[158].mxu0  ;;  %5817 = vmatprep.subr.bf16.mxu1 %v5816_v56  ;;  %v4870_v2 = vmul.f32 %v6081_v34, %v4678_v44  ;;  %v4689_v44 = vld [vmem:[%s9611_s6 + $0x540] sm:$0xff] }
 0x7bd   :  { %v6082_v57 = vadd.f32 %v4420_v51, %v9841_v59  ;;  %v4422_v18 = vpop.f32.mrb[159].mxu0  ;;  %5819 = vmatpush1.bf16.msra.mxu1 %v5818_v28 }
 0x7be   :  { %v6083_v63 = vadd.f32 %v4422_v18, %v9842_v30  ;;  %v4690_v18 = vld [vmem:[%s9611_s6 + $0x548] sm:$0xff] }
 0x7bf   :  { %v4871_v50 = vmul.f32 %v6082_v57, %v4679_v38  ;;  %v4691_v57 = vld [vmem:[%s9611_s6 + $0x550] sm:$0xff] }
 0x7c0   :  { %v4872_v32 = vmul.f32 %v6083_v63, %v4680_v26  ;;  %v4426_v41 = vpop.f32.mrb[160].mxu0  ;;  %v9853_v26 = vld [vmem:[#allocation24_spill] sm:$0xff] }
 0x7c1   :  { %v5822_v19 = vpack.c.bf16 %v4871_v50, %v4869_v24  ;;  %v6084_v60 = vadd.f32 %v4426_v41, %v9843_v10  ;;  %v4428_v39 = vpop.f32.mrb[161].mxu0  ;;  %v4692_v24 = vld [vmem:[%s9611_s6 + $0x558] sm:$0xff]  ;;  %v9854_v50 = vld [vmem:[#allocation25_spill] sm:$0xff] }
 0x7c2   :  { %v6085_v6 = vadd.f32 %v4428_v39, %v9844_v46  ;;  %v5820_v49 = vpack.c.bf16 %v4872_v32, %v4870_v2  ;;  %v9855_v46 = vld [vmem:[#allocation26_spill] sm:$0xff] }
 0x7c3   :  { %v4873_v31 = vmul.f32 %v6084_v60, %v4681_v58  ;;  %v9856_v58 = vld [vmem:[#allocation27_spill] sm:$0xff] }
 0x7c4   :  { %v4432_v14 = vpop.f32.mrb[162].mxu0  ;;  %5821 = vmatprep.subr.bf16.mxu1 %v5820_v49  ;;  %v4874_v15 = vmul.f32 %v6085_v6, %v4682_v53  ;;  %v4693_v53 = vld [vmem:[%s9611_s6 + $0x560] sm:$0xff] }
 0x7c5   :  { %v6086_v9 = vadd.f32 %v4432_v14, %v9845_v36  ;;  %v4434_v20 = vpop.f32.mrb[163].mxu0  ;;  %5823 = vmatpush1.bf16.msra.mxu1 %v5822_v19 }
 0x7c6   :  { %v6087_v3 = vadd.f32 %v4434_v20, %v9846_v52  ;;  %v4694_v20 = vld [vmem:[%s9611_s6 + $0x568] sm:$0xff] }
 0x7c7   :  { %v4875_v37 = vmul.f32 %v6086_v9, %v4683_v12  ;;  %v4695_v9 = vld [vmem:[%s9611_s6 + $0x570] sm:$0xff] }
 0x7c8   :  { %v4876_v8 = vmul.f32 %v6087_v3, %v4684_v23  ;;  %v4438_v7 = vpop.f32.mrb[164].mxu0  ;;  %v9857_v23 = vld [vmem:[#allocation28_spill] sm:$0xff] }
 0x7c9   :  { %v5826_v42 = vpack.c.bf16 %v4875_v37, %v4873_v31  ;;  %v6088_v4 = vadd.f32 %v4438_v7, %v9847_v16  ;;  %v4440_v0 = vpop.f32.mrb[165].mxu0  ;;  %v4696_v31 = vld [vmem:[%s9611_s6 + $0x578] sm:$0xff]  ;;  %v9858_v37 = vld [vmem:[#allocation29_spill] sm:$0xff] }
 0x7ca   :  { %v6089_v43 = vadd.f32 %v4440_v0, %v9848_v27  ;;  %v5824_v35 = vpack.c.bf16 %v4876_v8, %v4874_v15  ;;  %v9859_v27 = vld [vmem:[#allocation30_spill] sm:$0xff] }
 0x7cb   :  { %v4877_v21 = vmul.f32 %v6088_v4, %v4685_v11  ;;  %v9860_v11 = vld [vmem:[#allocation31_spill] sm:$0xff] }
 0x7cc   :  { %v4444_v13 = vpop.f32.mrb[166].mxu0  ;;  %5825 = vmatprep.subr.bf16.mxu1 %v5824_v35  ;;  %v4878_v28 = vmul.f32 %v6089_v43, %v4686_v54  ;;  %v4697_v54 = vld [vmem:[%s9611_s6 + $0x580] sm:$0xff] }
 0x7cd   :  { %v6090_v29 = vadd.f32 %v4444_v13, %v9849_v25  ;;  %v4446_v22 = vpop.f32.mrb[167].mxu0  ;;  %5827 = vmatpush1.bf16.msra.mxu1 %v5826_v42 }
 0x7ce   :  { %v6091_v61 = vadd.f32 %v4446_v22, %v9850_v55  ;;  %v4698_v22 = vld [vmem:[%s9611_s6 + $0x588] sm:$0xff] }
 0x7cf   :  { %v4879_v48 = vmul.f32 %v6090_v29, %v4687_v1  ;;  %v4699_v29 = vld [vmem:[%s9611_s6 + $0x590] sm:$0xff] }
 0x7d0   :  { %v4880_v45 = vmul.f32 %v6091_v61, %v4688_v47  ;;  %v4450_v17 = vpop.f32.mrb[168].mxu0  ;;  %v9861_v47 = vld [vmem:[#allocation32_spill] sm:$0xff] }
 0x7d1   :  { %v5830_v62 = vpack.c.bf16 %v4879_v48, %v4877_v21  ;;  %v6092_v34 = vadd.f32 %v4450_v17, %v9851_v33  ;;  %v4452_v56 = vpop.f32.mrb[169].mxu0  ;;  %v4700_v21 = vld [vmem:[%s9611_s6 + $0x598] sm:$0xff]  ;;  %v9862_v48 = vld [vmem:[#allocation33_spill] sm:$0xff] }
 0x7d2   :  { %v6093_v51 = vadd.f32 %v4452_v56, %v9852_v40  ;;  %v5828_v38 = vpack.c.bf16 %v4880_v45, %v4878_v28  ;;  %v9863_v40 = vld [vmem:[#allocation34_spill] sm:$0xff] }
 0x7d3   :  { %v4881_v32 = vmul.f32 %v6092_v34, %v4689_v44  ;;  %v9864_v44 = vld [vmem:[#allocation35_spill] sm:$0xff] }
 0x7d4   :  { %v4456_v59 = vpop.f32.mrb[170].mxu0  ;;  %5829 = vmatprep.subr.bf16.mxu1 %v5828_v38  ;;  %v4882_v19 = vmul.f32 %v6093_v51, %v4690_v18  ;;  %v4701_v18 = vld [vmem:[%s9611_s6 + $0x5a0] sm:$0xff] }
 0x7d5   :  { %v6094_v30 = vadd.f32 %v4456_v59, %v9853_v26  ;;  %v4458_v63 = vpop.f32.mrb[171].mxu0  ;;  %5831 = vmatpush1.bf16.msra.mxu1 %v5830_v62 }
 0x7d6   :  { %v6095_v2 = vadd.f32 %v4458_v63, %v9854_v50  ;;  %v4702_v63 = vld [vmem:[%s9611_s6 + $0x5a8] sm:$0xff] }
 0x7d7   :  { %v4883_v41 = vmul.f32 %v6094_v30, %v4691_v57  ;;  %v4703_v30 = vld [vmem:[%s9611_s6 + $0x5b0] sm:$0xff] }
 0x7d8   :  { %v4884_v10 = vmul.f32 %v6095_v2, %v4692_v24  ;;  %v4462_v60 = vpop.f32.mrb[172].mxu0  ;;  %v9865_v24 = vld [vmem:[#allocation36_spill] sm:$0xff] }
 0x7d9   :  { %v5834_v39 = vpack.c.bf16 %v4883_v41, %v4881_v32  ;;  %v6096_v6 = vadd.f32 %v4462_v60, %v9855_v46  ;;  %v4464_v49 = vpop.f32.mrb[173].mxu0  ;;  %v4704_v32 = vld [vmem:[%s9611_s6 + $0x5b8] sm:$0xff]  ;;  %v9866_v41 = vld [vmem:[#allocation37_spill] sm:$0xff] }
 0x7da   :  { %v6097_v14 = vadd.f32 %v4464_v49, %v9856_v58  ;;  %v5832_v12 = vpack.c.bf16 %v4884_v10, %v4882_v19  ;;  %v9867_v58 = vld [vmem:[#allocation38_spill] sm:$0xff] }
 0x7db   :  { %v4885_v8 = vmul.f32 %v6096_v6, %v4693_v53  ;;  %v9868_v53 = vld [vmem:[#allocation39_spill] sm:$0xff] }
 0x7dc   :  { %v4468_v36 = vpop.f32.mrb[174].mxu0  ;;  %5833 = vmatprep.subr.bf16.mxu1 %v5832_v12  ;;  %v4886_v42 = vmul.f32 %v6097_v14, %v4694_v20  ;;  %v4705_v20 = vld [vmem:[%s9611_s6 + $0x5c0] sm:$0xff] }
 0x7dd   :  { %v6098_v52 = vadd.f32 %v4468_v36, %v9857_v23  ;;  %v4470_v3 = vpop.f32.mrb[175].mxu0  ;;  %5835 = vmatpush1.bf16.msra.mxu1 %v5834_v39 }
 0x7de   :  { %v6099_v15 = vadd.f32 %v4470_v3, %v9858_v37  ;;  %v4706_v3 = vld [vmem:[%s9611_s6 + $0x5c8] sm:$0xff] }
 0x7df   :  { %v4887_v7 = vmul.f32 %v6098_v52, %v4695_v9  ;;  %v4707_v52 = vld [vmem:[%s9611_s6 + $0x5d0] sm:$0xff] }
 0x7e0   :  { %v4888_v16 = vmul.f32 %v6099_v15, %v4696_v31  ;;  %v4474_v4 = vpop.f32.mrb[176].mxu0  ;;  %v4708_v15 = vld [vmem:[%s9611_s6 + $0x5d8] sm:$0xff] }
 0x7e1   :  { %v5838_v0 = vpack.c.bf16 %v4887_v7, %v4885_v8  ;;  %v6100_v43 = vadd.f32 %v4474_v4, %v9859_v27  ;;  %v4476_v35 = vpop.f32.mrb[177].mxu0  ;;  %v9869_v8 = vld [vmem:[#allocation40_spill] sm:$0xff] }
 0x7e2   :  { %v6101_v13 = vadd.f32 %v4476_v35, %v9860_v11  ;;  %v5836_v1 = vpack.c.bf16 %v4888_v16, %v4886_v42  ;;  %v9870_v35 = vld [vmem:[#allocation41_spill] sm:$0xff] }
 0x7e3   :  { %v4889_v45 = vmul.f32 %v6100_v43, %v4697_v54 }
 0x7e4   :  { %v4480_v25 = vpop.f32.mrb[178].mxu0  ;;  %5837 = vmatprep.subr.bf16.mxu1 %v5836_v1  ;;  %v4890_v62 = vmul.f32 %v6101_v13, %v4698_v22  ;;  %v9871_v1 = vld [vmem:[#allocation42_spill] sm:$0xff]  ;;  %v4711_v22 = vld [vmem:[%s9611_s6 + $0x5f0] sm:$0xff] }
 0x7e5   :  { %v6102_v55 = vadd.f32 %v4480_v25, %v9861_v47  ;;  %v4482_v61 = vpop.f32.mrb[179].mxu0  ;;  %5839 = vmatpush1.bf16.msra.mxu1 %v5838_v0  ;;  %v4709_v25 = vld [vmem:[%s9611_s6 + $0x5e0] sm:$0xff]  ;;  %v4710_v47 = vld [vmem:[%s9611_s6 + $0x5e8] sm:$0xff] }
 0x7e6   :  { %v6103_v28 = vadd.f32 %v4482_v61, %v9862_v48  ;;  %v4712_v48 = vld [vmem:[%s9611_s6 + $0x5f8] sm:$0xff] }
 0x7e7   :  { %v4891_v17 = vmul.f32 %v6102_v55, %v4699_v29  ;;  %v9872_v55 = vld [vmem:[#allocation43_spill] sm:$0xff] }
 0x7e8   :  { %v4892_v33 = vmul.f32 %v6103_v28, %v4700_v21  ;;  %v4486_v34 = vpop.f32.mrb[180].mxu0  ;;  %v9873_v28 = vld [vmem:[#allocation44_spill] sm:$0xff] }
 0x7e9   :  { %v5842_v56 = vpack.c.bf16 %v4891_v17, %v4889_v45  ;;  %v6104_v51 = vadd.f32 %v4486_v34, %v9863_v40  ;;  %v4488_v38 = vpop.f32.mrb[181].mxu0 }
 0x7ea   :  { %v6105_v59 = vadd.f32 %v4488_v38, %v9864_v44  ;;  %v5840_v57 = vpack.c.bf16 %v4892_v33, %v4890_v62  ;;  %v5197_v38 = vld [vmem:[%s9613_s8 + $0x8] sm:$0xff]  ;;  %v4909_v44 = vld [vmem:[%s9612_s7 + $0x20] sm:$0xff] }
 0x7eb   :  { %v4893_v10 = vmul.f32 %v6104_v51, %v4701_v18  ;;  %v5196_v51 = vld [vmem:[%s9613_s8] sm:$0xff]  ;;  %v6645_v18 = vmov 0.0|0.0  }
 0x7ec   :  { %v4492_v26 = vpop.f32.mrb[182].mxu0  ;;  %5841 = vmatprep.subr.bf16.mxu1 %v5840_v57  ;;  %v4894_v39 = vmul.f32 %v6105_v59, %v4702_v63  ;;  %v5857_v59 = vpack.c.bf16 %v5197_v38, %v5196_v51  ;;  %v4916_v57 = vld [vmem:[%s9612_s7 + $0x58] sm:$0xff]  ;;  %v4915_v63 = vld [vmem:[%s9612_s7 + $0x50] sm:$0xff] }
 0x7ed   :  { %v6106_v50 = vadd.f32 %v4492_v26, %v9865_v24  ;;  %v4494_v2 = vpop.f32.mrb[183].mxu0  ;;  %5843 = vmatpush1.bf16.msra.mxu1 %v5842_v56  ;;  %v5198_v26 = vld [vmem:[%s9613_s8 + $0x10] sm:$0xff] }
 0x7ee   :  { %v6107_v19 = vadd.f32 %v4494_v2, %v9866_v41  ;;  %v5200_v2 = vld [vmem:[%s9613_s8 + $0x20] sm:$0xff] }
 0x7ef   :  { %v4895_v60 = vmul.f32 %v6106_v50, %v4703_v30  ;;  %v5199_v30 = vld [vmem:[%s9613_s8 + $0x18] sm:$0xff]  ;;  %v4922_v50 = vld [vmem:[%s9612_s7 + $0x88] sm:$0xff]  ;;  %v4921_v41 = vld [vmem:[%s9612_s7 + $0x80] sm:$0xff] }
 0x7f0   :  { %v4896_v46 = vmul.f32 %v6107_v19, %v4704_v32  ;;  %v4498_v6 = vpop.f32.mrb[184].mxu0  ;;  %v5860_v24 = vpack.c.bf16 %v5199_v30, %v5198_v26  ;;  %v5201_v32 = vld [vmem:[%s9613_s8 + $0x28] sm:$0xff] }
 0x7f1   :  { %v5846_v49 = vpack.c.bf16 %v4895_v60, %v4893_v10  ;;  %v6108_v14 = vadd.f32 %v4498_v6, %v9867_v58  ;;  %v4500_v12 = vpop.f32.mrb[185].mxu0  ;;  %v5863_v19 = vpack.c.bf16 %v5201_v32, %v5200_v2  ;;  %v4928_v10 = vld [vmem:[%s9612_s7 + $0xb8] sm:$0xff]  ;;  %v5202_v60 = vld [vmem:[%s9613_s8 + $0x30] sm:$0xff]  ;;  %v5205_v58 = vld [vmem:[%s9613_s8 + $0x48] sm:$0xff] }
 0x7f2   :  { %v6109_v36 = vadd.f32 %v4500_v12, %v9868_v53  ;;  %v5844_v9 = vpack.c.bf16 %v4896_v46, %v4894_v39  ;;  %v5203_v39 = vld [vmem:[%s9613_s8 + $0x38] sm:$0xff]  ;;  %v4927_v46 = vld [vmem:[%s9612_s7 + $0xb0] sm:$0xff] }
 0x7f3   :  { %v4897_v42 = vmul.f32 %v6108_v14, %v4705_v20  ;;  %v5866_v6 = vpack.c.bf16 %v5203_v39, %v5202_v60  ;;  %v5206_v12 = vld [vmem:[%s9613_s8 + $0x50] sm:$0xff]  ;;  %v5207_v53 = vld [vmem:[%s9613_s8 + $0x58] sm:$0xff]  ;;  %v5209_v20 = vld [vmem:[%s9613_s8 + $0x68] sm:$0xff] }
 0x7f4   :  { %v4504_v23 = vpop.f32.mrb[186].mxu0  ;;  %5845 = vmatprep.subr.bf16.mxu1 %v5844_v9  ;;  %v4898_v4 = vmul.f32 %v6109_v36, %v4706_v3  ;;  %v5872_v36 = vpack.c.bf16 %v5207_v53, %v5206_v12  ;;  %v5208_v9 = vld [vmem:[%s9613_s8 + $0x60] sm:$0xff]  ;;  %v5211_v3 = vld [vmem:[%s9613_s8 + $0x78] sm:$0xff] }
 0x7f5   :  { %v6110_v31 = vadd.f32 %v4504_v23, %v9088_v5  ;;  %v4506_v37 = vpop.f32.mrb[187].mxu0  ;;  %5847 = vmatpush1.bf16.msra.mxu1 %v5846_v49  ;;  %v5204_v49 = vld [vmem:[%s9613_s8 + $0x40] sm:$0xff]  ;;  %v5875_v23 = vpack.c.bf16 %v5209_v20, %v5208_v9 }
 0x7f6   :  { %v6111_v7 = vadd.f32 %v4506_v37, %v9869_v8  ;;  %v5869_v14 = vpack.c.bf16 %v5205_v58, %v5204_v49  ;;  %v5212_v37 = vld [vmem:[%s9613_s8 + $0x80] sm:$0xff] }
 0x7f7   :  { %v4899_v16 = vmul.f32 %v6110_v31, %v4707_v52  ;;  %v5210_v52 = vld [vmem:[%s9613_s8 + $0x70] sm:$0xff] }
 0x7f8   :  { %v4900_v0 = vmul.f32 %v6111_v7, %v4708_v15  ;;  %v4510_v27 = vpop.f32.mrb[188].mxu0  ;;  %v5878_v31 = vpack.c.bf16 %v5211_v3, %v5210_v52  ;;  %v5213_v15 = vld [vmem:[%s9613_s8 + $0x88] sm:$0xff]  ;;  %v5214_v7 = vld [vmem:[%s9613_s8 + $0x90] sm:$0xff] }
 0x7f9   :  { %v5850_v43 = vpack.c.bf16 %v4899_v16, %v4897_v42  ;;  %v6112_v11 = vadd.f32 %v4510_v27, %v9870_v35  ;;  %v4512_v13 = vpop.f32.mrb[189].mxu0  ;;  %v5881_v8 = vpack.c.bf16 %v5213_v15, %v5212_v37  ;;  %v5215_v42 = vld [vmem:[%s9613_s8 + $0x98] sm:$0xff] }
 0x7fa   :  { %v6113_v54 = vadd.f32 %v4512_v13, %v9871_v1  ;;  %v5848_v5 = vpack.c.bf16 %v4900_v0, %v4898_v4  ;;  %v5884_v16 = vpack.c.bf16 %v5215_v42, %v5214_v7  ;;  %v5216_v4 = vld [vmem:[%s9613_s8 + $0xa0] sm:$0xff]  ;;  %v5217_v0 = vld [vmem:[%s9613_s8 + $0xa8] sm:$0xff]  ;;  %v5219_v35 = vld [vmem:[%s9613_s8 + $0xb8] sm:$0xff]  ;;  %v9874_v13 = vmov 0.0  }
 0x7fb   :  { %v4901_v17 = vmul.f32 %v6112_v11, %v4709_v25  ;;  %v5887_v27 = vpack.c.bf16 %v5217_v0, %v5216_v4  ;;  %v5220_v1 = vld [vmem:[%s9613_s8 + $0xc0] sm:$0xff] }
 0x7fc   :  { %v4516_v29 = vpop.f32.mrb[190].mxu0  ;;  %5849 = vmatprep.subr.bf16.mxu1 %v5848_v5  ;;  %v4902_v33 = vmul.f32 %v6113_v54, %v4710_v47 }
 0x7fd   :  { %v6114_v61 = vadd.f32 %v4516_v29, %v9872_v55  ;;  %v4518_v21 = vpop.f32.mrb[191].mxu0  ;;  %5851 = vmatpush1.bf16.msra.mxu1 %v5850_v43  ;;  %v5218_v43 = vld [vmem:[%s9613_s8 + $0xb0] sm:$0xff] }
 0x7fe   :  { %v6115_v45 = vadd.f32 %v4518_v21, %v9873_v28  ;;  %v5890_v11 = vpack.c.bf16 %v5219_v35, %v5218_v43  ;;  %v5363_v21 = vld [vmem:[%s9614_s9] ss:$0 sm:$0xff] }
 0x7ff   :  { %v4903_v62 = vmul.f32 %v6114_v61, %v4711_v22 }
 0x800   :  { %v4904_v34 = vmul.f32 %v6115_v45, %v4712_v48 }
 0x801   :  { %v5854_v56 = vpack.c.bf16 %v4903_v62, %v4901_v17 }
 0x802   :  { %v5852_v40 = vpack.c.bf16 %v4904_v34, %v4902_v33 }
 0x804   :  { %5853 = vmatprep.subr.bf16.mxu1 %v5852_v40 }
 0x805   :  { %5855 = vmatpush1.bf16.msra.mxu1 %v5854_v56 }
 0x806   :  { %5856 = vmatprep.subr.bf16.mxu1 %v6645_v18 }
 0x808   :  { %5172 = vmatmul.mubr.f32.vlgmr.msra.gmra.mrb[192].mxu1 %v4909_v44 }
 0x809   :  { %5177 = vmatprep.mubr.f32.mxu1 %v4916_v57  ;;  %5858 = vmatpush1.bf16.msra.mxu1 %v5857_v59 }
 0x80a   :  { %5859 = vmatprep.subr.bf16.mxu1 %v6645_v18 }
 0x80c   :  { %5178 = vmatmul.mubr.f32.gmra.mrb[194].mxu1 %v4915_v63 }
 0x80d   :  { %5183 = vmatprep.mubr.f32.mxu1 %v4922_v50  ;;  %5861 = vmatpush1.bf16.msra.mxu1 %v5860_v24 }
 0x80e   :  { %5862 = vmatprep.subr.bf16.mxu1 %v6645_v18 }
 0x810   :  { %5184 = vmatmul.mubr.f32.gmra.mrb[196].mxu1 %v4921_v41 }
 0x811   :  { %5189 = vmatprep.mubr.f32.mxu1 %v4928_v10  ;;  %5864 = vmatpush1.bf16.msra.mxu1 %v5863_v19 }
 0x812   :  { %5865 = vmatprep.subr.bf16.mxu1 %v6645_v18 }
 0x814   :  { %5190 = vmatmul.mubr.f32.gmra.mrb[198].mxu1 %v4927_v46 }
 0x815   :  { %5867 = vmatpush1.bf16.msra.mxu1 %v5866_v6 }
 0x816   :  { %5868 = vmatprep.subr.bf16.mxu1 %v6645_v18 }
 0x819   :  { %5870 = vmatpush1.bf16.msra.mxu1 %v5869_v14 }
 0x81a   :  { %5871 = vmatprep.subr.bf16.mxu1 %v6645_v18 }
 0x81d   :  { %5873 = vmatpush1.bf16.msra.mxu1 %v5872_v36 }
 0x81e   :  { %5874 = vmatprep.subr.bf16.mxu1 %v6645_v18 }
 0x821   :  { %5876 = vmatpush1.bf16.msra.mxu1 %v5875_v23 }
 0x822   :  { %5877 = vmatprep.subr.bf16.mxu1 %v6645_v18 }
 0x825   :  { %5879 = vmatpush1.bf16.msra.mxu1 %v5878_v31 }
 0x826   :  { %5880 = vmatprep.subr.bf16.mxu1 %v6645_v18 }
 0x829   :  { %5882 = vmatpush1.bf16.msra.mxu1 %v5881_v8 }
 0x82a   :  { %5883 = vmatprep.subr.bf16.mxu1 %v6645_v18 }
 0x82d   :  { %5885 = vmatpush1.bf16.msra.mxu1 %v5884_v16 }
 0x82e   :  { %5886 = vmatprep.subr.bf16.mxu1 %v6645_v18 }
 0x831   :  { %5888 = vmatpush1.bf16.msra.mxu1 %v5887_v27 }
 0x832   :  { %5889 = vmatprep.subr.bf16.mxu1 %v6645_v18 }
 0x835   :  { %5891 = vmatpush1.bf16.msra.mxu1 %v5890_v11 }
 0x836   :  { %5289 = vmatprep.subr.mxu1 %v9874_v13 }
 0x839   :  { %5290 = vmatpush1.msra.mxu1 %v5220_v1 }
 0x8db   :  { %v5173_v54 = vpop.f32.mrb[192].mxu1 }
 0x8dc   :  { %v5175_v5 = vpop.f32.mrb[193].mxu1 }
 0x8dd   :  { %5364 = vmatprep.mubr.msk.f32.mxu1 %vm106_vm5, %v5175_v5 }
 0x8de   :  { %5306 = vmatmul.mubr.f32.vlgmr.msra.gmra.mrb[200].mxu1 %v5173_v54 }
 0x8df   :  { %v5179_v25 = vpop.f32.mrb[194].mxu1 }
 0x8e0   :  { %v5181_v29 = vpop.f32.mrb[195].mxu1 }
 0x8e1   :  { %5365 = vmatprep.mubr.msk.f32.mxu1 %vm106_vm5, %v5181_v29 }
 0x8e2   :  { %5311 = vmatmul.mubr.f32.gmra.mrb[202].mxu1 %v5179_v25 }
 0x8e3   :  { %v5185_v22 = vpop.f32.mrb[196].mxu1 }
 0x8e4   :  { %v5187_v47 = vpop.f32.mrb[197].mxu1 }
 0x8e5   :  { %5366 = vmatprep.mubr.msk.f32.mxu1 %vm106_vm5, %v5187_v47 }
 0x8e6   :  { %5316 = vmatmul.mubr.f32.gmra.mrb[204].mxu1 %v5185_v22 }
 0x8e7   :  { %v5191_v55 = vpop.f32.mrb[198].mxu1 }
 0x8e8   :  { %v5193_v61 = vpop.f32.mrb[199].mxu1 }
 0x8e9   :  { %5367 = vmatprep.mubr.msk.f32.mxu1 %vm106_vm5, %v5193_v61 }
 0x8ea   :  { %5321 = vmatmul.mubr.f32.gmra.mrb[206].mxu1 %v5191_v55 }
 0x9b1   :  { %v5307_v48 = vpop.f32.mrb[200].mxu1 }
 0x9b2   :  { %v5308_v28 = vadd.f32 %v5363_v21, %v5307_v48  ;;  %v5309_v45 = vpop.f32.mrb[201].mxu1 }
 0x9b4   :  { %5327 = vst.msk [vmem:[%s9615_s10] sm:$0xff] %vm5326_vm10, %v5308_v28 }
 0x9b5   :  { %v5312_v17 = vpop.f32.mrb[202].mxu1 }
 0x9b6   :  { %v5313_v62 = vadd.f32 %v5363_v21, %v5312_v17  ;;  %v5314_v33 = vpop.f32.mrb[203].mxu1 }
 0x9b8   :  { %5328 = vst.msk [vmem:[%s9615_s10 + $0x8] sm:$0xff] %vm5326_vm10, %v5313_v62 }
 0x9b9   :  { %v5317_v34 = vpop.f32.mrb[204].mxu1 }
 0x9ba   :  { %v5318_v56 = vadd.f32 %v5363_v21, %v5317_v34  ;;  %v5319_v40 = vpop.f32.mrb[205].mxu1 }
 0x9bc   :  { %5329 = vst.msk [vmem:[%s9615_s10 + $0x10] sm:$0xff] %vm5326_vm10, %v5318_v56 }
 0x9bd   :  { %v5322_v51 = vpop.f32.mrb[206].mxu1 }
 0x9be   :  { %v5323_v38 = vadd.f32 %v5363_v21, %v5322_v51  ;;  %v5324_v44 = vpop.f32.mrb[207].mxu1 }
 0x9c0   :  { %5330 = vst.msk [vmem:[%s9615_s10 + $0x18] sm:$0xff] %vm5326_vm10, %v5323_v38 }

</bundles_post_ra>
